<compile_context>
chip_gen: v7x
topology: tpu7x:2x2x1
jax: 0.10.0
libtpu: 0.0.40
codegen_flags: <defaults>
</compile_context>

<pallas_src>
import jax
import jax.numpy as jnp
from jax import lax
from jax.experimental import pallas as pl
from jax.experimental.pallas import tpu as pltpu

IMAGENET_MEAN = (0.485, 0.456, 0.406)
IMAGENET_STD = (0.229, 0.224, 0.225)

VGG_INDICES = (2, 4)      # args.vgg_indices
LAMBDA_VGG = (1.0, 0.5)   # args.lambda_vgg

_K1 = 32                  # 3x3x3 = 27 im2col taps, zero-padded to 32
_COUT = 64                # VGG19 conv1_1 / conv1_2 output channels


def _pick_strip_rows(H, W, target_m=256):
    """Rows per strip so each branch contributes >= ~256 matmul rows (M)."""
    r = max(1, min(H, max(1, target_m // max(W, 1))))
    while H % r:
        r -= 1
    return r


def _mo(x, m):
    """pl.multiple_of hint, applied only when the claimed multiple is 8-aligned."""
    return pl.multiple_of(x, m) if m % 8 == 0 else x


# ----------------------------- Pallas kernel -------------------------------

def _make_fused_vgg_kernel(H, W, R):
    """Fused conv1_1+ReLU -> conv1_2+ReLU for an (x, y) image pair, with the
    per-image L1 partial sums of both feature levels as the only outputs."""
    RW = R * W
    n_strips = H // R
    # Flattened, row-padded feature scratch: pixel p = pr*W + pc, padded row
    # pr in [0, H+4); image row r is stored at pr = r + 2; rows {0,1,H+2,H+3}=0.
    n_pix = (H + 4) * W
    slab_len = (R + 4) * W    # padded rows r0 .. r0+R+3 for one output strip

    def kernel(xcol_ref, ycol_ref, w1_ref, b1_ref, w2_ref, b2_ref,
               l1_ref, l2_ref, feat_ref):
        # ---- hoisted, grid-resident operands (weights are DMA'd once) ----
        w1m = w1_ref[...]                                         # (32, 64)  bf16
        w2m = w2_ref[...]                                         # (576, 64) bf16
        bias1 = jnp.broadcast_to(b1_ref[...], (2 * RW, _COUT))    # f32, hoisted
        bias2 = jnp.broadcast_to(b2_ref[...], (2 * RW, _COUT))

        # Boundary-column masks for the dx=0 / dx=2 conv1_2 taps (hoisted).
        col_id = lax.broadcasted_iota(jnp.int32, (RW, 1), 0) % W
        not_left = col_id > 0
        not_right = col_id < (W - 1)

        # Zero the padded feature scratch every grid step (cheap VMEM memset);
        # keeps the kernel independent of scratch persistence, so the image
        # axis can safely be "parallel" on megacore parts.
        feat_ref[...] = jnp.zeros(feat_ref.shape, feat_ref.dtype)

        # -------- stage 1: conv1_1 + ReLU, x & y stacked along M ------------
        def conv1_strip(s, acc):
            off_in = _mo(s * RW, RW)
            xs = xcol_ref[0, pl.ds(off_in, RW), :]                # (RW, 32) bf16
            ys = ycol_ref[0, pl.ds(off_in, RW), :]
            lhs = jnp.concatenate([xs, ys], axis=0)               # (2RW, 32)
            act = jnp.dot(lhs, w1m, preferred_element_type=jnp.float32)
            act = jnp.maximum(act + bias1, 0.0)                   # (2RW, 64) f32
            fx, fy = act[:RW], act[RW:]
            # vector L1 accumulator; cross-lane reduce only once at the end
            acc = acc + jnp.sum(jnp.abs(fx - fy), axis=0, keepdims=True)
            # contiguous feature stores into the VMEM scratch (no reshapes)
            off_st = _mo((2 + s * R) * W, W)
            feat_ref[0, pl.ds(off_st, RW), :] = fx.astype(feat_ref.dtype)
            feat_ref[1, pl.ds(off_st, RW), :] = fy.astype(feat_ref.dtype)
            return acc

        acc1 = lax.fori_loop(0, n_strips, conv1_strip,
                             jnp.zeros((1, _COUT), jnp.float32))

        # -------- stage 2: conv1_2 + ReLU on the VMEM-resident features -----
        # Fused-K form: one (2*R*W, 576) @ (576, 64) matmul per strip.
        # (Per-tap 9x (M,64)@(64,64) accumulation is the alternative form; the
        #  fused-K LHS keeps MXU contraction depth high and issues 1 matmul.)
        def conv2_strip(s, acc):
            slab_off = _mo(s * RW, RW)

            def branch_patches(b):
                slab = feat_ref[b, pl.ds(slab_off, slab_len), :]  # (slab_len, 64)
                taps = []
                for dy in range(3):
                    for dx in range(3):
                        q0 = (dy + 1) * W + dx - 1                # static offset
                        tap = slab[q0:q0 + RW, :]                 # (RW, 64)
                        if dx == 0:       # left image border -> zero column
                            tap = jnp.where(not_left, tap, 0.0)
                        elif dx == 2:     # right image border -> zero column
                            tap = jnp.where(not_right, tap, 0.0)
                        taps.append(tap)
                return jnp.concatenate(taps, axis=-1)             # (RW, 576)

            lhs = jnp.concatenate([branch_patches(0), branch_patches(1)], axis=0)
            act = jnp.dot(lhs, w2m, preferred_element_type=jnp.float32)
            act = jnp.maximum(act + bias2, 0.0)                   # (2RW, 64) f32
            fx, fy = act[:RW], act[RW:]
            return acc + jnp.sum(jnp.abs(fx - fy), axis=0, keepdims=True)

        acc2 = lax.fori_loop(0, n_strips, conv2_strip,
                             jnp.zeros((1, _COUT), jnp.float32))

        l1_ref[...] = jnp.sum(acc1).reshape(1, 1, 1)
        l2_ref[...] = jnp.sum(acc2).reshape(1, 1, 1)

    return kernel


# ------------------------------ wrapper -------------------------------------

def make_vgg_params(key):
    """VGG19.features[0..3]: Conv2d(3,64,3,p=1), ReLU, Conv2d(64,64,3,p=1), ReLU."""
    k1, k2, k3, k4 = jax.random.split(key, 4)
    w1 = jax.random.normal(k1, (3, 3, 3, _COUT), jnp.float32) * 0.10   # HWIO
    b1 = jax.random.normal(k2, (_COUT,), jnp.float32) * 0.10
    w2 = jax.random.normal(k3, (3, 3, _COUT, _COUT), jnp.float32) * 0.05
    b2 = jax.random.normal(k4, (_COUT,), jnp.float32) * 0.05
    return ((w1, b1), (w2, b2))


def _im2col_3x3(t_nhwc, H, W):
    """(n,H,W,3) -> (n, H*W, 32) bf16; 27 (dy,dx,cin)-major taps, K padded to 32."""
    n = t_nhwc.shape[0]
    tp = jnp.pad(t_nhwc, ((0, 0), (1, 1), (1, 1), (0, 0)))
    taps = [tp[:, dy:dy + H, dx:dx + W, :] for dy in range(3) for dx in range(3)]
    col = jnp.concatenate(taps, axis=-1)                           # (n, H, W, 27)
    col = jnp.pad(col, ((0, 0), (0, 0), (0, 0), (0, _K1 - 27)))
    return col.reshape(n, H * W, _K1).astype(jnp.bfloat16)


def vgg_loss(x_nchw, y_nchw, params, lambda_vgg=LAMBDA_VGG):
    n, c, h, w = x_nchw.shape
    assert c == 3, "VGG expects 3-channel input"
    (w1, b1), (w2, b2) = params

    mean = jnp.asarray(IMAGENET_MEAN, jnp.float32)
    inv_std = 1.0 / jnp.asarray(IMAGENET_STD, jnp.float32)

    # NCHW -> NHWC, subtract ImageNet mean (per-channel 1/std is folded into the
    # conv1 weights; exact under zero padding), then an XLA-side 3x3 im2col so
    # stage 1 of the kernel is a plain lane-dense matmul (no in-kernel gather).
    def prep(t):
        t = jnp.transpose(t, (0, 2, 3, 1)).astype(jnp.float32) - mean
        return _im2col_3x3(t, h, w)

    xcol = prep(x_nchw)
    ycol = prep(y_nchw)

    w1_eff = (w1 * inv_std[None, None, :, None]).reshape(27, _COUT)
    w1_eff = jnp.pad(w1_eff, ((0, _K1 - 27), (0, 0))).astype(jnp.bfloat16)
    b1_eff = b1.reshape(1, _COUT).astype(jnp.float32)
    w2_eff = w2.reshape(9 * _COUT, _COUT).astype(jnp.bfloat16)
    b2_eff = b2.reshape(1, _COUT).astype(jnp.float32)

    R = _pick_strip_rows(h, w)
    kernel = _make_fused_vgg_kernel(h, w, R)

    cost = pl.CostEstimate(
        flops=4 * n * h * w * _COUT * (_K1 + 9 * _COUT),   # 2 branches, 2*M*K*N
        transcendentals=0,
        bytes_accessed=int(xcol.size * 2 + ycol.size * 2 + w1_eff.size * 2
                           + w2_eff.size * 2 + (b1_eff.size + b2_eff.size) * 4
                           + 2 * n * 4),
    )

    l1p, l2p = pl.pallas_call(
        kernel,
        out_shape=(jax.ShapeDtypeStruct((n, 1, 1), jnp.float32),
                   jax.ShapeDtypeStruct((n, 1, 1), jnp.float32)),
        grid_spec=pltpu.PrefetchScalarGridSpec(
            num_scalar_prefetch=0,
            grid=(n,),
            in_specs=[
                pl.BlockSpec((1, h * w, _K1), lambda i: (i, 0, 0)),
                pl.BlockSpec((1, h * w, _K1), lambda i: (i, 0, 0)),
                pl.BlockSpec((_K1, _COUT), lambda i: (0, 0)),        # resident
                pl.BlockSpec((1, _COUT), lambda i: (0, 0)),          # resident
                pl.BlockSpec((9 * _COUT, _COUT), lambda i: (0, 0)),  # resident
                pl.BlockSpec((1, _COUT), lambda i: (0, 0)),          # resident
            ],
            out_specs=(pl.BlockSpec((1, 1, 1), lambda i: (i, 0, 0)),
                       pl.BlockSpec((1, 1, 1), lambda i: (i, 0, 0))),
            scratch_shapes=[pltpu.VMEM((2, (h + 4) * w, _COUT), jnp.bfloat16)],
        ),
        compiler_params=pltpu.CompilerParams(
            dimension_semantics=("parallel",),
            vmem_limit_bytes=48 * 1024 * 1024,   # also fits v7x's 64 MiB VMEM
        ),
        cost_estimate=cost,
    )(xcol, ycol, w1_eff, b1_eff, w2_eff, b2_eff)

    # F.l1_loss(reduction='mean') for both levels: same element count n*64*h*w.
    count = jnp.float32(n * h * w * _COUT)
    return (lambda_vgg[0] * jnp.sum(l1p) + lambda_vgg[1] * jnp.sum(l2p)) / count


# ------------------------------ reference -----------------------------------

def vgg_loss_reference(x_nchw, y_nchw, params, lambda_vgg=LAMBDA_VGG):
    """Pure-JAX f32 reference matching the PyTorch VGGLoss forward."""
    (w1, b1), (w2, b2) = params
    mean = jnp.asarray(IMAGENET_MEAN, jnp.float32)
    std = jnp.asarray(IMAGENET_STD, jnp.float32)
    dn = ('NHWC', 'HWIO', 'NHWC')

    def features(t):
        t = (jnp.transpose(t, (0, 2, 3, 1)).astype(jnp.float32) - mean) / std
        f1 = jnp.maximum(lax.conv_general_dilated(
            t, w1, (1, 1), 'SAME', dimension_numbers=dn) + b1, 0.0)
        f2 = jnp.maximum(lax.conv_general_dilated(
            f1, w2, (1, 1), 'SAME', dimension_numbers=dn) + b2, 0.0)
        return f1, f2

    fx1, fx2 = features(x_nchw)
    fy1, fy2 = features(y_nchw)
    return (lambda_vgg[0] * jnp.mean(jnp.abs(fx1 - fy1))
            + lambda_vgg[1] * jnp.mean(jnp.abs(fx2 - fy2)))


if __name__ == "__main__":
    key = jax.random.PRNGKey(0)
    kx, ky, kp = jax.random.split(key, 3)
    n, c, h, w = 2, 3, 16, 16   # VGG requires 3-channel images
    x = jax.random.uniform(kx, (n, c, h, w), jnp.float32)
    y = jax.random.uniform(ky, (n, c, h, w), jnp.float32)
    params = make_vgg_params(kp)

    loss_fn = jax.jit(lambda a, b: vgg_loss(a, b, params, LAMBDA_VGG))
    loss = loss_fn(x, y)
    jax.block_until_ready(loss)

    ref = vgg_loss_reference(x, y, params, LAMBDA_VGG)
    rel = abs(float(loss) - float(ref)) / max(abs(float(ref)), 1e-6)
    assert rel < 5e-2, f"mismatch: pallas={float(loss)} ref={float(ref)} rel={rel}"

    print("KERNEL_OK")
</pallas_src>

<mosaic_0001>
module attributes {stable_mosaic.version = 11 : i64} {
  func.func @kernel(%arg0: i32, %arg1: memref<1x256x32xbf16, #tpu.memory_space<vmem>>, %arg2: memref<1x256x32xbf16, #tpu.memory_space<vmem>>, %arg3: memref<32x64xbf16, #tpu.memory_space<vmem>>, %arg4: memref<1x64xf32, #tpu.memory_space<vmem>>, %arg5: memref<576x64xbf16, #tpu.memory_space<vmem>>, %arg6: memref<1x64xf32, #tpu.memory_space<vmem>>, %arg7: memref<1x1x1xf32, #tpu.memory_space<vmem>>, %arg8: memref<1x1x1xf32, #tpu.memory_space<vmem>>, %arg9: memref<2x320x64xbf16, #tpu.memory_space<vmem>>) attributes {dimension_semantics = [#tpu.dimension_semantics<parallel>], iteration_bounds = array<i64: 2>, scalar_prefetch = 0 : i64, scratch_operands = 1 : i64, tpu.core_type = #tpu.core_type<tc>, window_params = [{transform_indices = @transform_0, window_bounds = array<i64: 1, 256, 32>}, {transform_indices = @transform_1, window_bounds = array<i64: 1, 256, 32>}, {pipeline_mode = #tpu.pipeline_mode<synchronous>, transform_indices = @transform_2, window_bounds = array<i64: 32, 64>}, {pipeline_mode = #tpu.pipeline_mode<synchronous>, transform_indices = @transform_3, window_bounds = array<i64: 1, 64>}, {pipeline_mode = #tpu.pipeline_mode<synchronous>, transform_indices = @transform_4, window_bounds = array<i64: 576, 64>}, {pipeline_mode = #tpu.pipeline_mode<synchronous>, transform_indices = @transform_5, window_bounds = array<i64: 1, 64>}, {transform_indices = @transform_6, window_bounds = array<i64: 1, 1, 1>}, {transform_indices = @transform_7, window_bounds = array<i64: 1, 1, 1>}]} {
    %c0 = arith.constant 0 : index
    %c0_0 = arith.constant 0 : index
    %0 = vector.load %arg3[%c0, %c0_0] : memref<32x64xbf16, #tpu.memory_space<vmem>>, vector<32x64xbf16>
    %c0_1 = arith.constant 0 : index
    %c0_2 = arith.constant 0 : index
    %1 = vector.load %arg5[%c0_1, %c0_2] : memref<576x64xbf16, #tpu.memory_space<vmem>>, vector<576x64xbf16>
    %c0_3 = arith.constant 0 : index
    %c0_4 = arith.constant 0 : index
    %2 = vector.load %arg4[%c0_3, %c0_4] : memref<1x64xf32, #tpu.memory_space<vmem>>, vector<1x64xf32>
    %3 = vector.shape_cast %2 : vector<1x64xf32> to vector<1x64xf32>
    %4 = vector.broadcast %3 : vector<1x64xf32> to vector<512x64xf32>
    %c0_5 = arith.constant 0 : index
    %c0_6 = arith.constant 0 : index
    %5 = vector.load %arg6[%c0_5, %c0_6] : memref<1x64xf32, #tpu.memory_space<vmem>>, vector<1x64xf32>
    %6 = vector.shape_cast %5 : vector<1x64xf32> to vector<1x64xf32>
    %7 = vector.broadcast %6 : vector<1x64xf32> to vector<512x64xf32>
    %8 = tpu.iota {dimensions = array<i32: 0>} : vector<256x1xi32>
    %c16_i32 = arith.constant 16 : i32
    %c0_i32 = arith.constant 0 : i32
    %9 = arith.cmpi eq, %c16_i32, %c0_i32 : i32
    %c1_i32 = arith.constant 1 : i32
    %10 = arith.select %9, %c1_i32, %c16_i32 : i32
    %11 = vector.broadcast %10 : i32 to vector<256x1xi32>
    %12 = arith.remsi %8, %11 : vector<256x1xi32>
    %c0_i32_7 = arith.constant 0 : i32
    %13 = vector.broadcast %c0_i32_7 : i32 to vector<256x1xi32>
    %14 = arith.cmpi ne, %12, %13 : vector<256x1xi32>
    %c0_i32_8 = arith.constant 0 : i32
    %15 = vector.broadcast %c0_i32_8 : i32 to vector<256x1xi32>
    %16 = arith.cmpi slt, %12, %15 : vector<256x1xi32>
    %c0_i32_9 = arith.constant 0 : i32
    %17 = arith.cmpi slt, %10, %c0_i32_9 : i32
    %18 = vector.broadcast %17 : i1 to vector<256x1xi1>
    %19 = vector.broadcast %18 : vector<256x1xi1> to vector<256x1xi1>
    %20 = arith.xori %16, %19 : vector<256x1xi1>
    %21 = arith.andi %20, %14 : vector<256x1xi1>
    %22 = vector.broadcast %10 : i32 to vector<256x1xi32>
    %23 = arith.addi %12, %22 : vector<256x1xi32>
    %24 = arith.select %21, %23, %12 : vector<256x1xi1>, vector<256x1xi32>
    %c0_i32_10 = arith.constant 0 : i32
    %25 = vector.broadcast %c0_i32_10 : i32 to vector<256x1xi32>
    %26 = arith.cmpi sgt, %24, %25 : vector<256x1xi32>
    %c15_i32 = arith.constant 15 : i32
    %27 = vector.broadcast %c15_i32 : i32 to vector<256x1xi32>
    %28 = arith.cmpi slt, %24, %27 : vector<256x1xi32>
    %cst = arith.constant 0.000000e+00 : bf16
    %29 = vector.broadcast %cst : bf16 to vector<2x320x64xbf16>
    %c0_11 = arith.constant 0 : index
    %c0_12 = arith.constant 0 : index
    %c0_13 = arith.constant 0 : index
    %30 = vector.load %arg9[%c0_11, %c0_12, %c0_13] : memref<2x320x64xbf16, #tpu.memory_space<vmem>>, vector<2x320x64xbf16>
    tpu.vector_store %arg9[%c0_11, %c0_12, %c0_13], %29 {strides = array<i32>} : memref<2x320x64xbf16, #tpu.memory_space<vmem>>, vector<2x320x64xbf16>,
    %cst_14 = arith.constant 0.000000e+00 : f32
    %31 = vector.broadcast %cst_14 : f32 to vector<1x64xf32>
    %c0_i32_15 = arith.constant 0 : i32
    %c256_i32 = arith.constant 256 : i32
    %32 = arith.muli %c0_i32_15, %c256_i32 : i32
    %33 = tpu.assume_multiple %32, 256 : i32
    %c0_16 = arith.constant 0 : index
    %34 = arith.index_cast %33 : i32 to index
    %c0_17 = arith.constant 0 : index
    %35 = vector.load %arg1[%c0_16, %34, %c0_17] : memref<1x256x32xbf16, #tpu.memory_space<vmem>>, vector<1x256x32xbf16>
    %36 = vector.shape_cast %35 : vector<1x256x32xbf16> to vector<256x32xbf16>
    %c0_18 = arith.constant 0 : index
    %37 = arith.index_cast %33 : i32 to index
    %c0_19 = arith.constant 0 : index
    %38 = vector.load %arg2[%c0_18, %37, %c0_19] : memref<1x256x32xbf16, #tpu.memory_space<vmem>>, vector<1x256x32xbf16>
    %39 = vector.shape_cast %38 : vector<1x256x32xbf16> to vector<256x32xbf16>
    %40 = tpu.concatenate %36, %39 in 0 : vector<256x32xbf16>, vector<256x32xbf16> -> vector<512x32xbf16>
    %cst_20 = arith.constant dense<0.000000e+00> : vector<512x64xf32>
    %41 = tpu.matmul %40, %0, %cst_20 {dimension_numbers = #tpu.dot_dimension_numbers<[1], [0], [0], [1], [0, 0, 1, 1], [], []>} : vector<512x32xbf16>, vector<32x64xbf16>, vector<512x64xf32> -> vector<512x64xf32>
    %42 = arith.addf %41, %4 : vector<512x64xf32>
    %cst_21 = arith.constant 0.000000e+00 : f32
    %43 = vector.broadcast %cst_21 : f32 to vector<512x64xf32>
    %44 = arith.maximumf %42, %43 : vector<512x64xf32>
    %45 = vector.extract_strided_slice %44 {offsets = [0, 0], sizes = [256, 64], strides = [1, 1]} : vector<512x64xf32> to vector<256x64xf32>
    %46 = vector.extract_strided_slice %44 {offsets = [256, 0], sizes = [256, 64], strides = [1, 1]} : vector<512x64xf32> to vector<256x64xf32>
    %47 = arith.subf %45, %46 : vector<256x64xf32>
    %48 = math.absf %47 : vector<256x64xf32>
    %cst_22 = arith.constant dense<0.000000e+00> : vector<64xf32>
    %49 = vector.multi_reduction <add>, %48, %cst_22 [0] : vector<256x64xf32> to vector<64xf32>
    %50 = vector.shape_cast %49 : vector<64xf32> to vector<1x64xf32>
    %51 = arith.addf %31, %50 : vector<1x64xf32>
    %c16_i32_23 = arith.constant 16 : i32
    %52 = arith.muli %c0_i32_15, %c16_i32_23 : i32
    %c2_i32 = arith.constant 2 : i32
    %53 = arith.addi %c2_i32, %52 : i32
    %c16_i32_24 = arith.constant 16 : i32
    %54 = arith.muli %53, %c16_i32_24 : i32
    %55 = tpu.assume_multiple %54, 16 : i32
    %56 = arith.truncf %45 : vector<256x64xf32> to vector<256x64xbf16>
    %c0_25 = arith.constant 0 : index
    %57 = arith.index_cast %55 : i32 to index
    %c0_26 = arith.constant 0 : index
    %58 = vector.load %arg9[%c0_25, %57, %c0_26] : memref<2x320x64xbf16, #tpu.memory_space<vmem>>, vector<1x256x64xbf16>
    %59 = vector.shape_cast %58 : vector<1x256x64xbf16> to vector<256x64xbf16>
    %60 = vector.shape_cast %56 : vector<256x64xbf16> to vector<1x256x64xbf16>
    tpu.vector_store %arg9[%c0_25, %57, %c0_26], %60 {strides = array<i32>} : memref<2x320x64xbf16, #tpu.memory_space<vmem>>, vector<1x256x64xbf16>,
    %61 = arith.truncf %46 : vector<256x64xf32> to vector<256x64xbf16>
    %c1 = arith.constant 1 : index
    %62 = arith.index_cast %55 : i32 to index
    %c0_27 = arith.constant 0 : index
    %63 = vector.load %arg9[%c1, %62, %c0_27] : memref<2x320x64xbf16, #tpu.memory_space<vmem>>, vector<1x256x64xbf16>
    %64 = vector.shape_cast %63 : vector<1x256x64xbf16> to vector<256x64xbf16>
    %65 = vector.shape_cast %61 : vector<256x64xbf16> to vector<1x256x64xbf16>
    tpu.vector_store %arg9[%c1, %62, %c0_27], %65 {strides = array<i32>} : memref<2x320x64xbf16, #tpu.memory_space<vmem>>, vector<1x256x64xbf16>,
    %c1_i32_28 = arith.constant 1 : i32
    %cst_29 = arith.constant 0.000000e+00 : f32
    %66 = vector.broadcast %cst_29 : f32 to vector<1x64xf32>
    %c0_i32_30 = arith.constant 0 : i32
    %c256_i32_31 = arith.constant 256 : i32
    %67 = arith.muli %c0_i32_30, %c256_i32_31 : i32
    %68 = tpu.assume_multiple %67, 256 : i32
    %c0_32 = arith.constant 0 : index
    %69 = arith.index_cast %68 : i32 to index
    %c0_33 = arith.constant 0 : index
    %70 = vector.load %arg9[%c0_32, %69, %c0_33] : memref<2x320x64xbf16, #tpu.memory_space<vmem>>, vector<1x320x64xbf16>
    %71 = vector.shape_cast %70 : vector<1x320x64xbf16> to vector<320x64xbf16>
    %72 = vector.extract_strided_slice %71 {offsets = [15, 0], sizes = [256, 64], strides = [1, 1]} : vector<320x64xbf16> to vector<256x64xbf16>
    %cst_34 = arith.constant 0.000000e+00 : f32
    %73 = arith.truncf %cst_34 : f32 to bf16
    %74 = vector.shape_cast %26 : vector<256x1xi1> to vector<256x1xi1>
    %75 = vector.broadcast %74 : vector<256x1xi1> to vector<256x64xi1>
    %76 = vector.broadcast %73 : bf16 to vector<256x64xbf16>
    %77 = arith.select %75, %72, %76 : vector<256x64xi1>, vector<256x64xbf16>
    %78 = vector.extract_strided_slice %71 {offsets = [16, 0], sizes = [256, 64], strides = [1, 1]} : vector<320x64xbf16> to vector<256x64xbf16>
    %79 = vector.extract_strided_slice %71 {offsets = [17, 0], sizes = [256, 64], strides = [1, 1]} : vector<320x64xbf16> to vector<256x64xbf16>
    %cst_35 = arith.constant 0.000000e+00 : f32
    %80 = arith.truncf %cst_35 : f32 to bf16
    %81 = vector.shape_cast %28 : vector<256x1xi1> to vector<256x1xi1>
    %82 = vector.broadcast %81 : vector<256x1xi1> to vector<256x64xi1>
    %83 = vector.broadcast %80 : bf16 to vector<256x64xbf16>
    %84 = arith.select %82, %79, %83 : vector<256x64xi1>, vector<256x64xbf16>
    %85 = vector.extract_strided_slice %71 {offsets = [31, 0], sizes = [256, 64], strides = [1, 1]} : vector<320x64xbf16> to vector<256x64xbf16>
    %cst_36 = arith.constant 0.000000e+00 : f32
    %86 = arith.truncf %cst_36 : f32 to bf16
    %87 = vector.shape_cast %26 : vector<256x1xi1> to vector<256x1xi1>
    %88 = vector.broadcast %87 : vector<256x1xi1> to vector<256x64xi1>
    %89 = vector.broadcast %86 : bf16 to vector<256x64xbf16>
    %90 = arith.select %88, %85, %89 : vector<256x64xi1>, vector<256x64xbf16>
    %91 = vector.extract_strided_slice %71 {offsets = [32, 0], sizes = [256, 64], strides = [1, 1]} : vector<320x64xbf16> to vector<256x64xbf16>
    %92 = vector.extract_strided_slice %71 {offsets = [33, 0], sizes = [256, 64], strides = [1, 1]} : vector<320x64xbf16> to vector<256x64xbf16>
    %cst_37 = arith.constant 0.000000e+00 : f32
    %93 = arith.truncf %cst_37 : f32 to bf16
    %94 = vector.shape_cast %28 : vector<256x1xi1> to vector<256x1xi1>
    %95 = vector.broadcast %94 : vector<256x1xi1> to vector<256x64xi1>
    %96 = vector.broadcast %93 : bf16 to vector<256x64xbf16>
    %97 = arith.select %95, %92, %96 : vector<256x64xi1>, vector<256x64xbf16>
    %98 = vector.extract_strided_slice %71 {offsets = [47, 0], sizes = [256, 64], strides = [1, 1]} : vector<320x64xbf16> to vector<256x64xbf16>
    %cst_38 = arith.constant 0.000000e+00 : f32
    %99 = arith.truncf %cst_38 : f32 to bf16
    %100 = vector.shape_cast %26 : vector<256x1xi1> to vector<256x1xi1>
    %101 = vector.broadcast %100 : vector<256x1xi1> to vector<256x64xi1>
    %102 = vector.broadcast %99 : bf16 to vector<256x64xbf16>
    %103 = arith.select %101, %98, %102 : vector<256x64xi1>, vector<256x64xbf16>
    %104 = vector.extract_strided_slice %71 {offsets = [48, 0], sizes = [256, 64], strides = [1, 1]} : vector<320x64xbf16> to vector<256x64xbf16>
    %105 = vector.extract_strided_slice %71 {offsets = [49, 0], sizes = [256, 64], strides = [1, 1]} : vector<320x64xbf16> to vector<256x64xbf16>
    %cst_39 = arith.constant 0.000000e+00 : f32
    %106 = arith.truncf %cst_39 : f32 to bf16
    %107 = vector.shape_cast %28 : vector<256x1xi1> to vector<256x1xi1>
    %108 = vector.broadcast %107 : vector<256x1xi1> to vector<256x64xi1>
    %109 = vector.broadcast %106 : bf16 to vector<256x64xbf16>
    %110 = arith.select %108, %105, %109 : vector<256x64xi1>, vector<256x64xbf16>
    %111 = tpu.concatenate %77, %78, %84, %90, %91, %97, %103, %104, %110 in 1 : vector<256x64xbf16>, vector<256x64xbf16>, vector<256x64xbf16>, vector<256x64xbf16>, vector<256x64xbf16>, vector<256x64xbf16>, vector<256x64xbf16>, vector<256x64xbf16>, vector<256x64xbf16> -> vector<256x576xbf16>
    %c1_40 = arith.constant 1 : index
    %112 = arith.index_cast %68 : i32 to index
    %c0_41 = arith.constant 0 : index
    %113 = vector.load %arg9[%c1_40, %112, %c0_41] : memref<2x320x64xbf16, #tpu.memory_space<vmem>>, vector<1x320x64xbf16>
    %114 = vector.shape_cast %113 : vector<1x320x64xbf16> to vector<320x64xbf16>
    %115 = vector.extract_strided_slice %114 {offsets = [15, 0], sizes = [256, 64], strides = [1, 1]} : vector<320x64xbf16> to vector<256x64xbf16>
    %cst_42 = arith.constant 0.000000e+00 : f32
    %116 = arith.truncf %cst_42 : f32 to bf16
    %117 = vector.shape_cast %26 : vector<256x1xi1> to vector<256x1xi1>
    %118 = vector.broadcast %117 : vector<256x1xi1> to vector<256x64xi1>
    %119 = vector.broadcast %116 : bf16 to vector<256x64xbf16>
    %120 = arith.select %118, %115, %119 : vector<256x64xi1>, vector<256x64xbf16>
    %121 = vector.extract_strided_slice %114 {offsets = [16, 0], sizes = [256, 64], strides = [1, 1]} : vector<320x64xbf16> to vector<256x64xbf16>
    %122 = vector.extract_strided_slice %114 {offsets = [17, 0], sizes = [256, 64], strides = [1, 1]} : vector<320x64xbf16> to vector<256x64xbf16>
    %cst_43 = arith.constant 0.000000e+00 : f32
    %123 = arith.truncf %cst_43 : f32 to bf16
    %124 = vector.shape_cast %28 : vector<256x1xi1> to vector<256x1xi1>
    %125 = vector.broadcast %124 : vector<256x1xi1> to vector<256x64xi1>
    %126 = vector.broadcast %123 : bf16 to vector<256x64xbf16>
    %127 = arith.select %125, %122, %126 : vector<256x64xi1>, vector<256x64xbf16>
    %128 = vector.extract_strided_slice %114 {offsets = [31, 0], sizes = [256, 64], strides = [1, 1]} : vector<320x64xbf16> to vector<256x64xbf16>
    %cst_44 = arith.constant 0.000000e+00 : f32
    %129 = arith.truncf %cst_44 : f32 to bf16
    %130 = vector.shape_cast %26 : vector<256x1xi1> to vector<256x1xi1>
    %131 = vector.broadcast %130 : vector<256x1xi1> to vector<256x64xi1>
    %132 = vector.broadcast %129 : bf16 to vector<256x64xbf16>
    %133 = arith.select %131, %128, %132 : vector<256x64xi1>, vector<256x64xbf16>
    %134 = vector.extract_strided_slice %114 {offsets = [32, 0], sizes = [256, 64], strides = [1, 1]} : vector<320x64xbf16> to vector<256x64xbf16>
    %135 = vector.extract_strided_slice %114 {offsets = [33, 0], sizes = [256, 64], strides = [1, 1]} : vector<320x64xbf16> to vector<256x64xbf16>
    %cst_45 = arith.constant 0.000000e+00 : f32
    %136 = arith.truncf %cst_45 : f32 to bf16
    %137 = vector.shape_cast %28 : vector<256x1xi1> to vector<256x1xi1>
    %138 = vector.broadcast %137 : vector<256x1xi1> to vector<256x64xi1>
    %139 = vector.broadcast %136 : bf16 to vector<256x64xbf16>
    %140 = arith.select %138, %135, %139 : vector<256x64xi1>, vector<256x64xbf16>
    %141 = vector.extract_strided_slice %114 {offsets = [47, 0], sizes = [256, 64], strides = [1, 1]} : vector<320x64xbf16> to vector<256x64xbf16>
    %cst_46 = arith.constant 0.000000e+00 : f32
    %142 = arith.truncf %cst_46 : f32 to bf16
    %143 = vector.shape_cast %26 : vector<256x1xi1> to vector<256x1xi1>
    %144 = vector.broadcast %143 : vector<256x1xi1> to vector<256x64xi1>
    %145 = vector.broadcast %142 : bf16 to vector<256x64xbf16>
    %146 = arith.select %144, %141, %145 : vector<256x64xi1>, vector<256x64xbf16>
    %147 = vector.extract_strided_slice %114 {offsets = [48, 0], sizes = [256, 64], strides = [1, 1]} : vector<320x64xbf16> to vector<256x64xbf16>
    %148 = vector.extract_strided_slice %114 {offsets = [49, 0], sizes = [256, 64], strides = [1, 1]} : vector<320x64xbf16> to vector<256x64xbf16>
    %cst_47 = arith.constant 0.000000e+00 : f32
    %149 = arith.truncf %cst_47 : f32 to bf16
    %150 = vector.shape_cast %28 : vector<256x1xi1> to vector<256x1xi1>
    %151 = vector.broadcast %150 : vector<256x1xi1> to vector<256x64xi1>
    %152 = vector.broadcast %149 : bf16 to vector<256x64xbf16>
    %153 = arith.select %151, %148, %152 : vector<256x64xi1>, vector<256x64xbf16>
    %154 = tpu.concatenate %120, %121, %127, %133, %134, %140, %146, %147, %153 in 1 : vector<256x64xbf16>, vector<256x64xbf16>, vector<256x64xbf16>, vector<256x64xbf16>, vector<256x64xbf16>, vector<256x64xbf16>, vector<256x64xbf16>, vector<256x64xbf16>, vector<256x64xbf16> -> vector<256x576xbf16>
    %155 = tpu.concatenate %111, %154 in 0 : vector<256x576xbf16>, vector<256x576xbf16> -> vector<512x576xbf16>
    %cst_48 = arith.constant dense<0.000000e+00> : vector<512x64xf32>
    %156 = tpu.matmul %155, %1, %cst_48 {dimension_numbers = #tpu.dot_dimension_numbers<[1], [0], [0], [1], [0, 0, 1, 1], [], []>} : vector<512x576xbf16>, vector<576x64xbf16>, vector<512x64xf32> -> vector<512x64xf32>
    %157 = arith.addf %156, %7 : vector<512x64xf32>
    %cst_49 = arith.constant 0.000000e+00 : f32
    %158 = vector.broadcast %cst_49 : f32 to vector<512x64xf32>
    %159 = arith.maximumf %157, %158 : vector<512x64xf32>
    %160 = vector.extract_strided_slice %159 {offsets = [0, 0], sizes = [256, 64], strides = [1, 1]} : vector<512x64xf32> to vector<256x64xf32>
    %161 = vector.extract_strided_slice %159 {offsets = [256, 0], sizes = [256, 64], strides = [1, 1]} : vector<512x64xf32> to vector<256x64xf32>
    %162 = arith.subf %160, %161 : vector<256x64xf32>
    %163 = math.absf %162 : vector<256x64xf32>
    %cst_50 = arith.constant dense<0.000000e+00> : vector<64xf32>
    %164 = vector.multi_reduction <add>, %163, %cst_50 [0] : vector<256x64xf32> to vector<64xf32>
    %165 = vector.shape_cast %164 : vector<64xf32> to vector<1x64xf32>
    %166 = arith.addf %66, %165 : vector<1x64xf32>
    %c1_i32_51 = arith.constant 1 : i32
    %167 = vector.shape_cast %51 : vector<1x64xf32> to vector<1x1x64xf32>
    %cst_52 = arith.constant dense<0.000000e+00> : vector<1xf32>
    %168 = vector.multi_reduction <add>, %167, %cst_52 [1, 2] : vector<1x1x64xf32> to vector<1xf32>
    %169 = vector.shape_cast %168 : vector<1xf32> to vector<1x1x1xf32>
    %170 = vector.extract %169[0, 0, 0] : f32 from vector<1x1x1xf32>
    %171 = vector.broadcast %170 : f32 to vector<1x1x1xf32>
    %c0_53 = arith.constant 0 : index
    %c0_54 = arith.constant 0 : index
    %c0_55 = arith.constant 0 : index
    %172 = vector.load %arg7[%c0_53, %c0_54, %c0_55] : memref<1x1x1xf32, #tpu.memory_space<vmem>>, vector<1x1x1xf32>
    tpu.vector_store %arg7[%c0_53, %c0_54, %c0_55], %171 {strides = array<i32>} : memref<1x1x1xf32, #tpu.memory_space<vmem>>, vector<1x1x1xf32>,
    %173 = vector.shape_cast %166 : vector<1x64xf32> to vector<1x1x64xf32>
    %cst_56 = arith.constant dense<0.000000e+00> : vector<1xf32>
    %174 = vector.multi_reduction <add>, %173, %cst_56 [1, 2] : vector<1x1x64xf32> to vector<1xf32>
    %175 = vector.shape_cast %174 : vector<1xf32> to vector<1x1x1xf32>
    %176 = vector.extract %175[0, 0, 0] : f32 from vector<1x1x1xf32>
    %177 = vector.broadcast %176 : f32 to vector<1x1x1xf32>
    %c0_57 = arith.constant 0 : index
    %c0_58 = arith.constant 0 : index
    %c0_59 = arith.constant 0 : index
    %178 = vector.load %arg8[%c0_57, %c0_58, %c0_59] : memref<1x1x1xf32, #tpu.memory_space<vmem>>, vector<1x1x1xf32>
    tpu.vector_store %arg8[%c0_57, %c0_58, %c0_59], %177 {strides = array<i32>} : memref<1x1x1xf32, #tpu.memory_space<vmem>>, vector<1x1x1xf32>,
    return
  }
  func.func @transform_0(%arg0: i32) -> (i32, i32, i32) {
    %c0_i32 = arith.constant 0 : i32
    %c0_i32_0 = arith.constant 0 : i32
    %c0_i32_1 = arith.constant 0 : i32
    return %arg0, %c0_i32, %c0_i32_0 : i32, i32, i32
  }
  func.func @transform_1(%arg0: i32) -> (i32, i32, i32) {
    %c0_i32 = arith.constant 0 : i32
    %c0_i32_0 = arith.constant 0 : i32
    %c0_i32_1 = arith.constant 0 : i32
    return %arg0, %c0_i32, %c0_i32_0 : i32, i32, i32
  }
  func.func @transform_2(%arg0: i32) -> (i32, i32) {
    %c0_i32 = arith.constant 0 : i32
    %c0_i32_0 = arith.constant 0 : i32
    %c0_i32_1 = arith.constant 0 : i32
    return %c0_i32, %c0_i32_0 : i32, i32
  }
  func.func @transform_3(%arg0: i32) -> (i32, i32) {
    %c0_i32 = arith.constant 0 : i32
    %c0_i32_0 = arith.constant 0 : i32
    %c0_i32_1 = arith.constant 0 : i32
    return %c0_i32, %c0_i32_0 : i32, i32
  }
  func.func @transform_4(%arg0: i32) -> (i32, i32) {
    %c0_i32 = arith.constant 0 : i32
    %c0_i32_0 = arith.constant 0 : i32
    %c0_i32_1 = arith.constant 0 : i32
    return %c0_i32, %c0_i32_0 : i32, i32
  }
  func.func @transform_5(%arg0: i32) -> (i32, i32) {
    %c0_i32 = arith.constant 0 : i32
    %c0_i32_0 = arith.constant 0 : i32
    %c0_i32_1 = arith.constant 0 : i32
    return %c0_i32, %c0_i32_0 : i32, i32
  }
  func.func @transform_6(%arg0: i32) -> (i32, i32, i32) {
    %c0_i32 = arith.constant 0 : i32
    %c0_i32_0 = arith.constant 0 : i32
    %c0_i32_1 = arith.constant 0 : i32
    return %arg0, %c0_i32, %c0_i32_0 : i32, i32, i32
  }
  func.func @transform_7(%arg0: i32) -> (i32, i32, i32) {
    %c0_i32 = arith.constant 0 : i32
    %c0_i32_0 = arith.constant 0 : i32
    %c0_i32_1 = arith.constant 0 : i32
    return %arg0, %c0_i32, %c0_i32_0 : i32, i32, i32
  }
}

</mosaic_0001>

<bundles_post_ra>
// kernel: _lambda_.1
= control target key start
LH: loop header
LB: loop body
LE: loop exit
PB: predicated region body
PF: predicated region fallthrough
CT: control target
= control target key end

     0   :  { %s7495_s24 = smov 0   ;;  %s12495_s0 = inlined_call_operand.vmem [shape: bf16[2,256,32], index: 0, kind: input, shape index: {}]   ;;  %s12496_s1 = inlined_call_operand.vmem [shape: bf16[2,256,32], index: 1, kind: input, shape index: {}]   ;;  %s12497_s2 = inlined_call_operand.vmem [shape: bf16[32,64], index: 2, kind: input, shape index: {}]   ;;  %s12498_s3 = inlined_call_operand.vmem [shape: f32[1,64], index: 3, kind: input, shape index: {}]   ;;  %s12499_s4 = inlined_call_operand.vmem [shape: bf16[576,64], index: 4, kind: input, shape index: {}]   ;;  %s12500_s5 = inlined_call_operand.vmem [shape: f32[1,64], index: 5, kind: input, shape index: {}]   ;;  %s12501_s6 = inlined_call_operand.vmem [shape: f32[2,1,1], index: 6, kind: output, shape index: {0}]   ;;  %s12502_s7 = inlined_call_operand.vmem [shape: f32[2,1,1], index: 7, kind: output, shape index: {1}]  }
   0x1 LB: > { %s6720_s25 = sadd.s32 4294967295, %s7450_s24   ;;  %p6724_p0 = scmp.ge.s32.totalorder %s7450_s24, 1  ;;  %s7450_s24 = sphi %s7495_s24, %s18_s24  }
   0x2   : > { %p250_p1 = scmp.lt.s32.totalorder %s7450_s24, 3 }
   0x4   : > { %p251_p2 = pnand %p6724_p0, %p250_p1 }
   0x6   : > { %254 = sbr.rel (%p251_p2) target bundleno = 1309 (0x51d), region = 44 }
   0xd   : > { %v7312_v0 = vld [vmem:[%s12497_s2] sm:$0xff]   ;;  %p288_p3 = scmp.lt.s32.totalorder %s6720_s25, 1  ;;  %v7313_v1 = vld [vmem:[%s12497_s2 + $0x8] sm:$0xff]   ;;  %vm1155_vm0 = vcmask 261120   ;;  %vm12568_vm1 = vcmask 523264   ;;  %v12531_v27 = vmov 0   ;;  %v397_v35 = vlaneseq }
   0xe   : > { %6971 = vmatprep.subr.bf16.mxu0 %v7312_v0  ;;  %882 = vst.msk [vmem:[#allocation2 + $0x18] sm:$0xff] %vm12568_vm1, %v12531_v27  ;;  %879 = vst.msk [vmem:[#allocation2] sm:$0xff] %vm12568_vm1, %v12531_v27  ;;  %7111 = vmatprep.subr.bf16.mxu1 %v12531_v27  ;;  %vm7453_vm3 = vmmov 1   ;;  %v7695_v58 = vld [vmem:[%s12498_s3] ss:$0 sm:$0xff]  ;;  %s7454_s23 = smov 64  }
   0xf   : > { %s13639_s25 = smov (!%p288_p3, %s6720_s25), 1  ;;  %6972 = vmatpush3.bf16.msra.mxu0 %v7312_v0  ;;  %880 = vst.msk [vmem:[#allocation2 + $0x8] sm:$0xff] %vm12568_vm1, %v12531_v27  ;;  %881 = vst.msk [vmem:[#allocation2 + $0x10] sm:$0xff] %vm12568_vm1, %v12531_v27  ;;  %v7668_v36 = vshrl.u32 %v397_v35, 7  ;;  %vm2003_vm15 = vsmask.f32 7424 }
  0x10   : > { %6973 = vmatprep.subr.bf16.mxu0 %v7313_v1  ;;  %s6899_s30 = sshll.u32 %s13639_s25, 7  ;;  %883 = vst.msk [vmem:[#allocation2 + $0x20] sm:$0xff] %vm12568_vm1, %v12531_v27  ;;  %884 = vst.msk [vmem:[#allocation2 + $0x28] sm:$0xff] %vm12568_vm1, %v12531_v27  ;;  %s300_s14 = scalar_lea.vmem %s12501_s6, %s13639_s25 }
  0x11   : > { %s7515_s10 = scalar_lea.vmem %s12495_s0, %s6899_s30  ;;  %s7530_s13 = scalar_lea.vmem %s12496_s1, %s6899_s30  ;;  %885 = vst.msk [vmem:[#allocation2 + $0x30] sm:$0xff] %vm12568_vm1, %v12531_v27  ;;  %886 = vst.msk [vmem:[#allocation2 + $0x38] sm:$0xff] %vm12568_vm1, %v12531_v27  ;;  %v402_v37 = vadd.s32 32, %v7668_v36  ;;  %v404_v38 = vadd.s32 48, %v7668_v36  ;;  %v406_v41 = vadd.s32 64, %v7668_v36  ;;  %v400_v45 = vadd.s32 16, %v7668_v36 }
  0x12   : > { %v7314_v2 = vld [vmem:[%s7515_s10] sm:$0xff]   ;;  %v7315_v3 = vld [vmem:[%s7515_s10 + $0x8] sm:$0xff]   ;;  %v7316_v4 = vld [vmem:[%s7515_s10 + $0x10] sm:$0xff]   ;;  %887 = vst.msk [vmem:[#allocation2 + $0x40] sm:$0xff] %vm12568_vm1, %v12531_v27  ;;  %v408_v48 = vadd.s32 80, %v7668_v36  ;;  %v434_v49 = vand.u32 15, %v7668_v36  ;;  %s303_s20 = scalar_lea.vmem %s12502_s7, %s13639_s25 }
  0x13   : > { %6974 = vmatpush3.bf16.msra.mxu0 %v7313_v1  ;;  %6975 = vmatprep.mubr.msk.bf16.mxu0 %vm1155_vm0, %v7314_v2  ;;  %v7317_v5 = vld [vmem:[%s7515_s10 + $0x18] sm:$0xff]   ;;  %v7318_v6 = vld [vmem:[%s7515_s10 + $0x20] sm:$0xff]   ;;  %v7319_v7 = vld [vmem:[%s7515_s10 + $0x28] sm:$0xff]   ;;  %888 = vst.msk [vmem:[#allocation2 + $0x48] sm:$0xff] %vm12568_vm1, %v12531_v27  ;;  %v462_v39 = vand.u32 15, %v402_v37  ;;  %v476_v40 = vand.u32 15, %v404_v38 }
  0x14   : > { %v7320_v8 = vld [vmem:[%s7515_s10 + $0x30] sm:$0xff]   ;;  %v7321_v9 = vld [vmem:[%s7515_s10 + $0x38] sm:$0xff]   ;;  %v7322_v10 = vld [vmem:[%s7515_s10 + $0x40] sm:$0xff]   ;;  %889 = vst.msk [vmem:[#allocation2 + $0x50] sm:$0xff] %vm12568_vm1, %v12531_v27  ;;  %5543 = vmatprep.subr.bf16.mxu0 %v12531_v27  ;;  %v490_v42 = vand.u32 15, %v406_v41  ;;  %v448_v51 = vand.u32 15, %v400_v45 }
  0x15   : > { %v7323_v11 = vld [vmem:[%s7515_s10 + $0x48] sm:$0xff]   ;;  %v7324_v12 = vld [vmem:[%s7515_s10 + $0x50] sm:$0xff]   ;;  %v7325_v13 = vld [vmem:[%s7515_s10 + $0x58] sm:$0xff]   ;;  %890 = vst.msk [vmem:[#allocation2 + $0x58] sm:$0xff] %vm12568_vm1, %v12531_v27  ;;  %vm818_vm2 = vcmp.gt.s32.totalorder %v462_v39, 0  ;;  %vm820_vm5 = vcmp.gt.s32.totalorder %v476_v40, 0 }
  0x16   : > { %6976 = vmatmul.mubr.msk.bf16.vlgmr.msra.gmra.mrb[0].mxu0 %vm1155_vm0, %v7315_v3  ;;  %v7326_v14 = vld [vmem:[%s7515_s10 + $0x60] sm:$0xff]   ;;  %v7327_v15 = vld [vmem:[%s7515_s10 + $0x68] sm:$0xff]   ;;  %v7328_v16 = vld [vmem:[%s7515_s10 + $0x70] sm:$0xff]   ;;  %891 = vst.msk [vmem:[#allocation2 + $0x60] sm:$0xff] %vm12568_vm1, %v12531_v27  ;;  %vm822_vm8 = vcmp.gt.s32.totalorder %v490_v42, 0  ;;  %v399_v53 = vadd.s32 8, %v7668_v36 }
  0x17   : > { %6979 = vmatprep.mubr.msk.bf16.mxu0 %vm1155_vm0, %v7316_v4  ;;  %v7329_v17 = vld [vmem:[%s7515_s10 + $0x78] sm:$0xff]   ;;  %v7330_v18 = vld [vmem:[%s7530_s13] sm:$0xff]   ;;  %v7331_v19 = vld [vmem:[%s7530_s13 + $0x8] sm:$0xff]   ;;  %892 = vst.msk [vmem:[#allocation2 + $0x68] sm:$0xff] %vm12568_vm1, %v12531_v27  ;;  %v504_v55 = vand.u32 15, %v408_v48  ;;  %vm7687_vm10 = vcmp.gt.s32.totalorder %v434_v49, 0 }
  0x18   : > { %v7332_v20 = vld [vmem:[%s7530_s13 + $0x10] sm:$0xff]   ;;  %v7333_v21 = vld [vmem:[%s7530_s13 + $0x18] sm:$0xff]   ;;  %v7334_v22 = vld [vmem:[%s7530_s13 + $0x20] sm:$0xff]   ;;  %893 = vst.msk [vmem:[#allocation2 + $0x70] sm:$0xff] %vm12568_vm1, %v12531_v27  ;;  %v401_v57 = vadd.s32 24, %v7668_v36  ;;  %vm7698_vm11 = vcmp.gt.s32.totalorder %v448_v51, 0 }
  0x19   : > { %v7335_v23 = vld [vmem:[%s7530_s13 + $0x28] sm:$0xff]   ;;  %v7336_v24 = vld [vmem:[%s7530_s13 + $0x30] sm:$0xff]   ;;  %v7337_v25 = vld [vmem:[%s7530_s13 + $0x38] sm:$0xff]   ;;  %894 = vst.msk [vmem:[#allocation2 + $0x78] sm:$0xff] %vm12568_vm1, %v12531_v27  ;;  %v441_v0 = vand.u32 15, %v399_v53  ;;  %vm7710_vm13 = vcmp.gt.s32.totalorder %v504_v55, 0 }
  0x1a   : > { %v7338_v26 = vld [vmem:[%s7530_s13 + $0x40] sm:$0xff]   ;;  %895 = vst.msk [vmem:[#allocation2 + $0x80] sm:$0xff] %vm12568_vm1, %v12531_v27  ;;  %896 = vst.msk [vmem:[#allocation2 + $0x88] sm:$0xff] %vm12568_vm1, %v12531_v27  ;;  %v7339_v28 = vld [vmem:[%s7530_s13 + $0x48] sm:$0xff]   ;;  %v403_v3 = vadd.s32 40, %v7668_v36  ;;  %v412_v49 = vadd.s32 112, %v7668_v36 }
  0x1b   : > { %897 = vst.msk [vmem:[#allocation2 + $0x90] sm:$0xff] %vm12568_vm1, %v12531_v27  ;;  %898 = vst.msk [vmem:[#allocation2 + $0x98] sm:$0xff] %vm12568_vm1, %v12531_v27  ;;  %v7340_v29 = vld [vmem:[%s7530_s13 + $0x50] sm:$0xff]   ;;  %v7341_v30 = vld [vmem:[%s7530_s13 + $0x58] sm:$0xff]   ;;  %v405_v51 = vadd.s32 56, %v7668_v36 }
  0x1c   : > { %899 = vst.msk [vmem:[#allocation2 + $0xa0] sm:$0xff] %vm12568_vm1, %v12531_v27  ;;  %900 = vst.msk [vmem:[#allocation2 + $0xa8] sm:$0xff] %vm12568_vm1, %v12531_v27  ;;  %v7342_v31 = vld [vmem:[%s7530_s13 + $0x60] sm:$0xff]   ;;  %v7343_v32 = vld [vmem:[%s7530_s13 + $0x68] sm:$0xff]  }
  0x1d   : > { %901 = vst.msk [vmem:[#allocation2 + $0xb0] sm:$0xff] %vm12568_vm1, %v12531_v27  ;;  %902 = vst.msk [vmem:[#allocation2 + $0xb8] sm:$0xff] %vm12568_vm1, %v12531_v27  ;;  %v7344_v33 = vld [vmem:[%s7530_s13 + $0x70] sm:$0xff]   ;;  %v7345_v34 = vld [vmem:[%s7530_s13 + $0x78] sm:$0xff]  }
  0x1e   : > { %6980 = vmatmul.mubr.msk.bf16.gmra.mrb[4].mxu0 %vm1155_vm0, %v7317_v5  ;;  %903 = vst.msk [vmem:[#allocation2 + $0xc0] sm:$0xff] %vm12568_vm1, %v12531_v27  ;;  %904 = vst.msk [vmem:[#allocation2 + $0xc8] sm:$0xff] %vm12568_vm1, %v12531_v27 }
  0x1f   : > { %6983 = vmatprep.mubr.msk.bf16.mxu0 %vm1155_vm0, %v7318_v6  ;;  %905 = vst.msk [vmem:[#allocation2 + $0xd0] sm:$0xff] %vm12568_vm1, %v12531_v27  ;;  %906 = vst.msk [vmem:[#allocation2 + $0xd8] sm:$0xff] %vm12568_vm1, %v12531_v27  ;;  %v455_v6 = vand.u32 15, %v401_v57 }
  0x20   : > { %907 = vst.msk [vmem:[#allocation2 + $0xe0] sm:$0xff] %vm12568_vm1, %v12531_v27  ;;  %908 = vst.msk [vmem:[#allocation2 + $0xe8] sm:$0xff] %vm12568_vm1, %v12531_v27 }
  0x21   : > { %909 = vst.msk [vmem:[#allocation2 + $0xf0] sm:$0xff] %vm12568_vm1, %v12531_v27  ;;  %910 = vst.msk [vmem:[#allocation2 + $0xf8] sm:$0xff] %vm12568_vm1, %v12531_v27 }
  0x22   : > { %911 = vst.msk [vmem:[#allocation2 + $0x100] sm:$0xff] %vm12568_vm1, %v12531_v27  ;;  %912 = vst.msk [vmem:[#allocation2 + $0x108] sm:$0xff] %vm12568_vm1, %v12531_v27 }
  0x23   : > { %913 = vst.msk [vmem:[#allocation2 + $0x110] sm:$0xff] %vm12568_vm1, %v12531_v27  ;;  %914 = vst.msk [vmem:[#allocation2 + $0x118] sm:$0xff] %vm12568_vm1, %v12531_v27 }
  0x24   : > { %915 = vst.msk [vmem:[#allocation2 + $0x120] sm:$0xff] %vm12568_vm1, %v12531_v27  ;;  %916 = vst.msk [vmem:[#allocation2 + $0x128] sm:$0xff] %vm12568_vm1, %v12531_v27 }
  0x25   : > { %917 = vst.msk [vmem:[#allocation2 + $0x130] sm:$0xff] %vm12568_vm1, %v12531_v27  ;;  %918 = vst.msk [vmem:[#allocation2 + $0x138] sm:$0xff] %vm12568_vm1, %v12531_v27 }
  0x26   : > { %6984 = vmatmul.mubr.msk.bf16.gmra.mrb[8].mxu0 %vm1155_vm0, %v7319_v7  ;;  %vm1892_vm4 = vmpackc.low %vm7453_vm3, %vm7453_vm3  ;;  %vm7747_vm3 = vcmp.lt.s32.totalorder %v455_v6, 15  ;;  %v1808_v6 = vld [vmem:[#allocation2 + $0x8] sm:$0xff] }
  0x27   : > { %6987 = vmatprep.mubr.msk.bf16.mxu0 %vm1155_vm0, %v7320_v8  ;;  %vm1895_vm6 = vmpackc.low %vm818_vm2, %vm818_vm2  ;;  %v7674_v43 = vsel %vm1892_vm4, 65537, %v12531_v27  ;;  %vm7733_vm2 = vcmp.lt.s32.totalorder %v441_v0, 15 }
  0x28   : > { %vm1897_vm7 = vmpackc.low %vm820_vm5, %vm820_vm5  ;;  %12761 = vst [vmem:[#allocation3_spill] sm:$0xff] %v7674_v43  ;;  %v1927_v44 = vsel %vm1895_vm6, 65537, %v12531_v27 }
  0x29   : > { %v1929_v46 = vsel %vm1897_vm7, 65537, %v12531_v27  ;;  %v6799_v47 = vcombine.low %v1927_v44, %v7674_v43  ;;  %vm1899_vm9 = vmpackc.low %vm822_vm8, %vm822_vm8 }
  0x2a   : > { %v7683_v50 = vcombine.low %v1929_v46, %v7674_v43  ;;  %v1931_v54 = vsel %vm1899_vm9, 65537, %v12531_v27  ;;  %vm1891_vm12 = vmpackc.low %vm7687_vm10, %vm7687_vm10 }
  0x2b   : > { %v2020_v52 = vshll.u32 %v6799_v47, 16  ;;  %v7703_v61 = vcombine.low %v1931_v54, %v7674_v43  ;;  %v2024_v63 = vshrl.u32 %v6799_v47, 16  ;;  %vm1893_vm14 = vmpackc.low %vm7698_vm11, %vm7698_vm11 }
  0x2c   : > { %v2028_v59 = vshll.u32 %v7683_v50, 16  ;;  %vm2230_vm4 = vmpackc.low %vm7733_vm2, %vm7733_vm2 }
  0x2d   : > { %v7705_v62 = vrot.slane %v2020_v52, 1  ;;  %vm2232_vm5 = vmpackc.low %vm7747_vm3, %vm7747_vm3  ;;  %v2262_v40 = vsel %vm2230_vm4, 65537, %v12531_v27  ;;  %v2040_v53 = vshrl.u32 %v7703_v61, 16 }
  0x2e   : > { %6988 = vmatmul.mubr.msk.bf16.gmra.mrb[12].mxu0 %vm1155_vm0, %v7321_v9  ;;  %v2030_v9 = vrot.slane %v2028_v59, 1  ;;  %v2264_v54 = vsel %vm2232_vm5, 65537, %v12531_v27  ;;  %v7804_v55 = vcombine.low %v7674_v43, %v2262_v40 }
  0x2f   : > { %6991 = vmatprep.mubr.msk.bf16.mxu0 %vm1155_vm0, %v7322_v10  ;;  %v1923_v10 = vsel %vm1891_vm12, 65537, %v12531_v27 }
  0x36   : > { %6992 = vmatmul.mubr.msk.bf16.gmra.mrb[16].mxu0 %vm1155_vm0, %v7323_v11 }
  0x37   : > { %6995 = vmatprep.mubr.msk.bf16.mxu0 %vm1155_vm0, %v7324_v12 }
  0x3e   : > { %6996 = vmatmul.mubr.msk.bf16.gmra.mrb[20].mxu0 %vm1155_vm0, %v7325_v13  ;;  %v2036_v13 = vshll.u32 %v7703_v61, 16 }
  0x3f   : > { %6999 = vmatprep.mubr.msk.bf16.mxu0 %vm1155_vm0, %v7326_v14  ;;  %v2026_v14 = vor.u32 %v2024_v63, %v7705_v62 }
  0x46   : > { %7000 = vmatmul.mubr.msk.bf16.gmra.mrb[24].mxu0 %vm1155_vm0, %v7327_v15 }
  0x47   : > { %7003 = vmatprep.mubr.msk.bf16.mxu0 %vm1155_vm0, %v7328_v16 }
  0x4e   : > { %7004 = vmatmul.mubr.msk.bf16.gmra.mrb[28].mxu0 %vm1155_vm0, %v7329_v17  ;;  %v2032_v17 = vshrl.u32 %v7683_v50, 16 }
  0x4f   : > { %7007 = vmatprep.mubr.msk.bf16.mxu0 %vm1155_vm0, %v7330_v18  ;;  %v1925_v18 = vsel %vm1893_vm14, 65537, %v12531_v27 }
  0x50   : > { %v2034_v44 = vor.u32 %v2032_v17, %v2030_v9 }
  0x56   : > { %7008 = vmatmul.mubr.msk.bf16.gmra.mrb[32].mxu0 %vm1155_vm0, %v7331_v19  ;;  %v469_v19 = vand.u32 15, %v403_v3  ;;  %v532_v3 = vand.u32 15, %v412_v49 }
  0x57   : > { %7011 = vmatprep.mubr.msk.bf16.mxu0 %vm1155_vm0, %v7332_v20 }
  0x58   : > { %vm7788_vm6 = vcmp.lt.s32.totalorder %v469_v19, 15  ;;  %v7845_v19 = vcombine.low %v7674_v43, %v2264_v54  ;;  %vm7857_vm10 = vcmp.gt.s32.totalorder %v532_v3, 0 }
  0x59   : > { %vm2234_vm8 = vmpackc.low %vm7788_vm6, %vm7788_vm6 }
  0x5a   : > { %vm1905_vm12 = vmpackc.low %vm7857_vm10, %vm7857_vm10 }
  0x5e   : > { %7012 = vmatmul.mubr.msk.bf16.gmra.mrb[36].mxu0 %vm1155_vm0, %v7333_v21 }
  0x5f   : > { %7015 = vmatprep.mubr.msk.bf16.mxu0 %vm1155_vm0, %v7334_v22  ;;  %v7745_v22 = vcombine.low %v1923_v10, %v7674_v43 }
  0x61   : > { %v2005_v39 = vshll.u32 %v7745_v22, 16  ;;  %v2008_v61 = vshrl.u32 %v7745_v22, 16  ;;  %v483_v22 = vand.u32 15, %v405_v51 }
  0x63   : > { %v7809_v60 = vrot.slane %v2005_v39, 1  ;;  %v2346_v39 = vshll.u32 %v7804_v55, 16  ;;  %vm7877_vm11 = vcmp.lt.s32.totalorder %v483_v22, 15 }
  0x65   : > { %12775 = vst [vmem:[#allocation5_spill] sm:$0xff] %v7809_v60 }
  0x66   : > { %7016 = vmatmul.mubr.msk.bf16.gmra.mrb[40].mxu0 %vm1155_vm0, %v7335_v23 }
  0x67   : > { %7019 = vmatprep.mubr.msk.bf16.mxu0 %vm1155_vm0, %v7336_v24 }
  0x6e   : > { %7020 = vmatmul.mubr.msk.bf16.gmra.mrb[44].mxu0 %vm1155_vm0, %v7337_v25 }
  0x6f   : > { %7023 = vmatprep.mubr.msk.bf16.mxu0 %vm1155_vm0, %v7338_v26 }
  0x76   : > { %7024 = vmatmul.mubr.msk.bf16.gmra.mrb[48].mxu0 %vm1155_vm0, %v7339_v28  ;;  %v410_v28 = vadd.s32 96, %v7668_v36 }
  0x77   : > { %7027 = vmatprep.mubr.msk.bf16.mxu0 %vm1155_vm0, %v7340_v29 }
  0x78   : > { %v518_v45 = vand.u32 15, %v410_v28 }
  0x7a   : > { %vm7813_vm7 = vcmp.gt.s32.totalorder %v518_v45, 0  ;;  %v2266_v45 = vsel %vm2234_vm8, 65537, %v12531_v27 }
  0x7b   : > { %vm1903_vm9 = vmpackc.low %vm7813_vm7, %vm7813_vm7 }
  0x7e   : > { %7028 = vmatmul.mubr.msk.bf16.gmra.mrb[52].mxu0 %vm1155_vm0, %v7341_v30  ;;  %v7763_v30 = vcombine.low %v1925_v18, %v7674_v43 }
  0x7f   : > { %7031 = vmatprep.mubr.msk.bf16.mxu0 %vm1155_vm0, %v7342_v31 }
  0x80   : > { %v2012_v50 = vshll.u32 %v7763_v30, 16 }
  0x86   : > { %7032 = vmatmul.mubr.msk.bf16.gmra.mrb[56].mxu0 %vm1155_vm0, %v7343_v32 }
  0x87   : > { %7035 = vmatprep.mubr.msk.bf16.mxu0 %vm1155_vm0, %v7344_v33  ;;  %v2038_v33 = vrot.slane %v2036_v13, 1  ;;  %v2343_v13 = vshrl.u32 %v7804_v55, 16  ;;  %v2575_v55 = vshrl.u32 %v1808_v6, 16 }
  0x89   : > { %v2042_v18 = vor.u32 %v2040_v53, %v2038_v33 }
  0x8e   : > { %7036 = vmatmul.mubr.msk.bf16.gmra.mrb[60].mxu0 %vm1155_vm0, %v7345_v34  ;;  %vm1901_vm0 = vmpackc.low %vm7710_vm13, %vm7710_vm13  ;;  %v7770_v34 = vsel %vm2003_vm15, %v2026_v14, %v2030_v9  ;;  %v7835_v14 = vadd.s32 72, %v7668_v36 }
  0x8f   : > { %v1933_v26 = vsel %vm1901_vm0, 65537, %v12531_v27  ;;  %12772 = vst [vmem:[#allocation4_spill] sm:$0xff] %v7770_v34  ;;  %vm2236_vm13 = vmpackc.low %vm7877_vm11, %vm7877_vm11  ;;  %vm2341_vm0 = vsmask.f32 256 }
  0x90   : > { %v7777_v38 = vcombine.low %v1933_v26, %v7674_v43 }
  0x92   : > { %v2044_v59 = vshll.u32 %v7777_v38, 16 }
  0x94   : > { %v7851_v28 = vrot.slane %v2044_v59, 1 }
  0xe9   : > { %v6977_v1 = vpop.f32.mrb[0].mxu0 }
  0xea   : > { %v7716_v4 = vadd.f32 %v6977_v1, %v7695_v58  ;;  %v1286_v5 = vpop.f32.mrb[1].mxu0  ;;  %v7894_v1 = vsel %vm2003_vm15, %v2042_v18, %v7851_v28  ;;  %v416_v18 = vadd.s32 144, %v7668_v36 }
  0xeb   : > { %v7722_v7 = vadd.f32 %v7695_v58, %v1286_v5  ;;  %v6978_v8 = vpop.f32.mrb[2].mxu0  ;;  %v2014_v5 = vrot.slane %v2012_v50, 1  ;;  %v414_v50 = vadd.s32 128, %v7668_v36  ;;  %12784 = vst [vmem:[#allocation8_spill] sm:$0xff] %v7894_v1 }
  0xec   : > { %v7726_v11 = vadd.f32 %v6978_v8, %v7695_v58  ;;  %v1289_v12 = vpop.f32.mrb[3].mxu0  ;;  %v12522_v20 = vmax.f32 %v7716_v4, 0.0  ;;  %v2016_v8 = vshrl.u32 %v7763_v30, 16  ;;  %v2572_v30 = vshll.u32 %v1808_v6, 16 }
  0xed   : > { %v7738_v16 = vadd.f32 %v7695_v58, %v1289_v12  ;;  %v12521_v24 = vmax.f32 %v7722_v7, 0.0  ;;  %v7828_v12 = vsel %vm2003_vm15, %v2034_v44, %v2038_v33  ;;  %v7866_v44 = vrot.slane %v2343_v13, 7 }
  0xee   : > { %v12516_v21 = vmax.f32 %v7726_v11, 0.0  ;;  %12778 = vst [vmem:[#allocation6_spill] sm:$0xff] %v7828_v12  ;;  %v7886_v46 = vrot.slane %v2572_v30, 1  ;;  %v560_v51 = vand.u32 15, %v416_v18  ;;  %v7977_v18 = vadd.s32 88, %v7668_v36 }
  0xef   : > { %v12515_v25 = vmax.f32 %v7738_v16, 0.0  ;;  %v7936_v30 = vor.u32 %v2346_v39, %v7866_v44 }
  0xf0   : > { %v1740_v29 = vpack.c.bf16 %v12516_v21, %v12522_v20  ;;  %12783 = vst [vmem:[#allocation7_spill] sm:$0xff] %v7886_v46  ;;  %vm7993_vm3 = vcmp.gt.s32.totalorder %v560_v51, 0  ;;  %v411_v20 = vadd.s32 104, %v7668_v36 }
  0xf1   : > { %v1739_v31 = vpack.c.bf16 %v12515_v25, %v12521_v24  ;;  %v6981_v32 = vpop.f32.mrb[4].mxu0  ;;  %12788 = vst [vmem:[#allocation12_spill] sm:$0xff] %v7936_v30  ;;  %vm1909_vm5 = vmpackc.low %vm7993_vm3, %vm7993_vm3  ;;  %v511_v25 = vand.u32 15, %v7977_v18 }
  0xf2   : > { %1757 = vst.msk [vmem:[#allocation2 + $0x18] sm:$0xff] %vm12568_vm1, %v1740_v29  ;;  %v7774_v35 = vadd.f32 %v6981_v32, %v7695_v58  ;;  %v1302_v37 = vpop.f32.mrb[5].mxu0  ;;  %v2010_v29 = vor.u32 %v2008_v61, %v7809_v60 }
  0xf3   : > { %1756 = vst.msk [vmem:[#allocation2 + $0x10] sm:$0xff] %vm12568_vm1, %v1739_v31  ;;  %v7786_v41 = vadd.f32 %v7695_v58, %v1302_v37  ;;  %v6982_v42 = vpop.f32.mrb[6].mxu0  ;;  %v2018_v37 = vor.u32 %v2016_v8, %v2014_v5  ;;  %vm8120_vm11 = vcmp.lt.s32.totalorder %v511_v25, 15 }
  0xf4   : > { %v7793_v47 = vadd.f32 %v6982_v42, %v7695_v58  ;;  %v1305_v48 = vpop.f32.mrb[7].mxu0  ;;  %v12514_v56 = vmax.f32 %v7774_v35, 0.0  ;;  %v1935_v42 = vsel %vm1903_vm9, 65537, %v12531_v27  ;;  %v7905_v8 = vsel %vm2003_vm15, %v2010_v29, %v2014_v5 }
  0xf5   : > { %v7799_v52 = vadd.f32 %v7695_v58, %v1305_v48  ;;  %v12513_v63 = vmax.f32 %v7786_v41, 0.0  ;;  %v7897_v61 = vcombine.low %v1935_v42, %v7674_v43  ;;  %12785 = vst [vmem:[#allocation9_spill] sm:$0xff] %v7905_v8  ;;  %v546_v5 = vand.u32 15, %v414_v50 }
  0xf6   : > { %v12512_v57 = vmax.f32 %v7793_v47, 0.0  ;;  %v7933_v29 = vor.u32 %v2575_v55, %v7886_v46  ;;  %v2268_v50 = vsel %vm2236_vm13, 65537, %v12531_v27 }
  0xf7   : > { %v12511_v0 = vmax.f32 %v7799_v52, 0.0  ;;  %v2052_v42 = vshll.u32 %v7897_v61, 16  ;;  %vm7961_vm14 = vcmp.gt.s32.totalorder %v546_v5, 0 }
  0xf8   : > { %v1742_v2 = vpack.c.bf16 %v12512_v57, %v12514_v56  ;;  %12787 = vst [vmem:[#allocation11_spill] sm:$0xff] %v7933_v29  ;;  %vm1907_vm2 = vmpackc.low %vm7961_vm14, %vm7961_vm14 }
  0xf9   : > { %v1741_v9 = vpack.c.bf16 %v12511_v0, %v12513_v63  ;;  %v6985_v10 = vpop.f32.mrb[8].mxu0  ;;  %v2054_v5 = vrot.slane %v2052_v42, 1  ;;  %vm2240_vm14 = vmpackc.low %vm8120_vm11, %vm8120_vm11  ;;  %vm2134_vm11 = vcmp.ne.s16.totalorder %v7770_v34, 0 }
  0xfa   : > { %1759 = vst.msk [vmem:[#allocation2 + $0x28] sm:$0xff] %vm12568_vm1, %v1742_v2  ;;  %v7839_v15 = vadd.f32 %v6985_v10, %v7695_v58  ;;  %v1318_v17 = vpop.f32.mrb[9].mxu0  ;;  %v2350_v2 = vshrl.u32 %v7845_v19, 16  ;;  %v7912_v10 = vcombine.low %v7674_v43, %v2266_v45 }
  0xfb   : > { %1758 = vst.msk [vmem:[#allocation2 + $0x20] sm:$0xff] %vm12568_vm1, %v1741_v9  ;;  %v7849_v23 = vadd.f32 %v7695_v58, %v1318_v17  ;;  %v6986_v26 = vpop.f32.mrb[10].mxu0  ;;  %v7909_v9 = vsel %vm2003_vm15, %v2018_v37, %v7705_v62  ;;  %v1937_v62 = vsel %vm1905_vm12, 65537, %v12531_v27 }
  0xfc   : > { %v7855_v31 = vadd.f32 %v6986_v26, %v7695_v58  ;;  %v1321_v32 = vpop.f32.mrb[11].mxu0  ;;  %v12508_v48 = vmax.f32 %v7839_v15, 0.0  ;;  %12786 = vst [vmem:[#allocation10_spill] sm:$0xff] %v7909_v9  ;;  %v7943_v45 = vrot.slane %v2350_v2, 7  ;;  %v2358_v55 = vshrl.u32 %v7912_v10, 16 }
  0xfd   : > { %v7863_v40 = vadd.f32 %v7695_v58, %v1321_v32  ;;  %v12505_v53 = vmax.f32 %v7849_v23, 0.0  ;;  %v2353_v32 = vshll.u32 %v7845_v19, 16  ;;  %v7955_v19 = vcombine.low %v1937_v62, %v7674_v43 }
  0xfe   : > { %v12504_v49 = vmax.f32 %v7855_v31, 0.0  ;;  %v2048_v62 = vshrl.u32 %v7777_v38, 16  ;;  %v12820_v9 = vmov 0  }
  0xff   : > { %v12503_v54 = vmax.f32 %v7863_v40, 0.0  ;;  %v2355_v42 = vor.u32 %v2353_v32, %v7943_v45  ;;  %v2064_v25 = vshrl.u32 %v7955_v19, 16 }
 0x100   : > { %v1744_v59 = vpack.c.bf16 %v12504_v49, %v12508_v48  ;;  %v424_v48 = vadd.s32 208, %v7668_v36 }
 0x101   : > { %v1743_v3 = vpack.c.bf16 %v12503_v54, %v12505_v53  ;;  %v6989_v6 = vpop.f32.mrb[12].mxu0  ;;  %v418_v54 = vadd.s32 160, %v7668_v36  ;;  %v2060_v53 = vshll.u32 %v7955_v19, 16  ;;  %v426_v19 = vadd.s32 224, %v7668_v36 }
 0x102   : > { %1761 = vst.msk [vmem:[#allocation2 + $0x38] sm:$0xff] %vm12568_vm1, %v1744_v59  ;;  %v7919_v13 = vadd.f32 %v6989_v6, %v7695_v58  ;;  %v1334_v17 = vpop.f32.mrb[13].mxu0  ;;  %v497_v59 = vand.u32 15, %v7835_v14 }
 0x103   : > { %1760 = vst.msk [vmem:[#allocation2 + $0x30] sm:$0xff] %vm12568_vm1, %v1743_v3  ;;  %v7930_v22 = vadd.f32 %v7695_v58, %v1334_v17  ;;  %v6990_v26 = vpop.f32.mrb[14].mxu0 }
 0x104   : > { %v7940_v33 = vadd.f32 %v6990_v26, %v7695_v58  ;;  %v1337_v37 = vpop.f32.mrb[15].mxu0  ;;  %v12507_v2 = vmax.f32 %v7919_v13, 0.0  ;;  %vm8006_vm4 = vcmp.lt.s32.totalorder %v497_v59, 15 }
 0x105   : > { %v7952_v39 = vadd.f32 %v7695_v58, %v1337_v37  ;;  %v12510_v17 = vmax.f32 %v7930_v22, 0.0  ;;  %v7969_v37 = vcombine.low %v7674_v43, %v2268_v50  ;;  %v2056_v50 = vshrl.u32 %v7897_v61, 16  ;;  %vm2238_vm6 = vmpackc.low %vm8006_vm4, %vm8006_vm4 }
 0x106   : > { %v12506_v3 = vmax.f32 %v7940_v33, 0.0  ;;  %v2361_v61 = vshll.u32 %v7912_v10, 16  ;;  %v1939_v10 = vsel %vm1907_vm2, 65537, %v12531_v27  ;;  %v2270_v18 = vsel %vm2238_vm6, 65537, %v12531_v27 }
 0x107   : > { %v12509_v26 = vmax.f32 %v7952_v39, 0.0  ;;  %v2058_v59 = vor.u32 %v2056_v50, %v2054_v5  ;;  %v2369_v63 = vshll.u32 %v7969_v37, 16 }
 0x108   : > { %v1746_v14 = vpack.c.bf16 %v12506_v3, %v12507_v2 }
 0x109   : > { %v1745_v38 = vpack.c.bf16 %v12509_v26, %v12510_v17  ;;  %v6993_v49 = vpop.f32.mrb[16].mxu0  ;;  %v7997_v26 = vrot.slane %v2358_v55, 7 }
 0x10a   : > { %1763 = vst.msk [vmem:[#allocation2 + $0x48] sm:$0xff] %vm12568_vm1, %v1746_v14  ;;  %v7991_v3 = vadd.f32 %v6993_v49, %v7695_v58  ;;  %v1350_v2 = vpop.f32.mrb[17].mxu0  ;;  %v2050_v14 = vor.u32 %v2048_v62, %v7851_v28  ;;  %v2366_v49 = vshrl.u32 %v7969_v37, 16  ;;  %v422_v28 = vadd.s32 192, %v7668_v36 }
 0x10b   : > { %1762 = vst.msk [vmem:[#allocation2 + $0x40] sm:$0xff] %vm12568_vm1, %v1745_v38  ;;  %v8002_v17 = vadd.f32 %v7695_v58, %v1350_v2  ;;  %v6994_v32 = vpop.f32.mrb[18].mxu0  ;;  %v574_v2 = vand.u32 15, %v418_v54  ;;  %v8023_v38 = vrot.slane %v2060_v53, 1  ;;  %v2363_v54 = vor.u32 %v2361_v61, %v7997_v26 }
 0x10c   : > { %v8011_v51 = vadd.f32 %v6994_v32, %v7695_v58  ;;  %v1353_v55 = vpop.f32.mrb[19].mxu0  ;;  %v420_v32 = vadd.s32 176, %v7668_v36  ;;  %v12520_v57 = vmax.f32 %v7991_v3, 0.0  ;;  %v8041_v56 = vrot.slane %v2366_v49, 7 }
 0x10d   : > { %v8021_v62 = vadd.f32 %v7695_v58, %v1353_v55  ;;  %v12519_v53 = vmax.f32 %v8002_v17, 0.0  ;;  %v8039_v55 = vcombine.low %v1939_v10, %v7674_v43  ;;  %vm8047_vm7 = vcmp.gt.s32.totalorder %v574_v2, 0 }
 0x10e   : > { %v12517_v6 = vmax.f32 %v8011_v51, 0.0  ;;  %v602_v0 = vand.u32 15, %v422_v28  ;;  %v1941_v49 = vsel %vm1909_vm5, 65537, %v12531_v27  ;;  %v588_v2 = vand.u32 15, %v420_v32  ;;  %v7346_v28 = vld [vmem:[%s12499_s4] sm:$0xff]   ;;  %vm1911_vm8 = vmpackc.low %vm8047_vm7, %vm8047_vm7 }
 0x10f   : > { %v12518_v50 = vmax.f32 %v8021_v62, 0.0  ;;  %v8076_v32 = vsel %vm2341_vm0, %v7866_v44, %v2355_v42  ;;  %7127 = vmatpush1.bf16.msra.mxu1 %v7346_v28  ;;  %5544 = vmatpush1.bf16.msra.mxu0 %v7346_v28  ;;  %v8092_v44 = vsel %vm2341_vm0, %v7943_v45, %v2363_v54  ;;  %v7347_v54 = vld [vmem:[%s12499_s4 + $0x8] sm:$0xff]   ;;  %v2066_v29 = vor.u32 %v2064_v25, %v8023_v38  ;;  %v7349_v25 = vld [vmem:[%s12499_s4 + $0x18] sm:$0xff]  }
 0x110   : > { %v1748_v61 = vpack.c.bf16 %v12517_v6, %v12520_v57  ;;  %12798 = vst [vmem:[#allocation14_spill] sm:$0xff] %v8076_v32  ;;  %12800 = vst [vmem:[#allocation16_spill] sm:$0xff] %v8092_v44  ;;  %vm8100_vm9 = vcmp.gt.s32.totalorder %v602_v0, 0  ;;  %7112 = vmatprep.subr.bf16.mxu1 %v12531_v27  ;;  %5545 = vmatprep.subr.bf16.mxu0 %v12531_v27  ;;  %vm8112_vm10 = vcmp.gt.s32.totalorder %v588_v2, 0  ;;  %v1943_v2 = vsel %vm1911_vm8, 65537, %v12531_v27  ;;  %v7348_v32 = vld [vmem:[%s12499_s4 + $0x10] sm:$0xff]  }
 0x111   : > { %v1747_v10 = vpack.c.bf16 %v12518_v50, %v12519_v53  ;;  %v6997_v21 = vpop.f32.mrb[20].mxu0  ;;  %v8071_v53 = vsel %vm2003_vm15, %v2050_v14, %v2054_v5  ;;  %v8098_v14 = vcombine.low %v1941_v49, %v7674_v43  ;;  %v2371_v0 = vor.u32 %v2369_v63, %v8041_v56  ;;  %vm1915_vm12 = vmpackc.low %vm8100_vm9, %vm8100_vm9 }
 0x112   : > { %1765 = vst.msk [vmem:[#allocation2 + $0x58] sm:$0xff] %vm12568_vm1, %v1748_v61  ;;  %v8068_v6 = vadd.f32 %v6997_v21, %v7695_v58  ;;  %v1366_v50 = vpop.f32.mrb[21].mxu0  ;;  %12797 = vst [vmem:[#allocation13_spill] sm:$0xff] %v8071_v53  ;;  %v8084_v21 = vsel %vm2003_vm15, %v2058_v59, %v8023_v38  ;;  %v2068_v61 = vshll.u32 %v8039_v55, 16  ;;  %v8159_v46 = vcombine.low %v1943_v2, %v7674_v43 }
 0x113   : > { %1764 = vst.msk [vmem:[#allocation2 + $0x50] sm:$0xff] %vm12568_vm1, %v1747_v10  ;;  %v8080_v57 = vadd.f32 %v7695_v58, %v1366_v50  ;;  %v6998_v24 = vpop.f32.mrb[22].mxu0  ;;  %12799 = vst [vmem:[#allocation15_spill] sm:$0xff] %v8084_v21  ;;  %v8107_v50 = vcombine.low %v7674_v43, %v2270_v18  ;;  %v616_v18 = vand.u32 15, %v424_v48  ;;  %7128 = vmatpush1.bf16.msra.mxu1 %v7347_v54  ;;  %5546 = vmatpush1.bf16.msra.mxu0 %v7347_v54 }
 0x114   : > { %v8095_v5 = vadd.f32 %v6998_v24, %v7695_v58  ;;  %v1369_v42 = vpop.f32.mrb[23].mxu0  ;;  %v12525_v49 = vmax.f32 %v8068_v6, 0.0  ;;  %v8143_v48 = vrot.slane %v2068_v61, 1  ;;  %vm1913_vm13 = vmpackc.low %vm8112_vm10, %vm8112_vm10  ;;  %7113 = vmatprep.subr.bf16.mxu1 %v12531_v27  ;;  %5547 = vmatprep.subr.bf16.mxu0 %v12531_v27  ;;  %v2072_v61 = vshrl.u32 %v8039_v55, 16 }
 0x115   : > { %v8110_v45 = vadd.f32 %v7695_v58, %v1369_v42  ;;  %v12529_v42 = vmax.f32 %v8080_v57, 0.0  ;;  %v2374_v54 = vshrl.u32 %v8107_v50, 16  ;;  %v1947_v55 = vsel %vm1915_vm12, 65537, %v12531_v27 }
 0x116   : > { %12801 = vst [vmem:[#allocation17_spill] sm:$0xff] %v8095_v5  ;;  %v12524_v28 = vmax.f32 %v8095_v5, 0.0  ;;  %vm8177_vm2 = vcmp.gt.s32.totalorder %v616_v18, 0  ;;  %v8183_v30 = vsel %vm2341_vm0, %v7997_v26, %v2371_v0  ;;  %v1945_v59 = vsel %vm1913_vm13, 65537, %v12531_v27 }
 0x117   : > { %12804 = vst [vmem:[#allocation18_spill] sm:$0xff] %v8110_v45  ;;  %v12528_v63 = vmax.f32 %v8110_v45, 0.0  ;;  %12812 = vst [vmem:[#allocation20_spill] sm:$0xff] %v8183_v30  ;;  %7129 = vmatpush1.bf16.msra.mxu1 %v7348_v32  ;;  %5548 = vmatpush1.bf16.msra.mxu0 %v7348_v32  ;;  %v525_v18 = vand.u32 15, %v411_v20  ;;  %v630_v0 = vand.u32 15, %v426_v19  ;;  %v2272_v38 = vsel %vm2240_vm14, 65537, %v12531_v27 }
 0x118   : > { %v1750_v37 = vpack.c.bf16 %v12524_v28, %v12525_v49  ;;  %v2076_v49 = vshll.u32 %v8098_v14, 16  ;;  %7114 = vmatprep.subr.bf16.mxu1 %v12531_v27  ;;  %5549 = vmatprep.subr.bf16.mxu0 %v12531_v27  ;;  %v2084_v32 = vshll.u32 %v8159_v46, 16  ;;  %v8214_v24 = vcombine.low %v1947_v55, %v7674_v43  ;;  %vm1917_vm3 = vmpackc.low %vm8177_vm2, %vm8177_vm2 }
 0x119   : > { %v1749_v44 = vpack.c.bf16 %v12528_v63, %v12529_v42  ;;  %v7001_v28 = vpop.f32.mrb[24].mxu0  ;;  %v2377_v10 = vshll.u32 %v8107_v50, 16  ;;  %v428_v55 = vadd.s32 240, %v7668_v36  ;;  %v8232_v27 = vcombine.low %v7674_v43, %v2272_v38 }
 0x11a   : > { %1767 = vst.msk [vmem:[#allocation2 + $0x68] sm:$0xff] %vm12568_vm1, %v1750_v37  ;;  %v8169_v63 = vadd.f32 %v7001_v28, %v7695_v58  ;;  %v1382_v42 = vpop.f32.mrb[25].mxu0  ;;  %vm8234_vm4 = vcmp.lt.s32.totalorder %v525_v18, 15  ;;  %v2080_v30 = vshrl.u32 %v8098_v14, 16  ;;  %vm8244_vm5 = vcmp.gt.s32.totalorder %v630_v0, 0  ;;  %v7350_v0 = vld [vmem:[%s12499_s4 + $0x20] sm:$0xff]  }
 0x11b   : > { %1766 = vst.msk [vmem:[#allocation2 + $0x60] sm:$0xff] %vm12568_vm1, %v1749_v44  ;;  %v8187_v28 = vadd.f32 %v7695_v58, %v1382_v42  ;;  %v7002_v37 = vpop.f32.mrb[26].mxu0  ;;  %v8200_v42 = vrot.slane %v2374_v54, 7  ;;  %7130 = vmatpush1.bf16.msra.mxu1 %v7349_v25  ;;  %5550 = vmatpush1.bf16.msra.mxu0 %v7349_v25  ;;  %12817 = vst [vmem:[#allocation25_spill] sm:$0xff] %v8232_v27  ;;  %v2100_v14 = vshll.u32 %v8214_v24, 16  ;;  %vm12567_vm10 = vcmp.ne.s16.totalorder %v7828_v12, 0 }
 0x11c   : > { %12809 = vst [vmem:[#allocation19_spill] sm:$0xff] %v8169_v63  ;;  %v8197_v26 = vadd.f32 %v7002_v37, %v7695_v58  ;;  %v1385_v44 = vpop.f32.mrb[27].mxu0  ;;  %v12538_v19 = vmax.f32 %v8169_v63, 0.0  ;;  %v8226_v37 = vcombine.low %v1945_v59, %v7674_v43  ;;  %7115 = vmatprep.subr.bf16.mxu1 %v12820_v9  ;;  %5551 = vmatprep.subr.bf16.mxu0 %v12820_v9  ;;  %vm2242_vm6 = vmpackc.low %vm8234_vm4, %vm8234_vm4  ;;  %vm12566_vm12 = vcmp.ne.s16.totalorder %v7894_v1, 0 }
 0x11d   : > { %12813 = vst [vmem:[#allocation21_spill] sm:$0xff] %v8187_v28  ;;  %12815 = vst [vmem:[#allocation23_spill] sm:$0xff] %v8200_v42  ;;  %v8210_v20 = vadd.f32 %v7695_v58, %v1385_v44  ;;  %v1949_v44 = vsel %vm1917_vm3, 65537, %v12820_v9  ;;  %v12823_v18 = vmax.f32 %v8187_v28, 0.0  ;;  %vm12565_vm13 = vcmp.ne.s16.totalorder %v8071_v53, 0 }
 0x11e   : > { %12814 = vst [vmem:[#allocation22_spill] sm:$0xff] %v8197_v26  ;;  %v12537_v54 = vmax.f32 %v8197_v26, 0.0  ;;  %v8277_v28 = vcombine.low %v1949_v44, %v7674_v43  ;;  %vm1919_vm7 = vmpackc.low %vm8244_vm5, %vm8244_vm5  ;;  %v2102_v44 = vrot.slane %v2100_v14, 1  ;;  %vm12564_vm14 = vcmp.ne.s16.totalorder %v8084_v21, 0 }
 0x11f   : > { %12816 = vst [vmem:[#allocation24_spill] sm:$0xff] %v8210_v20  ;;  %v12824_v38 = vmax.f32 %v8210_v20, 0.0  ;;  %v8265_v20 = vsel %vm2003_vm15, %v2066_v29, %v8143_v48  ;;  %7131 = vmatpush1.bf16.msra.mxu1 %v7350_v0  ;;  %5552 = vmatpush1.bf16.msra.mxu0 %v7350_v0 }
 0x120   : > { %v1752_v59 = vpack.c.bf16 %v12537_v54, %v12538_v19  ;;  %v2074_v54 = vor.u32 %v2072_v61, %v8143_v48  ;;  %v2078_v19 = vrot.slane %v2076_v49, 1  ;;  %12826 = vst [vmem:[#allocation27_spill] sm:$0xff] %v8265_v20  ;;  %v2379_v61 = vor.u32 %v2377_v10, %v8200_v42  ;;  %7116 = vmatprep.subr.bf16.mxu1 %v12820_v9 }
 0x121   : > { %v1751_v25 = vpack.c.bf16 %v12824_v38, %v12823_v18  ;;  %v7005_v60 = vpop.f32.mrb[28].mxu0  ;;  %v644_v18 = vand.u32 15, %v428_v55  ;;  %v2088_v38 = vshrl.u32 %v8159_v46, 16  ;;  %v2382_v46 = vshrl.u32 %v8232_v27, 16  ;;  %5553 = vmatprep.subr.bf16.mxu0 %v12820_v9 }
 0x122   : > { %1769 = vst.msk [vmem:[#allocation2 + $0x78] sm:$0xff] %vm12568_vm1, %v1752_v59  ;;  %v8261_v8 = vadd.f32 %v7005_v60, %v7695_v58  ;;  %v1398_v26 = vpop.f32.mrb[29].mxu0  ;;  %v2086_v60 = vrot.slane %v2084_v32, 1  ;;  %v2082_v10 = vor.u32 %v2080_v30, %v2078_v19  ;;  %v2096_v55 = vshrl.u32 %v8226_v37, 16 }
 0x123   : > { %1768 = vst.msk [vmem:[#allocation2 + $0x70] sm:$0xff] %vm12568_vm1, %v1751_v25  ;;  %v8273_v49 = vadd.f32 %v7695_v58, %v1398_v26  ;;  %v7006_v59 = vpop.f32.mrb[30].mxu0  ;;  %v2092_v26 = vshll.u32 %v8226_v37, 16  ;;  %v7351_v25 = vld [vmem:[%s12499_s4 + $0x28] sm:$0xff]   ;;  %v2274_v30 = vsel %vm2242_vm6, 65537, %v12820_v9  ;;  %v1951_v37 = vsel %vm1919_vm7, 65537, %v12820_v9 }
 0x124   : > { %12825 = vst [vmem:[#allocation26_spill] sm:$0xff] %v8261_v8  ;;  %v8283_v29 = vadd.f32 %v7006_v59, %v7695_v58  ;;  %v1401_v48 = vpop.f32.mrb[31].mxu0  ;;  %vm8310_vm8 = vcmp.gt.s32.totalorder %v644_v18, 0  ;;  %v2104_v42 = vshrl.u32 %v8214_v24, 16  ;;  %v2108_v0 = vshll.u32 %v8277_v28, 16  ;;  %7132 = vmatpush1.bf16.msra.mxu1 %v7351_v25  ;;  %5554 = vmatpush1.bf16.msra.mxu0 %v7351_v25 }
 0x125   : > { %v8290_v32 = vadd.f32 %v7695_v58, %v1401_v48  ;;  %v12549_v48 = vmax.f32 %v8273_v49, 0.0  ;;  %v12830_v59 = vmax.f32 %v8261_v8, 0.0  ;;  %v8323_v18 = vsel %vm2003_vm15, %v2074_v54, %v2078_v19  ;;  %7117 = vmatprep.subr.bf16.mxu1 %v12820_v9  ;;  %5555 = vmatprep.subr.bf16.mxu0 %v12820_v9  ;;  %vm1921_vm9 = vmpackc.low %vm8310_vm8, %vm8310_vm8  ;;  %v7352_v19 = vld [vmem:[%s12499_s4 + $0x30] sm:$0xff]  }
 0x126   : > { %12827 = vst [vmem:[#allocation28_spill] sm:$0xff] %v8283_v29  ;;  %v12831_v2 = vmax.f32 %v8283_v29, 0.0  ;;  %12832 = vst [vmem:[#allocation29_spill] sm:$0xff] %v8323_v18  ;;  %v2090_v45 = vor.u32 %v2088_v38, %v2086_v60  ;;  %v2094_v5 = vrot.slane %v2092_v26, 1  ;;  %v8332_v8 = vcombine.low %v1951_v37, %v7674_v43 }
 0x127   : > { %v12548_v50 = vmax.f32 %v8290_v32, 0.0  ;;  %v8342_v54 = vsel %vm2341_vm0, %v8041_v56, %v2379_v61  ;;  %v8345_v38 = vcombine.low %v7674_v43, %v2274_v30  ;;  %v8355_v56 = vsel %vm2003_vm15, %v2082_v10, %v2086_v60 }
 0x128   : > { %v1754_v63 = vpack.c.bf16 %v12831_v2, %v12830_v59  ;;  %12833 = vst [vmem:[#allocation30_spill] sm:$0xff] %v8332_v8  ;;  %12834 = vst [vmem:[#allocation31_spill] sm:$0xff] %v8342_v54  ;;  %v2098_v37 = vor.u32 %v2096_v55, %v2094_v5  ;;  %v8349_v2 = vrot.slane %v2382_v46, 7  ;;  %v2106_v61 = vor.u32 %v2104_v42, %v2102_v44 }
 0x129   : > { %v1753_v24 = vpack.c.bf16 %v12548_v50, %v12549_v48  ;;  %v7009_v25 = vpop.f32.mrb[32].mxu0  ;;  %12835 = vst [vmem:[#allocation32_spill] sm:$0xff] %v8345_v38  ;;  %12837 = vst [vmem:[#allocation34_spill] sm:$0xff] %v8355_v56  ;;  %v8357_v30 = vrot.slane %v2108_v0, 1  ;;  %7133 = vmatpush1.bf16.msra.mxu1 %v7352_v19  ;;  %5556 = vmatpush1.bf16.msra.mxu0 %v7352_v19  ;;  %v1953_v60 = vsel %vm1921_vm9, 65537, %v12820_v9  ;;  %v12839_v0 = vmax.f32 %v7716_v4, 0.0 }
 0x12a   : > { %1771 = vst.msk [vmem:[#allocation2 + $0x88] sm:$0xff] %vm12568_vm1, %v1754_v63  ;;  %v1423_v26 = vadd.f32 %v7009_v25, %v7695_v58  ;;  %v1414_v59 = vpop.f32.mrb[33].mxu0  ;;  %12836 = vst [vmem:[#allocation33_spill] sm:$0xff] %v8349_v2  ;;  %v8361_v25 = vsel %vm2003_vm15, %v2090_v45, %v2094_v5  ;;  %7118 = vmatprep.subr.bf16.mxu1 %v12820_v9  ;;  %5557 = vmatprep.subr.bf16.mxu0 %v12820_v9  ;;  %v7353_v5 = vld [vmem:[%s12499_s4 + $0x38] sm:$0xff]   ;;  %v12843_v4 = vmax.f32 %v7726_v11, 0.0  ;;  %v7354_v11 = vld [vmem:[%s12499_s4 + $0x40] sm:$0xff]  }
 0x12b   : > { %1770 = vst.msk [vmem:[#allocation2 + $0x80] sm:$0xff] %vm12568_vm1, %v1753_v24  ;;  %v1415_v48 = vadd.f32 %v7695_v58, %v1414_v59  ;;  %v7010_v29 = vpop.f32.mrb[34].mxu0  ;;  %12838 = vst [vmem:[#allocation35_spill] sm:$0xff] %v8361_v25  ;;  %v8380_v19 = vsel %vm2003_vm15, %v2098_v37, %v2102_v44  ;;  %v8389_v50 = vsel %vm2003_vm15, %v2106_v61, %v8357_v30  ;;  %v12847_v2 = vmax.f32 %v7793_v47, 0.0  ;;  %v7356_v47 = vld [vmem:[%s12499_s4 + $0x50] sm:$0xff]  }
 0x12c   : > { %v1575_v63 = vmax.f32 %v1423_v26, 0.0  ;;  %v1426_v55 = vadd.f32 %v7010_v29, %v7695_v58  ;;  %v1417_v46 = vpop.f32.mrb[35].mxu0  ;;  %v2116_v29 = vshll.u32 %v8332_v8, 16  ;;  %12840 = vst [vmem:[#allocation36_spill] sm:$0xff] %v8380_v19  ;;  %v8383_v26 = vadd.s32 120, %v7668_v36  ;;  %12842 = vst [vmem:[#allocation37_spill] sm:$0xff] %v8389_v50 }
 0x12d   : > { %v1573_v42 = vmax.f32 %v1415_v48, 0.0  ;;  %v1418_v10 = vadd.f32 %v7695_v58, %v1417_v46  ;;  %v12841_v48 = vmax.f32 %v7722_v7, 0.0  ;;  %v8392_v45 = vcombine.low %v1953_v60, %v7674_v43  ;;  %7134 = vmatpush1.bf16.msra.mxu1 %v7353_v5  ;;  %5558 = vmatpush1.bf16.msra.mxu0 %v7353_v5 }
 0x12e   : > { %v1607_v14 = vsub.f32 %v12839_v0, %v1575_v63  ;;  %v1576_v24 = vmax.f32 %v1426_v55, 0.0  ;;  %7119 = vmatprep.subr.bf16.mxu1 %v12820_v9  ;;  %v8399_v7 = vadd.s32 136, %v7668_v36  ;;  %5559 = vmatprep.subr.bf16.mxu0 %v12820_v9  ;;  %v8404_v5 = vrot.slane %v2116_v29, 1 }
 0x12f   : > { %v1605_v59 = vsub.f32 %v12841_v48, %v1573_v42  ;;  %v1574_v46 = vmax.f32 %v1418_v10, 0.0  ;;  %v12844_v10 = vmax.f32 %v7738_v16, 0.0  ;;  %v8414_v16 = vadd.s32 152, %v7668_v36 }
 0x130   : > { %v1608_v44 = vsub.f32 %v12843_v4, %v1576_v24  ;;  %v1773_v37 = vpack.c.bf16 %v1576_v24, %v1575_v63  ;;  %vm12562_vm2 = vcmp.ne.s16.totalorder %v8265_v20, 0  ;;  %vm12559_vm3 = vcmp.ne.s16.totalorder %v8323_v18, 0 }
 0x131   : > { %v1637_v61 = vand.u32 2147483647, %v1605_v59  ;;  %v1606_v60 = vsub.f32 %v12844_v10, %v1574_v46  ;;  %v1772_v0 = vpack.c.bf16 %v1574_v46, %v1573_v42  ;;  %v7013_v48 = vpop.f32.mrb[36].mxu0  ;;  %v1639_v42 = vand.u32 2147483647, %v1607_v14  ;;  %7135 = vmatpush1.bf16.msra.mxu1 %v7354_v11  ;;  %5560 = vmatpush1.bf16.msra.mxu0 %v7354_v11 }
 0x132   : > { %1792 = vst.msk [vmem:[#allocation2 + $0xb8] sm:$0xff] %vm12568_vm1, %v1773_v37  ;;  %v1439_v63 = vadd.f32 %v7013_v48, %v7695_v58  ;;  %v1430_v24 = vpop.f32.mrb[37].mxu0  ;;  %v8419_v37 = vadd.s32 168, %v7668_v36  ;;  %v1640_v48 = vand.u32 2147483647, %v1608_v44  ;;  %7120 = vmatprep.subr.bf16.mxu1 %v12820_v9  ;;  %5561 = vmatprep.subr.bf16.mxu0 %v12820_v9  ;;  %v7355_v44 = vld [vmem:[%s12499_s4 + $0x48] sm:$0xff]  }
 0x133   : > { %v1638_v46 = vand.u32 2147483647, %v1606_v60  ;;  %1791 = vst.msk [vmem:[#allocation2 + $0xb0] sm:$0xff] %vm12568_vm1, %v1772_v0  ;;  %v1431_v29 = vadd.f32 %v7695_v58, %v1430_v24  ;;  %v7014_v10 = vpop.f32.mrb[38].mxu0  ;;  %v1669_v60 = vsel %vm12568_vm1, %v1637_v61, 0.0  ;;  %v1672_v43 = vsel %vm12568_vm1, %v1639_v42, 0.0 }
 0x134   : > { %v1579_v55 = vmax.f32 %v1439_v63, 0.0  ;;  %v1442_v4 = vadd.f32 %v7014_v10, %v7695_v58  ;;  %v1433_v59 = vpop.f32.mrb[39].mxu0  ;;  %v12845_v63 = vmax.f32 %v7774_v35, 0.0  ;;  %v12846_v61 = vmax.f32 %v7786_v41, 0.0 }
 0x135   : > { %v1670_v0 = vsel %vm12568_vm1, %v1638_v46, 0.0  ;;  %v1577_v24 = vmax.f32 %v1431_v29, 0.0  ;;  %v1434_v54 = vadd.f32 %v7695_v58, %v1433_v59  ;;  %7136 = vmatpush1.bf16.msra.mxu1 %v7355_v44  ;;  %5562 = vmatpush1.bf16.msra.mxu0 %v7355_v44  ;;  %v8442_v35 = vadd.s32 184, %v7668_v36 }
 0x136   : > { %v1671_v11 = vadd.f32 %v1670_v0, %v1669_v60  ;;  %v1611_v10 = vsub.f32 %v12845_v63, %v1579_v55  ;;  %v1580_v38 = vmax.f32 %v1442_v4, 0.0  ;;  %7121 = vmatprep.subr.bf16.mxu1 %v12820_v9  ;;  %5563 = vmatprep.subr.bf16.mxu0 %v12820_v9  ;;  %v1674_v41 = vsel %vm12568_vm1, %v1640_v48, 0.0 }
 0x137   : > { %v1609_v27 = vsub.f32 %v12846_v61, %v1577_v24  ;;  %v1578_v46 = vmax.f32 %v1434_v54, 0.0  ;;  %v12848_v54 = vmax.f32 %v7799_v52, 0.0  ;;  %v12852_v14 = vmax.f32 %v7855_v31, 0.0  ;;  %v7358_v31 = vld [vmem:[%s12499_s4 + $0x60] sm:$0xff]  }
 0x138   : > { %v1673_v29 = vadd.f32 %v1672_v43, %v1671_v11  ;;  %v1612_v60 = vsub.f32 %v12847_v2, %v1580_v38  ;;  %v1775_v0 = vpack.c.bf16 %v1580_v38, %v1579_v55  ;;  %v1643_v38 = vand.u32 2147483647, %v1611_v10 }
 0x139   : > { %v1641_v4 = vand.u32 2147483647, %v1609_v27  ;;  %v1610_v42 = vsub.f32 %v12848_v54, %v1578_v46  ;;  %v1774_v63 = vpack.c.bf16 %v1578_v46, %v1577_v24  ;;  %v7017_v44 = vpop.f32.mrb[40].mxu0  ;;  %v3189_v43 = vld [vmem:[#allocation2 + $0xb8] sm:$0xff]  ;;  %7137 = vmatpush1.bf16.msra.mxu1 %v7356_v47  ;;  %5564 = vmatpush1.bf16.msra.mxu0 %v7356_v47  ;;  %vm12560_vm4 = vcmp.ne.s16.totalorder %v8355_v56, 0 }
 0x13a   : > { %v1675_v2 = vadd.f32 %v1674_v41, %v1673_v29  ;;  %v1644_v55 = vand.u32 2147483647, %v1612_v60  ;;  %1794 = vst.msk [vmem:[#allocation2 + $0xc8] sm:$0xff] %vm12568_vm1, %v1775_v0  ;;  %v1455_v11 = vadd.f32 %v7017_v44, %v7695_v58  ;;  %v1446_v61 = vpop.f32.mrb[41].mxu0  ;;  %v3324_v46 = vshll.u32 %v3189_v43, 16  ;;  %7122 = vmatprep.subr.bf16.mxu1 %v12820_v9  ;;  %5565 = vmatprep.subr.bf16.mxu0 %v12820_v9  ;;  %v7357_v44 = vld [vmem:[%s12499_s4 + $0x58] sm:$0xff]  }
 0x13b   : > { %v1676_v27 = vsel %vm12568_vm1, %v1641_v4, 0.0  ;;  %v1642_v52 = vand.u32 2147483647, %v1610_v42  ;;  %1793 = vst.msk [vmem:[#allocation2 + $0xc0] sm:$0xff] %vm12568_vm1, %v1774_v63  ;;  %v1447_v48 = vadd.f32 %v7695_v58, %v1446_v61  ;;  %v7018_v24 = vpop.f32.mrb[42].mxu0  ;;  %v8461_v41 = vadd.s32 200, %v7668_v36 }
 0x13c   : > { %v1677_v10 = vadd.f32 %v1676_v27, %v1675_v2  ;;  %v1583_v29 = vmax.f32 %v1455_v11, 0.0  ;;  %v1458_v60 = vadd.f32 %v7018_v24, %v7695_v58  ;;  %v1449_v0 = vpop.f32.mrb[43].mxu0  ;;  %v8466_v63 = vrot.slane %v3324_v46, 1 }
 0x13d   : > { %v1678_v4 = vsel %vm12568_vm1, %v1642_v52, 0.0  ;;  %v1581_v54 = vmax.f32 %v1447_v48, 0.0  ;;  %v1450_v42 = vadd.f32 %v7695_v58, %v1449_v0  ;;  %v1680_v47 = vsel %vm12568_vm1, %v1643_v38, 0.0  ;;  %7138 = vmatpush1.bf16.msra.mxu1 %v7357_v44  ;;  %5566 = vmatpush1.bf16.msra.mxu0 %v7357_v44 }
 0x13e   : > { %12849 = vst [vmem:[#allocation38_spill] sm:$0xff] %v8466_v63  ;;  %v1679_v2 = vadd.f32 %v1678_v4, %v1677_v10  ;;  %v12850_v11 = vmax.f32 %v7839_v15, 0.0  ;;  %v1584_v27 = vmax.f32 %v1458_v60, 0.0  ;;  %v1682_v24 = vsel %vm12568_vm1, %v1644_v55, 0.0  ;;  %7123 = vmatprep.subr.bf16.mxu1 %v12820_v9  ;;  %5567 = vmatprep.subr.bf16.mxu0 %v12820_v9 }
 0x13f   : > { %v12851_v52 = vmax.f32 %v7849_v23, 0.0  ;;  %v1582_v59 = vmax.f32 %v1450_v42, 0.0  ;;  %v3328_v58 = vshrl.u32 %v3189_v43, 16  ;;  %v12853_v55 = vmax.f32 %v7863_v40, 0.0  ;;  %v8496_v40 = vld [vmem:[%s12498_s3] ss:$0 sm:$0xff] }
 0x140   : > { %v1615_v61 = vsub.f32 %v12850_v11, %v1583_v29  ;;  %v1681_v46 = vadd.f32 %v1680_v47, %v1679_v2  ;;  %v1616_v8 = vsub.f32 %v12852_v14, %v1584_v27  ;;  %v1777_v38 = vpack.c.bf16 %v1584_v27, %v1583_v29 }
 0x141   : > { %v1613_v48 = vsub.f32 %v12851_v52, %v1581_v54  ;;  %v1614_v10 = vsub.f32 %v12853_v55, %v1582_v59  ;;  %v1776_v23 = vpack.c.bf16 %v1582_v59, %v1581_v54  ;;  %v7021_v60 = vpop.f32.mrb[44].mxu0  ;;  %v8483_v4 = vld [vmem:[#allocation2 + $0xc8] sm:$0xff]  ;;  %v8486_v43 = vor.u32 %v3328_v58, %v8466_v63  ;;  %7139 = vmatpush1.bf16.msra.mxu1 %v7358_v31 }
 0x142   : > { %v1647_v0 = vand.u32 2147483647, %v1615_v61  ;;  %v1683_v29 = vadd.f32 %v1682_v24, %v1681_v46  ;;  %v1648_v42 = vand.u32 2147483647, %v1616_v8  ;;  %1796 = vst.msk [vmem:[#allocation2 + $0xd8] sm:$0xff] %vm12568_vm1, %v1777_v38  ;;  %v1471_v59 = vadd.f32 %v8496_v40, %v7021_v60  ;;  %v1462_v54 = vpop.f32.mrb[45].mxu0  ;;  %5568 = vmatpush1.bf16.msra.mxu0 %v7358_v31  ;;  %7124 = vmatprep.subr.bf16.mxu1 %v12820_v9 }
 0x143   : > { %v1645_v15 = vand.u32 2147483647, %v1613_v48  ;;  %v8499_v44 = vld [vmem:[#allocation2 + $0xc0] sm:$0xff]  ;;  %v1646_v2 = vand.u32 2147483647, %v1614_v10  ;;  %1795 = vst.msk [vmem:[#allocation2 + $0xd0] sm:$0xff] %vm12568_vm1, %v1776_v23  ;;  %v1463_v11 = vadd.f32 %v8496_v40, %v1462_v54  ;;  %5569 = vmatprep.subr.bf16.mxu0 %v12820_v9 }
 0x144   : > { %v1688_v14 = vsel %vm12568_vm1, %v1647_v0, 0.0  ;;  %v3244_v8 = vsel %vm12567_vm10, %v8483_v4, 0  ;;  %v7022_v61 = vpop.f32.mrb[46].mxu0  ;;  %v1690_v24 = vsel %vm12568_vm1, %v1648_v42, 0.0  ;;  %v1587_v52 = vmax.f32 %v1471_v59, 0.0  ;;  %v7359_v55 = vld [vmem:[%s12499_s4 + $0x68] sm:$0xff]  }
 0x145   : > { %v1684_v47 = vsel %vm12568_vm1, %v1645_v15, 0.0  ;;  %3544 = vrot.lane.b32.xlu0 %v3244_v8, %s7454_s23  ;;  %v1474_v48 = vadd.f32 %v8496_v40, %v7022_v61  ;;  %v1465_v58 = vpop.f32.mrb[47].mxu0  ;;  %v1686_v46 = vsel %vm12568_vm1, %v1646_v2, 0.0  ;;  %v1585_v0 = vmax.f32 %v1463_v11, 0.0  ;;  %7140 = vmatpush1.bf16.msra.mxu1 %v7359_v55 }
 0x146   : > { %v1685_v27 = vadd.f32 %v1684_v47, %v1683_v29  ;;  %v1466_v38 = vadd.f32 %v8496_v40, %v1465_v58  ;;  %v3243_v15 = vsel %vm2134_vm11, %v8499_v44, 0  ;;  %v12854_v23 = vmax.f32 %v7919_v13, 0.0  ;;  %5570 = vmatpush1.bf16.msra.mxu0 %v7359_v55  ;;  %7125 = vmatprep.subr.bf16.mxu1 %v12820_v9 }
 0x147   : > { %v1588_v31 = vmax.f32 %v1474_v48, 0.0  ;;  %3542 = vrot.lane.b32.xlu1 %v3243_v15, %s7454_s23  ;;  %v3332_v29 = vshll.u32 %v8499_v44, 16  ;;  %v12855_v42 = vmax.f32 %v7930_v22, 0.0  ;;  %v3336_v47 = vshrl.u32 %v8499_v44, 16  ;;  %5571 = vmatprep.subr.bf16.mxu0 %v12820_v9 }
 0x148   : > { %v1687_v10 = vadd.f32 %v1686_v46, %v1685_v27  ;;  %v1619_v60 = vsub.f32 %v12854_v23, %v1587_v52  ;;  %v1586_v54 = vmax.f32 %v1466_v38, 0.0  ;;  %v3340_v2 = vshll.u32 %v8483_v4, 16 }
 0x149   : > { %v1617_v59 = vsub.f32 %v12855_v42, %v1585_v0  ;;  %v12856_v13 = vmax.f32 %v7940_v33, 0.0  ;;  %v1779_v27 = vpack.c.bf16 %v1588_v31, %v1587_v52  ;;  %v12857_v22 = vmax.f32 %v7952_v39, 0.0  ;;  %v7025_v38 = vpop.f32.mrb[48].mxu0 }
 0x14a   : > { %v1689_v11 = vadd.f32 %v1688_v14, %v1687_v10  ;;  %v1651_v8 = vand.u32 2147483647, %v1619_v60  ;;  %v1778_v46 = vpack.c.bf16 %v1586_v54, %v1585_v0  ;;  %v3334_v44 = vrot.slane %v3332_v29, 1  ;;  %v7360_v14 = vld [vmem:[%s12499_s4 + $0x70] sm:$0xff]   ;;  %v1478_v10 = vpop.f32.mrb[49].mxu0 }
 0x14b   : > { %v1620_v61 = vsub.f32 %v12856_v13, %v1588_v31  ;;  %v1649_v48 = vand.u32 2147483647, %v1617_v59  ;;  %v1618_v58 = vsub.f32 %v12857_v22, %v1586_v54  ;;  %1798 = vst.msk [vmem:[#allocation2 + $0xe8] sm:$0xff] %vm12568_vm1, %v1779_v27  ;;  %v1487_v52 = vadd.f32 %v8496_v40, %v7025_v38  ;;  %v7026_v31 = vpop.f32.mrb[50].mxu0  ;;  %v8548_v29 = vld [vmem:[#allocation2 + $0xd0] sm:$0xff]  ;;  %7141 = vmatpush1.bf16.msra.mxu1 %v7360_v14  ;;  %v7361_v27 = vld [vmem:[%s12499_s4 + $0x78] sm:$0xff]  }
 0x14c   : > { %v1696_v15 = vsel %vm12568_vm1, %v1651_v8, 0.0  ;;  %v1691_v33 = vadd.f32 %v1690_v24, %v1689_v11  ;;  %1797 = vst.msk [vmem:[#allocation2 + $0xe0] sm:$0xff] %vm12568_vm1, %v1778_v46  ;;  %v8545_v0 = vsel %vm2003_vm15, %v8486_v43, %v3334_v44  ;;  %v1479_v60 = vadd.f32 %v8496_v40, %v1478_v10  ;;  %5572 = vmatpush1.bf16.msra.mxu0 %v7360_v14  ;;  %v1481_v11 = vpop.f32.mrb[51].mxu0 }
 0x14d   : > { %v1652_v55 = vand.u32 2147483647, %v1620_v61  ;;  %v1692_v23 = vsel %vm12568_vm1, %v1649_v48, 0.0  ;;  %v1650_v39 = vand.u32 2147483647, %v1618_v58  ;;  %12858 = vst [vmem:[#allocation39_spill] sm:$0xff] %v8545_v0  ;;  %3441 = vrot.lane.b32.xlu1 %v8545_v0, %s7454_s23  ;;  %v3338_v54 = vor.u32 %v3336_v47, %v3334_v44  ;;  %7126 = vmatprep.subr.bf16.mxu1 %v12820_v9 }
 0x14e   : > { %v1693_v24 = vadd.f32 %v1692_v23, %v1691_v33  ;;  %v1591_v59 = vmax.f32 %v1487_v52, 0.0  ;;  %v1589_v8 = vmax.f32 %v1479_v60, 0.0  ;;  %v3342_v13 = vrot.slane %v3340_v2, 1  ;;  %5573 = vmatprep.subr.bf16.mxu0 %v12820_v9  ;;  %v12938_v0 = vld [vmem:[#allocation14_spill] sm:$0xff] }
 0x14f   : > { %v1698_v42 = vsel %vm12568_vm1, %v1652_v55, 0.0  ;;  %v1694_v43 = vsel %vm12568_vm1, %v1650_v39, 0.0  ;;  %v1490_v61 = vadd.f32 %v8496_v40, %v7026_v31  ;;  %v12859_v22 = vmax.f32 %v7991_v3, 0.0  ;;  %7142 = vmatpush1.bf16.msra.mxu1 %v7361_v27 }
 0x150   : > { %v1695_v48 = vadd.f32 %v1694_v43, %v1693_v24  ;;  %v1482_v47 = vadd.f32 %v8496_v40, %v1481_v11  ;;  %v3245_v46 = vsel %vm12566_vm12, %v8548_v29, 0  ;;  %v12860_v2 = vmax.f32 %v8002_v17, 0.0  ;;  %5574 = vmatpush1.bf16.msra.mxu0 %v7361_v27  ;;  %5832 = vmatprep.subr.bf16.mxu1 %v12820_v9  ;;  %v8580_v24 = vld [vmem:[#allocation2 + $0xd8] sm:$0xff] }
 0x151   : > { %v1623_v58 = vsub.f32 %v12859_v22, %v1591_v59  ;;  %v8570_v38 = vsel %vm2003_vm15, %v3338_v54, %v3342_v13  ;;  %v1592_v14 = vmax.f32 %v1490_v61, 0.0  ;;  %v3344_v33 = vshrl.u32 %v8483_v4, 16  ;;  %v7029_v31 = vpop.f32.mrb[52].mxu0 }
 0x152   : > { %v1621_v44 = vsub.f32 %v12860_v2, %v1589_v8  ;;  %12861 = vst [vmem:[#allocation40_spill] sm:$0xff] %v8570_v38  ;;  %v1697_v3 = vadd.f32 %v1696_v15, %v1695_v48  ;;  %3443 = vrot.lane.b32.xlu0 %v8570_v38, %s7454_s23  ;;  %v1590_v52 = vmax.f32 %v1482_v47, 0.0  ;;  %v3348_v10 = vshll.u32 %v8548_v29, 16  ;;  %v1494_v27 = vpop.f32.mrb[53].mxu0 }
 0x153   : > { %v1655_v55 = vand.u32 2147483647, %v1623_v58  ;;  %v12862_v23 = vmax.f32 %v8011_v51, 0.0  ;;  %v1781_v60 = vpack.c.bf16 %v1592_v14, %v1591_v59  ;;  %v3346_v4 = vor.u32 %v3344_v33, %v3342_v13  ;;  %v7030_v13 = vpop.f32.mrb[54].mxu0 }
 0x154   : > { %v1653_v17 = vand.u32 2147483647, %v1621_v44  ;;  %v1699_v54 = vadd.f32 %v1698_v42, %v1697_v3  ;;  %v12863_v11 = vmax.f32 %v8021_v62, 0.0  ;;  %v1780_v61 = vpack.c.bf16 %v1590_v52, %v1589_v8  ;;  %v1497_v8 = vpop.f32.mrb[55].mxu0 }
 0x155   : > { %v1624_v39 = vsub.f32 %v12862_v23, %v1592_v14  ;;  %v1704_v15 = vsel %vm12568_vm1, %v1655_v55, 0.0  ;;  %1800 = vst.msk [vmem:[#allocation2 + $0xf8] sm:$0xff] %vm12568_vm1, %v1781_v60  ;;  %v3350_v51 = vrot.slane %v3348_v10, 1  ;;  %v1503_v59 = vadd.f32 %v8496_v40, %v7029_v31 }
 0x156   : > { %v1622_v43 = vsub.f32 %v12863_v11, %v1590_v52  ;;  %v1700_v48 = vsel %vm12568_vm1, %v1653_v17, 0.0  ;;  %1799 = vst.msk [vmem:[#allocation2 + $0xf0] sm:$0xff] %vm12568_vm1, %v1780_v61  ;;  %3546 = vrot.lane.b32.xlu0 %v3245_v46, %s7454_s23  ;;  %v1495_v62 = vadd.f32 %v8496_v40, %v1494_v27  ;;  %v3246_v42 = vsel %vm12565_vm13, %v8580_v24, 0 }
 0x157   : > { %v1656_v22 = vand.u32 2147483647, %v1624_v39  ;;  %v1701_v58 = vadd.f32 %v1700_v48, %v1699_v54  ;;  %v8596_v44 = vsel %vm2003_vm15, %v3346_v4, %v3350_v51  ;;  %v1595_v14 = vmax.f32 %v1503_v59, 0.0  ;;  %v3194_v4 = vld [vmem:[#allocation2 + $0xe0] sm:$0xff]  ;;  %v12867_v48 = vld [vmem:[#allocation17_spill] sm:$0xff] }
 0x158   : > { %v1654_v47 = vand.u32 2147483647, %v1622_v43  ;;  %12864 = vst [vmem:[#allocation41_spill] sm:$0xff] %v8596_v44  ;;  %v1506_v33 = vadd.f32 %v8496_v40, %v7030_v13  ;;  %3445 = vrot.lane.b32.xlu1 %v8596_v44, %s7454_s23  ;;  %v1593_v46 = vmax.f32 %v1495_v62, 0.0  ;;  %v1498_v55 = vadd.f32 %v8496_v40, %v1497_v8 }
 0x159   : > { %v1706_v2 = vsel %vm12568_vm1, %v1656_v22, 0.0  ;;  %v3352_v52 = vshrl.u32 %v8548_v29, 16  ;;  %v12865_v17 = vmax.f32 %v8068_v6, 0.0  ;;  %v3356_v60 = vshll.u32 %v8580_v24, 16  ;;  %v7033_v13 = vpop.f32.mrb[56].mxu0 }
 0x15a   : > { %v1702_v3 = vsel %vm12568_vm1, %v1654_v47, 0.0  ;;  %v1596_v39 = vmax.f32 %v1506_v33, 0.0  ;;  %v12866_v31 = vmax.f32 %v8080_v57, 0.0  ;;  %3548 = vrot.lane.b32.xlu0 %v3246_v42, %s7454_s23  ;;  %v1594_v11 = vmax.f32 %v1498_v55, 0.0  ;;  %v12869_v47 = vld [vmem:[#allocation18_spill] sm:$0xff]  ;;  %v1510_v33 = vpop.f32.mrb[57].mxu0 }
 0x15b   : > { %v1703_v10 = vadd.f32 %v1702_v3, %v1701_v58  ;;  %v1627_v23 = vsub.f32 %v12865_v17, %v1595_v14  ;;  %v3354_v43 = vor.u32 %v3352_v52, %v3350_v51  ;;  %v3247_v61 = vsel %vm12564_vm14, %v3194_v4, 0  ;;  %v7034_v52 = vpop.f32.mrb[58].mxu0 }
 0x15c   : > { %v1625_v54 = vsub.f32 %v12866_v31, %v1593_v46  ;;  %v12868_v22 = vmax.f32 %v12867_v48, 0.0  ;;  %v1783_v59 = vpack.c.bf16 %v1596_v39, %v1595_v14  ;;  %v12870_v57 = vmax.f32 %v12869_v47, 0.0  ;;  %v8631_v31 = vld [vmem:[#allocation2 + $0xe8] sm:$0xff] }
 0x15d   : > { %v1705_v27 = vadd.f32 %v1704_v15, %v1703_v10  ;;  %v1659_v29 = vand.u32 2147483647, %v1627_v23  ;;  %v1782_v8 = vpack.c.bf16 %v1594_v11, %v1593_v46  ;;  %v3358_v42 = vrot.slane %v3356_v60, 1  ;;  %v1513_v23 = vpop.f32.mrb[59].mxu0  ;;  %12872 = vst [vmem:[#allocation18_spill] sm:$0xff] %v8631_v31 }
 0x15e   : > { %v1628_v6 = vsub.f32 %v12868_v22, %v1596_v39  ;;  %v1657_v58 = vand.u32 2147483647, %v1625_v54  ;;  %v1626_v62 = vsub.f32 %v12870_v57, %v1594_v11  ;;  %1802 = vst.msk [vmem:[#allocation2 + $0x108] sm:$0xff] %vm12568_vm1, %v1783_v59  ;;  %v3360_v15 = vshrl.u32 %v8580_v24, 16  ;;  %3550 = vrot.lane.b32.xlu0 %v3247_v61, %s7454_s23  ;;  %v12874_v57 = vld [vmem:[#allocation19_spill] sm:$0xff] }
 0x15f   : > { %v1712_v51 = vsel %vm12568_vm1, %v1659_v29, 0.0  ;;  %v1707_v3 = vadd.f32 %v1706_v2, %v1705_v27  ;;  %1801 = vst.msk [vmem:[#allocation2 + $0x100] sm:$0xff] %vm12568_vm1, %v1782_v8  ;;  %v8624_v17 = vsel %vm2003_vm15, %v3354_v43, %v3358_v42  ;;  %v3364_v46 = vshll.u32 %v3194_v4, 16 }
 0x160   : > { %v1660_v55 = vand.u32 2147483647, %v1628_v6  ;;  %v1708_v14 = vsel %vm12568_vm1, %v1657_v58, 0.0  ;;  %v1658_v10 = vand.u32 2147483647, %v1626_v62  ;;  %12871 = vst [vmem:[#allocation17_spill] sm:$0xff] %v8624_v17  ;;  %3447 = vrot.lane.b32.xlu1 %v8624_v17, %s7454_s23  ;;  %v3362_v24 = vor.u32 %v3360_v15, %v3358_v42 }
 0x161   : > { %v1709_v39 = vadd.f32 %v1708_v14, %v1707_v3  ;;  %v1519_v60 = vadd.f32 %v8496_v40, %v7033_v13  ;;  %v3366_v11 = vrot.slane %v3364_v46, 1  ;;  %v1511_v43 = vadd.f32 %v8496_v40, %v1510_v33  ;;  %v8650_v3 = vld [vmem:[#allocation2 + $0xf0] sm:$0xff] }
 0x162   : > { %v1714_v2 = vsel %vm12568_vm1, %v1660_v55, 0.0  ;;  %v1710_v54 = vsel %vm12568_vm1, %v1658_v10, 0.0  ;;  %v3248_v61 = vsel %vm12562_vm2, %v8631_v31, 0  ;;  %v1522_v48 = vadd.f32 %v8496_v40, %v7034_v52  ;;  %12876 = vst [vmem:[#allocation19_spill] sm:$0xff] %v8650_v3  ;;  %v7037_v55 = vpop.f32.mrb[60].mxu0  ;;  %v12877_v15 = vld [vmem:[#allocation21_spill] sm:$0xff] }
 0x163   : > { %v1711_v27 = vadd.f32 %v1710_v54, %v1709_v39  ;;  %v1599_v29 = vmax.f32 %v1519_v60, 0.0  ;;  %v1514_v22 = vadd.f32 %v8496_v40, %v1513_v23  ;;  %v8642_v6 = vsel %vm2003_vm15, %v3362_v24, %v3366_v11  ;;  %3552 = vrot.lane.b32.xlu0 %v3248_v61, %s7454_s23  ;;  %v12879_v24 = vld [vmem:[#allocation22_spill] sm:$0xff] }
 0x164   : > { %12873 = vst [vmem:[#allocation42_spill] sm:$0xff] %v8642_v6  ;;  %v1597_v59 = vmax.f32 %v1511_v43, 0.0  ;;  %v3368_v13 = vshrl.u32 %v3194_v4, 16  ;;  %v3372_v58 = vshll.u32 %v8631_v31, 16  ;;  %3449 = vrot.lane.b32.xlu1 %v8642_v6, %s7454_s23  ;;  %v12875_v62 = vmax.f32 %v12874_v57, 0.0 }
 0x165   : > { %v1713_v47 = vadd.f32 %v1712_v51, %v1711_v27  ;;  %v1600_v42 = vmax.f32 %v1522_v48, 0.0  ;;  %v1598_v33 = vmax.f32 %v1514_v22, 0.0  ;;  %v12878_v52 = vmax.f32 %v12877_v15, 0.0  ;;  %v1526_v51 = vpop.f32.mrb[61].mxu0  ;;  %v12881_v48 = vld [vmem:[#allocation24_spill] sm:$0xff] }
 0x166   : > { %v1631_v8 = vsub.f32 %v12875_v62, %v1599_v29  ;;  %v3370_v10 = vor.u32 %v3368_v13, %v3366_v11  ;;  %v3374_v46 = vrot.slane %v3372_v58, 1  ;;  %v3249_v4 = vsel %vm12559_vm3, %v8650_v3, 0  ;;  %v7038_v61 = vpop.f32.mrb[62].mxu0 }
 0x167   : > { %v1629_v14 = vsub.f32 %v12878_v52, %v1597_v59  ;;  %vm12561_vm5 = vcmp.ne.s16.totalorder %v8361_v25, 0  ;;  %v1715_v39 = vadd.f32 %v1714_v2, %v1713_v47  ;;  %v12880_v60 = vmax.f32 %v12879_v24, 0.0  ;;  %3554 = vrot.lane.b32.xlu0 %v3249_v4, %s7454_s23  ;;  %v1529_v58 = vpop.f32.mrb[63].mxu0 }
 0x168   : > { %v1663_v23 = vand.u32 2147483647, %v1631_v8  ;;  %v1785_v43 = vpack.c.bf16 %v1600_v42, %v1599_v29  ;;  %v12882_v22 = vmax.f32 %v12881_v48, 0.0  ;;  %v1784_v11 = vpack.c.bf16 %v1598_v33, %v1597_v59 }
 0x169   : > { %v1632_v54 = vsub.f32 %v12880_v60, %v1600_v42  ;;  %v1661_v27 = vand.u32 2147483647, %v1629_v14  ;;  %v8663_v13 = vsel %vm2003_vm15, %v3370_v10, %v3374_v46  ;;  %v3376_v2 = vshrl.u32 %v8631_v31, 16  ;;  %v8689_v60 = vld [vmem:[#allocation2 + $0xf8] sm:$0xff] }
 0x16a   : > { %v1630_v57 = vsub.f32 %v12882_v22, %v1598_v33  ;;  %12883 = vst [vmem:[#allocation21_spill] sm:$0xff] %v8663_v13  ;;  %v1720_v62 = vsel %vm12568_vm1, %v1663_v23, 0.0  ;;  %1804 = vst.msk [vmem:[#allocation2 + $0x118] sm:$0xff] %vm12568_vm1, %v1785_v43  ;;  %3451 = vrot.lane.b32.xlu1 %v8663_v13, %s7454_s23  ;;  %v3380_v29 = vshll.u32 %v8650_v3, 16  ;;  %v12884_v47 = vand.u32 15, %v8383_v26 }
 0x16b   : > { %v595_v8 = vand.u32 15, %v8442_v35  ;;  %v1716_v42 = vsel %vm12568_vm1, %v1661_v27, 0.0  ;;  %1803 = vst.msk [vmem:[#allocation2 + $0x110] sm:$0xff] %vm12568_vm1, %v1784_v11  ;;  %v1535_v15 = vadd.f32 %v8496_v40, %v7037_v55  ;;  %v1527_v52 = vadd.f32 %v8496_v40, %v1526_v51  ;;  %12890 = vst [vmem:[#allocation22_spill] sm:$0xff] %v8689_v60 }
 0x16c   : > { %vm8674_vm6 = vcmp.lt.s32.totalorder %v12884_v47, 15  ;;  %v1662_v33 = vand.u32 2147483647, %v1630_v57  ;;  %v12887_v14 = vand.u32 15, %v8399_v7  ;;  %v1717_v26 = vadd.f32 %v1716_v42, %v1715_v39  ;;  %v12896_v57 = vld [vmem:[#allocation26_spill] sm:$0xff] }
 0x16d   : > { %v1664_v4 = vand.u32 2147483647, %v1632_v54  ;;  %v3378_v23 = vor.u32 %v3376_v2, %v3374_v46  ;;  %v3382_v24 = vrot.slane %v3380_v29, 1  ;;  %vm12563_vm8 = vcmp.ne.s16.totalorder %v8380_v19, 0  ;;  %v12894_v46 = vld [vmem:[#allocation9_spill] sm:$0xff] }
 0x16e   : > { %vm8685_vm7 = vcmp.lt.s32.totalorder %v12887_v14, 15  ;;  %v12891_v43 = vand.u32 15, %v8414_v16  ;;  %v1718_v7 = vsel %vm12568_vm1, %v1662_v33, 0.0  ;;  %v1603_v51 = vmax.f32 %v1535_v15, 0.0  ;;  %v8719_v15 = vld [vmem:[#allocation2 + $0x100] sm:$0xff] }
 0x16f   : > { %v1601_v27 = vmax.f32 %v1527_v52, 0.0  ;;  %v3250_v39 = vsel %vm12560_vm4, %v8689_v60, 0  ;;  %vm12569_vm3 = vcmp.ne.s16.totalorder %v12894_v46, 0  ;;  %v1719_v54 = vadd.f32 %v1718_v7, %v1717_v26  ;;  %12899 = vst [vmem:[#allocation26_spill] sm:$0xff] %v8719_v15 }
 0x170   : > { %vm8694_vm9 = vcmp.lt.s32.totalorder %v12891_v43, 15  ;;  %v8704_v48 = vsel %vm2003_vm15, %v3378_v23, %v3382_v24  ;;  %3556 = vrot.lane.b32.xlu0 %v3250_v39, %s7454_s23  ;;  %v8708_v16 = vadd.f32 %v8496_v40, %v7038_v61  ;;  %v1530_v22 = vadd.f32 %v8496_v40, %v1529_v58 }
 0x171   : > { %12895 = vst [vmem:[#allocation24_spill] sm:$0xff] %v8704_v48  ;;  %3453 = vrot.lane.b32.xlu1 %v8704_v48, %s7454_s23  ;;  %v12897_v11 = vmax.f32 %v12896_v57, 0.0  ;;  %v12898_v29 = vmax.f32 %v8273_v49, 0.0  ;;  %v3384_v42 = vshrl.u32 %v8650_v3, 16  ;;  %v3388_v33 = vshll.u32 %v8689_v60, 16  ;;  %vm2248_vm13 = vmpackc.low %vm8694_vm9, %vm8694_vm9 }
 0x172   : > { %v1721_v52 = vadd.f32 %v1720_v62, %v1719_v54  ;;  %v12570_v61 = vmax.f32 %v8708_v16, 0.0  ;;  %v1602_v14 = vmax.f32 %v1530_v22, 0.0  ;;  %v3251_v40 = vsel %vm12561_vm5, %v8719_v15, 0  ;;  %v8731_v62 = vld [vmem:[#allocation2 + $0x108] sm:$0xff]  ;;  %vm2244_vm5 = vmpackc.low %vm8674_vm6, %vm8674_vm6  ;;  %v13053_v34 = vld [vmem:[#allocation22_spill] sm:$0xff] }
 0x173   : > { %v1635_v2 = vsub.f32 %v12897_v11, %v1603_v51  ;;  %v1633_v47 = vsub.f32 %v12898_v29, %v1601_v27  ;;  %v1722_v58 = vsel %vm12568_vm1, %v1664_v4, 0.0  ;;  %v3386_v23 = vor.u32 %v3384_v42, %v3382_v24  ;;  %12901 = vst [vmem:[#allocation43_spill] sm:$0xff] %v8731_v62 }
 0x174   : > { %v3390_v49 = vrot.slane %v3388_v33, 1  ;;  %v1723_v43 = vadd.f32 %v1722_v58, %v1721_v52  ;;  %v1787_v7 = vpack.c.bf16 %v12570_v61, %v1603_v51  ;;  %v12900_v39 = vmax.f32 %v8290_v32, 0.0  ;;  %3558 = vrot.lane.b32.xlu0 %v3251_v40, %s7454_s23  ;;  %v8751_v33 = vld [vmem:[#allocation2 + $0x10] sm:$0xff] }
 0x175   : > { %v1665_v26 = vand.u32 2147483647, %v1633_v47  ;;  %vm2144_vm4 = vcmp.ne.s16.totalorder %v8389_v50, 0  ;;  %v609_v54 = vand.u32 15, %v8461_v41  ;;  %v1786_v22 = vpack.c.bf16 %v1602_v14, %v1601_v27  ;;  %v12903_v40 = vld [vmem:[#allocation5_spill] sm:$0xff] }
 0x176   : > { %v1634_v57 = vsub.f32 %v12900_v39, %v1602_v14  ;;  %v8737_v24 = vsel %vm2003_vm15, %v3386_v23, %v3390_v49  ;;  %v425_v11 = vadd.s32 216, %v7668_v36  ;;  %v1667_v51 = vand.u32 2147483647, %v1635_v2  ;;  %1806 = vst.msk [vmem:[#allocation2 + $0x128] sm:$0xff] %vm12568_vm1, %v1787_v7 }
 0x177   : > { %v1724_v4 = vsel %vm12568_vm1, %v1665_v26, 0.0  ;;  %12902 = vst [vmem:[#allocation44_spill] sm:$0xff] %v8737_v24  ;;  %3455 = vrot.lane.b32.xlu1 %v8737_v24, %s7454_s23  ;;  %v3392_v47 = vshrl.u32 %v8689_v60, 16  ;;  %1805 = vst.msk [vmem:[#allocation2 + $0x120] sm:$0xff] %vm12568_vm1, %v1786_v22  ;;  %v3396_v41 = vshll.u32 %v8719_v15, 16  ;;  %v3252_v27 = vsel %vm12563_vm8, %v8731_v62, 0 }
 0x178   : > { %v1725_v29 = vadd.f32 %v1724_v4, %v1723_v43  ;;  %v1666_v32 = vand.u32 2147483647, %v1634_v57  ;;  %v3400_v42 = vshrl.u32 %v8719_v15, 16  ;;  %v3404_v2 = vshll.u32 %v8731_v62, 16  ;;  %3560 = vrot.lane.b32.xlu0 %v3252_v27, %s7454_s23  ;;  %vm2246_vm8 = vmpackc.low %vm8685_vm7, %vm8685_vm7  ;;  %v8782_v4 = vld [vmem:[#allocation2 + $0x110] sm:$0xff]  ;;  %v12931_v22 = vld [vmem:[#allocation11_spill] sm:$0xff] }
 0x179   : > { %v3394_v14 = vor.u32 %v3392_v47, %v3390_v49  ;;  %vm12600_vm2 = vcmp.ne.s16.totalorder %v12903_v40, 0  ;;  %v2124_v58 = vshll.u32 %v8392_v45, 16  ;;  %v12904_v26 = vand.u32 15, %v8419_v37  ;;  %12909 = vst [vmem:[#allocation45_spill] sm:$0xff] %v8782_v4  ;;  %v12944_v60 = vld [vmem:[#allocation20_spill] sm:$0xff] }
 0x17a   : > { %v1726_v52 = vsel %vm12568_vm1, %v1666_v32, 0.0  ;;  %v3398_v7 = vrot.slane %v3396_v41, 1  ;;  %v3406_v39 = vrot.slane %v3404_v2, 1  ;;  %vm8774_vm12 = vcmp.lt.s32.totalorder %v595_v8, 15 }
 0x17b   : > { %vm8765_vm14 = vcmp.lt.s32.totalorder %v12904_v26, 15  ;;  %v1727_v43 = vadd.f32 %v1726_v52, %v1725_v29  ;;  %v1728_v57 = vsel %vm12568_vm1, %v1667_v51, 0.0  ;;  %v2504_v37 = vsel %vm12569_vm3, %v8751_v33, 0  ;;  %vm2252_vm3 = vmpackc.low %vm8774_vm12, %vm8774_vm12  ;;  %v12918_v26 = vld [vmem:[#allocation25_spill] sm:$0xff] }
 0x17c   : > { %vm8784_vm10 = vcmp.lt.s32.totalorder %v609_v54, 15  ;;  %v623_v29 = vand.u32 15, %v425_v11  ;;  %v8791_v35 = vsel %vm2003_vm15, %v3394_v14, %v3398_v7  ;;  %v3402_v8 = vor.u32 %v3400_v42, %v3398_v7  ;;  %vm2250_vm1 = vmpackc.low %vm8765_vm14, %vm8765_vm14  ;;  %2802 = vrot.lane.b32.xlu0 %v2504_v37, %s7454_s23  ;;  %v12915_v42 = vld [vmem:[#allocation30_spill] sm:$0xff]  ;;  %v12917_v14 = vld [vmem:[#allocation33_spill] sm:$0xff] }
 0x17d   : > { %v8788_v32 = vadd.f32 %v1728_v57, %v1727_v43  ;;  %12912 = vst [vmem:[#allocation46_spill] sm:$0xff] %v8791_v35  ;;  %v2579_v47 = vshll.u32 %v8751_v33, 16  ;;  %3457 = vrot.lane.b32.xlu1 %v8791_v35, %s7454_s23  ;;  %v12913_v54 = vshrl.u32 %v8277_v28, 16  ;;  %v2276_v51 = vsel %vm2244_vm5, 65537, %v12820_v9  ;;  %vm2254_vm12 = vmpackc.low %vm8784_vm10, %vm8784_vm10  ;;  %v12923_v37 = vld [vmem:[#allocation3_spill] sm:$0xff] }
 0x17e   : > { %v2278_v41 = vsel %vm2246_vm8, 65537, %v12820_v9  ;;  %v2280_v28 = vsel %vm2248_vm13, 65537, %v12820_v9  ;;  %v3253_v59 = vsel %vm2144_vm4, %v8782_v4, 0  ;;  %v3408_v10 = vshrl.u32 %v8731_v62, 16  ;;  %v8952_v40 = vld [vmem:[#allocation2 + $0x120] sm:$0xff] }
 0x17f   : > { %v2114_v11 = vor.u32 %v12913_v54, %v8357_v30  ;;  %v8825_v30 = vsel %vm2003_vm15, %v3402_v8, %v3406_v39  ;;  %v3412_v27 = vshll.u32 %v8782_v4, 16  ;;  %v12916_v55 = vshrl.u32 %v12915_v42, 16  ;;  %12939 = vst [vmem:[#allocation51_spill] sm:$0xff] %v8952_v40 }
 0x180   : > { %12914 = vst [vmem:[#allocation47_spill] sm:$0xff] %v8825_v30  ;;  %v2126_v52 = vrot.slane %v2124_v58, 1  ;;  %v12919_v43 = vshll.u32 %v12918_v26, 16  ;;  %vm8841_vm13 = vcmp.lt.s32.totalorder %v623_v29, 15  ;;  %v8845_v57 = vrot.slane %v2579_v47, 1  ;;  %3562 = vrot.lane.b32.xlu0 %v3253_v59, %s7454_s23  ;;  %v12925_v47 = vld [vmem:[#allocation10_spill] sm:$0xff] }
 0x181   : > { %v2122_v2 = vor.u32 %v12916_v55, %v8404_v5  ;;  %v8848_v8 = vcombine.low %v12923_v37, %v2276_v51  ;;  %v2282_v58 = vsel %vm2250_vm1, 65537, %v12820_v9  ;;  %v2284_v54 = vsel %vm2252_vm3, 65537, %v12820_v9  ;;  %3459 = vrot.lane.b32.xlu1 %v8825_v30, %s7454_s23  ;;  %v12926_v51 = vld [vmem:[#allocation32_spill] sm:$0xff]  ;;  %vm2256_vm1 = vmpackc.low %vm8841_vm13, %vm8841_vm13 }
 0x182   : > { %v2387_v7 = vor.u32 %v12919_v43, %v12917_v14  ;;  %12922 = vst [vmem:[#allocation30_spill] sm:$0xff] %v8845_v57  ;;  %v8862_v29 = vsel %vm2003_vm15, %v2114_v11, %v8404_v5  ;;  %vm12641_vm5 = vcmp.ne.s16.totalorder %v12925_v47, 0  ;;  %v12927_v42 = vshrl.u32 %v12926_v51, 16  ;;  %v8875_v30 = vld [vmem:[#allocation2 + $0x8] sm:$0xff] }
 0x183   : > { %12924 = vst [vmem:[#allocation33_spill] sm:$0xff] %v8862_v29  ;;  %v8870_v23 = vcombine.low %v12923_v37, %v2278_v41  ;;  %v8873_v26 = vcombine.low %v12923_v37, %v2280_v28  ;;  %v3410_v43 = vor.u32 %v3408_v10, %v3406_v39  ;;  %v3414_v61 = vrot.slane %v3412_v27, 1  ;;  %12928 = vst [vmem:[#allocation25_spill] sm:$0xff] %v8875_v30  ;;  %v8889_v41 = vld [vmem:[#allocation2 + $0x118] sm:$0xff]  ;;  %v9159_v47 = vld [vmem:[#allocation2 + $0xa8] sm:$0xff] }
 0x184   : > { %v8867_v55 = vrot.slane %v12927_v42, 7  ;;  %v2503_v5 = vsel %vm12600_vm2, %v8875_v30, 0  ;;  %v2286_v11 = vsel %vm2254_vm12, 65537, %v12820_v9  ;;  %12929 = vst [vmem:[#allocation32_spill] sm:$0xff] %v8889_v41  ;;  %v8892_v39 = vsel %vm2003_vm15, %v2122_v2, %v2126_v52  ;;  %v12932_v2 = vld [vmem:[#allocation12_spill] sm:$0xff] }
 0x185   : > { %12930 = vst [vmem:[#allocation48_spill] sm:$0xff] %v8892_v39  ;;  %v2393_v28 = vshll.u32 %v12926_v51, 16  ;;  %v8896_v59 = vcombine.low %v12923_v37, %v2282_v58  ;;  %v8899_v10 = vcombine.low %v12923_v37, %v2284_v54  ;;  %v2582_v27 = vsel %vm2003_vm15, %v12931_v22, %v8845_v57  ;;  %2800 = vrot.lane.b32.xlu0 %v2503_v5, %s7454_s23 }
 0x186   : > { %vm2145_vm10 = vcmp.ne.s16.totalorder %v8862_v29, 0  ;;  %v2128_v42 = vshrl.u32 %v8392_v45, 16  ;;  %v2398_v35 = vshrl.u32 %v8848_v8, 16  ;;  %2700 = vrot.lane.b32.xlu1 %v2582_v27, %s7454_s23  ;;  %vm12606_vm14 = vcmp.ne.s16.totalorder %v12932_v2, 0 }
 0x187   : > { %v2406_v58 = vshrl.u32 %v8870_v23, 16  ;;  %v2414_v54 = vshrl.u32 %v8873_v26, 16  ;;  %v8913_v51 = vcombine.low %v12923_v37, %v2286_v11  ;;  %v2288_v45 = vsel %vm2256_vm1, 65537, %v12820_v9  ;;  %v12934_v11 = vld [vmem:[#allocation23_spill] sm:$0xff] }
 0x188   : > { %v8922_v22 = vsel %vm2003_vm15, %v3410_v43, %v3414_v61  ;;  %v3254_v5 = vsel %vm2145_vm10, %v8889_v41, 0  ;;  %v3416_v27 = vshrl.u32 %v8782_v4, 16  ;;  %v3420_v24 = vshll.u32 %v8889_v41, 16 }
 0x189   : > { %12933 = vst [vmem:[#allocation11_spill] sm:$0xff] %v8922_v22  ;;  %v8931_v48 = vsel %vm2341_vm0, %v12934_v11, %v2387_v7  ;;  %v2395_v13 = vor.u32 %v2393_v28, %v8867_v55  ;;  %v2422_v49 = vshrl.u32 %v8896_v59, 16  ;;  %v2430_v6 = vshrl.u32 %v8899_v10, 16  ;;  %3564 = vrot.lane.b32.xlu0 %v3254_v5, %s7454_s23  ;;  %v8945_v7 = vld [vmem:[#allocation2 + $0x18] sm:$0xff] }
 0x18a   : > { %12935 = vst [vmem:[#allocation23_spill] sm:$0xff] %v8931_v48  ;;  %vm12601_vm3 = vcmp.ne.s16.totalorder %v8892_v39, 0  ;;  %v8937_v43 = vor.u32 %v2128_v42, %v2126_v52  ;;  %v2400_v17 = vrot.slane %v2398_v35, 7  ;;  %v8940_v44 = vcombine.low %v12923_v37, %v2288_v45  ;;  %3461 = vrot.lane.b32.xlu1 %v8922_v22, %s7454_s23  ;;  %12937 = vst [vmem:[#allocation50_spill] sm:$0xff] %v8945_v7 }
 0x18b   : > { %v2401_v28 = vshll.u32 %v8848_v8, 16  ;;  %v2409_v11 = vshll.u32 %v8870_v23, 16  ;;  %v2438_v38 = vshrl.u32 %v8913_v51, 16  ;;  %v427_v52 = vadd.s32 232, %v7668_v36 }
 0x18c   : > { %12936 = vst [vmem:[#allocation49_spill] sm:$0xff] %v8937_v43  ;;  %v3418_v42 = vor.u32 %v3416_v27, %v3414_v61  ;;  %v3422_v35 = vrot.slane %v3420_v24, 1  ;;  %vm12621_vm6 = vcmp.ne.s16.totalorder %v12938_v0, 0  ;;  %v2408_v45 = vrot.slane %v2406_v58, 7  ;;  %v12940_v58 = vld [vmem:[#allocation7_spill] sm:$0xff] }
 0x18d   : > { %v2416_v63 = vrot.slane %v2414_v54, 7  ;;  %v2417_v5 = vshll.u32 %v8873_v26, 16  ;;  %v2424_v22 = vrot.slane %v2422_v49, 7  ;;  %v2425_v4 = vshll.u32 %v8896_v59, 16 }
 0x18e   : > { %v2432_v8 = vrot.slane %v2430_v6, 7  ;;  %v2505_v23 = vsel %vm12641_vm5, %v8945_v7, 0  ;;  %v2433_v62 = vshll.u32 %v8899_v10, 16  ;;  %v2441_v61 = vshll.u32 %v8913_v51, 16  ;;  %2698 = vrot.lane.b32.xlu1 %v12940_v58, %s7454_s23  ;;  %v12942_v58 = vld [vmem:[#allocation16_spill] sm:$0xff] }
 0x18f   : > { %v2446_v24 = vshrl.u32 %v8940_v44, 16  ;;  %2804 = vrot.lane.b32.xlu0 %v2505_v23, %s7454_s23  ;;  %v2583_v26 = vshrl.u32 %v8751_v33, 16  ;;  %v2587_v59 = vshll.u32 %v8945_v7, 16  ;;  %v2440_v6 = vrot.slane %v2438_v38, 7 }
 0x190   : > { %v637_v54 = vand.u32 15, %v427_v52  ;;  %v8968_v27 = vsel %vm2003_vm15, %v3418_v42, %v3422_v35  ;;  %v3255_v10 = vsel %vm12601_vm3, %v8952_v40, 0  ;;  %v3424_v51 = vshrl.u32 %v8889_v41, 16 }
 0x191   : > { %12941 = vst [vmem:[#allocation7_spill] sm:$0xff] %v8968_v27  ;;  %v3428_v49 = vshll.u32 %v8952_v40, 16  ;;  %vm2471_vm7 = vcmp.ne.s16.totalorder %v12942_v58, 0  ;;  %v8978_v23 = vsel %vm2341_vm0, %v12917_v14, %v2395_v13  ;;  %v2403_v15 = vor.u32 %v2401_v28, %v2400_v17  ;;  %v8993_v13 = vld [vmem:[#allocation2 + $0x20] sm:$0xff] }
 0x192   : > { %12943 = vst [vmem:[#allocation52_spill] sm:$0xff] %v8978_v23  ;;  %v2411_v38 = vor.u32 %v2409_v11, %v2408_v45  ;;  %v2419_v52 = vor.u32 %v2417_v5, %v2416_v63  ;;  %v2585_v42 = vor.u32 %v2583_v26, %v8845_v57  ;;  %vm2472_vm8 = vcmp.ne.s16.totalorder %v12944_v60, 0  ;;  %3463 = vrot.lane.b32.xlu1 %v8968_v27, %s7454_s23  ;;  %v9002_v26 = vld [vmem:[#allocation2 + $0x28] sm:$0xff] }
 0x193   : > { %v8982_v3 = vrot.slane %v2446_v24, 7  ;;  %v2449_v31 = vshll.u32 %v8940_v44, 16  ;;  %v8988_v41 = vsel %vm12606_vm14, %v8875_v30, 0  ;;  %3566 = vrot.lane.b32.xlu0 %v3255_v10, %s7454_s23  ;;  %12946 = vst [vmem:[#allocation54_spill] sm:$0xff] %v8993_v13  ;;  %vm12623_vm9 = vcmp.ne.s16.totalorder %v8937_v43, 0  ;;  %12949 = vst [vmem:[#allocation55_spill] sm:$0xff] %v9002_v26 }
 0x194   : > { %12945 = vst [vmem:[#allocation53_spill] sm:$0xff] %v8988_v41  ;;  %vm2749_vm12 = vcmask 1046528   ;;  %v2427_v14 = vor.u32 %v2425_v4, %v2424_v22  ;;  %v2435_v28 = vor.u32 %v2433_v62, %v2432_v8  ;;  %vm8996_vm13 = vcmp.lt.s32.totalorder %v637_v54, 15  ;;  %v9004_v57 = vld [vmem:[#allocation2 + $0x128] sm:$0xff] }
 0x195   : > { %v9000_v44 = vrot.slane %v2587_v59, 1  ;;  %v3426_v5 = vor.u32 %v3424_v51, %v3422_v35  ;;  %v3430_v24 = vrot.slane %v3428_v49, 1  ;;  %v2443_v27 = vor.u32 %v2441_v61, %v2440_v6  ;;  %12950 = vst [vmem:[#allocation56_spill] sm:$0xff] %v9004_v57  ;;  %vm2258_vm2 = vmpackc.low %vm8996_vm13, %vm8996_vm13  ;;  %v9069_v59 = vld [vmem:[#allocation2 + $0x30] sm:$0xff] }
 0x196   : > { %v9008_v10 = vsel %vm2341_vm0, %v8867_v55, %v2403_v15  ;;  %v9011_v4 = vsel %vm2341_vm0, %v2400_v17, %v2411_v38  ;;  %v9014_v62 = vsel %vm2341_vm0, %v2408_v45, %v2419_v52  ;;  %v2506_v61 = vsel %vm2134_vm11, %v8993_v13, 0  ;;  %v12955_v15 = vld [vmem:[#allocation31_spill] sm:$0xff]  ;;  %12960 = vst [vmem:[#allocation65_spill] sm:$0xff] %v9069_v59 }
 0x197   : > { %12951 = vst [vmem:[#allocation57_spill] sm:$0xff] %v9008_v10  ;;  %12952 = vst [vmem:[#allocation58_spill] sm:$0xff] %v9011_v4  ;;  %v9019_v35 = vsel %vm2003_vm15, %v2585_v42, %v9000_v44  ;;  %v2595_v54 = vshll.u32 %v8993_v13, 16  ;;  %vm12664_vm1 = vcmp.ne.s16.totalorder %v12955_v15, 0  ;;  %v2451_v17 = vor.u32 %v2449_v31, %v8982_v3  ;;  %2806 = vrot.lane.b32.xlu0 %v2506_v61, %s7454_s23 }
 0x198   : > { %12953 = vst [vmem:[#allocation59_spill] sm:$0xff] %v9014_v62  ;;  %12954 = vst [vmem:[#allocation60_spill] sm:$0xff] %v9019_v35  ;;  %2702 = vrot.lane.b32.xlu1 %v9019_v35, %s7454_s23  ;;  %v2603_v55 = vshll.u32 %v9002_v26, 16  ;;  %v9037_v45 = vsel %vm12606_vm14, %v8751_v33, 0  ;;  %v2521_v31 = vsel %vm12621_vm6, %v8945_v7, 0  ;;  %vm12622_vm3 = vcmp.ne.s16.totalorder %v8931_v48, 0 }
 0x199   : > { %v9044_v51 = vsel %vm2341_vm0, %v2416_v63, %v2427_v14  ;;  %v9047_v49 = vsel %vm2003_vm15, %v3426_v5, %v3430_v24  ;;  %v3256_v38 = vsel %vm12623_vm9, %v9004_v57, 0  ;;  %v9053_v52 = vsel %vm2341_vm0, %v2424_v22, %v2435_v28 }
 0x19a   : > { %12956 = vst [vmem:[#allocation61_spill] sm:$0xff] %v9044_v51  ;;  %12957 = vst [vmem:[#allocation62_spill] sm:$0xff] %v9047_v49  ;;  %v9056_v42 = vsel %vm2341_vm0, %v2432_v8, %v2443_v27  ;;  %v2591_v11 = vshrl.u32 %v8945_v7, 16  ;;  %v2522_v63 = vsel %vm2471_vm7, %v8993_v13, 0  ;;  %v9065_v14 = vsel %vm12621_vm6, %v8751_v33, 0  ;;  %v1814_v8 = vld [vmem:[#allocation2 + $0x38] sm:$0xff] }
 0x19b   : > { %12958 = vst [vmem:[#allocation63_spill] sm:$0xff] %v9053_v52  ;;  %12959 = vst [vmem:[#allocation64_spill] sm:$0xff] %v9056_v42  ;;  %v2290_v5 = vsel %vm2258_vm2, 65537, %v12820_v9  ;;  %v2597_v61 = vrot.slane %v2595_v54, 1  ;;  %v2860_v28 = vrot.slane %v2521_v31, 1  ;;  %v9072_v27 = vsel %vm2341_vm0, %v2440_v6, %v2451_v17  ;;  %3568 = vrot.lane.b32.xlu0 %v3256_v38, %s7454_s23 }
 0x19c   : > { %12961 = vst [vmem:[#allocation66_spill] sm:$0xff] %v9072_v27  ;;  %3465 = vrot.lane.b32.xlu1 %v9047_v49, %s7454_s23  ;;  %v2593_v35 = vor.u32 %v2591_v11, %v9000_v44  ;;  %v3432_v57 = vshrl.u32 %v8952_v40, 16  ;;  %v2605_v2 = vrot.slane %v2603_v55, 1  ;;  %vm2475_vm2 = vcmp.ne.s16.totalorder %v8978_v23, 0  ;;  %v9189_v23 = vld [vmem:[#allocation2 + $0x60] sm:$0xff] }
 0x19d   : > { %v9081_v54 = vadd.s32 248, %v7668_v36  ;;  %v2599_v31 = vshrl.u32 %v8993_v13, 16  ;;  %v2862_v22 = vrot.slane %v2522_v63, 1  ;;  %v9086_v17 = vcombine.low %v12923_v37, %v2290_v5  ;;  %v1815_v37 = vld [vmem:[#allocation2 + $0x40] sm:$0xff] }
 0x19e   : > { %v2607_v11 = vshrl.u32 %v9002_v26, 16  ;;  %v2611_v38 = vshll.u32 %v9069_v59, 16  ;;  %v2619_v49 = vshll.u32 %v1814_v8, 16  ;;  %v2523_v55 = vsel %vm2472_vm8, %v9002_v26, 0 }
 0x19f   : > { %vm12638_vm13 = vcmp.ne.s16.totalorder %v9008_v10, 0  ;;  %v9095_v36 = vsel %vm2003_vm15, %v2593_v35, %v2597_v61  ;;  %vm12963_vm14 = vcmp.ne.s16.totalorder %v7828_v12, 0  ;;  %v2601_v5 = vor.u32 %v2599_v31, %v2597_v61  ;;  %v1816_v12 = vld [vmem:[#allocation2 + $0x48] sm:$0xff] }
 0x1a0   : > { %12962 = vst [vmem:[#allocation67_spill] sm:$0xff] %v9095_v36  ;;  %v2507_v63 = vsel %vm12963_vm14, %v9002_v26, 0  ;;  %v12964_v6 = vrot.slane %v9037_v45, 1  ;;  %2704 = vrot.lane.b32.xlu1 %v9095_v36, %s7454_s23  ;;  %v9105_v9 = vor.u32 %v3432_v57, %v3430_v24  ;;  %v2609_v30 = vor.u32 %v2607_v11, %v2605_v2 }
 0x1a1   : > { %2808 = vrot.lane.b32.xlu0 %v2507_v63, %s7454_s23  ;;  %v2524_v35 = vsel %vm12664_vm1, %v9069_v59, 0  ;;  %v9114_v61 = vsel %vm2471_vm7, %v8945_v7, 0  ;;  %v9117_v31 = vsel %vm2749_vm12, %v2860_v28, %v2862_v22  ;;  %v12967_v57 = vrot.slane %v9065_v14, 1 }
 0x1a2   : > { %v2861_v40 = vsel %vm2749_vm12, %v12964_v6, %v2860_v28  ;;  %12965 = vst [vmem:[#allocation68_spill] sm:$0xff] %v9105_v9  ;;  %12966 = vst [vmem:[#allocation69_spill] sm:$0xff] %v9114_v61  ;;  %v2864_v6 = vrot.slane %v2523_v55, 1  ;;  %v12968_v24 = vrot.slane %v8988_v41, 1  ;;  %v2454_v63 = vshrl.u32 %v9086_v17, 16 }
 0x1a3   : > { %v2613_v36 = vrot.slane %v2611_v38, 1  ;;  %v2621_v26 = vrot.slane %v2619_v49, 1  ;;  %v2627_v46 = vshll.u32 %v1815_v37, 16  ;;  %vm12648_vm14 = vcmp.ne.s16.totalorder %v9014_v62, 0 }
 0x1a4   : > { %v9124_v11 = vsel %vm2749_vm12, %v12968_v24, %v12967_v57  ;;  %v9130_v28 = vsel %vm2003_vm15, %v2601_v5, %v2605_v2  ;;  %v2866_v55 = vrot.slane %v2524_v35, 1  ;;  %v2635_v43 = vshll.u32 %v1816_v12, 16  ;;  %3467 = vrot.lane.b32.xlu1 %v9105_v9, %s7454_s23 }
 0x1a5   : > { %12969 = vst [vmem:[#allocation70_spill] sm:$0xff] %v9124_v11  ;;  %12970 = vst [vmem:[#allocation71_spill] sm:$0xff] %v9130_v28  ;;  %v2525_v41 = vsel %vm12622_vm3, %v1814_v8, 0  ;;  %vm12651_vm6 = vcmp.ne.s16.totalorder %v9011_v4, 0  ;;  %2894 = vrot.lane.b32.xlu0 %v2861_v40, %s7454_s23  ;;  %v2615_v49 = vshrl.u32 %v9069_v59, 16  ;;  %v2623_v38 = vshrl.u32 %v1814_v8, 16 }
 0x1a6   : > { %v9143_v2 = vsel %vm12641_vm5, %v8751_v33, 0  ;;  %vm12972_vm3 = vcmp.ne.s16.totalorder %v7894_v1, 0  ;;  %vm12973_vm9 = vcmp.ne.s16.totalorder %v8071_v53, 0  ;;  %v9151_v24 = vsel %vm2749_vm12, %v2862_v22, %v2864_v6  ;;  %v9153_v40 = vld [vmem:[#allocation2 + $0x50] sm:$0xff]  ;;  %v1818_v11 = vld [vmem:[#allocation2 + $0x58] sm:$0xff] }
 0x1a7   : > { %12971 = vst [vmem:[#allocation72_spill] sm:$0xff] %v9143_v2  ;;  %v2508_v5 = vsel %vm12972_vm3, %v9069_v59, 0  ;;  %v2509_v35 = vsel %vm12973_vm9, %v1814_v8, 0  ;;  %v9157_v0 = vsel %vm2475_vm2, %v1815_v37, 0  ;;  %v2617_v57 = vor.u32 %v2615_v49, %v2613_v36  ;;  %v9169_v1 = vld [vmem:[#allocation2 + $0x90] sm:$0xff] }
 0x1a8   : > { %v2625_v9 = vor.u32 %v2623_v38, %v2621_v26  ;;  %v2629_v33 = vrot.slane %v2627_v46, 1  ;;  %v2868_v2 = vrot.slane %v2525_v41, 1  ;;  %v9162_v59 = vsel %vm2003_vm15, %v2609_v30, %v2613_v36  ;;  %12976 = vst [vmem:[#allocation75_spill] sm:$0xff] %v9169_v1  ;;  %2706 = vrot.lane.b32.xlu1 %v9130_v28, %s7454_s23 }
 0x1a9   : > { %12974 = vst [vmem:[#allocation73_spill] sm:$0xff] %v9162_v59  ;;  %v9165_v8 = vsel %vm2749_vm12, %v2864_v6, %v2866_v55  ;;  %v2637_v22 = vrot.slane %v2635_v43, 1  ;;  %v9167_v53 = vrot.slane %v2454_v63, 7  ;;  %v12977_v46 = vrot.slane %v9037_v45, 1 }
 0x1aa   : > { %v2631_v41 = vshrl.u32 %v1815_v37, 16  ;;  %v2643_v49 = vshll.u32 %v9153_v40, 16  ;;  %v2870_v30 = vrot.slane %v9157_v0, 1  ;;  %v2927_v36 = vshll.u32 %v9169_v1, 16 }
 0x1ab   : > { %12975 = vst [vmem:[#allocation74_spill] sm:$0xff] %v9167_v53  ;;  %2892 = vrot.lane.b32.xlu0 %v12977_v46, %s7454_s23  ;;  %v2639_v6 = vshrl.u32 %v1816_v12, 16  ;;  %v2651_v43 = vshll.u32 %v1818_v11, 16  ;;  %v2527_v63 = vsel %vm12638_vm13, %v1816_v12, 0  ;;  %vm12650_vm3 = vcmp.ne.s16.totalorder %v9044_v51, 0 }
 0x1ac   : > { %v3309_v38 = vshll.u32 %v9159_v47, 16  ;;  %v9184_v28 = vsel %vm2003_vm15, %v2617_v57, %v2621_v26  ;;  %v2633_v45 = vor.u32 %v2631_v41, %v2629_v33  ;;  %v9187_v46 = vsel %vm2749_vm12, %v2866_v55, %v2868_v2  ;;  %2934 = vrot.lane.b32.xlu1 %v9000_v44, %s7454_s23 }
 0x1ad   : > { %12978 = vst [vmem:[#allocation76_spill] sm:$0xff] %v9184_v28  ;;  %vm12687_vm9 = vcmp.ne.s16.totalorder %v9053_v52, 0  ;;  %v12979_v0 = vrot.slane %v9114_v61, 1  ;;  %v12980_v1 = vrot.slane %v9065_v14, 1  ;;  %vm12982_vm13 = vcmp.ne.s16.totalorder %v8084_v21, 0 }
 0x1ae   : > { %v9201_v48 = vsel %vm12982_vm13, %v1815_v37, 0  ;;  %v9204_v26 = vsel %vm2003_vm15, %v2625_v9, %v2629_v33  ;;  %vm12984_vm5 = vcmp.ne.s16.totalorder %v8265_v20, 0  ;;  %v2641_v57 = vor.u32 %v2639_v6, %v2637_v22  ;;  %v1820_v33 = vld [vmem:[#allocation2 + $0x68] sm:$0xff] }
 0x1af   : > { %v9197_v10 = vsel %vm2749_vm12, %v12980_v1, %v12979_v0  ;;  %12983 = vst [vmem:[#allocation78_spill] sm:$0xff] %v9204_v26  ;;  %v9208_v55 = vsel %vm12984_vm5, %v1816_v12, 0  ;;  %2708 = vrot.lane.b32.xlu0 %v9162_v59, %s7454_s23  ;;  %v2645_v1 = vrot.slane %v2643_v49, 1  ;;  %v9215_v14 = vsel %vm2749_vm12, %v2868_v2, %v2870_v30  ;;  %v7374_v12 = vld [vmem:[%s12499_s4 + $0x100] sm:$0xff]  }
 0x1b0   : > { %12981 = vst [vmem:[#allocation77_spill] sm:$0xff] %v9197_v10  ;;  %12985 = vst [vmem:[#allocation79_spill] sm:$0xff] %v9215_v14  ;;  %v2872_v37 = vrot.slane %v2527_v63, 1  ;;  %v2528_v9 = vsel %vm12651_vm6, %v9153_v40, 0  ;;  %v2653_v41 = vrot.slane %v2651_v43, 1  ;;  %v2659_v44 = vshll.u32 %v9189_v23, 16  ;;  %7039 = vmatprep.subr.bf16.mxu0 %v7374_v12  ;;  %2810 = vrot.lane.b32.xlu1 %v2508_v5, %s7454_s23 }
 0x1b1   : > { %v2529_v6 = vsel %vm12648_vm14, %v1818_v11, 0  ;;  %v9226_v49 = vrot.slane %v3309_v38, 1  ;;  %v12987_v2 = vmax.f32 %v8708_v16, 0.0  ;;  %v12988_v63 = vld [vmem:[#allocation28_spill] sm:$0xff]  ;;  %v9233_v10 = vsel %vm2003_vm15, %v2633_v45, %v2637_v22  ;;  %v9238_v38 = vld [vmem:[#allocation2 + $0x70] sm:$0xff] }
 0x1b2   : > { %v12989_v0 = vmax.f32 %v12988_v63, 0.0  ;;  %12990 = vst [vmem:[#allocation28_spill] sm:$0xff] %v9233_v10  ;;  %v2647_v61 = vshrl.u32 %v9153_v40, 16  ;;  %vm12686_vm5 = vcmp.ne.s16.totalorder %v9056_v42, 0  ;;  %v3312_v43 = vshrl.u32 %v9159_v47, 16 }
 0x1b3   : > { %12986 = vst [vmem:[#allocation80_spill] sm:$0xff] %v9226_v49  ;;  %v2655_v14 = vshrl.u32 %v1818_v11, 16  ;;  %v2874_v20 = vrot.slane %v2528_v9, 1  ;;  %v2667_v21 = vshll.u32 %v1820_v33, 16  ;;  %v12991_v16 = vshll.u32 %v9086_v17, 16  ;;  %2812 = vrot.lane.b32.xlu0 %v2509_v35, %s7454_s23 }
 0x1b4   : > { %v1636_v59 = vsub.f32 %v12989_v0, %v12987_v2  ;;  %vm12992_vm13 = vcmp.ne.s16.totalorder %v8355_v56, 0  ;;  %v2649_v45 = vor.u32 %v2647_v61, %v2645_v1  ;;  %v2876_v2 = vrot.slane %v2529_v6, 1  ;;  %2896 = vrot.lane.b32.xlu1 %v9117_v31, %s7454_s23 }
 0x1b5   : > { %v2459_v63 = vor.u32 %v12991_v16, %v9167_v53  ;;  %v9247_v22 = vsel %vm12992_vm13, %v1818_v11, 0  ;;  %v9249_v12 = vrot.slane %v2927_v36, 1  ;;  %vm12994_vm14 = vcmp.ne.s16.totalorder %v8323_v18, 0  ;;  %v9266_v36 = vld [vmem:[#allocation2 + $0x78] sm:$0xff] }
 0x1b6   : > { %v9254_v9 = vsel %vm12994_vm14, %v9153_v40, 0  ;;  %v9257_v17 = vsel %vm2749_vm12, %v2870_v30, %v2872_v37  ;;  %v2657_v0 = vor.u32 %v2655_v14, %v2653_v41  ;;  %v2661_v5 = vrot.slane %v2659_v44, 1 }
 0x1b7   : > { %12993 = vst [vmem:[#allocation81_spill] sm:$0xff] %v9249_v12  ;;  %v1668_v16 = vand.u32 2147483647, %v1636_v59  ;;  %v9260_v35 = vsel %vm2003_vm15, %v2641_v57, %v2645_v1  ;;  %v2675_v11 = vshll.u32 %v9238_v38, 16  ;;  %v2530_v61 = vsel %vm12650_vm3, %v9189_v23, 0  ;;  %2898 = vrot.lane.b32.xlu0 %v9151_v24, %s7454_s23  ;;  %v13069_v42 = vld [vmem:[#allocation79_spill] sm:$0xff] }
 0x1b8   : > { %12995 = vst [vmem:[#allocation82_spill] sm:$0xff] %v9260_v35  ;;  %v9269_v40 = vsel %vm2749_vm12, %v2872_v37, %v2874_v20  ;;  %v2663_v30 = vshrl.u32 %v9189_v23, 16  ;;  %v2669_v6 = vrot.slane %v2667_v21, 1  ;;  %v9273_v14 = vor.u32 %v3312_v43, %v9226_v49  ;;  %v9290_v49 = vld [vmem:[#allocation2 + $0x80] sm:$0xff]  ;;  %2710 = vrot.lane.b32.xlu1 %v9184_v28, %s7454_s23  ;;  %v9339_v28 = vld [vmem:[#allocation2 + $0xc8] sm:$0xff] }
 0x1b9   : > { %v9280_v59 = vsel %vm2003_vm15, %v2649_v45, %v2653_v41  ;;  %v9283_v57 = vsel %vm2749_vm12, %v2874_v20, %v2876_v2  ;;  %v2671_v1 = vshrl.u32 %v1820_v33, 16  ;;  %vm2482_vm14 = vcmp.ne.s16.totalorder %v9072_v27, 0  ;;  %v3543_v12 = vpop.permute.xlu1 %3542 }
 0x1ba   : > { %12996 = vst [vmem:[#allocation83_spill] sm:$0xff] %v9280_v59  ;;  %v2665_v37 = vor.u32 %v2663_v30, %v2661_v5  ;;  %v2878_v44 = vrot.slane %v2530_v61, 1  ;;  %v2683_v43 = vshll.u32 %v9266_v36, 16  ;;  %v2531_v31 = vsel %vm12687_vm9, %v1820_v33, 0 }
 0x1bb   : > { %vm12997_vm13 = vcmask 523264   ;;  %vm12998_vm3 = vcmp.ne.s16.totalorder %v8380_v19, 0  ;;  %v2677_v41 = vrot.slane %v2675_v11, 1  ;;  %v9299_v45 = vsel %vm2341_vm0, %v8982_v3, %v2459_v63  ;;  %2712 = vrot.lane.b32.xlu0 %v9204_v26, %s7454_s23  ;;  %v9334_v26 = vld [vmem:[#allocation2 + $0xc0] sm:$0xff] }
 0x1bc   : > { %v1730_v24 = vsel %vm12997_vm13, %v1668_v16, 0.0  ;;  %v9295_v20 = vsel %vm12998_vm3, %v1820_v33, 0  ;;  %12999 = vst [vmem:[#allocation84_spill] sm:$0xff] %v9299_v45  ;;  %vm13000_vm6 = vcmp.ne.s16.totalorder %v8361_v25, 0  ;;  %v2673_v30 = vor.u32 %v2671_v1, %v2669_v6  ;;  %13006 = vst [vmem:[#allocation90_spill] sm:$0xff] %v9334_v26  ;;  %2814 = vrot.lane.b32.xlu1 %v9201_v48, %s7454_s23 }
 0x1bd   : > { %v9304_v61 = vsel %vm13000_vm6, %v9189_v23, 0  ;;  %v9309_v21 = vsel %vm12686_vm5, %v9238_v38, 0  ;;  %v9312_v16 = vadd.f32 %v1730_v24, %v8788_v32  ;;  %v2679_v3 = vshrl.u32 %v9238_v38, 16 }
 0x1be   : > { %v2880_v33 = vrot.slane %v2531_v31, 1  ;;  %v2691_v23 = vshll.u32 %v9290_v49, 16  ;;  %v9323_v63 = vsel %vm2472_vm8, %v8993_v13, 0  ;;  %v9326_v11 = vsel %vm2003_vm15, %v2657_v0, %v2661_v5 }
 0x1bf   : > { %13001 = vst [vmem:[#allocation85_spill] sm:$0xff] %v9312_v16  ;;  %13002 = vst [vmem:[#allocation86_spill] sm:$0xff] %v9323_v63  ;;  %v9329_v32 = vsel %vm2003_vm15, %v2665_v37, %v2669_v6  ;;  %v9332_v1 = vsel %vm2749_vm12, %v2876_v2, %v2878_v44  ;;  %v2685_v24 = vrot.slane %v2683_v43, 1  ;;  %v3226_v31 = vsel %vm2472_vm8, %v9334_v26, 0  ;;  %v9353_v43 = vld [vmem:[#allocation2 + $0x88] sm:$0xff]  ;;  %2816 = vrot.lane.b32.xlu0 %v9208_v55, %s7454_s23 }
 0x1c0   : > { %13003 = vst [vmem:[#allocation87_spill] sm:$0xff] %v9326_v11  ;;  %13004 = vst [vmem:[#allocation88_spill] sm:$0xff] %v9329_v32  ;;  %v9344_v0 = vsel %vm12664_vm1, %v9339_v28, 0  ;;  %v2681_v5 = vor.u32 %v2679_v3, %v2677_v41  ;;  %v9350_v2 = vsel %vm2145_vm10, %v9266_v36, 0  ;;  %v2687_v37 = vshrl.u32 %v9266_v36, 16  ;;  %v9365_v3 = vld [vmem:[#allocation2 + $0xb8] sm:$0xff]  ;;  %2900 = vrot.lane.b32.xlu1 %v9165_v8, %s7454_s23 }
 0x1c1   : > { %13005 = vst [vmem:[#allocation89_spill] sm:$0xff] %v9332_v1  ;;  %13007 = vst [vmem:[#allocation91_spill] sm:$0xff] %v9350_v2  ;;  %v9359_v13 = vsel %vm2134_vm11, %v8945_v7, 0  ;;  %v3225_v6 = vsel %vm2471_vm7, %v9365_v3, 0  ;;  %v9373_v16 = vsel %vm2144_vm4, %v9238_v38, 0  ;;  %v9376_v53 = vsel %vm2749_vm12, %v2878_v44, %v2880_v33  ;;  %v9384_v7 = vld [vmem:[#allocation2 + $0xb0] sm:$0xff] }
 0x1c2   : > { %13008 = vst [vmem:[#allocation92_spill] sm:$0xff] %v9359_v13  ;;  %13009 = vst [vmem:[#allocation93_spill] sm:$0xff] %v9373_v16  ;;  %v9378_v13 = vrot.slane %v2691_v23, 1  ;;  %v3491_v48 = vrot.slane %v3226_v31, 1  ;;  %v3493_v15 = vrot.slane %v9344_v0, 1  ;;  %v9382_v55 = vsel %vm2003_vm15, %v2673_v30, %v2677_v41  ;;  %v13017_v31 = vld [vmem:[#allocation49_spill] sm:$0xff] }
 0x1c3   : > { %13010 = vst [vmem:[#allocation94_spill] sm:$0xff] %v9376_v53  ;;  %13011 = vst [vmem:[#allocation95_spill] sm:$0xff] %v9382_v55  ;;  %v2689_v60 = vor.u32 %v2687_v37, %v2685_v24  ;;  %v9387_v58 = vsel %vm2003_vm15, %v2681_v5, %v2685_v24  ;;  %vm13013_vm6 = vcmp.ne.s16.totalorder %v8892_v39, 0  ;;  %v13015_v44 = vrot.slane %v9309_v21, 1  ;;  %2902 = vrot.lane.b32.xlu0 %v9187_v46, %s7454_s23  ;;  %v13020_v37 = vld [vmem:[#allocation23_spill] sm:$0xff]  ;;  %v13023_v8 = vld [vmem:[#allocation14_spill] sm:$0xff]  ;;  %v3545_v46 = vpop.permute.xlu0 %3544 }
 0x1c4   : > { %13012 = vst [vmem:[#allocation96_spill] sm:$0xff] %v9387_v58  ;;  %v9392_v38 = vsel %vm13013_vm6, %v9290_v49, 0  ;;  %vm13018_vm3 = vcmp.ne.s16.totalorder %v13017_v31, 0  ;;  %v3489_v30 = vrot.slane %v3225_v6, 1  ;;  %v9408_v24 = vsel %vm2482_vm14, %v9266_v36, 0  ;;  %v9420_v6 = vld [vmem:[#allocation2 + $0xd0] sm:$0xff]  ;;  %2714 = vrot.lane.b32.xlu1 %v9233_v10, %s7454_s23 }
 0x1c5   : > { %13014 = vst [vmem:[#allocation97_spill] sm:$0xff] %v9392_v38  ;;  %v9397_v23 = vsel %vm2749_vm12, %v2880_v33, %v13015_v44  ;;  %v9402_v41 = vsel %vm13018_vm3, %v9353_v43, 0  ;;  %v9418_v33 = vsel %vm2134_vm11, %v9365_v3, 0  ;;  %vm13021_vm13 = vcmp.ne.s16.totalorder %v13020_v37, 0  ;;  %v13031_v53 = vld [vmem:[#allocation6_spill] sm:$0xff]  ;;  %v9456_v58 = vld [vmem:[#allocation2 + $0xe0] sm:$0xff] }
 0x1c6   : > { %13016 = vst [vmem:[#allocation98_spill] sm:$0xff] %v9397_v23  ;;  %13019 = vst [vmem:[#allocation99_spill] sm:$0xff] %v9402_v41  ;;  %v3228_v36 = vsel %vm13021_vm13, %v9420_v6, 0  ;;  %v9427_v44 = vsel %vm2003_vm15, %v2689_v60, %v9378_v13  ;;  %vm13024_vm6 = vcmp.ne.s16.totalorder %v13023_v8, 0  ;;  %v3494_v0 = vsel %vm2749_vm12, %v3491_v48, %v3493_v15  ;;  %v9436_v41 = vld [vmem:[#allocation2 + $0xd8] sm:$0xff]  ;;  %v13045_v55 = vld [vmem:[#allocation19_spill] sm:$0xff] }
 0x1c7   : > { %13022 = vst [vmem:[#allocation100_spill] sm:$0xff] %v9427_v44  ;;  %v9432_v5 = vsel %vm13024_vm6, %v9384_v7, 0  ;;  %v3492_v23 = vsel %vm2749_vm12, %v3489_v30, %v3491_v48  ;;  %v3229_v37 = vsel %vm2475_vm2, %v9436_v41, 0  ;;  %vm13027_vm3 = vcmask 523264   ;;  %v13028_v44 = vld [vmem:[#allocation9_spill] sm:$0xff]  ;;  %v13033_v48 = vld [vmem:[#allocation10_spill] sm:$0xff]  ;;  %2716 = vrot.lane.b32.xlu0 %v9260_v35, %s7454_s23 }
 0x1c8   : > { %13025 = vst [vmem:[#allocation101_spill] sm:$0xff] %v9432_v5  ;;  %v3793_v60 = vsel %vm13027_vm3, %v3494_v0, %v3545_v46  ;;  %vm13029_vm13 = vcmp.ne.s16.totalorder %v13028_v44, 0  ;;  %vm13032_vm6 = vcmp.ne.s16.totalorder %v13031_v53, 0  ;;  %vm13034_vm1 = vcmp.ne.s16.totalorder %v13033_v48, 0  ;;  %v13036_v0 = vld [vmem:[#allocation57_spill] sm:$0xff]  ;;  %v13038_v2 = vld [vmem:[#allocation18_spill] sm:$0xff]  ;;  %2818 = vrot.lane.b32.xlu1 %v9254_v9, %s7454_s23 }
 0x1c9   : > { %v9446_v31 = vsel %vm13029_vm13, %v9365_v3, 0  ;;  %v3210_v1 = vsel %vm13032_vm6, %v9334_v26, 0  ;;  %v9454_v63 = vsel %vm13034_vm1, %v9334_v26, 0  ;;  %v4706_v38 = vshrl.u32 %v3793_v60, 16  ;;  %v13145_v50 = vld [vmem:[#allocation89_spill] sm:$0xff] }
 0x1ca   : > { %13030 = vst [vmem:[#allocation102_spill] sm:$0xff] %v9446_v31  ;;  %13035 = vst [vmem:[#allocation6_spill] sm:$0xff] %v9454_v63  ;;  %v3495_v8 = vrot.slane %v3228_v36, 1  ;;  %vm13037_vm3 = vcmp.ne.s16.totalorder %v13036_v0, 0  ;;  %vm13039_vm13 = vcmp.ne.s16.totalorder %v9011_v4, 0  ;;  %vm13040_vm1 = vcmask 523264  }
 0x1cb   : > { %v3230_v46 = vsel %vm13037_vm3, %v9456_v58, 0  ;;  %v3231_v31 = vsel %vm13039_vm13, %v13038_v2, 0  ;;  %v3790_v63 = vsel %vm13040_vm1, %v3492_v23, %v3543_v12  ;;  %v13041_v36 = vld [vmem:[#allocation8_spill] sm:$0xff]  ;;  %v3497_v39 = vrot.slane %v3229_v37, 1  ;;  %v13048_v23 = vld [vmem:[#allocation13_spill] sm:$0xff]  ;;  %2820 = vrot.lane.b32.xlu0 %v9247_v22, %s7454_s23  ;;  %v13060_v22 = vld [vmem:[#allocation26_spill] sm:$0xff] }
 0x1cc   : > { %vm13042_vm6 = vcmp.ne.s16.totalorder %v13041_v36, 0  ;;  %v13043_v0 = vrot.slane %v9432_v5, 1  ;;  %v9479_v2 = vrot.slane %v4706_v38, 7  ;;  %v4709_v4 = vshll.u32 %v3793_v60, 16  ;;  %2904 = vrot.lane.b32.xlu1 %v13069_v42, %s7454_s23 }
 0x1cd   : > { %v9472_v26 = vsel %vm13042_vm6, %v9339_v28, 0  ;;  %v4670_v10 = vshrl.u32 %v3790_v63, 16  ;;  %vm13046_vm3 = vcmp.ne.s16.totalorder %v9014_v62, 0  ;;  %v9487_v12 = vsel %vm2134_vm11, %v9339_v28, 0 }
 0x1ce   : > { %v9477_v16 = vsel %vm2749_vm12, %v13043_v0, %v3489_v30  ;;  %v3232_v35 = vsel %vm13046_vm3, %v13045_v55, 0  ;;  %13047 = vst [vmem:[#allocation19_spill] sm:$0xff] %v9487_v12  ;;  %vm13049_vm13 = vcmp.ne.s16.totalorder %v13048_v23, 0  ;;  %v3499_v30 = vrot.slane %v3230_v46, 1  ;;  %v9528_v23 = vpop.permute.xlu1 %3441 }
 0x1cf   : > { %13044 = vst [vmem:[#allocation18_spill] sm:$0xff] %v9477_v16  ;;  %v9492_v37 = vsel %vm13049_vm13, %v9420_v6, 0  ;;  %v3501_v0 = vrot.slane %v3231_v31, 1  ;;  %v13050_v38 = vand.u32 15, %v9081_v54  ;;  %v4672_v16 = vrot.slane %v4670_v10, 7  ;;  %v13057_v10 = vld [vmem:[#allocation15_spill] sm:$0xff]  ;;  %2906 = vrot.lane.b32.xlu0 %v9257_v17, %s7454_s23  ;;  %v9586_v17 = vpop.permute.xlu0 %3443 }
 0x1d0   : > { %v4673_v5 = vshll.u32 %v3790_v63, 16  ;;  %v4711_v62 = vor.u32 %v4709_v4, %v9479_v2  ;;  %vm13054_vm6 = vcmp.ne.s16.totalorder %v9044_v51, 0  ;;  %v3496_v54 = vsel %vm2749_vm12, %v3493_v15, %v3495_v8  ;;  %13061 = vst [vmem:[#allocation26_spill] sm:$0xff] %v9528_v23  ;;  %13074 = vst [vmem:[#allocation105_spill] sm:$0xff] %v9586_v17  ;;  %2718 = vrot.lane.b32.xlu1 %v9280_v59, %s7454_s23 }
 0x1d1   : > { %vm9496_vm1 = vcmp.lt.s32.totalorder %v13050_v38, 15  ;;  %v3233_v12 = vsel %vm13054_vm6, %v13053_v34, 0  ;;  %vm13055_vm3 = vcmp.ne.s16.totalorder %v13031_v53, 0  ;;  %vm13058_vm13 = vcmp.ne.s16.totalorder %v13057_v10, 0  ;;  %v9551_v10 = vld [vmem:[#allocation2 + $0xe8] sm:$0xff] }
 0x1d2   : > { %v9512_v31 = vsel %vm13055_vm3, %v9420_v6, 0  ;;  %v9517_v4 = vsel %vm13058_vm13, %v9436_v41, 0  ;;  %v3503_v63 = vrot.slane %v3232_v35, 1  ;;  %v9519_v46 = vor.u32 %v4673_v5, %v4672_v16  ;;  %v13064_v35 = vld [vmem:[#allocation27_spill] sm:$0xff] }
 0x1d3   : > { %13056 = vst [vmem:[#allocation22_spill] sm:$0xff] %v9512_v31  ;;  %v4712_v9 = vsel %vm2341_vm0, %v4672_v16, %v4711_v62  ;;  %v9523_v38 = vsel %vm2749_vm12, %v3495_v8, %v3497_v39  ;;  %v3234_v15 = vsel %vm12687_vm9, %v13060_v22, 0  ;;  %vm13062_vm6 = vcmp.ne.s16.totalorder %v13041_v36, 0  ;;  %v13066_v16 = vld [vmem:[#allocation43_spill] sm:$0xff]  ;;  %2720 = vrot.lane.b32.xlu0 %v9326_v11, %s7454_s23 }
 0x1d4   : > { %13059 = vst [vmem:[#allocation103_spill] sm:$0xff] %v9519_v46  ;;  %5727 = vmatprep.mubr.bf16.mxu1 %v4712_v9  ;;  %v9533_v31 = vsel %vm13062_vm6, %v9436_v41, 0  ;;  %vm13065_vm3 = vcmp.ne.s16.totalorder %v13064_v35, 0  ;;  %v3505_v62 = vrot.slane %v3233_v12, 1  ;;  %v9543_v8 = vsel %vm12686_vm5, %v13066_v16, 0  ;;  %2822 = vrot.lane.b32.xlu1 %v9304_v61, %s7454_s23  ;;  %v13107_v36 = vld [vmem:[#allocation3_spill] sm:$0xff] }
 0x1d5   : > { %13063 = vst [vmem:[#allocation104_spill] sm:$0xff] %v9533_v31  ;;  %v9538_v5 = vsel %vm13065_vm3, %v9456_v58, 0  ;;  %v9546_v46 = vsel %vm2749_vm12, %v3497_v39, %v3499_v30  ;;  %v9549_v9 = vsel %vm2749_vm12, %v3499_v30, %v3501_v0  ;;  %vm13067_vm13 = vcmp.ne.s16.totalorder %v8323_v18, 0 }
 0x1d6   : > { %v9556_v31 = vsel %vm13067_vm13, %v9551_v10, 0  ;;  %vm13068_vm6 = vcmp.ne.s16.totalorder %v8355_v56, 0  ;;  %v9568_v39 = vsel %vm2749_vm12, %v3501_v0, %v3503_v63  ;;  %v9573_v30 = vsel %vm13065_vm3, %v13045_v55, 0 }
 0x1d7   : > { %v9561_v12 = vsel %vm13068_vm6, %v13045_v55, 0  ;;  %13070 = vst [vmem:[#allocation43_spill] sm:$0xff] %v9573_v30  ;;  %v3507_v52 = vrot.slane %v3234_v15, 1  ;;  %vm13071_vm13 = vcmp.ne.s16.totalorder %v8361_v25, 0  ;;  %vm2483_vm6 = vcmp.ne.s16.totalorder %v9299_v45, 0  ;;  %2824 = vrot.lane.b32.xlu0 %v9295_v20, %s7454_s23 }
 0x1d8   : > { %v9578_v51 = vsel %vm13071_vm13, %v13053_v34, 0  ;;  %vm13073_vm5 = vcmask 523264   ;;  %vm13075_vm9 = vcmp.ne.s16.totalorder %v8323_v18, 0  ;;  %v3509_v0 = vrot.slane %v9543_v8, 1  ;;  %v3547_v18 = vpop.permute.xlu0 %3546  ;;  %2908 = vrot.lane.b32.xlu1 %v9269_v40, %s7454_s23 }
 0x1d9   : > { %13072 = vst [vmem:[#allocation79_spill] sm:$0xff] %v9578_v51  ;;  %v9584_v42 = vsel %vm13073_vm5, %v9418_v33, %v9528_v23  ;;  %v9591_v55 = vsel %vm13075_vm9, %v13053_v34, 0  ;;  %v13077_v15 = vshrl.u32 %v9290_v49, 16  ;;  %vm13078_vm3 = vmmov %vm13073_vm5  ;;  %v9602_v33 = vsel %vm2749_vm12, %v3503_v63, %v3505_v62 }
 0x1da   : > { %13076 = vst [vmem:[#allocation106_spill] sm:$0xff] %v9591_v55  ;;  %v3742_v35 = vsel %vm13078_vm3, %v3210_v1, %v9586_v17  ;;  %vm13079_vm5 = vcmp.ne.s16.totalorder %v8380_v19, 0  ;;  %vm13081_vm9 = vcmp.ne.s16.totalorder %v8355_v56, 0  ;;  %v4663_v63 = vshrl.u32 %v9584_v42, 16 }
 0x1db   : > { %v9597_v30 = vor.u32 %v13077_v15, %v9378_v13  ;;  %v9607_v23 = vsel %vm13079_vm5, %v13060_v22, 0  ;;  %v4699_v55 = vshrl.u32 %v3742_v35, 16  ;;  %v9613_v8 = vsel %vm13081_vm9, %v13060_v22, 0  ;;  %v13083_v15 = vld [vmem:[#allocation45_spill] sm:$0xff]  ;;  %vm2260_vm9 = vmpackc.low %vm9496_vm1, %vm9496_vm1  ;;  %2910 = vrot.lane.b32.xlu0 %v9283_v57, %s7454_s23 }
 0x1dc   : > { %13080 = vst [vmem:[#allocation107_spill] sm:$0xff] %v9607_v23  ;;  %13082 = vst [vmem:[#allocation108_spill] sm:$0xff] %v9613_v8  ;;  %v3316_v13 = vshll.u32 %v9384_v7, 16  ;;  %v9619_v1 = vsel %vm2482_vm14, %v13083_v15, 0  ;;  %v9627_v34 = vsel %vm2749_vm12, %v3505_v62, %v3507_v52  ;;  %vm13084_vm13 = vcmp.ne.s16.totalorder %v13028_v44, 0  ;;  %v13086_v8 = vld [vmem:[#allocation25_spill] sm:$0xff]  ;;  %2722 = vrot.lane.b32.xlu1 %v9329_v32, %s7454_s23 }
 0x1dd   : > { %v9632_v22 = vsel %vm13084_vm13, %v9384_v7, 0  ;;  %vm13087_vm3 = vmmov %vm13084_vm13  ;;  %v9639_v56 = vrot.slane %v4699_v55, 7  ;;  %v4702_v59 = vshll.u32 %v3742_v35, 16  ;;  %v9642_v27 = vsel %vm2749_vm12, %v3507_v52, %v3509_v0  ;;  %v13090_v62 = vld [vmem:[#allocation5_spill] sm:$0xff] }
 0x1de   : > { %13085 = vst [vmem:[#allocation45_spill] sm:$0xff] %v9632_v22  ;;  %v9637_v17 = vsel %vm13087_vm3, %v13086_v8, 0  ;;  %13089 = vst [vmem:[#allocation109_spill] sm:$0xff] %v9642_v27  ;;  %vm13091_vm5 = vcmp.ne.s16.totalorder %v13090_v62, 0  ;;  %vm13093_vm13 = vcmask 523264   ;;  %v13094_v8 = vrot.slane %v9408_v24, 1  ;;  %v9666_v27 = vpop.permute.xlu1 %3445 }
 0x1df   : > { %13088 = vst [vmem:[#allocation25_spill] sm:$0xff] %v9637_v17  ;;  %v9647_v11 = vsel %vm13091_vm5, %v9159_v47, 0  ;;  %v3796_v23 = vsel %vm13093_vm13, %v3496_v54, %v3547_v18  ;;  %v13095_v55 = vrot.slane %v9309_v21, 1  ;;  %v9664_v47 = vsel %vm2144_vm4, %v13066_v16, 0  ;;  %13097 = vst [vmem:[#allocation112_spill] sm:$0xff] %v9666_v27  ;;  %v1807_v54 = vld [vmem:[#allocation2] sm:$0xff] }
 0x1e0   : > { %13092 = vst [vmem:[#allocation110_spill] sm:$0xff] %v9647_v11  ;;  %13096 = vst [vmem:[#allocation111_spill] sm:$0xff] %v9664_v47  ;;  %v4742_v51 = vshrl.u32 %v3796_v23, 16  ;;  %v4704_v11 = vor.u32 %v4702_v59, %v9639_v56  ;;  %v9669_v18 = vrot.slane %v3316_v13, 1  ;;  %vm13099_vm3 = vcmp.ne.s16.totalorder %v8361_v25, 0  ;;  %v7362_v59 = vld [vmem:[%s12499_s4 + $0x80] sm:$0xff]  }
 0x1e1   : > { %v9658_v35 = vsel %vm2749_vm12, %v13095_v55, %v13094_v8  ;;  %v9674_v21 = vsel %vm13099_vm3, %v13066_v16, 0  ;;  %v9676_v8 = vrot.slane %v4663_v63, 7  ;;  %vm13101_vm5 = vmmov %vm13093_vm13  ;;  %v13102_v16 = vshll.u32 %v9353_v43, 16  ;;  %v13106_v47 = vld [vmem:[#allocation32_spill] sm:$0xff] }
 0x1e2   : > { %13098 = vst [vmem:[#allocation113_spill] sm:$0xff] %v9669_v18  ;;  %13100 = vst [vmem:[#allocation114_spill] sm:$0xff] %v9674_v21  ;;  %v3745_v55 = vsel %vm13101_vm5, %v9472_v26, %v9666_v27  ;;  %v13103_v63 = vmov 0   ;;  %v4744_v52 = vrot.slane %v4742_v51, 7  ;;  %v4745_v26 = vshll.u32 %v3796_v23, 16  ;;  %v3549_v27 = vpop.permute.xlu0 %3548 }
 0x1e3   : > { %v9690_v13 = vrot.slane %v13102_v16, 1  ;;  %v2292_v61 = vsel %vm2260_vm9, 65537, %v13103_v63  ;;  %v4735_v21 = vshrl.u32 %v3745_v55, 16  ;;  %v9701_v20 = vsel %vm2483_vm6, %v9290_v49, 0  ;;  %vm13104_vm13 = vmmov %vm13101_vm5 }
 0x1e4   : > { %v3799_v16 = vsel %vm13104_vm13, %v9523_v38, %v3549_v27  ;;  %v4705_v25 = vsel %vm2341_vm0, %v9676_v8, %v4704_v11  ;;  %vm13105_vm3 = vcmp.ne.s16.totalorder %v13090_v62, 0  ;;  %v9714_v51 = vsel %vm2483_vm6, %v13106_v47, 0  ;;  %v7363_v11 = vld [vmem:[%s12499_s4 + $0x88] sm:$0xff]   ;;  %vm13111_vm9 = vmmov %vm13101_vm5 }
 0x1e5   : > { %v9709_v60 = vsel %vm13105_vm3, %v1807_v54, 0  ;;  %v4747_v23 = vor.u32 %v4745_v26, %v4744_v52  ;;  %v9716_v17 = vrot.slane %v4735_v21, 7  ;;  %v4778_v49 = vshrl.u32 %v3799_v16, 16  ;;  %5728 = vmatmul.mubr.bf16.vlgmr.msra.gmra.mrb[0].mxu1 %v4705_v25  ;;  %vm13123_vm3 = vmmov %vm13101_vm5 }
 0x1e6   : > { %v9719_v22 = vcombine.low %v13107_v36, %v2292_v61  ;;  %v4738_v27 = vshll.u32 %v3745_v55, 16  ;;  %5833 = vmatpush1.bf16.msra.mxu1 %v7362_v59  ;;  %v13108_v38 = vrot.slane %v9619_v1, 1  ;;  %v12703_v21 = vrot.slane %v9701_v20, 1  ;;  %v3551_v55 = vpop.permute.xlu0 %3550  ;;  %v9745_v61 = vpop.permute.xlu1 %3447 }
 0x1e7   : > { %vm13109_vm1 = vcmp.ne.s16.totalorder %v13033_v48, 0  ;;  %v9737_v36 = vrot.slane %v4778_v49, 7  ;;  %v4781_v40 = vshll.u32 %v3799_v16, 16  ;;  %v4748_v59 = vsel %vm2341_vm0, %v9479_v2, %v4747_v23  ;;  %5834 = vmatprep.subr.bf16.mxu1 %v13103_v63  ;;  %13110 = vst [vmem:[#allocation32_spill] sm:$0xff] %v9745_v61 }
 0x1e8   : > { %v9729_v54 = vsel %vm2749_vm12, %v3509_v0, %v13108_v38  ;;  %v9735_v25 = vsel %vm13109_vm1, %v9365_v3, 0  ;;  %v3802_v26 = vsel %vm13111_vm9, %v9546_v46, %v3551_v55  ;;  %5735 = vmatprep.mubr.bf16.mxu1 %v4748_v59  ;;  %v4740_v49 = vor.u32 %v4738_v27, %v9716_v17  ;;  %v13115_v59 = vld [vmem:[#allocation95_spill] sm:$0xff]  ;;  %vm13126_vm1 = vmmov %vm13123_vm3 }
 0x1e9   : > { %v9753_v57 = vsel %vm2003_vm15, %v9273_v14, %v9669_v18  ;;  %v9758_v2 = vsel %vm2003_vm15, %v9597_v30, %v9690_v13  ;;  %v4783_v16 = vor.u32 %v4781_v40, %v9737_v36  ;;  %v3748_v23 = vsel %vm13101_vm5, %v9492_v37, %v9745_v61  ;;  %2724 = vrot.lane.b32.xlu0 %v13115_v59, %s7454_s23 }
 0x1ea   : > { %13112 = vst [vmem:[#allocation3_spill] sm:$0xff] %v9758_v2  ;;  %v4814_v46 = vshrl.u32 %v3802_v26, 16  ;;  %v2462_v38 = vshrl.u32 %v9719_v22, 16  ;;  %v4771_v27 = vshrl.u32 %v3748_v23, 16  ;;  %5835 = vmatpush1.bf16.msra.mxu1 %v7363_v11  ;;  %v13113_v14 = vrot.slane %v9408_v24, 1  ;;  %v3553_v0 = vpop.permute.xlu0 %3552  ;;  %v7364_v24 = vld [vmem:[%s12499_s4 + $0x90] sm:$0xff]   ;;  %v9802_v32 = vpop.permute.xlu1 %3449 }
 0x1eb   : > { %v9777_v40 = vsel %vm2145_vm10, %v13083_v15, 0  ;;  %v3320_v37 = vshrl.u32 %v9384_v7, 16  ;;  %v4784_v11 = vsel %vm2341_vm0, %v4744_v52, %v4783_v16  ;;  %5836 = vmatprep.subr.bf16.mxu1 %v13103_v63  ;;  %vm13119_vm13 = vcmp.ne.s16.totalorder %v8380_v19, 0  ;;  %13121 = vst [vmem:[#allocation118_spill] sm:$0xff] %v9802_v32  ;;  %v13125_v19 = vld [vmem:[#allocation93_spill] sm:$0xff] }
 0x1ec   : > { %v9772_v55 = vsel %vm2749_vm12, %v13113_v14, %v12703_v21  ;;  %13114 = vst [vmem:[#allocation115_spill] sm:$0xff] %v9777_v40  ;;  %v13116_v14 = vrot.slane %v9714_v51, 1  ;;  %v13117_v21 = vrot.slane %v9619_v1, 1  ;;  %v9797_v59 = vsel %vm13119_vm13, %v13083_v15, 0  ;;  %v13122_v1 = vld [vmem:[#allocation75_spill] sm:$0xff]  ;;  %2826 = vrot.lane.b32.xlu1 %v13125_v19, %s7454_s23  ;;  %v7365_v19 = vld [vmem:[%s12499_s4 + $0x98] sm:$0xff]  }
 0x1ed   : > { %13120 = vst [vmem:[#allocation117_spill] sm:$0xff] %v9797_v59  ;;  %v2839_v52 = vshrl.u32 %v9353_v43, 16  ;;  %v9800_v16 = vrot.slane %v4771_v27, 7  ;;  %v4741_v29 = vsel %vm2341_vm0, %v9639_v56, %v4740_v49  ;;  %v3322_v40 = vor.u32 %v3320_v37, %v9669_v18 }
 0x1ee   : > { %v9792_v61 = vsel %vm2749_vm12, %v13117_v21, %v13116_v14  ;;  %v2931_v45 = vshrl.u32 %v13122_v1, 16  ;;  %v9808_v21 = vrot.slane %v4814_v46, 7  ;;  %v9813_v15 = vsel %vm13123_vm3, %v9517_v4, %v9802_v32  ;;  %5736 = vmatmul.mubr.bf16.gmra.mrb[4].mxu1 %v4741_v29  ;;  %v13128_v4 = vld [vmem:[#allocation48_spill] sm:$0xff] }
 0x1ef   : > { %13118 = vst [vmem:[#allocation116_spill] sm:$0xff] %v9792_v61  ;;  %v9815_v14 = vrot.slane %v2462_v38, 7  ;;  %v2465_v27 = vshll.u32 %v9719_v22, 16  ;;  %v4774_v59 = vshll.u32 %v3748_v23, 16  ;;  %v9822_v56 = vsel %vm13126_vm1, %v9549_v9, %v3553_v0  ;;  %5743 = vmatprep.mubr.bf16.mxu1 %v4784_v11  ;;  %v13131_v22 = vld [vmem:[#allocation91_spill] sm:$0xff]  ;;  %v3555_v23 = vpop.permute.xlu0 %3554  ;;  %5837 = vmatpush1.bf16.msra.mxu1 %v7364_v24  ;;  %v9853_v11 = vpop.permute.xlu1 %3451 }
 0x1f0   : > { %v9825_v49 = vor.u32 %v2839_v52, %v9690_v13  ;;  %vm13129_vm9 = vcmp.ne.s16.totalorder %v13128_v4, 0  ;;  %v4817_v46 = vshll.u32 %v3802_v26, 16  ;;  %2828 = vrot.lane.b32.xlu0 %v13131_v22, %s7454_s23  ;;  %v9840_v9 = vsel %vm2144_vm4, %v13106_v47, 0  ;;  %v13133_v13 = vld [vmem:[#allocation12_spill] sm:$0xff]  ;;  %v13135_v26 = vld [vmem:[#allocation14_spill] sm:$0xff]  ;;  %13137 = vst [vmem:[#allocation120_spill] sm:$0xff] %v9853_v11  ;;  %5838 = vmatprep.subr.bf16.mxu1 %v13103_v63 }
 0x1f1   : > { %13124 = vst [vmem:[#allocation75_spill] sm:$0xff] %v9815_v14  ;;  %v9830_v29 = vsel %vm13129_vm9, %v13106_v47, 0  ;;  %13132 = vst [vmem:[#allocation91_spill] sm:$0xff] %v9840_v9  ;;  %vm13134_vm5 = vcmp.ne.s16.totalorder %v13133_v13, 0  ;;  %vm13136_vm13 = vcmp.ne.s16.totalorder %v13135_v26, 0  ;;  %v4807_v37 = vshrl.u32 %v9813_v15, 16  ;;  %2912 = vrot.lane.b32.xlu1 %v13145_v50, %s7454_s23 }
 0x1f2   : > { %13127 = vst [vmem:[#allocation93_spill] sm:$0xff] %v9825_v49  ;;  %13130 = vst [vmem:[#allocation119_spill] sm:$0xff] %v9830_v29  ;;  %v9845_v0 = vsel %vm13134_vm5, %v9384_v7, 0  ;;  %v9850_v38 = vsel %vm13136_vm13, %v9365_v3, 0  ;;  %v4776_v24 = vor.u32 %v4774_v59, %v9800_v16  ;;  %v13138_v47 = vld [vmem:[#allocation81_spill] sm:$0xff]  ;;  %v13139_v22 = vld [vmem:[#allocation86_spill] sm:$0xff]  ;;  %v4819_v3 = vor.u32 %v4817_v46, %v9808_v21 }
 0x1f3   : > { %v9858_v52 = vor.u32 %v2931_v45, %v13138_v47  ;;  %v13140_v18 = vrot.slane %v13139_v22, 1  ;;  %v13141_v7 = vld [vmem:[#allocation69_spill] sm:$0xff]  ;;  %v4850_v26 = vshrl.u32 %v9822_v56, 16  ;;  %v13143_v13 = vld [vmem:[#allocation38_spill] sm:$0xff]  ;;  %v2467_v59 = vor.u32 %v2465_v27, %v9815_v14  ;;  %5839 = vmatpush1.bf16.msra.mxu1 %v7365_v19  ;;  %v13150_v27 = vld [vmem:[#allocation51_spill] sm:$0xff] }
 0x1f4   : > { %v13142_v9 = vrot.slane %v13141_v7, 1  ;;  %v9871_v4 = vsel %vm2003_vm15, %v3322_v40, %v13143_v13  ;;  %v4666_v45 = vshll.u32 %v9584_v42, 16  ;;  %v13146_v7 = vld [vmem:[#allocation94_spill] sm:$0xff]  ;;  %v7366_v42 = vld [vmem:[%s12499_s4 + $0xa0] sm:$0xff]   ;;  %vm13148_vm3 = vcmp.ne.s16.totalorder %v13028_v44, 0  ;;  %v3557_v13 = vpop.permute.xlu0 %3556  ;;  %5840 = vmatprep.subr.bf16.mxu1 %v13103_v63 }
 0x1f5   : > { %13144 = vst [vmem:[#allocation81_spill] sm:$0xff] %v9871_v4  ;;  %2914 = vrot.lane.b32.xlu0 %v13146_v7, %s7454_s23  ;;  %v13147_v40 = vld [vmem:[#allocation50_spill] sm:$0xff]  ;;  %v9905_v7 = vsel %vm2472_vm8, %v9339_v28, 0  ;;  %v9907_v61 = vrot.slane %v4807_v37, 7  ;;  %v13157_v44 = vld [vmem:[#allocation55_spill] sm:$0xff]  ;;  %vm13161_vm5 = vcmask 523264   ;;  %v9927_v37 = vpop.permute.xlu1 %3453 }
 0x1f6   : > { %v9865_v32 = vsel %vm2749_vm12, %v13142_v9, %v13140_v18  ;;  %v9880_v18 = vsel %vm2003_vm15, %v9825_v49, %v13138_v47  ;;  %v3596_v9 = vrot.slane %v9850_v38, 1  ;;  %v9892_v50 = vsel %vm13148_vm3, %v13147_v40, 0  ;;  %v13151_v47 = vld [vmem:[#allocation49_spill] sm:$0xff]  ;;  %v13154_v46 = vld [vmem:[#allocation90_spill] sm:$0xff]  ;;  %13162 = vst [vmem:[#allocation94_spill] sm:$0xff] %v9927_v37  ;;  %vm13165_vm13 = vmmov %vm13161_vm5 }
 0x1f7   : > { %13149 = vst [vmem:[#allocation86_spill] sm:$0xff] %v9892_v50  ;;  %vm13152_vm1 = vcmp.ne.s16.totalorder %v13151_v47, 0  ;;  %v3259_v29 = vsel %vm2471_vm7, %v13154_v46, 0  ;;  %v4777_v40 = vsel %vm2341_vm0, %v9716_v17, %v4776_v24  ;;  %v13158_v47 = vld [vmem:[#allocation31_spill] sm:$0xff]  ;;  %v9918_v46 = vor.u32 %v4666_v45, %v9676_v8  ;;  %v13163_v24 = vld [vmem:[#allocation74_spill] sm:$0xff]  ;;  %v13166_v45 = vld [vmem:[#allocation96_spill] sm:$0xff]  ;;  %5841 = vmatpush1.bf16.msra.mxu1 %v7366_v42 }
 0x1f8   : > { %v9897_v49 = vsel %vm13152_vm1, %v13150_v27, 0  ;;  %vm13159_vm9 = vcmp.ne.s16.totalorder %v13158_v47, 0  ;;  %v9920_v38 = vrot.slane %v4850_v26, 7  ;;  %v9925_v28 = vsel %vm13161_vm5, %v9538_v5, %v9853_v11  ;;  %5744 = vmatmul.mubr.bf16.gmra.mrb[8].mxu1 %v4777_v40  ;;  %2726 = vrot.lane.b32.xlu1 %v13166_v45, %s7454_s23  ;;  %v13171_v11 = vld [vmem:[#allocation97_spill] sm:$0xff]  ;;  %v13174_v47 = vld [vmem:[#allocation54_spill] sm:$0xff] }
 0x1f9   : > { %13153 = vst [vmem:[#allocation69_spill] sm:$0xff] %v9897_v49  ;;  %v9915_v50 = vsel %vm13159_vm9, %v13157_v44, 0  ;;  %13160 = vst [vmem:[#allocation89_spill] sm:$0xff] %v9918_v46  ;;  %v4820_v17 = vsel %vm2341_vm0, %v9737_v36, %v4819_v3  ;;  %v9933_v44 = vsel %vm2341_vm0, %v13163_v24, %v2467_v59  ;;  %v4810_v8 = vshll.u32 %v9813_v15, 16  ;;  %v13168_v59 = vld [vmem:[#allocation100_spill] sm:$0xff]  ;;  %v9957_v24 = vpop.permute.xlu0 %3558  ;;  %5842 = vmatprep.subr.bf16.mxu1 %v13103_v63  ;;  %v13211_v49 = vld [vmem:[#allocation53_spill] sm:$0xff] }
 0x1fa   : > { %13164 = vst [vmem:[#allocation50_spill] sm:$0xff] %v9933_v44  ;;  %v9938_v26 = vsel %vm13165_vm13, %v9568_v39, %v3555_v23  ;;  %5751 = vmatprep.mubr.bf16.mxu1 %v4820_v17  ;;  %v13167_v5 = vrot.slane %v9845_v0, 1  ;;  %v3598_v36 = vrot.slane %v3259_v29, 1  ;;  %v4853_v3 = vshll.u32 %v9822_v56, 16  ;;  %2728 = vrot.lane.b32.xlu0 %v13168_v59, %s7454_s23  ;;  %v7367_v39 = vld [vmem:[%s12499_s4 + $0xa8] sm:$0xff]   ;;  %v13169_v23 = vld [vmem:[#allocation23_spill] sm:$0xff]  ;;  %v9979_v59 = vpop.permute.xlu1 %3455 }
 0x1fb   : > { %vm2485_vm3 = vcmp.ne.s16.totalorder %v9815_v14, 0  ;;  %v3600_v15 = vrot.slane %v9905_v7, 1  ;;  %v4843_v17 = vshrl.u32 %v9925_v28, 16  ;;  %v4812_v56 = vor.u32 %v4810_v8, %v9907_v61  ;;  %13172 = vst [vmem:[#allocation51_spill] sm:$0xff] %v9979_v59  ;;  %5843 = vmatpush1.bf16.msra.mxu1 %v7367_v39 }
 0x1fc   : > { %v9945_v40 = vsel %vm2749_vm12, %v13167_v5, %v3596_v9  ;;  %vm2484_vm1 = vcmp.ne.s16.totalorder %v9933_v44, 0  ;;  %v9965_v29 = vsel %vm2485_vm3, %v13122_v1, 0  ;;  %v4855_v42 = vor.u32 %v4853_v3, %v9920_v38  ;;  %2830 = vrot.lane.b32.xlu1 %v13171_v11, %s7454_s23  ;;  %v13173_v3 = vld [vmem:[#allocation56_spill] sm:$0xff]  ;;  %v13178_v11 = vld [vmem:[#allocation99_spill] sm:$0xff]  ;;  %5844 = vmatprep.subr.bf16.mxu1 %v13103_v63 }
 0x1fd   : > { %v4886_v7 = vshrl.u32 %v9938_v26, 16  ;;  %v3261_v5 = vsel %vm13159_vm9, %v9420_v6, 0  ;;  %vm13170_vm5 = vcmp.ne.s16.totalorder %v13169_v23, 0  ;;  %v2535_v1 = vsel %vm2484_vm1, %v9353_v43, 0  ;;  %v7368_v43 = vld [vmem:[%s12499_s4 + $0xb0] sm:$0xff]  }
 0x1fe   : > { %v9975_v8 = vsel %vm13170_vm5, %v9436_v41, 0  ;;  %v3239_v45 = vsel %vm2485_vm3, %v13173_v3, 0  ;;  %vm13175_vm13 = vcmp.ne.s16.totalorder %v13031_v53, 0  ;;  %vm13176_vm9 = vcmp.ne.s16.totalorder %v13033_v48, 0  ;;  %2832 = vrot.lane.b32.xlu0 %v13178_v11, %s7454_s23  ;;  %v10014_v11 = vpop.permute.xlu0 %3560 }
 0x1ff   : > { %v9990_v6 = vsel %vm13175_vm13, %v13174_v47, 0  ;;  %v9995_v41 = vsel %vm13176_vm9, %v13174_v47, 0  ;;  %v3238_v3 = vsel %vm2484_vm1, %v13150_v27, 0  ;;  %v2890_v46 = vrot.slane %v9965_v29, 1  ;;  %5845 = vmatpush1.bf16.msra.mxu1 %v7368_v43 }
 0x200   : > { %13177 = vst [vmem:[#allocation90_spill] sm:$0xff] %v9995_v41  ;;  %v10007_v19 = vsel %vm2749_vm12, %v3596_v9, %v3598_v36  ;;  %v10010_v47 = vsel %vm2749_vm12, %v3598_v36, %v3600_v15  ;;  %v10012_v48 = vrot.slane %v4843_v17, 7  ;;  %v4813_v39 = vsel %vm2341_vm0, %v9800_v16, %v4812_v56  ;;  %v13181_v56 = vld [vmem:[#allocation98_spill] sm:$0xff]  ;;  %5846 = vmatprep.subr.bf16.mxu1 %v13103_v63 }
 0x201   : > { %v3602_v41 = vrot.slane %v3261_v5, 1  ;;  %v3604_v27 = vrot.slane %v9975_v8, 1  ;;  %v10020_v14 = vrot.slane %v4886_v7, 7  ;;  %vm13179_vm5 = vcmask 523264   ;;  %5752 = vmatmul.mubr.bf16.gmra.mrb[12].mxu1 %v4813_v39  ;;  %2916 = vrot.lane.b32.xlu1 %v13181_v56, %s7454_s23 }
 0x202   : > { %v10025_v9 = vsel %vm13179_vm5, %v9556_v31, %v9927_v37  ;;  %v4856_v36 = vsel %vm2341_vm0, %v9808_v21, %v4855_v42  ;;  %v2888_v17 = vrot.slane %v2535_v1, 1  ;;  %v4846_v29 = vshll.u32 %v9925_v28, 16  ;;  %vm13180_vm13 = vmmov %vm13179_vm5  ;;  %2918 = vrot.lane.b32.xlu0 %v9658_v35, %s7454_s23  ;;  %v10058_v1 = vpop.permute.xlu1 %3457  ;;  %v2803_v43 = vpop.permute.xlu0 %2802 }
 0x203   : > { %v10032_v16 = vsel %vm13180_vm13, %v9602_v33, %v3557_v13  ;;  %5759 = vmatprep.mubr.bf16.mxu1 %v4856_v36  ;;  %v3515_v7 = vrot.slane %v3238_v3, 1  ;;  %v3263_v31 = vsel %vm2475_vm2, %v9456_v58, 0  ;;  %v4889_v8 = vshll.u32 %v9938_v26, 16  ;;  %v7369_v33 = vld [vmem:[%s12499_s4 + $0xb8] sm:$0xff]   ;;  %v13185_v58 = vld [vmem:[#allocation57_spill] sm:$0xff]  ;;  %13187 = vst [vmem:[#allocation55_spill] sm:$0xff] %v10058_v1 }
 0x204   : > { %v3517_v21 = vrot.slane %v3239_v45, 1  ;;  %v13183_v13 = vrot.slane %v9915_v50, 1  ;;  %v13184_v28 = vrot.slane %v13139_v22, 1  ;;  %vm13186_vm9 = vcmp.ne.s16.totalorder %v13185_v58, 0  ;;  %v7391_v22 = vld [vmem:[#allocation2 + $0x10] sm:$0xff]  ;;  %5847 = vmatpush1.bf16.msra.mxu1 %v7369_v33 }
 0x205   : > { %v10055_v26 = vsel %vm13186_vm9, %v9551_v10, 0  ;;  %v4879_v35 = vshrl.u32 %v10025_v9, 16  ;;  %v4848_v3 = vor.u32 %v4846_v29, %v10012_v48  ;;  %v10063_v45 = vsel %vm2749_vm12, %v3600_v15, %v3602_v41  ;;  %2730 = vrot.lane.b32.xlu1 %v9597_v30, %s7454_s23  ;;  %v13191_v29 = vld [vmem:[#allocation70_spill] sm:$0xff]  ;;  %5848 = vmatprep.subr.bf16.mxu1 %v13103_v63 }
 0x206   : > { %v10050_v42 = vsel %vm2749_vm12, %v13184_v28, %v13183_v13  ;;  %vm13188_vm5 = vcmp.ne.s16.totalorder %v13090_v62, 0  ;;  %v4891_v10 = vor.u32 %v4889_v8, %v10020_v14  ;;  %v4922_v36 = vshrl.u32 %v10032_v16, 16  ;;  %3437 = vrot.lane.b32.xlu0 %v9753_v57, %s7454_s23 }
 0x207   : > { %v10067_v39 = vsel %vm13188_vm5, %v7391_v22, 0  ;;  %v10072_v56 = vsel %vm2749_vm12, %v3602_v41, %v3604_v27  ;;  %v3606_v13 = vrot.slane %v3263_v31, 1  ;;  %v10078_v15 = vsel %vm13180_vm13, %v13191_v29, %v2803_v43  ;;  %v7392_v29 = vld [vmem:[#allocation2 + $0xf0] sm:$0xff] }
 0x208   : > { %13189 = vst [vmem:[#allocation74_spill] sm:$0xff] %v10067_v39  ;;  %13190 = vst [vmem:[#allocation97_spill] sm:$0xff] %v10072_v56  ;;  %v13192_v28 = vrot.slane %v9701_v20, 1  ;;  %v13193_v8 = vrot.slane %v9714_v51, 1  ;;  %v10094_v30 = vsel %vm2749_vm12, %v2888_v17, %v2890_v46  ;;  %v7370_v20 = vld [vmem:[%s12499_s4 + $0xc0] sm:$0xff]   ;;  %v10100_v31 = vsel %vm2749_vm12, %v3515_v7, %v3517_v21  ;;  %v13195_v51 = vld [vmem:[#allocation65_spill] sm:$0xff] }
 0x209   : > { %13194 = vst [vmem:[#allocation56_spill] sm:$0xff] %v10100_v31  ;;  %vm13196_vm9 = vcmp.ne.s16.totalorder %v13169_v23, 0  ;;  %v10111_v33 = vrot.slane %v4879_v35, 7  ;;  %v10116_v46 = vsel %vm13180_vm13, %v9561_v12, %v9979_v59  ;;  %v4849_v21 = vsel %vm2341_vm0, %v9907_v61, %v4848_v3  ;;  %v13203_v59 = vld [vmem:[#allocation45_spill] sm:$0xff]  ;;  %5849 = vmatpush1.bf16.msra.mxu1 %v7370_v20 }
 0x20a   : > { %v10083_v22 = vsel %vm2749_vm12, %v13192_v28, %v2888_v17  ;;  %v10088_v37 = vsel %vm2749_vm12, %v13193_v8, %v3515_v7  ;;  %v10105_v43 = vsel %vm13196_vm9, %v13195_v51, 0  ;;  %v13197_v28 = vld [vmem:[#allocation58_spill] sm:$0xff]  ;;  %v10118_v17 = vpop.permute.xlu1 %3459  ;;  %v10120_v7 = vpop.permute.xlu0 %3562  ;;  %v13200_v51 = vld [vmem:[#allocation59_spill] sm:$0xff]  ;;  %v10129_v35 = vrot.slane %v4922_v36, 7  ;;  %5760 = vmatmul.mubr.bf16.gmra.mrb[16].mxu1 %v4849_v21  ;;  %3538 = vrot.lane.b32.xlu1 %v13203_v59, %s7454_s23  ;;  %v7371_v59 = vld [vmem:[%s12499_s4 + $0xc8] sm:$0xff]  }
 0x20b   : > { %vm13198_vm5 = vcmp.ne.s16.totalorder %v13197_v28, 0  ;;  %13199 = vst [vmem:[#allocation54_spill] sm:$0xff] %v10118_v17  ;;  %v7393_v8 = vld [vmem:[#allocation2 + $0xf8] sm:$0xff]  ;;  %vm13201_vm9 = vcmp.ne.s16.totalorder %v13200_v51, 0  ;;  %v3932_v41 = vshrl.u32 %v10078_v15, 16  ;;  %v4892_v61 = vsel %vm2341_vm0, %v9920_v38, %v4891_v10  ;;  %2936 = vrot.lane.b32.xlu0 %v9758_v2, %s7454_s23  ;;  %v13206_v10 = vld [vmem:[#allocation8_spill] sm:$0xff]  ;;  %5850 = vmatprep.subr.bf16.mxu1 %v13103_v63 }
 0x20c   : > { %v10109_v57 = vsel %vm13198_vm5, %v7392_v29, 0  ;;  %v10127_v29 = vsel %vm13201_vm9, %v7393_v8, 0  ;;  %vm13202_vm5 = vmmov %vm13180_vm13  ;;  %v4882_v3 = vshll.u32 %v10025_v9, 16  ;;  %5767 = vmatprep.mubr.bf16.mxu1 %v4892_v61  ;;  %v10143_v36 = vsel %vm2749_vm12, %v3604_v27, %v3606_v13  ;;  %v7394_v9 = vld [vmem:[#allocation2 + $0x28] sm:$0xff]  ;;  %v7395_v2 = vld [vmem:[#allocation2 + $0x100] sm:$0xff] }
 0x20d   : > { %v10134_v12 = vsel %vm13202_vm5, %v9627_v34, %v9957_v24  ;;  %v13204_v8 = vrot.slane %v10055_v26, 1  ;;  %v4925_v21 = vshll.u32 %v10032_v16, 16  ;;  %v4915_v38 = vshrl.u32 %v10116_v46, 16  ;;  %v13209_v23 = vld [vmem:[#allocation61_spill] sm:$0xff]  ;;  %5851 = vmatpush1.bf16.msra.mxu1 %v7371_v59  ;;  %v13225_v59 = vld [vmem:[#allocation79_spill] sm:$0xff] }
 0x20e   : > { %v3610_v27 = vrot.slane %v10109_v57, 1  ;;  %vm13207_vm13 = vcmp.ne.s16.totalorder %v13206_v10, 0  ;;  %v4958_v61 = vshrl.u32 %v10134_v12, 16  ;;  %v2701_v16 = vpop.permute.xlu1 %2700  ;;  %v4884_v24 = vor.u32 %v4882_v3, %v10111_v33  ;;  %v13215_v3 = vld [vmem:[#allocation25_spill] sm:$0xff]  ;;  %5852 = vmatprep.subr.bf16.mxu1 %v13103_v63 }
 0x20f   : > { %v10148_v34 = vsel %vm2749_vm12, %v3606_v13, %v13204_v8  ;;  %v10161_v13 = vsel %vm13207_vm13, %v7394_v9, 0  ;;  %v2801_v8 = vpop.permute.xlu0 %2800  ;;  %v3612_v20 = vrot.slane %v10127_v29, 1  ;;  %vm13210_vm9 = vcmp.ne.s16.totalorder %v13209_v23, 0  ;;  %vm13216_vm13 = vmmov %vm13202_vm5  ;;  %v13217_v29 = vld [vmem:[#allocation110_spill] sm:$0xff]  ;;  %2920 = vrot.lane.b32.xlu0 %v9772_v55, %s7454_s23 }
 0x210   : > { %13205 = vst [vmem:[#allocation99_spill] sm:$0xff] %v10148_v34  ;;  %13208 = vst [vmem:[#allocation98_spill] sm:$0xff] %v10161_v13  ;;  %v3267_v62 = vsel %vm13210_vm9, %v7395_v2, 0  ;;  %v4927_v57 = vor.u32 %v4925_v21, %v10129_v35  ;;  %v10170_v39 = vrot.slane %v3932_v41, 7  ;;  %v13212_v44 = vrot.slane %v13211_v49, 1  ;;  %3536 = vrot.lane.b32.xlu1 %v13217_v29, %s7454_s23 }
 0x211   : > { %v10177_v31 = vsel %vm2134_vm11, %v7394_v9, 0  ;;  %v10181_v56 = vsel %vm13216_vm13, %v13215_v3, %v2701_v16  ;;  %v13218_v21 = vrot.slane %v10105_v43, 1  ;;  %v13219_v41 = vrot.slane %v9915_v50, 1  ;;  %v7372_v50 = vld [vmem:[%s12499_s4 + $0xd0] sm:$0xff]   ;;  %vm13223_vm11 = vmmov %vm13202_vm5 }
 0x212   : > { %v3045_v34 = vsel %vm13202_vm5, %v13212_v44, %v2801_v8  ;;  %13214 = vst [vmem:[#allocation70_spill] sm:$0xff] %v10177_v31  ;;  %v7396_v44 = vld [vmem:[#allocation2 + $0x108] sm:$0xff]  ;;  %v13220_v8 = vld [vmem:[#allocation63_spill] sm:$0xff]  ;;  %v10196_v13 = vrot.slane %v4915_v38, 7  ;;  %v4918_v16 = vshll.u32 %v10116_v46, 16  ;;  %v3935_v3 = vshll.u32 %v10078_v15, 16  ;;  %5853 = vmatpush1.bf16.msra.mxu1 %v7372_v50 }
 0x213   : > { %v3929_v2 = vshrl.u32 %v3045_v34, 16  ;;  %v10190_v49 = vsel %vm2749_vm12, %v13219_v41, %v13218_v21  ;;  %vm13221_vm9 = vcmp.ne.s16.totalorder %v13220_v8, 0  ;;  %v3614_v34 = vrot.slane %v3267_v62, 1  ;;  %v13222_v21 = vld [vmem:[#allocation109_spill] sm:$0xff]  ;;  %v10212_v41 = vpop.permute.xlu1 %3461  ;;  %v10214_v15 = vpop.permute.xlu0 %3564  ;;  %3439 = vrot.lane.b32.xlu0 %v9871_v4, %s7454_s23  ;;  %5854 = vmatprep.subr.bf16.mxu1 %v13103_v63 }
 0x214   : > { %v10194_v9 = vsel %vm13221_vm9, %v7396_v44, 0  ;;  %v10205_v29 = vrot.slane %v4958_v61, 7  ;;  %v10210_v38 = vsel %vm13223_vm11, %v13222_v21, %v10014_v11  ;;  %13224 = vst [vmem:[#allocation65_spill] sm:$0xff] %v10212_v41  ;;  %v4885_v55 = vsel %vm2341_vm0, %v10012_v48, %v4884_v24  ;;  %v13226_v44 = vld [vmem:[#allocation80_spill] sm:$0xff]  ;;  %vm13233_vm11 = vmmov %vm13202_vm5  ;;  %v13234_v31 = vld [vmem:[#allocation77_spill] sm:$0xff] }
 0x215   : > { %v3931_v46 = vrot.slane %v3929_v2, 7  ;;  %v10222_v62 = vsel %vm13202_vm5, %v13225_v59, %v10058_v1  ;;  %v3937_v61 = vor.u32 %v3935_v3, %v10170_v39  ;;  %v3922_v11 = vshrl.u32 %v10181_v56, 16  ;;  %5768 = vmatmul.mubr.bf16.gmra.mrb[20].mxu1 %v4885_v55  ;;  %3435 = vrot.lane.b32.xlu1 %v13226_v44, %s7454_s23  ;;  %v10239_v59 = vld [vmem:[#allocation2 + $0x38] sm:$0xff]  ;;  %v13229_v44 = vld [vmem:[#allocation13_spill] sm:$0xff] }
 0x216   : > { %v4928_v2 = vsel %vm2341_vm0, %v10020_v14, %v4927_v57  ;;  %v13227_v48 = vrot.slane %v10055_v26, 1  ;;  %v10236_v21 = vsel %vm2749_vm12, %v3610_v27, %v3612_v20  ;;  %v10244_v14 = vsel %vm2475_vm2, %v10239_v59, 0 }
 0x217   : > { %5775 = vmatprep.mubr.bf16.mxu1 %v4928_v2  ;;  %13228 = vst [vmem:[#allocation45_spill] sm:$0xff] %v10236_v21  ;;  %v4920_v57 = vor.u32 %v4918_v16, %v10196_v13  ;;  %v4961_v55 = vshll.u32 %v10134_v12, 16  ;;  %v3938_v26 = vsel %vm2341_vm0, %v3931_v46, %v3937_v61  ;;  %v7398_v2 = vld [vmem:[#allocation2 + $0x30] sm:$0xff]  ;;  %vm13230_vm13 = vcmp.ne.s16.totalorder %v13229_v44, 0  ;;  %v2699_v12 = vpop.permute.xlu1 %2698  ;;  %v2805_v1 = vpop.permute.xlu0 %2804  ;;  %2922 = vrot.lane.b32.xlu0 %v10083_v22, %s7454_s23 }
 0x218   : > { %v10233_v24 = vsel %vm2749_vm12, %v13227_v48, %v3610_v27  ;;  %v7373_v27 = vld [vmem:[%s12499_s4 + $0xd8] sm:$0xff]   ;;  %v10256_v48 = vsel %vm13230_vm13, %v7398_v2, 0  ;;  %v4951_v3 = vshrl.u32 %v10222_v62, 16  ;;  %v4994_v16 = vshrl.u32 %v10210_v38, 16  ;;  %5575 = vmatprep.mubr.bf16.mxu0 %v3938_v26  ;;  %vm13237_vm13 = vmmov %vm13202_vm5 }
 0x219   : > { %13231 = vst [vmem:[#allocation8_spill] sm:$0xff] %v10256_v48  ;;  %v10262_v50 = vsel %vm2749_vm12, %v3612_v20, %v3614_v34  ;;  %vm13232_vm9 = vcmp.ne.s16.totalorder %v13031_v53, 0  ;;  %v4963_v61 = vor.u32 %v4961_v55, %v10205_v29  ;;  %v10269_v4 = vrot.slane %v3922_v11, 7  ;;  %3540 = vrot.lane.b32.xlu1 %v9735_v25, %s7454_s23  ;;  %v13236_v11 = vld [vmem:[#allocation107_spill] sm:$0xff]  ;;  %5855 = vmatpush1.bf16.msra.mxu1 %v7373_v27 }
 0x21a   : > { %v10266_v46 = vsel %vm13232_vm9, %v7398_v2, 0  ;;  %v2994_v5 = vsel %vm13233_vm11, %v9709_v60, %v2699_v12  ;;  %v3051_v26 = vsel %vm13202_vm5, %v13234_v31, %v2805_v1  ;;  %v13235_v21 = vrot.slane %v10194_v9, 1  ;;  %v13238_v1 = vld [vmem:[#allocation64_spill] sm:$0xff]  ;;  %vm13240_vm11 = vmmov %vm13202_vm5  ;;  %5856 = vmatprep.subr.bf16.mxu1 %v13103_v63 }
 0x21b   : > { %v3919_v48 = vshrl.u32 %v2994_v5, 16  ;;  %v3978_v20 = vshrl.u32 %v3051_v26, 16  ;;  %v12733_v55 = vrot.slane %v10244_v14, 1  ;;  %v10286_v2 = vsel %vm13237_vm13, %v13236_v11, %v10118_v17  ;;  %v7399_v5 = vld [vmem:[#allocation2 + $0x110] sm:$0xff]  ;;  %v10307_v12 = vpop.permute.xlu1 %3463  ;;  %2924 = vrot.lane.b32.xlu0 %v10094_v30, %s7454_s23 }
 0x21c   : > { %v10280_v53 = vsel %vm2749_vm12, %v3614_v34, %v13235_v21  ;;  %v3925_v60 = vshll.u32 %v10181_v56, 16  ;;  %v4921_v25 = vsel %vm2341_vm0, %v10111_v33, %v4920_v57  ;;  %vm13239_vm9 = vcmp.ne.s16.totalorder %v13238_v1, 0  ;;  %v7375_v34 = vld [vmem:[%s12499_s4 + $0xe0] sm:$0xff]   ;;  %13241 = vst [vmem:[#allocation53_spill] sm:$0xff] %v10307_v12  ;;  %v10311_v57 = vpop.permute.xlu0 %3566 }
 0x21d   : > { %v10295_v31 = vsel %vm13239_vm9, %v7399_v5, 0  ;;  %v10300_v21 = vrot.slane %v4951_v3, 7  ;;  %v10305_v56 = vsel %vm13240_vm11, %v9729_v54, %v10120_v7  ;;  %v3921_v22 = vrot.slane %v3919_v48, 7  ;;  %5776 = vmatmul.mubr.bf16.gmra.mrb[24].mxu1 %v4921_v25  ;;  %2938 = vrot.lane.b32.xlu1 %v9880_v18, %s7454_s23  ;;  %v7376_v18 = vld [vmem:[%s12499_s4 + $0xe8] sm:$0xff]  }
 0x21e   : > { %v10309_v33 = vrot.slane %v3978_v20, 7  ;;  %v10314_v27 = vrot.slane %v4994_v16, 7  ;;  %v3927_v11 = vor.u32 %v3925_v60, %v10269_v4  ;;  %v3981_v3 = vshll.u32 %v3051_v26, 16  ;;  %v10324_v20 = vld [vmem:[#allocation2 + $0x40] sm:$0xff]  ;;  %5857 = vmatpush1.bf16.msra.mxu1 %v7375_v34 }
 0x21f   : > { %v4964_v5 = vsel %vm2341_vm0, %v10129_v35, %v4963_v61  ;;  %v4954_v54 = vshll.u32 %v10222_v62, 16  ;;  %v4987_v7 = vshrl.u32 %v10286_v2, 16  ;;  %vm13242_vm5 = vcmp.ne.s16.totalorder %v13185_v58, 0  ;;  %v2703_v25 = vpop.permute.xlu1 %2702  ;;  %5858 = vmatprep.subr.bf16.mxu1 %v13103_v63 }
 0x220   : > { %5783 = vmatprep.mubr.bf16.mxu1 %v4964_v5  ;;  %v10329_v16 = vsel %vm13242_vm5, %v10324_v20, 0  ;;  %v4997_v26 = vshll.u32 %v10210_v38, 16  ;;  %v5030_v35 = vshrl.u32 %v10305_v56, 16  ;;  %v3983_v62 = vor.u32 %v3981_v3, %v10309_v33  ;;  %v2807_v5 = vpop.permute.xlu0 %2806  ;;  %vm13249_vm5 = vmmov %vm13240_vm11 }
 0x221   : > { %v3928_v61 = vsel %vm2341_vm0, %v3921_v22, %v3927_v11  ;;  %v4956_v60 = vor.u32 %v4954_v54, %v10300_v21  ;;  %v13243_v38 = vrot.slane %v10105_v43, 1  ;;  %v13244_v22 = vld [vmem:[#allocation15_spill] sm:$0xff]  ;;  %vm13246_vm9 = vcmp.ne.s16.totalorder %v13206_v10, 0  ;;  %v7379_v11 = vld [vmem:[%s12499_s4 + $0x108] sm:$0xff]   ;;  %2940 = vrot.lane.b32.xlu1 %v9858_v52, %s7454_s23 }
 0x222   : > { %5576 = vmatmul.mubr.bf16.vlgmr.msra.gmra.mrb[64].mxu0 %v3928_v61  ;;  %vm13245_vm13 = vcmp.ne.s16.totalorder %v13244_v22, 0  ;;  %v10356_v34 = vsel %vm13246_vm9, %v10239_v59, 0  ;;  %v4999_v43 = vor.u32 %v4997_v26, %v10314_v27  ;;  %v13248_v54 = vld [vmem:[#allocation72_spill] sm:$0xff]  ;;  %v7401_v10 = vld [vmem:[%s12499_s4 + $0x100] sm:$0xff]   ;;  %5859 = vmatpush1.bf16.msra.mxu1 %v7376_v18 }
 0x223   : > { %v10346_v3 = vsel %vm2749_vm12, %v13243_v38, %v12733_v55  ;;  %v10351_v30 = vsel %vm13245_vm13, %v10239_v59, 0  ;;  %13247 = vst [vmem:[#allocation4_spill] sm:$0xff] %v10356_v34  ;;  %v3000_v61 = vsel %vm13240_vm11, %v13248_v54, %v2703_v25  ;;  %v3054_v38 = vsel %vm13249_vm5, %v9865_v32, %v2807_v5  ;;  %7040 = vmatpush3.bf16.msra.mxu0 %v7401_v10  ;;  %v10377_v25 = vld [vmem:[#allocation2 + $0x48] sm:$0xff]  ;;  %v13251_v5 = vld [vmem:[#allocation38_spill] sm:$0xff]  ;;  %v13252_v52 = vld [vmem:[#allocation27_spill] sm:$0xff]  ;;  %v10404_v17 = vpop.permute.xlu1 %3465 }
 0x224   : > { %v3984_v55 = vsel %vm2341_vm0, %v10170_v39, %v3983_v62  ;;  %v10372_v59 = vrot.slane %v4987_v7, 7  ;;  %v3971_v48 = vshrl.u32 %v3000_v61, 16  ;;  %vm13250_vm13 = vcmp.ne.s16.totalorder %v13197_v28, 0  ;;  %3670 = vrot.lane.b32.xlu0 %v13251_v5, %s7454_s23  ;;  %v7377_v54 = vld [vmem:[%s12499_s4 + $0xf0] sm:$0xff]   ;;  %v13254_v10 = vld [vmem:[#allocation111_spill] sm:$0xff]  ;;  %vm13255_vm11 = vmmov %vm13249_vm5  ;;  %13256 = vst [vmem:[#allocation25_spill] sm:$0xff] %v10404_v17  ;;  %v10406_v18 = vpop.permute.xlu0 %3568  ;;  %5860 = vmatprep.subr.bf16.mxu1 %v13103_v63 }
 0x225   : > { %5583 = vmatprep.mubr.bf16.mxu0 %v3984_v55  ;;  %v10382_v32 = vsel %vm13250_vm13, %v10377_v25, 0  ;;  %v4990_v39 = vshll.u32 %v10286_v2, 16  ;;  %v10385_v62 = vrot.slane %v5030_v35, 7  ;;  %v4014_v7 = vshrl.u32 %v3054_v38, 16  ;;  %7041 = vmatprep.subr.bf16.mxu0 %v7379_v11  ;;  %v7380_v28 = vld [vmem:[%s12499_s4 + $0x110] sm:$0xff]  }
 0x226   : > { %vm13253_vm9 = vcmp.ne.s16.totalorder %v13252_v52, 0  ;;  %v10400_v2 = vsel %vm13255_vm11, %v13254_v10, %v10212_v41  ;;  %v10402_v35 = vrot.slane %v3971_v48, 7  ;;  %v3974_v26 = vshll.u32 %v3000_v61, 16  ;;  %v13257_v48 = vld [vmem:[#allocation116_spill] sm:$0xff]  ;;  %3630 = vrot.lane.b32.xlu1 %v9945_v40, %s7454_s23  ;;  %v10428_v34 = vld [vmem:[#allocation2 + $0x50] sm:$0xff]  ;;  %5861 = vmatpush1.bf16.msra.mxu1 %v7377_v54  ;;  %vm13264_vm11 = vmmov %vm13249_vm5 }
 0x227   : > { %v10392_v55 = vsel %vm13253_vm9, %v10324_v20, 0  ;;  %v4957_v5 = vsel %vm2341_vm0, %v10196_v13, %v4956_v60  ;;  %v5033_v10 = vshll.u32 %v10305_v56, 16  ;;  %v10418_v61 = vsel %vm13249_vm5, %v13257_v48, %v10214_v15  ;;  %7042 = vmatpush3.bf16.msra.mxu0 %v7379_v11  ;;  %5862 = vmatprep.subr.bf16.mxu1 %v13103_v63  ;;  %v13263_v54 = vld [vmem:[#allocation92_spill] sm:$0xff] }
 0x228   : > { %v10420_v41 = vrot.slane %v4014_v7, 7  ;;  %5784 = vmatmul.mubr.bf16.gmra.mrb[28].mxu1 %v4957_v5  ;;  %v5000_v13 = vsel %vm2341_vm0, %v10205_v29, %v4999_v43  ;;  %v4992_v60 = vor.u32 %v4990_v39, %v10372_v59  ;;  %v3976_v58 = vor.u32 %v3974_v26, %v10402_v35  ;;  %3632 = vrot.lane.b32.xlu0 %v10007_v19, %s7454_s23  ;;  %v7378_v26 = vld [vmem:[%s12499_s4 + $0xf8] sm:$0xff]  }
 0x229   : > { %v4017_v56 = vshll.u32 %v3054_v38, 16  ;;  %5791 = vmatprep.mubr.bf16.mxu1 %v5000_v13  ;;  %vm13258_vm13 = vcmp.ne.s16.totalorder %v13200_v51, 0  ;;  %v5035_v7 = vor.u32 %v5033_v10, %v10385_v62  ;;  %v5023_v29 = vshrl.u32 %v10400_v2, 16  ;;  %v10452_v10 = vpop.permute.xlu1 %2704  ;;  %7043 = vmatprep.subr.bf16.mxu0 %v7380_v28 }
 0x22a   : > { %v10433_v15 = vsel %vm13258_vm13, %v10428_v34, 0  ;;  %v13259_v11 = vrot.slane %v10295_v31, 1  ;;  %v13260_v40 = vrot.slane %v10194_v9, 1  ;;  %v5066_v39 = vshrl.u32 %v10418_v61, 16  ;;  %v2809_v9 = vpop.permute.xlu0 %2808  ;;  %5863 = vmatpush1.bf16.msra.mxu1 %v7378_v26  ;;  %vm13271_vm13 = vmmov %vm13249_vm5 }
 0x22b   : > { %v4019_v5 = vor.u32 %v4017_v56, %v10420_v41  ;;  %v3977_v19 = vsel %vm2341_vm0, %v10269_v4, %v3976_v58  ;;  %vm13261_vm9 = vcmp.ne.s16.totalorder %v13229_v44, 0  ;;  %v3003_v13 = vsel %vm13264_vm11, %v13263_v54, %v10452_v10  ;;  %v7404_v54 = vld [vmem:[#allocation2 + $0x118] sm:$0xff]  ;;  %7044 = vmatpush3.bf16.msra.mxu0 %v7380_v28 }
 0x22c   : > { %v10444_v43 = vsel %vm2749_vm12, %v13260_v40, %v13259_v11  ;;  %v10459_v48 = vsel %vm13261_vm9, %v10324_v20, 0  ;;  %5584 = vmatmul.mubr.bf16.gmra.mrb[68].mxu0 %v3977_v19  ;;  %v3057_v56 = vsel %vm13249_vm5, %v10050_v42, %v2809_v9  ;;  %v13265_v11 = vrot.slane %v10329_v16, 1  ;;  %3636 = vrot.lane.b32.xlu0 %v10063_v45, %s7454_s23  ;;  %vm13272_vm9 = vmmov %vm13249_vm5 }
 0x22d   : > { %13262 = vst [vmem:[#allocation110_spill] sm:$0xff] %v10459_v48  ;;  %v13266_v4 = vrot.slane %v10244_v14, 1  ;;  %v5026_v63 = vshll.u32 %v10400_v2, 16  ;;  %v13267_v40 = vrot.slane %v9845_v0, 1  ;;  %v4993_v19 = vsel %vm2341_vm0, %v10300_v21, %v4992_v60  ;;  %v7405_v14 = vld [vmem:[#allocation2 + $0x120] sm:$0xff] }
 0x22e   : > { %v10483_v9 = vsel %vm2482_vm14, %v7404_v54, 0  ;;  %v4007_v2 = vshrl.u32 %v3003_v13, 16  ;;  %v4050_v20 = vshrl.u32 %v3057_v56, 16  ;;  %v5036_v0 = vsel %vm2341_vm0, %v10314_v27, %v5035_v7  ;;  %v13270_v60 = vld [vmem:[#allocation115_spill] sm:$0xff]  ;;  %v10511_v54 = vpop.permute.xlu0 %2894 }
 0x22f   : > { %v10472_v58 = vsel %vm2749_vm12, %v13266_v4, %v13265_v11  ;;  %3628 = vrot.lane.b32.xlu1 %v13267_v40, %s7454_s23  ;;  %v10487_v11 = vsel %vm2483_vm6, %v7405_v14, 0  ;;  %v10489_v4 = vrot.slane %v5023_v29, 7  ;;  %v10495_v21 = vrot.slane %v5066_v39, 7  ;;  %v10507_v29 = vpop.permute.xlu1 %3467 }
 0x230   : > { %v10500_v40 = vsel %vm13271_vm13, %v13270_v60, %v10307_v12  ;;  %v10505_v28 = vsel %vm13272_vm9, %v10088_v37, %v10311_v57  ;;  %v4020_v45 = vsel %vm2341_vm0, %v10309_v33, %v4019_v5  ;;  %v10513_v27 = vrot.slane %v4007_v2, 7  ;;  %5792 = vmatmul.mubr.bf16.gmra.mrb[32].mxu1 %v4993_v19  ;;  %v13273_v33 = vld [vmem:[#allocation29_spill] sm:$0xff]  ;;  %v10526_v5 = vld [vmem:[#allocation2 + $0x58] sm:$0xff]  ;;  %3640 = vrot.lane.b32.xlu0 %v10143_v36, %s7454_s23 }
 0x231   : > { %v4010_v7 = vshll.u32 %v3003_v13, 16  ;;  %v10515_v26 = vrot.slane %v4050_v20, 7  ;;  %v4053_v39 = vshll.u32 %v3057_v56, 16  ;;  %5591 = vmatprep.mubr.bf16.mxu0 %v4020_v45  ;;  %v5069_v14 = vshll.u32 %v10418_v61, 16  ;;  %5799 = vmatprep.mubr.bf16.mxu1 %v5036_v0 }
 0x232   : > { %vm13274_vm11 = vcmp.ne.s16.totalorder %v13273_v33, 0  ;;  %vm13275_vm5 = vcmp.ne.s16.totalorder %v13209_v23, 0  ;;  %v5028_v61 = vor.u32 %v5026_v63, %v10489_v4  ;;  %v5059_v56 = vshrl.u32 %v10500_v40, 16  ;;  %v10542_v0 = vpop.permute.xlu0 %2892 }
 0x233   : > { %3634 = vrot.lane.b32.xlu1 %v10010_v47, %s7454_s23  ;;  %v10524_v57 = vsel %vm13274_vm11, %v10377_v25, 0  ;;  %v10531_v13 = vsel %vm13275_vm5, %v10526_v5, 0  ;;  %v4012_v47 = vor.u32 %v4010_v7, %v10513_v27  ;;  %v4055_v20 = vor.u32 %v4053_v39, %v10515_v26  ;;  %v10540_v2 = vpop.permute.xlu1 %2706  ;;  %vm13287_vm5 = vmmov %vm13272_vm9 }
 0x234   : > { %v5102_v19 = vshrl.u32 %v10505_v28, 16  ;;  %v13276_v45 = vrot.slane %v10382_v32, 1  ;;  %v13277_v63 = vrot.slane %v10329_v16, 1  ;;  %vm13278_vm13 = vcmp.ne.s16.totalorder %v13244_v22, 0  ;;  %3644 = vrot.lane.b32.xlu0 %v10233_v24, %s7454_s23 }
 0x235   : > { %v10555_v7 = vsel %vm13278_vm13, %v10377_v25, 0  ;;  %v5071_v36 = vor.u32 %v5069_v14, %v10495_v21  ;;  %v3006_v39 = vsel %vm13272_vm9, %v9990_v6, %v10540_v2  ;;  %v4013_v60 = vsel %vm2341_vm0, %v10402_v35, %v4012_v47  ;;  %v13282_v25 = vld [vmem:[#allocation97_spill] sm:$0xff]  ;;  %v7407_v14 = vld [vmem:[#allocation2 + $0x128] sm:$0xff]  ;;  %v10573_v6 = vld [vmem:[#allocation2 + $0x60] sm:$0xff] }
 0x236   : > { %v10550_v37 = vsel %vm2749_vm12, %v13277_v63, %v13276_v45  ;;  %13279 = vst [vmem:[#allocation109_spill] sm:$0xff] %v10555_v7  ;;  %v13280_v44 = vrot.slane %v10433_v15, 1  ;;  %v13281_v16 = vmov %v13276_v45  ;;  %v4043_v63 = vshrl.u32 %v3006_v39, 16  ;;  %5592 = vmatmul.mubr.bf16.gmra.mrb[72].mxu0 %v4013_v60  ;;  %vm13289_vm13 = vmmov %vm13287_vm5 }
 0x237   : > { %3638 = vrot.lane.b32.xlu1 %v13282_v25, %s7454_s23  ;;  %v3571_v22 = vshll.u32 %v7407_v14, 16  ;;  %vm13283_vm11 = vcmp.ne.s16.totalorder %v13220_v8, 0  ;;  %v10580_v32 = vrot.slane %v5059_v56, 7  ;;  %v5029_v47 = vsel %vm2341_vm0, %v10372_v59, %v5028_v61  ;;  %v13286_v56 = vld [vmem:[#allocation119_spill] sm:$0xff]  ;;  %v10606_v59 = vpop.permute.xlu0 %2708  ;;  %v13288_v61 = vld [vmem:[#allocation56_spill] sm:$0xff]  ;;  %vm13291_vm9 = vmmov %vm13287_vm5 }
 0x238   : > { %v10568_v45 = vsel %vm2749_vm12, %v13281_v16, %v13280_v44  ;;  %v10578_v35 = vsel %vm13283_vm11, %v10573_v6, 0  ;;  %v4056_v44 = vsel %vm2341_vm0, %v10420_v41, %v4055_v20  ;;  %v13284_v60 = vrot.slane %v10483_v9, 1  ;;  %v10604_v20 = vpop.permute.xlu1 %2934  ;;  %5800 = vmatmul.mubr.bf16.gmra.mrb[36].mxu1 %v5029_v47  ;;  %3648 = vrot.lane.b32.xlu0 %v10262_v50, %s7454_s23  ;;  %vm13294_vm11 = vmmov %vm13287_vm5 }
 0x239   : > { %v13285_v16 = vrot.slane %v10295_v31, 1  ;;  %v10595_v12 = vrot.slane %v5102_v19, 7  ;;  %v10600_v8 = vsel %vm13287_vm5, %v13286_v56, %v10404_v17  ;;  %v10602_v41 = vrot.slane %v4043_v63, 7  ;;  %5599 = vmatprep.mubr.bf16.mxu0 %v4056_v44  ;;  %v13292_v56 = vld [vmem:[#allocation99_spill] sm:$0xff] }
 0x23a   : > { %v4046_v24 = vshll.u32 %v3006_v39, 16  ;;  %v5062_v31 = vshll.u32 %v10500_v40, 16  ;;  %v10612_v19 = vsel %vm13289_vm13, %v13288_v61, %v10406_v18  ;;  %v5072_v39 = vsel %vm2341_vm0, %v10385_v62, %v5071_v36  ;;  %v7381_v18 = vld [vmem:[%s12499_s4 + $0x118] sm:$0xff]   ;;  %v10630_v62 = vld [vmem:[#allocation2 + $0x130] sm:$0xff]  ;;  %vm13300_vm13 = vmmov %vm13287_vm5 }
 0x23b   : > { %v10593_v25 = vsel %vm2749_vm12, %v13285_v16, %v13284_v60  ;;  %v13290_v60 = vld [vmem:[#allocation98_spill] sm:$0xff]  ;;  %v5105_v63 = vshll.u32 %v10505_v28, 16  ;;  %3642 = vrot.lane.b32.xlu1 %v13292_v56, %s7454_s23  ;;  %5807 = vmatprep.mubr.bf16.mxu1 %v5072_v39  ;;  %v3573_v40 = vrot.slane %v3571_v22, 1  ;;  %v3575_v17 = vshrl.u32 %v7407_v14, 16  ;;  %v2813_v56 = vpop.permute.xlu0 %2812  ;;  %v13295_v28 = vld [vmem:[#allocation45_spill] sm:$0xff] }
 0x23c   : > { %v3009_v16 = vsel %vm13291_vm9, %v13290_v60, %v10606_v59  ;;  %v4048_v44 = vor.u32 %v4046_v24, %v10602_v41  ;;  %v5064_v61 = vor.u32 %v5062_v31, %v10580_v32  ;;  %v5095_v47 = vshrl.u32 %v10600_v8, 16  ;;  %v2811_v39 = vpop.permute.xlu1 %2810  ;;  %7045 = vmatprep.subr.bf16.mxu0 %v7381_v18  ;;  %3652 = vrot.lane.b32.xlu0 %v10444_v43, %s7454_s23  ;;  %vm13302_vm9 = vmmov %vm13287_vm5 }
 0x23d   : > { %v4079_v60 = vshrl.u32 %v3009_v16, 16  ;;  %v10634_v36 = vsel %vm2484_vm1, %v7407_v14, 0  ;;  %v5107_v22 = vor.u32 %v5105_v63, %v10595_v12  ;;  %v5138_v24 = vshrl.u32 %v10612_v19, 16  ;;  %7046 = vmatpush3.bf16.msra.mxu0 %v7381_v18 }
 0x23e   : > { %v4049_v31 = vsel %vm2341_vm0, %v10513_v27, %v4048_v44  ;;  %v3663_v23 = vshll.u32 %v10630_v62, 16  ;;  %v3060_v50 = vsel %vm13294_vm11, %v10190_v49, %v2811_v39  ;;  %v4082_v7 = vshll.u32 %v3009_v16, 16  ;;  %v13296_v44 = vld [vmem:[#allocation68_spill] sm:$0xff]  ;;  %vm13305_vm11 = vmmov %vm13287_vm5 }
 0x23f   : > { %v10643_v51 = vrot.slane %v4079_v60, 7  ;;  %v3063_v14 = vsel %vm13287_vm5, %v10346_v3, %v2813_v56  ;;  %v4086_v63 = vshrl.u32 %v3060_v50, 16  ;;  %5600 = vmatmul.mubr.bf16.gmra.mrb[76].mxu0 %v4049_v31  ;;  %3646 = vrot.lane.b32.xlu1 %v13295_v28, %s7454_s23  ;;  %v10651_v38 = vsel %vm2003_vm15, %v13296_v44, %v3573_v40  ;;  %v10667_v44 = vpop.permute.xlu0 %2898 }
 0x240   : > { %v4122_v27 = vshrl.u32 %v3063_v14, 16  ;;  %13297 = vst [vmem:[#allocation79_spill] sm:$0xff] %v10651_v38  ;;  %v10654_v49 = vrot.slane %v5095_v47, 7  ;;  %v5065_v3 = vsel %vm2341_vm0, %v10489_v4, %v5064_v61  ;;  %v10661_v18 = vor.u32 %v3575_v17, %v3573_v40  ;;  %v10663_v39 = vpop.permute.xlu1 %2896  ;;  %3672 = vrot.lane.b32.xlu0 %v10651_v38, %s7454_s23 }
 0x241   : > { %v4084_v16 = vor.u32 %v4082_v7, %v10643_v51  ;;  %v4088_v60 = vrot.slane %v4086_v63, 7  ;;  %v4089_v28 = vshll.u32 %v3060_v50, 16  ;;  %v4125_v56 = vshll.u32 %v3063_v14, 16  ;;  %v13299_v7 = vld [vmem:[#allocation69_spill] sm:$0xff]  ;;  %5808 = vmatmul.mubr.bf16.gmra.mrb[40].mxu1 %v5065_v3  ;;  %v13301_v50 = vld [vmem:[#allocation86_spill] sm:$0xff] }
 0x242   : > { %13298 = vst [vmem:[#allocation80_spill] sm:$0xff] %v10661_v18  ;;  %v10665_v31 = vrot.slane %v4122_v27, 7  ;;  %v5140_v47 = vrot.slane %v5138_v24, 7  ;;  %v3778_v48 = vsel %vm13300_vm13, %v13299_v7, %v10507_v29  ;;  %v5108_v43 = vsel %vm2341_vm0, %v10495_v21, %v5107_v22  ;;  %v13308_v7 = vld [vmem:[#allocation85_spill] sm:$0xff]  ;;  %vm13312_vm13 = vmmov %vm13287_vm5 }
 0x243   : > { %v3665_v17 = vrot.slane %v3663_v23, 1  ;;  %v5098_v4 = vshll.u32 %v10600_v8, 16  ;;  %v4091_v40 = vor.u32 %v4089_v28, %v4088_v60  ;;  %3650 = vrot.lane.b32.xlu1 %v10280_v53, %s7454_s23  ;;  %5815 = vmatprep.mubr.bf16.mxu1 %v5108_v43  ;;  %v3667_v24 = vshrl.u32 %v10630_v62, 16 }
 0x244   : > { %v4127_v61 = vor.u32 %v4125_v56, %v10665_v31  ;;  %v10682_v29 = vsel %vm13302_vm9, %v13301_v50, %v10452_v10  ;;  %v5141_v14 = vshll.u32 %v10612_v19, 16  ;;  %v4085_v23 = vsel %vm2341_vm0, %v10602_v41, %v4084_v16  ;;  %v10695_v63 = vpop.permute.xlu1 %2710  ;;  %v10699_v19 = vpop.permute.xlu0 %2712  ;;  %v13304_v16 = vld [vmem:[#allocation8_spill] sm:$0xff]  ;;  %v13311_v50 = vld [vmem:[#allocation74_spill] sm:$0xff]  ;;  %vm13314_vm9 = vmmov %vm13287_vm5 }
 0x245   : > { %v10692_v53 = vsel %vm2485_vm3, %v10630_v62, 0  ;;  %v5100_v21 = vor.u32 %v5098_v4, %v10654_v49  ;;  %v5131_v22 = vshrl.u32 %v3778_v48, 16  ;;  %v4092_v10 = vsel %vm2341_vm0, %v10515_v26, %v4091_v40 }
 0x246   : > { %v4128_v41 = vsel %vm2341_vm0, %v4088_v60, %v4127_v61  ;;  %v5143_v27 = vor.u32 %v5141_v14, %v5140_v47  ;;  %v3012_v3 = vsel %vm13305_vm11, %v13304_v16, %v10695_v63  ;;  %5607 = vmatprep.mubr.bf16.mxu0 %v4092_v10  ;;  %v13306_v62 = vrot.slane %v10487_v11, 1  ;;  %vm13316_vm11 = vmmov %vm13287_vm5 }
 0x247   : > { %v13307_v28 = vrot.slane %v10483_v9, 1  ;;  %v1732_v43 = vrot.slane %v13308_v7, 4  ;;  %v4115_v4 = vshrl.u32 %v3012_v3, 16  ;;  %3654 = vrot.lane.b32.xlu1 %v10593_v25, %s7454_s23  ;;  %5608 = vmatmul.mubr.bf16.gmra.mrb[80].mxu0 %v4085_v23  ;;  %v3015_v26 = vsel %vm13287_vm5, %v10351_v30, %v10699_v19 }
 0x248   : > { %v3666_v60 = vsel %vm2003_vm15, %v10661_v18, %v3665_v17  ;;  %v13309_v47 = vrot.slane %v10634_v36, 1  ;;  %v13310_v9 = vmov %v13306_v62  ;;  %v3952_v61 = vshrl.u32 %v10682_v29, 16  ;;  %5615 = vmatprep.mubr.bf16.mxu0 %v4128_v41  ;;  %v2817_v11 = vpop.permute.xlu0 %2816  ;;  %vm13313_vm15 = vmmov %vm13287_vm5 }
 0x249   : > { %v3623_v56 = vsel %vm2749_vm12, %v13307_v28, %v13306_v62  ;;  %v3147_v25 = vsel %vm13312_vm13, %v13311_v50, %v10604_v20  ;;  %3674 = vrot.lane.b32.xlu0 %v3666_v60, %s7454_s23  ;;  %v3669_v14 = vor.u32 %v3667_v24, %v3665_v17  ;;  %v3626_v30 = vrot.slane %v10692_v53, 1  ;;  %v2815_v62 = vpop.permute.xlu1 %2814  ;;  %v13318_v50 = vld [vmem:[#allocation30_spill] sm:$0xff]  ;;  %vm13319_vm13 = vmmov %vm13287_vm5 }
 0x24a   : > { %v3625_v40 = vsel %vm2749_vm12, %v13310_v9, %v13309_v47  ;;  %v5133_v23 = vrot.slane %v5131_v22, 7  ;;  %v10729_v10 = vrot.slane %v4115_v4, 7  ;;  %v4118_v16 = vshll.u32 %v3012_v3, 16 }
 0x24b   : > { %v5101_v28 = vsel %vm2341_vm0, %v10580_v32, %v5100_v21  ;;  %v3066_v47 = vsel %vm13313_vm15, %v10472_v58, %v2815_v62  ;;  %v4151_v9 = vshrl.u32 %v3015_v26, 16  ;;  %v3069_v20 = vsel %vm13314_vm9, %v10550_v37, %v2817_v11  ;;  %3656 = vrot.lane.b32.xlu1 %v3623_v56, %s7454_s23  ;;  %v13315_v58 = vld [vmem:[#allocation90_spill] sm:$0xff]  ;;  %v13317_v37 = vld [vmem:[#allocation60_spill] sm:$0xff]  ;;  %vm13322_vm15 = vmmov %vm13287_vm5 }
 0x24c   : > { %5816 = vmatmul.mubr.bf16.gmra.mrb[44].mxu1 %v5101_v28  ;;  %v5144_v17 = vsel %vm2341_vm0, %v10595_v12, %v5143_v27  ;;  %v5134_v24 = vshll.u32 %v3778_v48, 16  ;;  %v3949_v53 = vshrl.u32 %v3147_v25, 16  ;;  %v4120_v22 = vor.u32 %v4118_v16, %v10729_v10  ;;  %vm13324_vm9 = vmmov %vm13287_vm5 }
 0x24d   : > { %v4158_v41 = vshrl.u32 %v3066_v47, 16  ;;  %5823 = vmatprep.mubr.bf16.mxu1 %v5144_v17  ;;  %v10741_v32 = vrot.slane %v3952_v61, 7  ;;  %v3151_v21 = vsel %vm13316_vm11, %v13315_v58, %v10540_v2  ;;  %v3099_v3 = vsel %vm13287_vm5, %v13317_v37, %v10511_v54  ;;  %3676 = vrot.lane.b32.xlu0 %v3669_v14, %s7454_s23  ;;  %v10751_v56 = vpop.permute.xlu1 %2900  ;;  %v10753_v61 = vpop.permute.xlu0 %2902  ;;  %vm13325_vm11 = vmmov %vm13287_vm5 }
 0x24e   : > { %v4194_v4 = vshrl.u32 %v3069_v20, 16  ;;  %v3955_v12 = vshll.u32 %v10682_v29, 16  ;;  %v5136_v48 = vor.u32 %v5134_v24, %v5133_v23  ;;  %v4161_v60 = vshll.u32 %v3066_v47, 16  ;;  %v13321_v24 = vld [vmem:[#allocation70_spill] sm:$0xff] }
 0x24f   : > { %v4160_v27 = vrot.slane %v4158_v41, 7  ;;  %v3096_v2 = vsel %vm13319_vm13, %v13318_v50, %v10542_v0  ;;  %v10758_v25 = vrot.slane %v4151_v9, 7  ;;  %v4121_v54 = vsel %vm2341_vm0, %v10643_v51, %v4120_v22  ;;  %3658 = vrot.lane.b32.xlu1 %v3625_v40, %s7454_s23  ;;  %vm13328_vm13 = vmmov %vm13287_vm5 }
 0x250   : > { %v10760_v16 = vrot.slane %v4194_v4, 7  ;;  %v3992_v14 = vshrl.u32 %v3151_v21, 16  ;;  %v3942_v29 = vshrl.u32 %v3099_v3, 16  ;;  %v3951_v23 = vrot.slane %v3949_v53, 7  ;;  %5616 = vmatmul.mubr.bf16.gmra.mrb[84].mxu0 %v4121_v54 }
 0x251   : > { %v4163_v62 = vor.u32 %v4161_v60, %v4160_v27  ;;  %v3957_v11 = vor.u32 %v3955_v12, %v10741_v32  ;;  %v4154_v28 = vshll.u32 %v3015_v26, 16  ;;  %v4197_v47 = vshll.u32 %v3069_v20, 16  ;;  %v10772_v22 = vpop.permute.xlu1 %2714  ;;  %v10776_v40 = vpop.permute.xlu0 %2716  ;;  %v13323_v20 = vld [vmem:[#allocation67_spill] sm:$0xff] }
 0x252   : > { %v13320_v0 = vrot.slane %v10634_v36, 1  ;;  %v3939_v17 = vshrl.u32 %v3096_v2, 16  ;;  %v3153_v51 = vsel %vm13322_vm15, %v13321_v24, %v10606_v59  ;;  %v5137_v26 = vsel %vm2341_vm0, %v10654_v49, %v5136_v48  ;;  %vm13329_vm15 = vmmov %vm13287_vm5 }
 0x253   : > { %v4164_v53 = vsel %vm2341_vm0, %v10665_v31, %v4163_v62  ;;  %v10783_v36 = vsel %vm13324_vm9, %v13323_v20, %v10663_v39  ;;  %v4199_v41 = vor.u32 %v4197_v47, %v10760_v16  ;;  %v3018_v59 = vsel %vm13325_vm11, %v10392_v55, %v10772_v22  ;;  %vm13331_vm9 = vmmov %vm13287_vm5 }
 0x254   : > { %v3627_v9 = vsel %vm2749_vm12, %v13320_v0, %v3626_v30  ;;  %v4156_v30 = vor.u32 %v4154_v28, %v10758_v25  ;;  %5623 = vmatprep.mubr.bf16.mxu0 %v4164_v53  ;;  %v10790_v31 = vrot.slane %v3992_v14, 7  ;;  %v10792_v58 = vrot.slane %v3942_v29, 7  ;;  %5824 = vmatmul.mubr.bf16.gmra.mrb[48].mxu1 %v5137_v26 }
 0x255   : > { %v4187_v37 = vshrl.u32 %v3018_v59, 16  ;;  %3660 = vrot.lane.b32.xlu1 %v3627_v9, %s7454_s23  ;;  %v3958_v49 = vsel %vm2341_vm0, %v3951_v23, %v3957_v11  ;;  %v4028_v39 = vshrl.u32 %v3153_v51, 16  ;;  %v13326_v4 = vrot.slane %v10531_v13, 1  ;;  %v2819_v29 = vpop.permute.xlu1 %2818  ;;  %v2821_v23 = vpop.permute.xlu0 %2820 }
 0x256   : > { %5864 = vmatprep.mubr.bf16.mxu1 %v3958_v49  ;;  %v13327_v12 = vrot.slane %v10433_v15, 1  ;;  %v2771_v55 = vrot.slane %v10578_v35, 1  ;;  %v1733_v60 = vadd.f32 %v1732_v43, %v13308_v7  ;;  %v3995_v50 = vshll.u32 %v3151_v21, 16  ;;  %v13332_v49 = vld [vmem:[#allocation34_spill] sm:$0xff] }
 0x257   : > { %v3945_v2 = vshll.u32 %v3099_v3, 16  ;;  %v3941_v54 = vrot.slane %v3939_v17, 7  ;;  %v3985_v14 = vshrl.u32 %v10783_v36, 16  ;;  %v10806_v62 = vrot.slane %v4187_v37, 7 }
 0x258   : > { %v2770_v48 = vsel %vm2749_vm12, %v13327_v12, %v13326_v4  ;;  %v3072_v15 = vsel %vm13287_vm5, %v10568_v45, %v2819_v29  ;;  %v4157_v11 = vsel %vm2341_vm0, %v10729_v10, %v4156_v30  ;;  %v4200_v28 = vsel %vm2341_vm0, %v4160_v27, %v4199_v41 }
 0x259   : > { %v3997_v47 = vor.u32 %v3995_v50, %v10790_v31  ;;  %v3947_v7 = vor.u32 %v3945_v2, %v10792_v58  ;;  %v4230_v43 = vshrl.u32 %v3072_v15, 16  ;;  %v3021_v21 = vsel %vm13328_vm13, %v10524_v57, %v10776_v40  ;;  %5624 = vmatmul.mubr.bf16.gmra.mrb[88].mxu0 %v4157_v11  ;;  %v10823_v24 = vpop.permute.xlu1 %2904  ;;  %v10825_v53 = vpop.permute.xlu0 %2906  ;;  %v13330_v57 = vld [vmem:[#allocation71_spill] sm:$0xff] }
 0x25a   : > { %v10818_v3 = vrot.slane %v4028_v39, 7  ;;  %v4190_v0 = vshll.u32 %v3018_v59, 16  ;;  %5631 = vmatprep.mubr.bf16.mxu0 %v4200_v28  ;;  %v3075_v45 = vsel %vm13329_vm15, %v2770_v48, %v2821_v23  ;;  %v1734_v9 = vrot.slane %v1733_v60, 2 }
 0x25b   : > { %v4031_v10 = vshll.u32 %v3153_v51, 16  ;;  %v10821_v17 = vrot.slane %v4230_v43, 7  ;;  %v4233_v27 = vshll.u32 %v3072_v15, 16  ;;  %v3948_v26 = vsel %vm2341_vm0, %v3941_v54, %v3947_v7 }
 0x25c   : > { %v10828_v20 = vrot.slane %v3985_v14, 7  ;;  %v3105_v30 = vsel %vm13331_vm9, %v13330_v57, %v10667_v44  ;;  %v4192_v41 = vor.u32 %v4190_v0, %v10806_v62  ;;  %v4223_v59 = vshrl.u32 %v3021_v21, 16  ;;  %5865 = vmatmul.mubr.bf16.vlgmr.msra.gmra.mrb[52].mxu1 %v3948_v26 }
 0x25d   : > { %v4235_v51 = vor.u32 %v4233_v27, %v10821_v17  ;;  %v4266_v37 = vshrl.u32 %v3075_v45, 16  ;;  %vm13333_vm11 = vcmp.ne.s16.totalorder %v13332_v49, 0  ;;  %v3998_v4 = vsel %vm2341_vm0, %v10741_v32, %v3997_v47  ;;  %v10850_v14 = vpop.permute.xlu1 %2718  ;;  %v13335_v32 = vld [vmem:[#allocation35_spill] sm:$0xff]  ;;  %v10855_v23 = vpop.permute.xlu0 %2720  ;;  %v13340_v27 = vld [vmem:[#allocation4_spill] sm:$0xff] }
 0x25e   : > { %v2158_v39 = vsel %vm13333_vm11, %v10428_v34, 0  ;;  %v4033_v12 = vor.u32 %v4031_v10, %v10818_v3  ;;  %v3988_v48 = vshll.u32 %v10783_v36, 16  ;;  %v3155_v44 = vsel %vm13287_vm5, %v10266_v46, %v10695_v63  ;;  %5872 = vmatprep.mubr.bf16.mxu1 %v3998_v4  ;;  %v10857_v36 = vld [vmem:[#allocation2 + $0x68] sm:$0xff]  ;;  %vm13339_vm11 = vmmov %vm13287_vm5 }
 0x25f   : > { %v1735_v50 = vadd.f32 %v1734_v9, %v1733_v60  ;;  %v4021_v2 = vshrl.u32 %v3105_v30, 16  ;;  %vm13334_vm13 = vcmp.ne.s16.totalorder %v13252_v52, 0  ;;  %vm13336_vm15 = vcmp.ne.s16.totalorder %v13335_v32, 0 }
 0x260   : > { %v10848_v54 = vsel %vm13334_vm13, %v10428_v34, 0  ;;  %v2159_v29 = vsel %vm13336_vm15, %v10526_v5, 0  ;;  %vm13337_vm9 = vcmp.ne.s16.totalorder %v13238_v1, 0  ;;  %v3990_v63 = vor.u32 %v3988_v48, %v10828_v20  ;;  %vm13341_vm13 = vmmov %vm13287_vm5 }
 0x261   : > { %v10862_v46 = vsel %vm13337_vm9, %v10857_v36, 0  ;;  %v10865_v52 = vrot.slane %v4223_v59, 7  ;;  %v4193_v34 = vsel %vm2341_vm0, %v10758_v25, %v4192_v41  ;;  %v13338_v60 = vrot.slane %v10531_v13, 1  ;;  %v2823_v41 = vpop.permute.xlu1 %2822  ;;  %v2825_v59 = vpop.permute.xlu0 %2824  ;;  %vm13343_vm15 = vmmov %vm13287_vm5 }
 0x262   : > { %v4064_v11 = vshrl.u32 %v3155_v44, 16  ;;  %v10874_v28 = vrot.slane %v4266_v37, 7  ;;  %v3024_v47 = vsel %vm13339_vm11, %v2158_v39, %v10850_v14  ;;  %5632 = vmatmul.mubr.bf16.gmra.mrb[92].mxu0 %v4193_v34  ;;  %v4236_v7 = vsel %vm2341_vm0, %v10760_v16, %v4235_v51  ;;  %v13342_v39 = vld [vmem:[#allocation73_spill] sm:$0xff] }
 0x263   : > { %v2772_v15 = vsel %vm2749_vm12, %v13338_v60, %v2771_v55  ;;  %v4226_v43 = vshll.u32 %v3021_v21, 16  ;;  %5639 = vmatprep.mubr.bf16.mxu0 %v4236_v7  ;;  %v2773_v25 = vrot.slane %v10862_v46, 1  ;;  %v4034_v0 = vsel %vm2341_vm0, %v10790_v31, %v4033_v12  ;;  %v13345_v12 = vld [vmem:[#allocation36_spill] sm:$0xff] }
 0x264   : > { %v1736_v13 = vrot.slane %v1735_v50, 1  ;;  %v10883_v9 = vrot.slane %v4021_v2, 7  ;;  %v4024_v10 = vshll.u32 %v3105_v30, 16  ;;  %v3157_v26 = vsel %vm13287_vm5, %v13340_v27, %v10699_v19 }
 0x265   : > { %v4269_v57 = vshll.u32 %v3075_v45, 16  ;;  %v4228_v16 = vor.u32 %v4226_v43, %v10865_v52  ;;  %v4259_v21 = vshrl.u32 %v3024_v47, 16  ;;  %v3078_v51 = vsel %vm13341_vm13, %v2772_v15, %v2823_v41  ;;  %v10919_v34 = vpop.permute.xlu1 %2908 }
 0x266   : > { %v3991_v37 = vsel %vm2341_vm0, %v10792_v58, %v3990_v63  ;;  %v10892_v31 = vrot.slane %v4064_v11, 7  ;;  %v3108_v30 = vsel %vm13343_vm15, %v13342_v39, %v10751_v56  ;;  %v4302_v19 = vshrl.u32 %v3078_v51, 16  ;;  %v10911_v56 = vld [vmem:[#allocation2 + $0x70] sm:$0xff]  ;;  %v10925_v11 = vpop.permute.xlu0 %2910  ;;  %vm13348_vm15 = vmmov %vm13341_vm13 }
 0x267   : > { %v4271_v4 = vor.u32 %v4269_v57, %v10874_v28  ;;  %5873 = vmatmul.mubr.bf16.gmra.mrb[56].mxu1 %v3991_v37  ;;  %vm13344_vm9 = vcmp.ne.s16.totalorder %v13273_v33, 0  ;;  %v2774_v58 = vsel %vm2749_vm12, %v2771_v55, %v2773_v25  ;;  %vm13346_vm11 = vcmp.ne.s16.totalorder %v13345_v12, 0  ;;  %13347 = vst [vmem:[#allocation77_spill] sm:$0xff] %v10911_v56 }
 0x268   : > { %v10901_v45 = vsel %vm13344_vm9, %v10526_v5, 0  ;;  %v2160_v48 = vsel %vm13346_vm11, %v10573_v6, 0  ;;  %5880 = vmatprep.mubr.bf16.mxu1 %v4034_v0  ;;  %v10916_v2 = vsel %vm2482_vm14, %v10911_v56, 0  ;;  %v4067_v33 = vshll.u32 %v3155_v44, 16  ;;  %vm13351_vm11 = vmmov %vm13341_vm13 }
 0x269   : > { %v4026_v5 = vor.u32 %v4024_v10, %v10883_v9  ;;  %v4100_v63 = vshrl.u32 %v3157_v26, 16  ;;  %v1737_v35 = vadd.f32 %v1736_v13, %v1735_v50  ;;  %v4057_v55 = vshrl.u32 %v3108_v30, 16  ;;  %v10943_v41 = vpop.permute.xlu1 %2722 }
 0x26a   : > { %v10921_v60 = vrot.slane %v4259_v21, 7  ;;  %v4229_v15 = vsel %vm2341_vm0, %v10806_v62, %v4228_v16  ;;  %vm6608_vm5 = vcmask 516096   ;;  %v4069_v7 = vor.u32 %v4067_v33, %v10892_v31  ;;  %v10954_v21 = vpop.permute.xlu0 %2724 }
 0x26b   : > { %v10928_v43 = vrot.slane %v4302_v19, 7  ;;  %v3027_v44 = vsel %vm13341_vm13, %v2159_v29, %v10855_v23  ;;  %5640 = vmatmul.mubr.bf16.gmra.mrb[96].mxu0 %v4229_v15  ;;  %v4272_v50 = vsel %vm2341_vm0, %v10821_v17, %v4271_v4  ;;  %v4262_v0 = vshll.u32 %v3024_v47, 16  ;;  %v13352_v19 = vld [vmem:[#allocation110_spill] sm:$0xff]  ;;  %vm13353_vm13 = vmmov %vm13351_vm11 }
 0x26c   : > { %v3081_v13 = vsel %vm13348_vm15, %v2774_v58, %v2825_v59  ;;  %vm13349_vm9 = vcmp.ne.s16.totalorder %v13332_v49, 0  ;;  %5647 = vmatprep.mubr.bf16.mxu0 %v4272_v50  ;;  %v2775_v10 = vrot.slane %v10916_v2, 1  ;;  %v10941_v27 = vrot.slane %v4100_v63, 7  ;;  %v13350_v59 = vld [vmem:[#allocation76_spill] sm:$0xff] }
 0x26d   : > { %v10938_v62 = vsel %vm13349_vm9, %v10573_v6, 0  ;;  %v4305_v57 = vshll.u32 %v3078_v51, 16  ;;  %v4027_v29 = vsel %vm2341_vm0, %v10828_v20, %v4026_v5  ;;  %v6609_v17 = vsel %vm6608_vm5, %v1737_v35, 0.0  ;;  %v2827_v63 = vpop.permute.xlu1 %2826  ;;  %v10976_v35 = vld [vmem:[#allocation2 + $0x80] sm:$0xff]  ;;  %vm13360_vm9 = vmmov %vm13351_vm11 }
 0x26e   : > { %v10948_v47 = vrot.slane %v4057_v55, 7  ;;  %v3111_v6 = vsel %vm13351_vm11, %v13350_v59, %v10753_v61  ;;  %v4264_v49 = vor.u32 %v4262_v0, %v10921_v60  ;;  %v4295_v16 = vshrl.u32 %v3027_v44, 16  ;;  %6610 = vadd.xlane.f32.xlu0 %v6609_v17  ;;  %13358 = vst [vmem:[#allocation72_spill] sm:$0xff] %v10976_v35  ;;  %vm13361_vm11 = vmmov %vm13360_vm9 }
 0x26f   : > { %v4103_v37 = vshll.u32 %v3157_v26, 16  ;;  %v4307_v51 = vor.u32 %v4305_v57, %v10928_v43  ;;  %v4338_v39 = vshrl.u32 %v3081_v13, 16  ;;  %5881 = vmatmul.mubr.bf16.gmra.mrb[60].mxu1 %v4027_v29  ;;  %v4070_v20 = vsel %vm2341_vm0, %v10818_v3, %v4069_v7  ;;  %v10971_v3 = vld [vmem:[#allocation2 + $0x78] sm:$0xff]  ;;  %v2829_v57 = vpop.permute.xlu0 %2828 }
 0x270   : > { %v4060_v4 = vshll.u32 %v3108_v30, 16  ;;  %v3159_v58 = vsel %vm13353_vm13, %v13352_v19, %v10772_v22  ;;  %v2161_v2 = vsel %vm2144_vm4, %v10857_v36, 0  ;;  %vm13355_vm15 = vcmp.ne.s16.totalorder %v13335_v32, 0  ;;  %5888 = vmatprep.mubr.bf16.mxu1 %v4070_v20  ;;  %13356 = vst [vmem:[#allocation107_spill] sm:$0xff] %v10971_v3  ;;  %v13362_v19 = vld [vmem:[#allocation109_spill] sm:$0xff]  ;;  %vm13363_vm13 = vmmov %vm13360_vm9 }
 0x271   : > { %v10968_v26 = vsel %vm13355_vm15, %v10857_v36, 0  ;;  %v4105_v33 = vor.u32 %v4103_v37, %v10941_v27  ;;  %v4093_v5 = vshrl.u32 %v3111_v6, 16  ;;  %v2500_v22 = vsel %vm2483_vm6, %v10971_v3, 0  ;;  %vm13365_vm15 = vmmov %vm13360_vm9 }
 0x272   : > { %v10981_v15 = vsel %vm2484_vm1, %v10976_v35, 0  ;;  %v4062_v32 = vor.u32 %v4060_v4, %v10948_v47  ;;  %v10984_v7 = vrot.slane %v4295_v16, 7  ;;  %v2776_v50 = vsel %vm2749_vm12, %v2773_v25, %v2775_v10 }
 0x273   : > { %v4265_v0 = vsel %vm2341_vm0, %v10865_v52, %v4264_v49  ;;  %v4136_v29 = vshrl.u32 %v3159_v58, 16  ;;  %v10991_v17 = vrot.slane %v4338_v39, 7  ;;  %v3030_v59 = vsel %vm13360_vm9, %v2160_v48, %v10943_v41  ;;  %v11001_v39 = vpop.permute.xlu1 %2912 }
 0x274   : > { %5648 = vmatmul.mubr.bf16.gmra.mrb[100].mxu0 %v4265_v0  ;;  %v4308_v37 = vsel %vm2341_vm0, %v10874_v28, %v4307_v51  ;;  %v4298_v16 = vshll.u32 %v3027_v44, 16  ;;  %v3084_v20 = vsel %vm13361_vm11, %v2776_v50, %v2827_v63  ;;  %v2777_v46 = vrot.slane %v2500_v22, 1  ;;  %v11009_v63 = vpop.permute.xlu0 %2914 }
 0x275   : > { %5655 = vmatprep.mubr.bf16.mxu0 %v4308_v37  ;;  %v12746_v25 = vrot.slane %v10981_v15, 1  ;;  %v10999_v4 = vrot.slane %v4093_v5, 7  ;;  %v4096_v52 = vshll.u32 %v3111_v6, 16  ;;  %v4341_v49 = vshll.u32 %v3081_v13, 16  ;;  %v13364_v13 = vld [vmem:[#allocation78_spill] sm:$0xff] }
 0x276   : > { %v4106_v48 = vsel %vm2341_vm0, %v10892_v31, %v4105_v33  ;;  %v3161_v28 = vsel %vm13363_vm13, %v13362_v19, %v10776_v40  ;;  %v4300_v44 = vor.u32 %v4298_v16, %v10984_v7  ;;  %v4331_v51 = vshrl.u32 %v3030_v59, 16 }
 0x277   : > { %v4063_v5 = vsel %vm2341_vm0, %v10883_v9, %v4062_v32  ;;  %v11013_v22 = vrot.slane %v4136_v29, 7  ;;  %v3114_v6 = vsel %vm13365_vm15, %v13364_v13, %v10823_v24  ;;  %v4343_v31 = vor.u32 %v4341_v49, %v10991_v17  ;;  %v13368_v32 = vld [vmem:[#allocation48_spill] sm:$0xff] }
 0x278   : > { %v4374_v33 = vshrl.u32 %v3084_v20, 16  ;;  %5889 = vmatmul.mubr.bf16.gmra.mrb[64].mxu1 %v4063_v5  ;;  %v2778_v40 = vsel %vm2749_vm12, %v2775_v10, %v2777_v46  ;;  %v2162_v0 = vsel %vm2145_vm10, %v10911_v56, 0  ;;  %vm13367_vm9 = vcmp.ne.s16.totalorder %v13345_v12, 0  ;;  %v11034_v10 = vpop.permute.xlu1 %2726  ;;  %v11048_v5 = vpop.permute.xlu0 %2728 }
 0x279   : > { %v11026_v9 = vsel %vm13367_vm9, %v10911_v56, 0  ;;  %5896 = vmatprep.mubr.bf16.mxu1 %v4106_v48  ;;  %vm13369_vm11 = vcmp.ne.s16.totalorder %v13368_v32, 0  ;;  %v4139_v29 = vshll.u32 %v3159_v58, 16  ;;  %v4098_v37 = vor.u32 %v4096_v52, %v10999_v4  ;;  %v7417_v56 = vld [vmem:[#allocation2 + $0x20] sm:$0xff] }
 0x27a   : > { %v11031_v24 = vsel %vm13369_vm11, %v10971_v3, 0  ;;  %v4172_v16 = vshrl.u32 %v3161_v28, 16  ;;  %v11039_v49 = vsel %vm2144_vm4, %v10971_v3, 0  ;;  %v4129_v12 = vshrl.u32 %v3114_v6, 16  ;;  %vm13370_vm4 = vmmov %vm13363_vm13 }
 0x27b   : > { %v11041_v19 = vrot.slane %v4331_v51, 7  ;;  %v4301_v48 = vsel %vm2341_vm0, %v10921_v60, %v4300_v44  ;;  %v2780_v58 = vsel %vm2749_vm12, %v2777_v46, %v12746_v25  ;;  %v4141_v52 = vor.u32 %v4139_v29, %v11013_v22  ;;  %v11058_v44 = vld [vmem:[#allocation2 + $0x88] sm:$0xff]  ;;  %vm13377_vm11 = vmmov %vm13370_vm4 }
 0x27c   : > { %v11051_v13 = vrot.slane %v4374_v33, 7  ;;  %v3033_v61 = vsel %vm13363_vm13, %v2161_v2, %v10954_v21  ;;  %5656 = vmatmul.mubr.bf16.gmra.mrb[104].mxu0 %v4301_v48  ;;  %v4344_v51 = vsel %vm2341_vm0, %v10928_v43, %v4343_v31  ;;  %v4334_v18 = vshll.u32 %v3030_v59, 16  ;;  %13371 = vst [vmem:[#allocation38_spill] sm:$0xff] %v11058_v44  ;;  %v13372_v33 = vld [vmem:[#allocation49_spill] sm:$0xff]  ;;  %v2831_v25 = vpop.permute.xlu1 %2830  ;;  %v13374_v59 = vld [vmem:[#allocation12_spill] sm:$0xff]  ;;  %v11087_v8 = vpop.permute.xlu0 %2832  ;;  %vm13378_vm13 = vmmov %vm13370_vm4 }
 0x27d   : > { %v3087_v60 = vsel %vm13370_vm4, %v2778_v40, %v2829_v57  ;;  %5663 = vmatprep.mubr.bf16.mxu0 %v4344_v51  ;;  %v2502_v46 = vsel %vm2485_vm3, %v11058_v44, 0  ;;  %vm13373_vm15 = vcmp.ne.s16.totalorder %v13372_v33, 0  ;;  %v11068_v2 = vrot.slane %v4172_v16, 7  ;;  %v11072_v57 = vld [vmem:[#allocation2 + $0xa8] sm:$0xff] }
 0x27e   : > { %v11066_v29 = vsel %vm13373_vm15, %v10976_v35, 0  ;;  %v4377_v48 = vshll.u32 %v3084_v20, 16  ;;  %v4099_v43 = vsel %vm2341_vm0, %v10948_v47, %v4098_v37  ;;  %vm13375_vm9 = vcmp.ne.s16.totalorder %v13374_v59, 0  ;;  %v13376_v51 = vld [vmem:[#allocation28_spill] sm:$0xff]  ;;  %vm13381_vm15 = vmmov %vm13377_vm11 }
 0x27f   : > { %v11077_v31 = vsel %vm13375_vm9, %v11072_v57, 0  ;;  %v11079_v40 = vrot.slane %v4129_v12, 7  ;;  %v11084_v38 = vsel %vm13377_vm11, %v13376_v51, %v10825_v53  ;;  %v4336_v20 = vor.u32 %v4334_v18, %v11041_v19  ;;  %vm13382_vm9 = vmmov %vm13377_vm11 }
 0x280   : > { %v4367_v16 = vshrl.u32 %v3033_v61, 16  ;;  %v4175_v47 = vshll.u32 %v3161_v28, 16  ;;  %v4379_v37 = vor.u32 %v4377_v48, %v11051_v13  ;;  %v4410_v55 = vshrl.u32 %v3087_v60, 16  ;;  %5897 = vmatmul.mubr.bf16.gmra.mrb[68].mxu1 %v4099_v43  ;;  %v11098_v1 = vpop.permute.xlu1 %2916  ;;  %v11117_v43 = vpop.permute.xlu0 %2918  ;;  %vm13383_vm11 = vmmov %vm13382_vm9 }
 0x281   : > { %v4142_v30 = vsel %vm2341_vm0, %v10941_v27, %v4141_v52  ;;  %v4132_v12 = vshll.u32 %v3114_v6, 16  ;;  %v3163_v42 = vsel %vm13378_vm13, %v10848_v54, %v10850_v14  ;;  %v2781_v53 = vrot.slane %v2502_v46, 1  ;;  %v7415_v27 = vld [vmem:[#allocation2 + $0xb0] sm:$0xff]  ;;  %v13379_v6 = vld [vmem:[#allocation10_spill] sm:$0xff] }
 0x282   : > { %5904 = vmatprep.mubr.bf16.mxu1 %v4142_v30  ;;  %v4177_v51 = vor.u32 %v4175_v47, %v11068_v2  ;;  %v4165_v28 = vshrl.u32 %v11084_v38, 16  ;;  %v11103_v48 = vsel %vm2145_vm10, %v10976_v35, 0  ;;  %vm13380_vm4 = vcmp.ne.s16.totalorder %v13379_v6, 0 }
 0x283   : > { %v11107_v52 = vsel %vm13380_vm4, %v7415_v27, 0  ;;  %v4134_v54 = vor.u32 %v4132_v12, %v11079_v40  ;;  %v3165_v14 = vsel %vm13381_vm15, %v10901_v45, %v10855_v23  ;;  %v11113_v30 = vrot.slane %v4367_v16, 7  ;;  %vm13389_vm15 = vmmov %vm13382_vm9 }
 0x284   : > { %v4337_v46 = vsel %vm2341_vm0, %v10984_v7, %v4336_v20  ;;  %v4208_v47 = vshrl.u32 %v3163_v42, 16  ;;  %v11119_v18 = vrot.slane %v4410_v55, 7  ;;  %v3036_v6 = vsel %vm13382_vm9, %v2162_v0, %v11034_v10  ;;  %v7416_v7 = vld [vmem:[#allocation2 + $0x18] sm:$0xff] }
 0x285   : > { %5664 = vmatmul.mubr.bf16.gmra.mrb[108].mxu0 %v4337_v46  ;;  %v4380_v12 = vsel %vm2341_vm0, %v10991_v17, %v4379_v37  ;;  %v4370_v35 = vshll.u32 %v3033_v61, 16  ;;  %v3090_v23 = vsel %vm13383_vm11, %v2780_v58, %v2831_v25  ;;  %v13384_v45 = vrot.slane %v10981_v15, 1  ;;  %v11133_v46 = vpop.permute.xlu1 %2730  ;;  %v13386_v17 = vld [vmem:[#allocation14_spill] sm:$0xff] }
 0x286   : > { %5671 = vmatprep.mubr.bf16.mxu0 %v4380_v12  ;;  %vm13385_vm13 = vcmp.ne.s16.totalorder %v13374_v59, 0  ;;  %v11131_v20 = vrot.slane %v4165_v28, 7  ;;  %v4244_v3 = vshrl.u32 %v3165_v14, 16  ;;  %v4413_v0 = vshll.u32 %v3087_v60, 16  ;;  %v13388_v15 = vld [vmem:[#allocation82_spill] sm:$0xff] }
 0x287   : > { %v2782_v16 = vsel %vm2749_vm12, %v13384_v45, %v2781_v53  ;;  %v2554_v55 = vsel %vm13385_vm13, %v7416_v7, 0  ;;  %vm13387_vm4 = vcmp.ne.s16.totalorder %v13386_v17, 0  ;;  %v3120_v25 = vsel %vm13389_vm15, %v13388_v15, %v10919_v34  ;;  %v11143_v53 = vpop.permute.xlu0 %3437  ;;  %vm13394_vm13 = vmmov %vm13389_vm15 }
 0x288   : > { %v11137_v61 = vsel %vm13387_vm4, %v7417_v56, 0  ;;  %v4372_v58 = vor.u32 %v4370_v35, %v11113_v30  ;;  %v4403_v37 = vshrl.u32 %v3036_v6, 16  ;;  %v4135_v28 = vsel %vm2341_vm0, %v10999_v4, %v4134_v54  ;;  %v13391_v35 = vld [vmem:[#allocation5_spill] sm:$0xff]  ;;  %vm13395_vm4 = vmmov %vm13394_vm13 }
 0x289   : > { %v4210_v60 = vrot.slane %v4208_v47, 7  ;;  %v4415_v12 = vor.u32 %v4413_v0, %v11119_v18  ;;  %v4446_v45 = vshrl.u32 %v3090_v23, 16  ;;  %5905 = vmatmul.mubr.bf16.gmra.mrb[72].mxu1 %v4135_v28  ;;  %v4178_v56 = vsel %vm2341_vm0, %v11013_v22, %v4177_v51  ;;  %v3539_v28 = vpop.permute.xlu1 %3538  ;;  %vm13400_vm15 = vmmov %vm13395_vm4 }
 0x28a   : > { %v4168_v7 = vshll.u32 %v11084_v38, 16  ;;  %5912 = vmatprep.mubr.bf16.mxu1 %v4178_v56  ;;  %vm13390_vm9 = vcmp.ne.s16.totalorder %v13368_v32, 0  ;;  %vm13392_vm11 = vcmp.ne.s16.totalorder %v13391_v35, 0  ;;  %v12756_v4 = vrot.slane %v11137_v61, 1 }
 0x28b   : > { %v11154_v34 = vsel %vm13390_vm9, %v11058_v44, 0  ;;  %v11158_v15 = vsel %vm13392_vm11, %v7415_v27, 0  ;;  %v4211_v54 = vshll.u32 %v3163_v42, 16  ;;  %v11161_v47 = vrot.slane %v4244_v3, 7  ;;  %v11168_v17 = vpop.permute.xlu0 %2936  ;;  %vm13401_vm9 = vmmov %vm13395_vm4 }
 0x28c   : > { %13393 = vst [vmem:[#allocation27_spill] sm:$0xff] %v11158_v15  ;;  %v4201_v0 = vshrl.u32 %v3120_v25, 16  ;;  %v2959_v22 = vrot.slane %v2554_v55, 1  ;;  %v4170_v38 = vor.u32 %v4168_v7, %v11131_v20  ;;  %v4247_v51 = vshll.u32 %v3165_v14, 16  ;;  %vm13404_vm11 = vmmov %vm13395_vm4 }
 0x28d   : > { %v11164_v56 = vrot.slane %v4403_v37, 7  ;;  %v4373_v59 = vsel %vm2341_vm0, %v11041_v19, %v4372_v58  ;;  %v4213_v27 = vor.u32 %v4211_v54, %v4210_v60  ;;  %v11170_v44 = vrot.slane %v4446_v45, 7  ;;  %v13396_v37 = vld [vmem:[#allocation101_spill] sm:$0xff] }
 0x28e   : > { %v3039_v42 = vsel %vm13394_vm13, %v11031_v24, %v11048_v5  ;;  %5672 = vmatmul.mubr.bf16.gmra.mrb[112].mxu0 %v4373_v59  ;;  %v4416_v3 = vsel %vm2341_vm0, %v11051_v13, %v4415_v12  ;;  %v4406_v55 = vshll.u32 %v3036_v6, 16  ;;  %v3093_v14 = vsel %vm13395_vm4, %v2782_v16, %v11087_v8  ;;  %v13399_v13 = vld [vmem:[#allocation83_spill] sm:$0xff]  ;;  %v3537_v16 = vpop.permute.xlu1 %3536  ;;  %vm13405_vm13 = vmmov %vm13395_vm4 }
 0x28f   : > { %v13397_v7 = vrot.slane %v13396_v37, 1  ;;  %v13398_v19 = vrot.slane %v11077_v31, 1  ;;  %5679 = vmatprep.mubr.bf16.mxu0 %v4416_v3  ;;  %v11187_v45 = vsel %vm2749_vm12, %v2959_v22, %v12756_v4  ;;  %v4249_v24 = vor.u32 %v4247_v51, %v11161_v47  ;;  %v11201_v37 = vpop.permute.xlu0 %2920  ;;  %v7419_v4 = vld [vmem:[#allocation2 + $0x30] sm:$0xff] }
 0x290   : > { %v11190_v59 = vrot.slane %v4201_v0, 7  ;;  %v3123_v8 = vsel %vm13400_vm15, %v13399_v13, %v10925_v11  ;;  %v4449_v6 = vshll.u32 %v3090_v23, 16  ;;  %v11198_v12 = vsel %vm13401_vm9, %v10938_v62, %v10943_v41  ;;  %v7418_v41 = vld [vmem:[#allocation2 + $0x28] sm:$0xff]  ;;  %vm13406_vm15 = vmmov %vm13395_vm4 }
 0x291   : > { %v3488_v58 = vsel %vm2749_vm12, %v13398_v19, %v13397_v7  ;;  %v4408_v54 = vor.u32 %v4406_v55, %v11164_v56  ;;  %v4439_v3 = vshrl.u32 %v3039_v42, 16  ;;  %v4171_v0 = vsel %vm2341_vm0, %v11079_v40, %v4170_v38  ;;  %vm13408_vm9 = vmmov %vm13395_vm4  ;;  %v13543_v55 = vld [vmem:[#allocation17_spill] sm:$0xff] }
 0x292   : > { %v4204_v51 = vshll.u32 %v3120_v25, 16  ;;  %v4451_v7 = vor.u32 %v4449_v6, %v11170_v44  ;;  %v4482_v19 = vshrl.u32 %v3093_v14, 16  ;;  %5913 = vmatmul.mubr.bf16.gmra.mrb[76].mxu1 %v4171_v0  ;;  %v4214_v11 = vsel %vm2341_vm0, %v11068_v2, %v4213_v27  ;;  %v11220_v6 = vpop.permute.xlu1 %3435 }
 0x293   : > { %v4237_v23 = vshrl.u32 %v3123_v8, 16  ;;  %5920 = vmatprep.mubr.bf16.mxu1 %v4214_v11  ;;  %v11208_v62 = vshrl.u32 %v2959_v22, 16  ;;  %v11212_v13 = vsel %vm2471_vm7, %v7418_v41, 0  ;;  %v11216_v40 = vsel %vm2472_vm8, %v7419_v4, 0  ;;  %v3440_v41 = vpop.permute.xlu0 %3439 }
 0x294   : > { %v4206_v25 = vor.u32 %v4204_v51, %v11190_v59  ;;  %v4280_v38 = vshrl.u32 %v11198_v12, 16  ;;  %v4240_v27 = vshll.u32 %v3123_v8, 16  ;;  %v11224_v0 = vrot.slane %v4439_v3, 7 }
 0x295   : > { %v4409_v11 = vsel %vm2341_vm0, %v11113_v30, %v4408_v54  ;;  %v4250_v4 = vsel %vm2341_vm0, %v4210_v60, %v4249_v24  ;;  %v4484_v15 = vrot.slane %v4482_v19, 7  ;;  %v3042_v51 = vsel %vm13404_vm11, %v11066_v29, %v11133_v46  ;;  %vm13410_vm11 = vmmov %vm13395_vm4 }
 0x296   : > { %5680 = vmatmul.mubr.bf16.gmra.mrb[116].mxu0 %v4409_v11  ;;  %v4452_v2 = vsel %vm2341_vm0, %v11119_v18, %v4451_v7  ;;  %v11236_v8 = vsel %vm13405_vm13, %v11107_v52, %v3440_v41  ;;  %v11238_v3 = vrot.slane %v4237_v23, 7  ;;  %v4442_v22 = vshll.u32 %v3039_v42, 16  ;;  %v3541_v46 = vpop.permute.xlu1 %3540  ;;  %v13409_v23 = vld [vmem:[#allocation87_spill] sm:$0xff]  ;;  %v13414_v41 = vld [vmem:[#allocation89_spill] sm:$0xff] }
 0x297   : > { %v11241_v30 = vsel %vm13395_vm4, %v3488_v58, %v3539_v28  ;;  %5687 = vmatprep.mubr.bf16.mxu0 %v4452_v2  ;;  %v4627_v60 = vshrl.u32 %v11236_v8, 16  ;;  %v11244_v24 = vrot.slane %v4280_v38, 7  ;;  %v11249_v29 = vsel %vm13406_vm15, %v10968_v26, %v10954_v21  ;;  %v13407_v28 = vld [vmem:[#allocation18_spill] sm:$0xff]  ;;  %v11258_v19 = vpop.permute.xlu0 %2922 }
 0x298   : > { %v4485_v18 = vshll.u32 %v3093_v14, 16  ;;  %v4207_v52 = vsel %vm2341_vm0, %v11131_v20, %v4206_v25  ;;  %v4444_v42 = vor.u32 %v4442_v22, %v11224_v0  ;;  %v4475_v54 = vshrl.u32 %v3042_v51, 16  ;;  %v13411_v25 = vld [vmem:[#allocation9_spill] sm:$0xff] }
 0x299   : > { %v3787_v58 = vsel %vm13408_vm9, %v13407_v28, %v3541_v46  ;;  %v11256_v7 = vrot.slane %v4627_v60, 7  ;;  %v3126_v21 = vsel %vm13410_vm11, %v13409_v23, %v11001_v39  ;;  %v4588_v14 = vshrl.u32 %v11241_v30, 16  ;;  %vm13417_vm9 = vmmov %vm13395_vm4 }
 0x29a   : > { %v4487_v26 = vor.u32 %v4485_v18, %v4484_v15  ;;  %v4634_v38 = vshrl.u32 %v3787_v58, 16  ;;  %5921 = vmatmul.mubr.bf16.gmra.mrb[80].mxu1 %v4207_v52  ;;  %v4283_v20 = vshll.u32 %v11198_v12, 16  ;;  %vm13412_vm13 = vcmp.ne.s16.totalorder %v13411_v25, 0  ;;  %v3186_v18 = vld [vmem:[#allocation2 + $0xa0] sm:$0xff]  ;;  %vm13419_vm11 = vmmov %vm13395_vm4 }
 0x29b   : > { %v3207_v2 = vsel %vm13412_vm13, %v11072_v57, 0  ;;  %v13413_v22 = vrot.slane %v11077_v31, 1  ;;  %5928 = vmatprep.mubr.bf16.mxu1 %v4250_v4  ;;  %v11274_v39 = vsel %vm2341_vm0, %v11256_v7, %v13414_v41  ;;  %v4242_v15 = vor.u32 %v4240_v27, %v11238_v3  ;;  %vm13420_vm13 = vmmov %vm13395_vm4 }
 0x29c   : > { %v4316_v60 = vshrl.u32 %v11249_v29, 16  ;;  %v4636_v12 = vrot.slane %v4634_v38, 7  ;;  %v4637_v46 = vshll.u32 %v3787_v58, 16  ;;  %v4285_v52 = vor.u32 %v4283_v20, %v11244_v24  ;;  %v11285_v58 = vpop.permute.xlu0 %2924  ;;  %v13416_v38 = vld [vmem:[#allocation103_spill] sm:$0xff] }
 0x29d   : > { %v3781_v11 = vsel %vm13395_vm4, %v13413_v22, %v3537_v16  ;;  %v4273_v57 = vshrl.u32 %v3126_v21, 16  ;;  %v4477_v28 = vrot.slane %v4475_v54, 7  ;;  %v4445_v31 = vsel %vm2341_vm0, %v11164_v56, %v4444_v42 }
 0x29e   : > { %v4590_v16 = vrot.slane %v4588_v14, 7  ;;  %v4585_v4 = vshrl.u32 %v3781_v11, 16  ;;  %v4639_v23 = vor.u32 %v4637_v46, %v4636_v12  ;;  %5688 = vmatmul.mubr.bf16.gmra.mrb[120].mxu0 %v4445_v31  ;;  %v4488_v25 = vsel %vm2341_vm0, %v11170_v44, %v4487_v26  ;;  %v13423_v46 = vld [vmem:[#allocation26_spill] sm:$0xff] }
 0x29f   : > { %v4478_v27 = vshll.u32 %v3042_v51, 16  ;;  %vm13415_vm15 = vcmp.ne.s16.totalorder %v13391_v35, 0  ;;  %5695 = vmatprep.mubr.bf16.mxu0 %v4488_v25  ;;  %v11289_v54 = vsel %vm2341_vm0, %v4636_v12, %v13416_v38  ;;  %v2962_v56 = vrot.slane %v11212_v13, 1  ;;  %v13418_v13 = vld [vmem:[#allocation88_spill] sm:$0xff] }
 0x2a0   : > { %v3206_v22 = vsel %vm13415_vm15, %v3186_v18, 0  ;;  %v11292_v42 = vrot.slane %v4316_v60, 7  ;;  %v3733_v14 = vsel %vm13417_vm9, %v3207_v2, %v11143_v53  ;;  %v11297_v44 = vsel %vm2341_vm0, %v4590_v16, %v4639_v23  ;;  %vm13425_vm9 = vmmov %vm13395_vm4  ;;  %v11328_v31 = vpop.permute.xlu0 %3670 }
 0x2a1   : > { %v2964_v35 = vrot.slane %v11216_v40, 1  ;;  %v11300_v51 = vrot.slane %v4273_v57, 7  ;;  %v4480_v26 = vor.u32 %v4478_v27, %v4477_v28  ;;  %v4243_v20 = vsel %vm2341_vm0, %v11190_v59, %v4242_v15  ;;  %v7420_v15 = vld [vmem:[#allocation2 + $0x38] sm:$0xff] }
 0x2a2   : > { %v4286_v11 = vsel %vm2341_vm0, %v11161_v47, %v4285_v52  ;;  %v3129_v41 = vsel %vm13419_vm11, %v13418_v13, %v11009_v63  ;;  %v4591_v53 = vshll.u32 %v11241_v30, 16  ;;  %v4587_v2 = vrot.slane %v4585_v4, 7  ;;  %5929 = vmatmul.mubr.bf16.gmra.mrb[84].mxu1 %v4243_v20  ;;  %v13421_v47 = vld [vmem:[#allocation31_spill] sm:$0xff]  ;;  %v13424_v63 = vld [vmem:[#allocation102_spill] sm:$0xff] }
 0x2a3   : > { %v3730_v60 = vsel %vm13420_vm13, %v3206_v22, %v11220_v6  ;;  %v4276_v40 = vshll.u32 %v3126_v21, 16  ;;  %v3171_v18 = vsel %vm13395_vm4, %v11026_v9, %v11034_v10  ;;  %v4578_v59 = vshrl.u32 %v3733_v14, 16  ;;  %5936 = vmatprep.mubr.bf16.mxu1 %v4286_v11  ;;  %vm13432_vm13 = vmmov %vm13395_vm4 }
 0x2a4   : > { %vm13422_vm15 = vcmp.ne.s16.totalorder %v13421_v47, 0  ;;  %v11320_v30 = vsel %vm13425_vm9, %v13424_v63, %v13423_v46  ;;  %v4319_v52 = vshll.u32 %v11249_v29, 16  ;;  %v4593_v6 = vor.u32 %v4591_v53, %v4590_v16  ;;  %vm13439_vm9 = vmmov %vm13395_vm4 }
 0x2a5   : > { %v2558_v12 = vsel %vm13422_vm15, %v7420_v15, 0  ;;  %v13426_v21 = vshrl.u32 %v11187_v45, 16  ;;  %v4278_v9 = vor.u32 %v4276_v40, %v11300_v51  ;;  %v4309_v10 = vshrl.u32 %v3129_v41, 16  ;;  %vm13435_vm15 = vmmov %vm13395_vm4 }
 0x2a6   : > { %v4575_v28 = vshrl.u32 %v3730_v60, 16  ;;  %v4481_v4 = vsel %vm2341_vm0, %v11224_v0, %v4480_v26  ;;  %v4321_v23 = vor.u32 %v4319_v52, %v11292_v42  ;;  %v4352_v25 = vshrl.u32 %v3171_v18, 16  ;;  %v13467_v26 = vld [vmem:[#allocation3_spill] sm:$0xff] }
 0x2a7   : > { %v11325_v57 = vrot.slane %v13426_v21, 7  ;;  %5696 = vmatmul.mubr.bf16.gmra.mrb[124].mxu0 %v4481_v4  ;;  %v4594_v29 = vsel %vm2341_vm0, %v4587_v2, %v4593_v6  ;;  %v3962_v16 = vrot.slane %v11208_v62, 7  ;;  %v11335_v27 = vrot.slane %v4578_v59, 7  ;;  %v7421_v62 = vld [vmem:[#allocation2 + $0x40] sm:$0xff]  ;;  %v11367_v21 = vpop.permute.xlu0 %3632  ;;  %v13434_v4 = vld [vmem:[#allocation6_spill] sm:$0xff] }
 0x2a8   : > { %5703 = vmatprep.mubr.bf16.mxu0 %v4594_v29  ;;  %v13427_v22 = vrot.slane %v11137_v61, 1  ;;  %v11341_v20 = vsel %vm2749_vm12, %v2962_v56, %v2964_v35  ;;  %v2966_v11 = vrot.slane %v2558_v12, 1  ;;  %v4608_v0 = vshrl.u32 %v11320_v30, 16  ;;  %v13429_v2 = vld [vmem:[#allocation23_spill] sm:$0xff] }
 0x2a9   : > { %v13428_v13 = vshll.u32 %v11187_v45, 16  ;;  %vm13430_vm11 = vcmp.ne.s16.totalorder %v13429_v2, 0  ;;  %v11352_v61 = vrot.slane %v4309_v10, 7  ;;  %v4581_v40 = vshll.u32 %v3733_v14, 16  ;;  %v13431_v12 = vld [vmem:[#allocation95_spill] sm:$0xff] }
 0x2aa   : > { %v2963_v38 = vsel %vm2749_vm12, %v13427_v22, %v2962_v56  ;;  %v11350_v60 = vsel %vm13430_vm11, %v7421_v62, 0  ;;  %v4577_v59 = vrot.slane %v4575_v28, 7  ;;  %v4279_v56 = vsel %vm2341_vm0, %v11238_v3, %v4278_v9  ;;  %vm13441_vm11 = vmmov %vm13395_vm4 }
 0x2ab   : > { %v3969_v53 = vor.u32 %v13428_v13, %v11325_v57  ;;  %v11356_v15 = vrot.slane %v4352_v25, 7  ;;  %v3132_v46 = vsel %vm13432_vm13, %v13431_v12, %v11098_v1  ;;  %5937 = vmatmul.mubr.bf16.gmra.mrb[88].mxu1 %v4279_v56  ;;  %v4322_v45 = vsel %vm2341_vm0, %v11244_v24, %v4321_v23  ;;  %v13433_v24 = vld [vmem:[#allocation105_spill] sm:$0xff]  ;;  %vm13442_vm13 = vmmov %vm13395_vm4 }
 0x2ac   : > { %v4000_v63 = vshrl.u32 %v2963_v38, 16  ;;  %v4312_v52 = vshll.u32 %v3129_v41, 16  ;;  %v3173_v14 = vsel %vm13395_vm4, %v11039_v49, %v11048_v5  ;;  %v4583_v6 = vor.u32 %v4581_v40, %v11335_v27  ;;  %5944 = vmatprep.mubr.bf16.mxu1 %v4322_v45  ;;  %v13437_v45 = vld [vmem:[#allocation112_spill] sm:$0xff] }
 0x2ad   : > { %v4003_v3 = vshll.u32 %v2963_v38, 16  ;;  %v4355_v9 = vshll.u32 %v3171_v18, 16  ;;  %v4036_v10 = vshrl.u32 %v11341_v20, 16  ;;  %v2967_v1 = vsel %vm2749_vm12, %v2964_v35, %v2966_v11 }
 0x2ae   : > { %v2968_v28 = vrot.slane %v11350_v60, 1  ;;  %v11375_v41 = vsel %vm13435_vm15, %v13434_v4, %v13433_v24  ;;  %v4314_v49 = vor.u32 %v4312_v52, %v11352_v61  ;;  %v4345_v5 = vshrl.u32 %v3132_v46, 16  ;;  %v13440_v52 = vld [vmem:[#allocation96_spill] sm:$0xff]  ;;  %vm13447_vm15 = vmmov %vm13395_vm4 }
 0x2af   : > { %v4584_v23 = vsel %vm2341_vm0, %v4577_v59, %v4583_v6  ;;  %v11379_v25 = vrot.slane %v4608_v0, 7  ;;  %v4357_v18 = vor.u32 %v4355_v9, %v11356_v15  ;;  %v4388_v29 = vshrl.u32 %v3173_v14, 16  ;;  %v7422_v59 = vld [vmem:[#allocation2 + $0x48] sm:$0xff] }
 0x2b0   : > { %5704 = vmatmul.mubr.bf16.gmra.mrb[128].mxu0 %v4584_v23  ;;  %v4002_v22 = vrot.slane %v4000_v63, 7  ;;  %v4630_v35 = vshll.u32 %v11236_v8, 16  ;;  %v11385_v38 = vsel %vm2341_vm0, %v3962_v16, %v3969_v53  ;;  %v4039_v13 = vshll.u32 %v11341_v20, 16  ;;  %v13438_v8 = vld [vmem:[#allocation19_spill] sm:$0xff]  ;;  %v11402_v53 = vpop.permute.xlu0 %3636 }
 0x2b1   : > { %5711 = vmatprep.mubr.bf16.mxu0 %v11297_v44  ;;  %v4072_v62 = vshrl.u32 %v2967_v1, 16  ;;  %v4648_v60 = vshrl.u32 %v11375_v41, 16  ;;  %v4038_v40 = vrot.slane %v4036_v10, 7  ;;  %v2969_v0 = vsel %vm2749_vm12, %v2966_v11, %v2968_v28 }
 0x2b2   : > { %v11392_v12 = vsel %vm2475_vm2, %v7422_v59, 0  ;;  %v11397_v44 = vsel %vm13439_vm9, %v13438_v8, %v13437_v45  ;;  %v11399_v16 = vrot.slane %v4345_v5, 7  ;;  %v4632_v20 = vor.u32 %v4630_v35, %v11256_v7  ;;  %vm13450_vm9 = vmmov %vm13395_vm4 }
 0x2b3   : > { %v4315_v63 = vsel %vm2341_vm0, %v11300_v51, %v4314_v49  ;;  %v11406_v11 = vrot.slane %v4388_v29, 7  ;;  %v3135_v6 = vsel %vm13441_vm11, %v13440_v52, %v11117_v43  ;;  %v4358_v9 = vsel %vm2341_vm0, %v11292_v42, %v4357_v18  ;;  %v13443_v18 = vld [vmem:[#allocation32_spill] sm:$0xff]  ;;  %vm13451_vm11 = vmmov %vm13395_vm4 }
 0x2b4   : > { %5945 = vmatmul.mubr.bf16.gmra.mrb[92].mxu1 %v4315_v63  ;;  %v4005_v10 = vor.u32 %v4003_v3, %v4002_v22  ;;  %v4348_v24 = vshll.u32 %v3132_v46, 16  ;;  %v3176_v7 = vsel %vm13442_vm13, %v11103_v48, %v11168_v17  ;;  %v4074_v4 = vrot.slane %v4072_v62, 7  ;;  %v13444_v48 = vld [vmem:[#allocation22_spill] sm:$0xff]  ;;  %v11430_v59 = vpop.permute.xlu0 %3640  ;;  %v2939_v63 = vpop.permute.xlu1 %2938  ;;  %vm13454_vm13 = vmmov %vm13395_vm4 }
 0x2b5   : > { %5952 = vmatprep.mubr.bf16.mxu1 %v4358_v9  ;;  %v4108_v5 = vshrl.u32 %v2969_v0, 16  ;;  %v4684_v51 = vshrl.u32 %v11397_v44, 16  ;;  %v4391_v49 = vshll.u32 %v3173_v14, 16  ;;  %v4041_v23 = vor.u32 %v4039_v13, %v4038_v40 }
 0x2b6   : > { %v12757_v29 = vrot.slane %v11392_v12, 1  ;;  %v4350_v43 = vor.u32 %v4348_v24, %v11399_v16  ;;  %v4381_v35 = vshrl.u32 %v3135_v6, 16  ;;  %v4633_v42 = vsel %vm2341_vm0, %v11335_v27, %v4632_v20  ;;  %v13445_v24 = vld [vmem:[#allocation51_spill] sm:$0xff] }
 0x2b7   : > { %v4075_v46 = vshll.u32 %v2967_v1, 16  ;;  %v11425_v17 = vsel %vm13395_vm4, %v13444_v48, %v13443_v18  ;;  %v4393_v62 = vor.u32 %v4391_v49, %v11406_v11  ;;  %v4424_v14 = vshrl.u32 %v3176_v7, 16  ;;  %v13449_v49 = vld [vmem:[#allocation100_spill] sm:$0xff] }
 0x2b8   : > { %5712 = vmatmul.mubr.bf16.gmra.mrb[132].mxu0 %v4633_v42  ;;  %v11428_v13 = vrot.slane %v4648_v60, 7  ;;  %v11435_v27 = vsel %vm2341_vm0, %v11325_v57, %v4005_v10  ;;  %v11437_v45 = vrot.slane %v4108_v5, 7  ;;  %v11439_v8 = vrot.slane %v4684_v51, 7  ;;  %v13446_v5 = vld [vmem:[#allocation43_spill] sm:$0xff]  ;;  %v13452_v42 = vld [vmem:[#allocation118_spill] sm:$0xff] }
 0x2b9   : > { %5719 = vmatprep.mubr.bf16.mxu0 %v11289_v54  ;;  %v4077_v1 = vor.u32 %v4075_v46, %v4074_v4  ;;  %v11443_v52 = vsel %vm2341_vm0, %v4002_v22, %v4041_v23  ;;  %v11448_v60 = vsel %vm2749_vm12, %v2968_v28, %v12757_v29  ;;  %v4720_v54 = vshrl.u32 %v11425_v17, 16  ;;  %v13453_v46 = vld [vmem:[#allocation104_spill] sm:$0xff] }
 0x2ba   : > { %v11451_v57 = vrot.slane %v4381_v35, 7  ;;  %v4351_v9 = vsel %vm2341_vm0, %v11352_v61, %v4350_v43  ;;  %v4111_v10 = vshll.u32 %v2969_v0, 16  ;;  %v11458_v51 = vsel %vm13447_vm15, %v13446_v5, %v13445_v24  ;;  %vm13458_vm15 = vmmov %vm13450_vm9  ;;  %v11494_v5 = vld [vmem:[#allocation2 + $0x120] sm:$0xff]  ;;  %v13472_v29 = vld [vmem:[#allocation108_spill] sm:$0xff] }
 0x2bb   : > { %13448 = vst [vmem:[#allocation111_spill] sm:$0xff] %v11458_v51  ;;  %v11460_v22 = vrot.slane %v4424_v14, 7  ;;  %v3138_v28 = vsel %vm13450_vm9, %v13449_v49, %v11201_v37  ;;  %v4394_v23 = vsel %vm2341_vm0, %v11356_v15, %v4393_v62  ;;  %v4384_v35 = vshll.u32 %v3135_v6, 16  ;;  %v11482_v14 = vpop.permute.xlu0 %3644  ;;  %13459 = vst [vmem:[#allocation92_spill] sm:$0xff] %v11494_v5 }
 0x2bc   : > { %5953 = vmatmul.mubr.bf16.gmra.mrb[96].mxu1 %v4351_v9  ;;  %v3179_v61 = vsel %vm13451_vm11, %v11154_v34, %v2939_v63  ;;  %v11470_v0 = vsel %vm2341_vm0, %v4038_v40, %v4077_v1  ;;  %v4113_v43 = vor.u32 %v4111_v10, %v11437_v45  ;;  %v11476_v18 = vsel %vm13454_vm13, %v13453_v46, %v13452_v42  ;;  %v7423_v40 = vld [vmem:[#allocation2 + $0x50] sm:$0xff]  ;;  %v13463_v42 = vld [vmem:[#allocation106_spill] sm:$0xff] }
 0x2bd   : > { %5960 = vmatprep.mubr.bf16.mxu1 %v4394_v23  ;;  %v4427_v37 = vshll.u32 %v3176_v7, 16  ;;  %v4144_v48 = vshrl.u32 %v11448_v60, 16  ;;  %v4147_v15 = vshll.u32 %v11448_v60, 16  ;;  %v4864_v6 = vshrl.u32 %v11458_v51, 16  ;;  %13455 = vst [vmem:[#allocation116_spill] sm:$0xff] %v11482_v14  ;;  %v13456_v1 = vld [vmem:[#allocation57_spill] sm:$0xff] }
 0x2be   : > { %v4386_v34 = vor.u32 %v4384_v35, %v11451_v57  ;;  %v4417_v62 = vshrl.u32 %v3138_v28, 16  ;;  %vm13457_vm4 = vcmp.ne.s16.totalorder %v13456_v1, 0  ;;  %v11486_v9 = vrot.slane %v4720_v54, 7  ;;  %v11501_v54 = vld [vmem:[#allocation2 + $0x128] sm:$0xff]  ;;  %v13462_v35 = vld [vmem:[#allocation55_spill] sm:$0xff]  ;;  %v11516_v46 = vld [vmem:[#allocation2 + $0x90] sm:$0xff] }
 0x2bf   : > { %v2561_v63 = vsel %vm13457_vm4, %v7423_v40, 0  ;;  %v4429_v7 = vor.u32 %v4427_v37, %v11460_v22  ;;  %v4460_v24 = vshrl.u32 %v3179_v61, 16  ;;  %v11499_v49 = vsel %vm2145_vm10, %v11494_v5, 0  ;;  %13460 = vst [vmem:[#allocation115_spill] sm:$0xff] %v11501_v54  ;;  %v2941_v37 = vpop.permute.xlu1 %2940  ;;  %vm13468_vm4 = vmmov %vm13451_vm11  ;;  %v11545_v5 = vpop.permute.xlu0 %3648 }
 0x2c0   : > { %5720 = vmatmul.mubr.bf16.gmra.mrb[136].mxu0 %v11274_v39  ;;  %vm13461_vm9 = vcmp.ne.s16.totalorder %v13368_v32, 0  ;;  %v11509_v39 = vsel %vm2341_vm0, %v4074_v4, %v4113_v43  ;;  %vm13464_vm10 = vcmp.ne.s16.totalorder %v13372_v33, 0  ;;  %v11521_v40 = vrot.slane %v4144_v48, 7  ;;  %v7427_v43 = vld [vmem:[#allocation2 + $0x58] sm:$0xff]  ;;  %13475 = vst [vmem:[#allocation29_spill] sm:$0xff] %v11545_v5 }
 0x2c1   : > { %7047 = vmatprep.mubr.msk.bf16.mxu0 %vm13458_vm15, %v11385_v38  ;;  %v11506_v23 = vsel %vm13461_vm9, %v11501_v54, 0  ;;  %v11514_v38 = vsel %vm13451_vm11, %v13463_v42, %v13462_v35  ;;  %v2553_v50 = vsel %vm13464_vm10, %v11516_v46, 0  ;;  %v2972_v32 = vrot.slane %v2561_v63, 1  ;;  %v13465_v35 = vld [vmem:[#allocation58_spill] sm:$0xff]  ;;  %vm13473_vm9 = vmmov %vm13468_vm4 }
 0x2c2   : > { %v11523_v60 = vrot.slane %v4864_v6, 7  ;;  %v11525_v10 = vrot.slane %v4417_v62, 7  ;;  %v4387_v4 = vsel %vm2341_vm0, %v11399_v16, %v4386_v34  ;;  %vm13466_vm13 = vcmp.ne.s16.totalorder %v13465_v35, 0  ;;  %v7428_v6 = vld [vmem:[#allocation2 + $0x60] sm:$0xff]  ;;  %v13471_v34 = vld [vmem:[#allocation54_spill] sm:$0xff]  ;;  %vm13474_vm11 = vmmov %vm13468_vm4 }
 0x2c3   : > { %v2562_v42 = vsel %vm13466_vm13, %v7427_v43, 0  ;;  %v11531_v20 = vrot.slane %v4460_v24, 7  ;;  %v3141_v3 = vsel %vm13468_vm4, %v13467_v26, %v11258_v19  ;;  %v4430_v48 = vsel %vm2341_vm0, %v11406_v11, %v4429_v7  ;;  %v13469_v62 = vld [vmem:[#allocation59_spill] sm:$0xff]  ;;  %v13476_v19 = vld [vmem:[#allocation65_spill] sm:$0xff]  ;;  %v13477_v26 = vld [vmem:[#allocation114_spill] sm:$0xff] }
 0x2c4   : > { %5961 = vmatmul.mubr.bf16.gmra.mrb[100].mxu1 %v4387_v4  ;;  %vm13470_vm15 = vcmp.ne.s16.totalorder %v13469_v62, 0  ;;  %v4900_v16 = vshrl.u32 %v11514_v38, 16  ;;  %v3903_v43 = vsel %vm13473_vm9, %v13472_v29, %v13471_v34  ;;  %v4420_v24 = vshll.u32 %v3138_v28, 16  ;;  %vm13478_vm10 = vmmov %vm13468_vm4 }
 0x2c5   : > { %v2563_v63 = vsel %vm13470_vm15, %v7428_v6, 0  ;;  %v3182_v54 = vsel %vm13474_vm11, %v2553_v50, %v2941_v37  ;;  %5968 = vmatprep.mubr.bf16.mxu1 %v4430_v48  ;;  %v3905_v11 = vsel %vm13478_vm10, %v13477_v26, %v13476_v19  ;;  %v4463_v7 = vshll.u32 %v3179_v61, 16  ;;  %vm13480_vm13 = vmmov %vm13468_vm4  ;;  %v13481_v61 = vld [vmem:[#allocation61_spill] sm:$0xff] }
 0x2c6   : > { %v13479_v4 = vrot.slane %v11392_v12, 1  ;;  %v2974_v51 = vrot.slane %v2562_v42, 1  ;;  %v4422_v62 = vor.u32 %v4420_v24, %v11525_v10  ;;  %v4453_v35 = vshrl.u32 %v3141_v3, 16  ;;  %vm13483_vm15 = vmmov %vm13473_vm9  ;;  %v13485_v19 = vld [vmem:[#allocation117_spill] sm:$0xff] }
 0x2c7   : > { %v4149_v29 = vor.u32 %v4147_v15, %v11521_v40  ;;  %v2976_v28 = vrot.slane %v2563_v63, 1  ;;  %v4903_v50 = vshll.u32 %v11514_v38, 16  ;;  %v4465_v37 = vor.u32 %v4463_v7, %v11531_v20  ;;  %v13484_v63 = vld [vmem:[#allocation53_spill] sm:$0xff]  ;;  %vm13488_vm11 = vmmov %vm13473_vm9 }
 0x2c8   : > { %v2973_v6 = vsel %vm2749_vm12, %v13479_v4, %v2972_v32  ;;  %v4496_v48 = vshrl.u32 %v3182_v54, 16  ;;  %7048 = vmatmul.mubr.msk.bf16.vlgmr.msra.gmra.mrb[140].mxu0 %vm13480_vm13, %v11435_v27  ;;  %vm13482_vm4 = vcmp.ne.s16.totalorder %v13481_v61, 0  ;;  %v11564_v42 = vrot.slane %v4900_v16, 7  ;;  %v13486_v7 = vld [vmem:[#allocation25_spill] sm:$0xff]  ;;  %v13487_v27 = vld [vmem:[#allocation91_spill] sm:$0xff]  ;;  %v11577_v16 = vpop.permute.xlu0 %3652  ;;  %vm13491_vm10 = vmmov %vm13473_vm9 }
 0x2c9   : > { %v11562_v12 = vsel %vm13482_vm4, %v10857_v36, 0  ;;  %v4936_v34 = vshrl.u32 %v3903_v43, 16  ;;  %v4972_v24 = vshrl.u32 %v3905_v11, 16  ;;  %7051 = vmatprep.mubr.msk.bf16.mxu0 %vm13483_vm15, %v11443_v52  ;;  %v4180_v15 = vshrl.u32 %v2973_v6, 16  ;;  %13489 = vst [vmem:[#allocation97_spill] sm:$0xff] %v11577_v16  ;;  %vm13492_vm13 = vmmov %vm13473_vm9 }
 0x2ca   : > { %v4939_v38 = vshll.u32 %v3903_v43, 16  ;;  %v3907_v26 = vsel %vm13473_vm9, %v13485_v19, %v13484_v63  ;;  %v3909_v4 = vsel %vm13488_vm11, %v13487_v27, %v13486_v7  ;;  %v2975_v36 = vsel %vm2749_vm12, %v2972_v32, %v2974_v51  ;;  %v13490_v63 = vld [vmem:[#allocation93_spill] sm:$0xff]  ;;  %vm13495_vm4 = vmmov %vm13473_vm9 }
 0x2cb   : > { %v11575_v5 = vrot.slane %v4453_v35, 7  ;;  %v4423_v61 = vsel %vm2341_vm0, %v11451_v57, %v4422_v62  ;;  %v2977_v52 = vsel %vm2749_vm12, %v2974_v51, %v2976_v28  ;;  %v4498_v14 = vrot.slane %v4496_v48, 7  ;;  %vm13496_vm15 = vmmov %vm13495_vm4 }
 0x2cc   : > { %v4499_v1 = vshll.u32 %v3182_v54, 16  ;;  %v3144_v19 = vsel %vm13491_vm10, %v13490_v63, %v11285_v58  ;;  %5969 = vmatmul.mubr.bf16.gmra.mrb[104].mxu1 %v4423_v61  ;;  %v4466_v32 = vsel %vm2341_vm0, %v11460_v22, %v4465_v37  ;;  %v11588_v35 = vrot.slane %v4936_v34, 7  ;;  %v3631_v58 = vpop.permute.xlu1 %3630  ;;  %vm13501_vm11 = vmmov %vm13495_vm4 }
 0x2cd   : > { %v11590_v7 = vrot.slane %v4972_v24, 7  ;;  %v4456_v27 = vshll.u32 %v3141_v3, 16  ;;  %5976 = vmatprep.mubr.bf16.mxu1 %v4466_v32  ;;  %v4182_v57 = vrot.slane %v4180_v15, 7  ;;  %v5008_v51 = vshrl.u32 %v3907_v26, 16  ;;  %v13494_v24 = vld [vmem:[#allocation27_spill] sm:$0xff]  ;;  %vm13503_vm10 = vmmov %vm13495_vm4 }
 0x2ce   : > { %v5044_v62 = vshrl.u32 %v3909_v4, 16  ;;  %v4183_v43 = vshll.u32 %v2973_v6, 16  ;;  %v4216_v48 = vshrl.u32 %v2975_v36, 16  ;;  %v4975_v54 = vshll.u32 %v3905_v11, 16  ;;  %v13498_v15 = vld [vmem:[#allocation63_spill] sm:$0xff] }
 0x2cf   : > { %v4458_v16 = vor.u32 %v4456_v27, %v11575_v5  ;;  %v4489_v56 = vshrl.u32 %v3144_v19, 16  ;;  %v4252_v61 = vshrl.u32 %v2977_v52, 16  ;;  %v4905_v63 = vor.u32 %v4903_v50, %v11564_v42  ;;  %v13497_v50 = vld [vmem:[#allocation77_spill] sm:$0xff] }
 0x2d0   : > { %v4501_v22 = vor.u32 %v4499_v1, %v4498_v14  ;;  %7052 = vmatmul.mubr.msk.bf16.gmra.mrb[144].mxu0 %vm13492_vm13, %v11470_v0  ;;  %v4150_v3 = vsel %vm2341_vm0, %v11437_v45, %v4149_v29  ;;  %v13493_v37 = vrot.slane %v11562_v12, 1  ;;  %v11602_v11 = vor.u32 %v4939_v38, %v11588_v35  ;;  %v11610_v1 = vpop.permute.xlu0 %3672  ;;  %vm13504_vm13 = vmmov %vm13495_vm4 }
 0x2d1   : > { %v11605_v34 = vor.u32 %v4975_v54, %v11590_v7  ;;  %v3883_v14 = vsel %vm13495_vm4, %v13494_v24, %v11328_v31  ;;  %7055 = vmatprep.mubr.msk.bf16.mxu0 %vm13496_vm15, %v11509_v39  ;;  %v4185_v45 = vor.u32 %v4183_v43, %v4182_v57  ;;  %v11614_v0 = vrot.slane %v5008_v51, 7  ;;  %v3629_v24 = vpop.permute.xlu1 %3628  ;;  %vm13508_vm15 = vmmov %vm13503_vm10 }
 0x2d2   : > { %v2979_v6 = vsel %vm2749_vm12, %v2976_v28, %v13493_v37  ;;  %v11616_v29 = vrot.slane %v5044_v62, 7  ;;  %v4218_v28 = vrot.slane %v4216_v48, 7  ;;  %vm13499_vm9 = vcmp.ne.s16.totalorder %v13498_v15, 0 }
 0x2d3   : > { %v11621_v38 = vsel %vm13499_vm9, %v13497_v50, 0  ;;  %v4491_v32 = vrot.slane %v4489_v56, 7  ;;  %v4459_v31 = vsel %vm2341_vm0, %v11525_v10, %v4458_v16  ;;  %v11625_v27 = vrot.slane %v4252_v61, 7  ;;  %v13500_v10 = vld [vmem:[#allocation81_spill] sm:$0xff] }
 0x2d4   : > { %v4288_v54 = vshrl.u32 %v2979_v6, 16  ;;  %v5011_v37 = vshll.u32 %v3907_v26, 16  ;;  %v4605_v39 = vshrl.u32 %v3883_v14, 16  ;;  %5977 = vmatmul.mubr.bf16.gmra.mrb[108].mxu1 %v4459_v31  ;;  %v4502_v43 = vsel %vm2341_vm0, %v11531_v20, %v4501_v22  ;;  %v13502_v14 = vld [vmem:[#allocation113_spill] sm:$0xff]  ;;  %v13506_v31 = vld [vmem:[#allocation64_spill] sm:$0xff] }
 0x2d5   : > { %v4219_v51 = vshll.u32 %v2975_v36, 16  ;;  %v5047_v62 = vshll.u32 %v3909_v4, 16  ;;  %v4492_v48 = vshll.u32 %v3144_v19, 16  ;;  %5984 = vmatprep.mubr.bf16.mxu1 %v4502_v43  ;;  %v4255_v50 = vshll.u32 %v2977_v52, 16  ;;  %v3675_v36 = vpop.permute.xlu0 %3674 }
 0x2d6   : > { %v2980_v56 = vrot.slane %v11621_v38, 1  ;;  %v11631_v15 = vor.u32 %v5011_v37, %v11614_v0  ;;  %v3835_v16 = vsel %vm13501_vm11, %v13500_v10, %v3631_v58  ;;  %v4186_v26 = vsel %vm2341_vm0, %v11521_v40, %v4185_v45  ;;  %v13505_v58 = vld [vmem:[#allocation107_spill] sm:$0xff]  ;;  %vm13516_vm11 = vmmov %vm13503_vm10 }
 0x2d7   : > { %v4221_v61 = vor.u32 %v4219_v51, %v4218_v28  ;;  %v11638_v20 = vor.u32 %v5047_v62, %v11616_v29  ;;  %v4494_v4 = vor.u32 %v4492_v48, %v4491_v32  ;;  %v4257_v19 = vor.u32 %v4255_v50, %v11625_v27  ;;  %v11665_v48 = vld [vmem:[#allocation2 + $0x130] sm:$0xff] }
 0x2d8   : > { %v11641_v52 = vrot.slane %v4288_v54, 7  ;;  %v4607_v22 = vrot.slane %v4605_v39, 7  ;;  %v3832_v38 = vsel %vm13503_vm10, %v13502_v14, %v3629_v24  ;;  %7056 = vmatmul.mubr.msk.bf16.gmra.mrb[148].mxu0 %vm13504_vm13, %v4150_v3  ;;  %vm13507_vm4 = vcmp.ne.s16.totalorder %v13506_v31, 0  ;;  %v13511_v3 = vld [vmem:[#allocation72_spill] sm:$0xff]  ;;  %vm13517_vm13 = vmmov %vm13503_vm10 }
 0x2d9   : > { %v2566_v40 = vsel %vm13507_vm4, %v13505_v58, 0  ;;  %v11651_v45 = vsel %vm2341_vm0, %v11523_v60, %v4905_v63  ;;  %v4598_v32 = vshrl.u32 %v3835_v16, 16  ;;  %7059 = vmatprep.mubr.msk.bf16.mxu0 %vm13508_vm15, %v4186_v26  ;;  %v13509_v54 = vshll.u32 %v11375_v41, 16  ;;  %v13515_v26 = vld [vmem:[#allocation39_spill] sm:$0xff]  ;;  %vm13519_vm4 = vmmov %vm13503_vm10 }
 0x2da   : > { %v13510_v39 = vrot.slane %v11562_v12, 1  ;;  %v11663_v62 = vsel %vm2482_vm14, %v13511_v3, 0  ;;  %vm13513_vm9 = vcmp.ne.s16.totalorder %v13372_v33, 0  ;;  %v4222_v24 = vsel %vm2341_vm0, %v4182_v57, %v4221_v61  ;;  %vm13520_vm15 = vmmov %vm13519_vm4 }
 0x2db   : > { %v4653_v37 = vor.u32 %v13509_v54, %v11428_v13  ;;  %v3290_v63 = vsel %vm13513_vm9, %v11665_v48, 0  ;;  %v13514_v41 = vshll.u32 %v11320_v30, 16  ;;  %v4291_v12 = vshll.u32 %v2979_v6, 16  ;;  %v3677_v6 = vpop.permute.xlu0 %3676  ;;  %vm13521_vm9 = vmmov %vm13519_vm4 }
 0x2dc   : > { %v2981_v43 = vsel %vm2749_vm12, %v13510_v39, %v2980_v56  ;;  %v4595_v10 = vshrl.u32 %v3832_v38, 16  ;;  %v3838_v14 = vsel %vm13516_vm11, %v13515_v26, %v11367_v21  ;;  %v4495_v58 = vsel %vm2341_vm0, %v11575_v5, %v4494_v4  ;;  %vm13525_vm11 = vmmov %vm13519_vm4 }
 0x2dd   : > { %v4613_v50 = vor.u32 %v13514_v41, %v11379_v25  ;;  %v2982_v54 = vrot.slane %v2566_v40, 1  ;;  %5985 = vmatmul.mubr.bf16.gmra.mrb[112].mxu1 %v4495_v58  ;;  %v4293_v39 = vor.u32 %v4291_v12, %v11641_v52  ;;  %v4324_v57 = vshrl.u32 %v2981_v43, 16  ;;  %v13524_v41 = vld [vmem:[#allocation40_spill] sm:$0xff] }
 0x2de   : > { %v2984_v61 = vrot.slane %v11663_v62, 1  ;;  %v11682_v30 = vrot.slane %v4598_v32, 7  ;;  %v4258_v38 = vsel %vm2341_vm0, %v4218_v28, %v4257_v19  ;;  %v4654_v21 = vsel %vm2341_vm0, %v11379_v25, %v4653_v37 }
 0x2df   : > { %v4614_v33 = vsel %vm2341_vm0, %v4607_v22, %v4613_v50  ;;  %v11690_v5 = vsel %vm2341_vm0, %v11564_v42, %v11602_v11  ;;  %v4641_v4 = vshrl.u32 %v3838_v14, 16  ;;  %v3912_v22 = vsel %vm13503_vm10, %v11499_v49, %v11610_v1  ;;  %v3635_v11 = vpop.permute.xlu1 %3634  ;;  %vm13527_vm10 = vmmov %vm13519_vm4 }
 0x2e0   : > { %5992 = vmatprep.mubr.bf16.mxu1 %v4614_v33  ;;  %v3915_v40 = vsel %vm13517_vm13, %v11506_v23, %v3675_v36  ;;  %v13518_v32 = vshll.u32 %v11397_v44, 16  ;;  %v4601_v19 = vshll.u32 %v3835_v16, 16  ;;  %v4597_v3 = vrot.slane %v4595_v10, 7  ;;  %7060 = vmatmul.mubr.msk.bf16.gmra.mrb[152].mxu0 %vm13520_vm15, %v4222_v24  ;;  %vm13528_vm13 = vmmov %vm13519_vm4 }
 0x2e1   : > { %v2983_v25 = vsel %vm2749_vm12, %v2980_v56, %v2982_v54  ;;  %v11704_v42 = vsel %vm2341_vm0, %v11588_v35, %v11605_v34  ;;  %v3918_v37 = vsel %vm13519_vm4, %v3290_v63, %v3677_v6  ;;  %v4294_v49 = vsel %vm2341_vm0, %v11625_v27, %v4293_v39  ;;  %7063 = vmatprep.mubr.msk.bf16.mxu0 %vm13521_vm9, %v4258_v38  ;;  %v13522_v35 = vld [vmem:[#allocation38_spill] sm:$0xff] }
 0x2e2   : > { %v4689_v28 = vor.u32 %v13518_v32, %v11439_v8  ;;  %v11710_v23 = vrot.slane %v4324_v57, 7  ;;  %v2985_v44 = vsel %vm2749_vm12, %v2982_v54, %v2984_v61  ;;  %v4603_v1 = vor.u32 %v4601_v19, %v11682_v30 }
 0x2e3   : > { %v5080_v56 = vshrl.u32 %v3912_v22, 16  ;;  %v5116_v16 = vshrl.u32 %v3915_v40, 16  ;;  %v2568_v36 = vsel %vm2483_vm6, %v13522_v35, 0  ;;  %v11718_v62 = vrot.slane %v4641_v4, 7 }
 0x2e4   : > { %v4327_v63 = vshll.u32 %v2981_v43, 16  ;;  %v4360_v24 = vshrl.u32 %v2983_v25, 16  ;;  %v4690_v27 = vsel %vm2341_vm0, %v11428_v13, %v4689_v28  ;;  %v3841_v50 = vsel %vm13525_vm11, %v13524_v41, %v3635_v11  ;;  %v1826_v28 = vld [vmem:[#allocation2 + $0x98] sm:$0xff] }
 0x2e5   : > { %v5152_v12 = vshrl.u32 %v3918_v37, 16  ;;  %v4604_v10 = vsel %vm2341_vm0, %v4597_v3, %v4603_v1  ;;  %v11728_v58 = vsel %vm2484_vm1, %v11516_v46, 0  ;;  %v4644_v54 = vshll.u32 %v3838_v14, 16 }
 0x2e6   : > { %5993 = vmatmul.mubr.bf16.gmra.mrb[116].mxu1 %v4604_v10  ;;  %v4329_v33 = vor.u32 %v4327_v63, %v11710_v23  ;;  %v4396_v43 = vshrl.u32 %v2985_v44, 16  ;;  %v2986_v39 = vrot.slane %v2568_v36, 1  ;;  %v5082_v57 = vrot.slane %v5080_v56, 7  ;;  %v7430_v36 = vld [vmem:[#allocation2 + $0xc0] sm:$0xff]  ;;  %v13531_v63 = vld [vmem:[#allocation14_spill] sm:$0xff] }
 0x2e7   : > { %v5118_v6 = vrot.slane %v5116_v16, 7  ;;  %6000 = vmatprep.mubr.bf16.mxu1 %v4654_v21  ;;  %v4363_v13 = vshll.u32 %v2983_v25, 16  ;;  %v11734_v38 = vsel %vm2341_vm0, %v11590_v7, %v11631_v15  ;;  %v4646_v4 = vor.u32 %v4644_v54, %v11718_v62  ;;  %v7431_v54 = vld [vmem:[#allocation2 + $0xb8] sm:$0xff] }
 0x2e8   : > { %v4677_v32 = vshrl.u32 %v3841_v50, 16  ;;  %v4362_v46 = vrot.slane %v4360_v24, 7  ;;  %v2988_v14 = vrot.slane %v11728_v58, 1  ;;  %v5083_v19 = vshll.u32 %v3912_v22, 16  ;;  %7064 = vmatmul.mubr.msk.bf16.gmra.mrb[156].mxu0 %vm13527_vm10, %v4294_v49  ;;  %vm13539_vm10 = vmmov %vm13519_vm4 }
 0x2e9   : > { %v5119_v3 = vshll.u32 %v3915_v40, 16  ;;  %v5154_v11 = vrot.slane %v5152_v12, 7  ;;  %v5155_v1 = vshll.u32 %v3918_v37, 16  ;;  %v4330_v21 = vsel %vm2341_vm0, %v11641_v52, %v4329_v33  ;;  %v13530_v52 = vld [vmem:[#allocation41_spill] sm:$0xff]  ;;  %v13533_v33 = vld [vmem:[#allocation12_spill] sm:$0xff] }
 0x2ea   : > { %v11741_v25 = vrot.slane %v4396_v43, 7  ;;  %v2987_v7 = vsel %vm2749_vm12, %v2984_v61, %v2986_v39  ;;  %v2989_v15 = vsel %vm2749_vm12, %v2986_v39, %v2988_v14  ;;  %v5085_v56 = vor.u32 %v5083_v19, %v5082_v57  ;;  %7067 = vmatprep.mubr.msk.bf16.mxu0 %vm13528_vm13, %v4330_v21  ;;  %vm13541_vm13 = vmmov %vm13519_vm4 }
 0x2eb   : > { %v5121_v16 = vor.u32 %v5119_v3, %v5118_v6  ;;  %v2570_v22 = vsel %vm2485_vm3, %v1826_v28, 0  ;;  %v11751_v40 = vsel %vm2341_vm0, %v11614_v0, %v11638_v20  ;;  %v11756_v37 = vsel %vm13519_vm4, %v13530_v52, %v11402_v53 }
 0x2ec   : > { %v4365_v61 = vor.u32 %v4363_v13, %v4362_v46  ;;  %v4399_v49 = vshll.u32 %v2985_v44, 16  ;;  %vm13532_vm15 = vcmp.ne.s16.totalorder %v13531_v63, 0  ;;  %v11762_v41 = vrot.slane %v4677_v32, 7  ;;  %v13535_v32 = vld [vmem:[#allocation13_spill] sm:$0xff] }
 0x2ed   : > { %v11760_v24 = vsel %vm13532_vm15, %v7430_v36, 0  ;;  %v5157_v12 = vor.u32 %v5155_v1, %v5154_v11  ;;  %v4647_v10 = vsel %vm2341_vm0, %v11682_v30, %v4646_v4  ;;  %v4432_v0 = vshrl.u32 %v2987_v7, 16  ;;  %v7432_v4 = vld [vmem:[#allocation2 + $0xe0] sm:$0xff]  ;;  %v7433_v36 = vld [vmem:[#allocation2 + $0xc8] sm:$0xff]  ;;  %vm13548_vm15 = vmmov %vm13519_vm4 }
 0x2ee   : > { %6001 = vmatmul.mubr.bf16.gmra.mrb[120].mxu1 %v4647_v10  ;;  %v4401_v20 = vor.u32 %v4399_v49, %v11741_v25  ;;  %v4468_v58 = vshrl.u32 %v2989_v15, 16  ;;  %v2990_v53 = vrot.slane %v2570_v22, 1  ;;  %vm13534_vm9 = vcmp.ne.s16.totalorder %v13533_v33, 0  ;;  %v13540_v22 = vld [vmem:[#allocation120_spill] sm:$0xff] }
 0x2ef   : > { %v11769_v44 = vsel %vm13534_vm9, %v7431_v54, 0  ;;  %v4680_v43 = vshll.u32 %v3841_v50, 16  ;;  %6008 = vmatprep.mubr.bf16.mxu1 %v4690_v27  ;;  %v3696_v39 = vrot.slane %v11760_v24, 1  ;;  %v11774_v13 = vsel %vm2341_vm0, %v11616_v29, %v5085_v56  ;;  %vm13549_vm9 = vmmov %vm13519_vm4 }
 0x2f0   : > { %v11777_v30 = vsel %vm2341_vm0, %v5082_v57, %v5121_v16  ;;  %vm13536_vm11 = vcmp.ne.s16.totalorder %v13535_v32, 0  ;;  %v4713_v19 = vshrl.u32 %v11756_v37, 16  ;;  %v4366_v3 = vsel %vm2341_vm0, %v11710_v23, %v4365_v61  ;;  %v3639_v61 = vpop.permute.xlu1 %3638  ;;  %v13545_v32 = vld [vmem:[#allocation15_spill] sm:$0xff] }
 0x2f1   : > { %v3280_v28 = vsel %vm13536_vm11, %v7432_v4, 0  ;;  %v13537_v27 = vshll.u32 %v11425_v17, 16  ;;  %v4682_v11 = vor.u32 %v4680_v43, %v11762_v41  ;;  %v4434_v29 = vrot.slane %v4432_v0, 7  ;;  %7068 = vmatmul.mubr.msk.bf16.gmra.mrb[160].mxu0 %vm13539_vm10, %v4366_v3  ;;  %v7435_v43 = vld [vmem:[#allocation2 + $0xe8] sm:$0xff]  ;;  %vm13550_vm11 = vmmov %vm13519_vm4 }
 0x2f2   : > { %v3695_v1 = vrot.slane %v11769_v44, 1  ;;  %v11790_v57 = vsel %vm2341_vm0, %v5118_v6, %v5157_v12  ;;  %v13538_v21 = vshrl.u32 %v11476_v18, 16  ;;  %v4402_v23 = vsel %vm2341_vm0, %v4362_v46, %v4401_v20 }
 0x2f3   : > { %v4725_v50 = vor.u32 %v13537_v27, %v11486_v9  ;;  %v11798_v16 = vrot.slane %v4468_v58, 7  ;;  %v2991_v17 = vsel %vm2749_vm12, %v2988_v14, %v2990_v53  ;;  %v11803_v52 = vsel %vm13541_vm13, %v3280_v28, %v13540_v22  ;;  %7071 = vmatprep.mubr.msk.bf16.mxu0 %vm13519_vm4, %v4402_v23  ;;  %v7434_v14 = vld [vmem:[#allocation2 + $0xd0] sm:$0xff]  ;;  %vm13553_vm13 = vmmov %vm13519_vm4 }
 0x2f4   : > { %v11794_v56 = vrot.slane %v13538_v21, 7  ;;  %v4435_v6 = vshll.u32 %v2987_v7, 16  ;;  %v3697_v49 = vsel %vm2749_vm12, %v3695_v1, %v3696_v39  ;;  %v3293_v63 = vsel %vm2471_vm7, %v7433_v36, 0  ;;  %vm13544_vm7 = vmmov %vm13519_vm4 }
 0x2f5   : > { %v11809_v24 = vrot.slane %v4713_v19, 7  ;;  %v4716_v46 = vshll.u32 %v11756_v37, 16  ;;  %v4471_v12 = vshll.u32 %v2989_v15, 16  ;;  %v11814_v0 = vsel %vm2472_vm8, %v7434_v14, 0  ;;  %v13547_v19 = vld [vmem:[#allocation94_spill] sm:$0xff] }
 0x2f6   : > { %v4683_v20 = vsel %vm2341_vm0, %v11718_v62, %v4682_v11  ;;  %v4437_v7 = vor.u32 %v4435_v6, %v4434_v29  ;;  %v4726_v58 = vsel %vm2341_vm0, %v11439_v8, %v4725_v50  ;;  %v4504_v53 = vshrl.u32 %v2991_v17, 16 }
 0x2f7   : > { %v3847_v54 = vsel %vm13544_vm7, %v13543_v55, %v3639_v61  ;;  %6009 = vmatmul.mubr.bf16.gmra.mrb[124].mxu1 %v4683_v20  ;;  %v4473_v37 = vor.u32 %v4471_v12, %v11798_v16  ;;  %v4620_v15 = vshrl.u32 %v3697_v49, 16  ;;  %v3698_v33 = vrot.slane %v3293_v63, 1 }
 0x2f8   : > { %v4792_v44 = vshrl.u32 %v11803_v52, 16  ;;  %vm13546_vm8 = vcmp.ne.s16.totalorder %v13545_v32, 0  ;;  %6016 = vmatprep.mubr.bf16.mxu1 %v4726_v58  ;;  %v3700_v62 = vrot.slane %v11814_v0, 1  ;;  %v4759_v8 = vshll.u32 %v11476_v18, 16 }
 0x2f9   : > { %v3281_v28 = vsel %vm13546_vm8, %v7435_v43, 0  ;;  %v4718_v27 = vor.u32 %v4716_v46, %v11809_v24  ;;  %v4749_v50 = vshrl.u32 %v3847_v54, 16  ;;  %v4438_v11 = vsel %vm2341_vm0, %v11741_v25, %v4437_v7  ;;  %v7436_v46 = vld [vmem:[#allocation2 + $0xd8] sm:$0xff]  ;;  %vm13555_vm8 = vmmov %vm13544_vm7 }
 0x2fa   : > { %v11830_v3 = vsel %vm13548_vm15, %v3281_v28, %v13547_v19  ;;  %v4506_v21 = vrot.slane %v4504_v53, 7  ;;  %v4507_v23 = vshll.u32 %v2991_v17, 16  ;;  %7072 = vmatmul.mubr.msk.bf16.gmra.mrb[164].mxu0 %vm13549_vm9, %v4438_v11  ;;  %v4474_v22 = vsel %vm2341_vm0, %v4434_v29, %v4473_v37  ;;  %v13552_v29 = vld [vmem:[#allocation42_spill] sm:$0xff]  ;;  %v11877_v19 = vpop.f32.mrb[64].mxu0  ;;  %vm13558_vm15 = vmmov %vm13544_vm7 }
 0x2fb   : > { %v4761_v61 = vor.u32 %v4759_v8, %v11794_v56  ;;  %v11838_v6 = vrot.slane %v4620_v15, 7  ;;  %v3699_v18 = vsel %vm2749_vm12, %v3696_v39, %v3698_v33  ;;  %v11841_v36 = vrot.slane %v4792_v44, 7  ;;  %7075 = vmatprep.mubr.msk.bf16.mxu0 %vm13550_vm11, %v4474_v22  ;;  %v3643_v15 = vpop.permute.xlu1 %3642  ;;  %v13566_v11 = vld [vmem:[#allocation58_spill] sm:$0xff] }
 0x2fc   : > { %v4828_v63 = vshrl.u32 %v11830_v3, 16  ;;  %v3701_v25 = vsel %vm2749_vm12, %v3698_v33, %v3700_v62  ;;  %vm13551_vm10 = vcmp.ne.s16.totalorder %v13421_v47, 0  ;;  %v3850_v12 = vsel %vm13553_vm13, %v13552_v29, %v11430_v59 }
 0x2fd   : > { %v3295_v17 = vsel %vm13551_vm10, %v7436_v46, 0  ;;  %v4616_v14 = vshrl.u32 %v3695_v1, 16  ;;  %v4623_v10 = vshll.u32 %v3697_v49, 16  ;;  %vm13554_vm4 = vcmp.ne.s16.totalorder %v13429_v2, 0  ;;  %v7437_v46 = vld [vmem:[#allocation2 + $0xf0] sm:$0xff] }
 0x2fe   : > { %v11853_v39 = vsel %vm13554_vm4, %v7432_v4, 0  ;;  %v11855_v0 = vrot.slane %v4749_v50, 7  ;;  %v4719_v20 = vsel %vm2341_vm0, %v11762_v41, %v4718_v27  ;;  %v4509_v7 = vor.u32 %v4507_v23, %v4506_v21  ;;  %v13557_v23 = vld [vmem:[#allocation21_spill] sm:$0xff] }
 0x2ff   : > { %v4656_v58 = vshrl.u32 %v3699_v18, 16  ;;  %6017 = vmatmul.mubr.bf16.gmra.mrb[0].mxu1 %v4719_v20  ;;  %v4762_v47 = vsel %vm2341_vm0, %v11486_v9, %v4761_v61  ;;  %v4625_v53 = vor.u32 %v4623_v10, %v11838_v6  ;;  %v4692_v59 = vshrl.u32 %v3701_v25, 16  ;;  %v5579_v61 = vpop.f32.mrb[65].mxu0 }
 0x300   : > { %v3702_v1 = vrot.slane %v3295_v17, 1  ;;  %v4795_v49 = vshll.u32 %v11803_v52, 16  ;;  %v4752_v2 = vshll.u32 %v3847_v54, 16  ;;  %v4785_v4 = vshrl.u32 %v3850_v12, 16  ;;  %6024 = vmatprep.mubr.bf16.mxu1 %v4762_v47  ;;  %v13559_v17 = vld [vmem:[#allocation57_spill] sm:$0xff] }
 0x301   : > { %v3704_v55 = vrot.slane %v11853_v39, 1  ;;  %v4618_v37 = vrot.slane %v4616_v14, 7  ;;  %v4510_v33 = vsel %vm2341_vm0, %v11798_v16, %v4509_v7  ;;  %v4658_v44 = vrot.slane %v4656_v58, 7  ;;  %v6611_v16 = vpop.xlane.xlu0 %6610  ;;  %v11891_v14 = vpop.f32.mrb[66].mxu0 }
 0x302   : > { %v4754_v41 = vor.u32 %v4752_v2, %v11855_v0  ;;  %v4797_v9 = vor.u32 %v4795_v49, %v11841_v36  ;;  %v11868_v32 = vrot.slane %v4828_v63, 7  ;;  %7076 = vmatmul.mubr.msk.bf16.gmra.mrb[168].mxu0 %vm13544_vm7, %v4510_v33  ;;  %v11872_v54 = vrot.slane %v4692_v59, 7  ;;  %v5582_v20 = vpop.f32.mrb[67].mxu0  ;;  %v13562_v33 = vld [vmem:[#allocation116_spill] sm:$0xff] }
 0x303   : > { %v4626_v52 = vsel %vm2341_vm0, %v4618_v37, %v4625_v53  ;;  %v3703_v28 = vsel %vm2749_vm12, %v3700_v62, %v3702_v1  ;;  %v11875_v8 = vrot.slane %v4785_v4, 7  ;;  %v4659_v27 = vshll.u32 %v3699_v18, 16 }
 0x304   : > { %7079 = vmatprep.mubr.msk.bf16.mxu0 %vm13555_vm8, %v4626_v52  ;;  %v3705_v50 = vsel %vm2749_vm12, %v3702_v1, %v3704_v55  ;;  %v3297_v21 = vsel %vm2475_vm2, %v7435_v43, 0  ;;  %v11885_v22 = vsel %vm13558_vm15, %v13557_v23, %v3643_v15  ;;  %v6612_v63 = vrot.slane %v6611_v16, 4  ;;  %vm13561_vm2 = vmmov %vm13544_vm7  ;;  %v11921_v23 = vpop.f32.mrb[68].mxu0 }
 0x305   : > { %v4695_v62 = vshll.u32 %v3701_v25, 16  ;;  %vm13560_vm9 = vcmp.ne.s16.totalorder %v13559_v17, 0  ;;  %v4755_v18 = vsel %vm2341_vm0, %v11809_v24, %v4754_v41  ;;  %v4661_v10 = vor.u32 %v4659_v27, %v4658_v44  ;;  %vm13564_vm11 = vmmov %vm13561_vm2  ;;  %v7438_v27 = vld [vmem:[#allocation2 + $0xf8] sm:$0xff]  ;;  %v5587_v17 = vpop.f32.mrb[69].mxu0 }
 0x306   : > { %v11889_v29 = vsel %vm13560_vm9, %v7437_v46, 0  ;;  %v4798_v43 = vsel %vm2341_vm0, %v11794_v56, %v4797_v9  ;;  %v4728_v39 = vshrl.u32 %v3703_v28, 16  ;;  %v6613_v7 = vadd.f32 %v6612_v63, %v6611_v16  ;;  %v13563_v9 = vld [vmem:[#allocation24_spill] sm:$0xff]  ;;  %vm13565_vm10 = vmmov %vm13561_vm2  ;;  %v7439_v63 = vld [vmem:[#allocation2 + $0x100] sm:$0xff] }
 0x307   : > { %6025 = vmatmul.mubr.bf16.gmra.mrb[4].mxu1 %v4755_v18  ;;  %v4697_v25 = vor.u32 %v4695_v62, %v11872_v54  ;;  %v4764_v58 = vshrl.u32 %v3705_v50, 16  ;;  %v3706_v47 = vrot.slane %v3297_v21, 1  ;;  %v4831_v53 = vshll.u32 %v11830_v3, 16  ;;  %v13568_v62 = vld [vmem:[#allocation59_spill] sm:$0xff]  ;;  %vm13571_vm7 = vmmov %vm13561_vm2 }
 0x308   : > { %v4788_v59 = vshll.u32 %v3850_v12, 16  ;;  %6032 = vmatprep.mubr.bf16.mxu1 %v4798_v43  ;;  %v3708_v1 = vrot.slane %v11889_v29, 1  ;;  %v4821_v24 = vshrl.u32 %v11885_v22, 16  ;;  %v6614_v49 = vrot.slane %v6613_v7, 2  ;;  %v11931_v43 = vpop.f32.mrb[70].mxu0  ;;  %vm13572_vm8 = vmmov %vm13561_vm2 }
 0x309   : > { %v4662_v56 = vsel %vm2341_vm0, %v11838_v6, %v4661_v10  ;;  %v4730_v4 = vrot.slane %v4728_v39, 7  ;;  %v4833_v37 = vor.u32 %v4831_v53, %v11868_v32  ;;  %v4698_v41 = vsel %vm2341_vm0, %v4658_v44, %v4697_v25 }
 0x30a   : > { %v4790_v2 = vor.u32 %v4788_v59, %v11875_v8  ;;  %7080 = vmatmul.mubr.msk.bf16.gmra.mrb[172].mxu0 %vm13561_vm2, %v4662_v56  ;;  %v11907_v3 = vrot.slane %v4764_v58, 7  ;;  %v6615_v12 = vadd.f32 %v6614_v49, %v6613_v7  ;;  %v3707_v15 = vsel %vm2749_vm12, %v3704_v55, %v3706_v47  ;;  %v5590_v58 = vpop.f32.mrb[71].mxu0 }
 0x30b   : > { %v11913_v52 = vsel %vm13564_vm11, %v13563_v9, %v13562_v33  ;;  %7083 = vmatprep.mubr.msk.bf16.mxu0 %vm13565_vm10, %v4698_v41  ;;  %v4731_v6 = vshll.u32 %v3703_v28, 16  ;;  %v3709_v16 = vsel %vm2749_vm12, %v3706_v47, %v3708_v1  ;;  %vm13567_vm13 = vcmp.ne.s16.totalorder %v13566_v11, 0  ;;  %v7440_v9 = vld [vmem:[#allocation2 + $0x108] sm:$0xff]  ;;  %v7441_v11 = vld [vmem:[#allocation2 + $0x110] sm:$0xff]  ;;  %vm13578_vm11 = vmmov %vm13561_vm2 }
 0x30c   : > { %v3299_v21 = vsel %vm13567_vm13, %v7438_v27, 0  ;;  %v11919_v44 = vrot.slane %v4821_v24, 7  ;;  %v4767_v61 = vshll.u32 %v3705_v50, 16  ;;  %v6616_v55 = vrot.slane %v6615_v12, 1  ;;  %vm13579_vm10 = vmmov %vm13561_vm2 }
 0x30d   : > { %vm13569_vm4 = vcmp.ne.s16.totalorder %v13568_v62, 0  ;;  %v4791_v28 = vsel %vm2341_vm0, %v11855_v0, %v4790_v2  ;;  %v4733_v29 = vor.u32 %v4731_v6, %v4730_v4  ;;  %v4834_v18 = vsel %vm2341_vm0, %v11841_v36, %v4833_v37  ;;  %v13570_v0 = vld [vmem:[#allocation111_spill] sm:$0xff]  ;;  %v3647_v37 = vpop.permute.xlu1 %3646  ;;  %v13573_v6 = vld [vmem:[#allocation61_spill] sm:$0xff] }
 0x30e   : > { %v11925_v46 = vsel %vm13569_vm4, %v7439_v63, 0  ;;  %v4800_v10 = vshrl.u32 %v3707_v15, 16  ;;  %v4769_v50 = vor.u32 %v4767_v61, %v11907_v3  ;;  %v6617_v39 = vadd.f32 %v6616_v55, %v6615_v12  ;;  %v13577_v61 = vld [vmem:[#allocation44_spill] sm:$0xff]  ;;  %v11956_v55 = vpop.f32.mrb[72].mxu0  ;;  %vm13583_vm4 = vmmov %vm13561_vm2 }
 0x30f   : > { %6033 = vmatmul.mubr.bf16.gmra.mrb[8].mxu1 %v4791_v28  ;;  %v4836_v20 = vshrl.u32 %v3709_v16, 16  ;;  %v3710_v7 = vrot.slane %v3299_v21, 1  ;;  %v4824_v25 = vshll.u32 %v11885_v22, 16  ;;  %v3712_v47 = vrot.slane %v11925_v46, 1  ;;  %v13575_v21 = vld [vmem:[#allocation63_spill] sm:$0xff]  ;;  %v5595_v17 = vpop.f32.mrb[73].mxu0 }
 0x310   : > { %6040 = vmatprep.mubr.bf16.mxu1 %v4834_v18  ;;  %v4867_v53 = vshll.u32 %v13570_v0, 16  ;;  %v4857_v59 = vshrl.u32 %v11913_v52, 16  ;;  %7297 = vpush %v6617_v39  ;;  %v4734_v24 = vsel %vm2341_vm0, %v11872_v54, %v4733_v29  ;;  %v4802_v49 = vrot.slane %v4800_v10, 7  ;;  %v11962_v18 = vpop.f32.mrb[74].mxu0 }
 0x311   : > { %v4826_v36 = vor.u32 %v4824_v25, %v11919_v44  ;;  %v4803_v2 = vshll.u32 %v3707_v15, 16  ;;  %v4770_v22 = vsel %vm2341_vm0, %v4730_v4, %v4769_v50  ;;  %v4838_v41 = vrot.slane %v4836_v20, 7  ;;  %v5598_v39 = vpop.f32.mrb[75].mxu0 }
 0x312   : > { %v4869_v56 = vor.u32 %v4867_v53, %v11523_v60  ;;  %7084 = vmatmul.mubr.msk.bf16.gmra.mrb[176].mxu0 %vm13571_vm7, %v4734_v24  ;;  %v3711_v12 = vsel %vm2749_vm12, %v3708_v1, %v3710_v7  ;;  %v3713_v33 = vsel %vm2749_vm12, %v3710_v7, %v3712_v47  ;;  %vm13574_vm15 = vcmp.ne.s16.totalorder %v13573_v6, 0  ;;  %vm13586_vm7 = vmmov %vm13561_vm2 }
 0x313   : > { %7087 = vmatprep.mubr.msk.bf16.mxu0 %vm13572_vm8, %v4770_v22  ;;  %v3301_v54 = vsel %vm13574_vm15, %v7440_v9, 0  ;;  %v11949_v27 = vrot.slane %v4857_v59, 7  ;;  %v4860_v60 = vshll.u32 %v11913_v52, 16  ;;  %v4839_v15 = vshll.u32 %v3709_v16, 16  ;;  %vm13589_vm8 = vmmov %vm13561_vm2 }
 0x314   : > { %vm13576_vm9 = vcmp.ne.s16.totalorder %v13575_v21, 0  ;;  %v3859_v1 = vsel %vm13561_vm2, %v13577_v61, %v3647_v37  ;;  %v4827_v63 = vsel %vm2341_vm0, %v11875_v8, %v4826_v36  ;;  %v4805_v62 = vor.u32 %v4803_v2, %v4802_v49  ;;  %v7442_v36 = vld [vmem:[#allocation2 + $0x118] sm:$0xff]  ;;  %v13581_v2 = vld [vmem:[#allocation29_spill] sm:$0xff]  ;;  %v13584_v37 = vld [vmem:[#allocation92_spill] sm:$0xff] }
 0x315   : > { %v3302_v4 = vsel %vm13576_vm9, %v7441_v11, 0  ;;  %v4872_v46 = vshrl.u32 %v3711_v12, 16  ;;  %v4870_v52 = vsel %vm2341_vm0, %v11868_v32, %v4869_v56  ;;  %v4841_v16 = vor.u32 %v4839_v15, %v4838_v41 }
 0x316   : > { %v4908_v28 = vshrl.u32 %v3713_v33, 16  ;;  %v3714_v29 = vrot.slane %v3301_v54, 1  ;;  %v3716_v10 = vrot.slane %v3302_v4, 1  ;;  %v4862_v50 = vor.u32 %v4860_v60, %v11949_v27 }
 0x317   : > { %6041 = vmatmul.mubr.bf16.gmra.mrb[12].mxu1 %v4827_v63  ;;  %v4893_v20 = vshrl.u32 %v3859_v1, 16  ;;  %v4806_v8 = vsel %vm2341_vm0, %v11907_v3, %v4805_v62  ;;  %v4874_v7 = vrot.slane %v4872_v46, 7  ;;  %v4875_v25 = vshll.u32 %v3711_v12, 16  ;;  %v13582_v3 = vld [vmem:[#allocation46_spill] sm:$0xff]  ;;  %v11982_v12 = vpop.f32.mrb[76].mxu0 }
 0x318   : > { %6048 = vmatprep.mubr.bf16.mxu1 %v4870_v52  ;;  %v4842_v32 = vsel %vm2341_vm0, %v4802_v49, %v4841_v16  ;;  %v4910_v58 = vrot.slane %v4908_v28, 7  ;;  %v4911_v0 = vshll.u32 %v3713_v33, 16  ;;  %v3715_v53 = vsel %vm2749_vm12, %v3712_v47, %v3714_v29  ;;  %v5603_v6 = vpop.f32.mrb[77].mxu0  ;;  %v3651_v16 = vpop.permute.xlu1 %3650  ;;  %v13587_v28 = vld [vmem:[#allocation115_spill] sm:$0xff] }
 0x319   : > { %v3717_v59 = vsel %vm2749_vm12, %v3714_v29, %v3716_v10  ;;  %vm13580_vm13 = vcmp.ne.s16.totalorder %v13506_v31, 0  ;;  %v3862_v56 = vsel %vm13583_vm4, %v13582_v3, %v13581_v2  ;;  %v3304_v49 = vsel %vm2482_vm14, %v13584_v37, 0  ;;  %v11986_v11 = vpop.f32.mrb[78].mxu0  ;;  %vm13585_vm14 = vmmov %vm13561_vm2  ;;  %v3205_v2 = vld [vmem:[#allocation2 + $0x138] sm:$0xff] }
 0x31a   : > { %7088 = vmatmul.mubr.msk.bf16.gmra.mrb[180].mxu0 %vm13578_vm11, %v4806_v8  ;;  %v3303_v24 = vsel %vm13580_vm13, %v7442_v36, 0  ;;  %v11980_v22 = vrot.slane %v4893_v20, 7  ;;  %v4863_v47 = vsel %vm2341_vm0, %v11919_v44, %v4862_v50  ;;  %v4877_v33 = vor.u32 %v4875_v25, %v4874_v7  ;;  %v5606_v4 = vpop.f32.mrb[79].mxu0  ;;  %v13588_v25 = vld [vmem:[#allocation47_spill] sm:$0xff] }
 0x31b   : > { %7091 = vmatprep.mubr.msk.bf16.mxu0 %vm13579_vm10, %v4842_v32  ;;  %v4944_v9 = vshrl.u32 %v3715_v53, 16  ;;  %v4913_v31 = vor.u32 %v4911_v0, %v4910_v58  ;;  %v4980_v54 = vshrl.u32 %v3717_v59, 16  ;;  %v3718_v60 = vrot.slane %v3303_v24, 1  ;;  %v12002_v20 = vpop.f32.mrb[80].mxu0 }
 0x31c   : > { %v4896_v15 = vshll.u32 %v3859_v1, 16  ;;  %v3720_v51 = vrot.slane %v3304_v49, 1  ;;  %v4929_v21 = vshrl.u32 %v3862_v56, 16  ;;  %v4878_v63 = vsel %vm2341_vm0, %v4838_v41, %v4877_v33  ;;  %v5611_v0 = vpop.f32.mrb[81].mxu0 }
 0x31d   : > { %v4946_v44 = vrot.slane %v4944_v9, 7  ;;  %v4947_v62 = vshll.u32 %v3715_v53, 16  ;;  %v4914_v46 = vsel %vm2341_vm0, %v4874_v7, %v4913_v31  ;;  %v4982_v17 = vrot.slane %v4980_v54, 7  ;;  %v12008_v36 = vpop.f32.mrb[82].mxu0  ;;  %v13592_v31 = vld [vmem:[#allocation97_spill] sm:$0xff]  ;;  %v13593_v54 = vld [vmem:[#allocation11_spill] sm:$0xff] }
 0x31e   : > { %v4898_v61 = vor.u32 %v4896_v15, %v11980_v22  ;;  %v4983_v52 = vshll.u32 %v3717_v59, 16  ;;  %v3719_v1 = vsel %vm2749_vm12, %v3716_v10, %v3718_v60  ;;  %v3305_v29 = vsel %vm2483_vm6, %v13587_v28, 0  ;;  %v5614_v24 = vpop.f32.mrb[83].mxu0  ;;  %vm13590_vm6 = vmmov %vm13561_vm2 }
 0x31f   : > { %6049 = vmatmul.mubr.bf16.gmra.mrb[16].mxu1 %v4863_v47  ;;  %v4931_v41 = vrot.slane %v4929_v21, 7  ;;  %v3306_v50 = vsel %vm2484_vm1, %v11665_v48, 0  ;;  %v4932_v39 = vshll.u32 %v3862_v56, 16  ;;  %v4949_v8 = vor.u32 %v4947_v62, %v4946_v44  ;;  %vm13591_vm1 = vmmov %vm13561_vm2 }
 0x320   : > { %6056 = vmatprep.mubr.bf16.mxu1 %v11651_v45  ;;  %v3721_v45 = vsel %vm2749_vm12, %v3718_v60, %v3720_v51  ;;  %v4899_v10 = vsel %vm2341_vm0, %v11949_v27, %v4898_v61  ;;  %v5016_v7 = vshrl.u32 %v3719_v1, 16  ;;  %v3865_v32 = vsel %vm13589_vm8, %v13588_v25, %v3651_v16  ;;  %vm13594_vm15 = vmmov %vm13591_vm1 }
 0x321   : > { %v4985_v34 = vor.u32 %v4983_v52, %v4982_v17  ;;  %v5052_v53 = vshrl.u32 %v3721_v45, 16  ;;  %v3722_v59 = vrot.slane %v3305_v29, 1  ;;  %v3724_v48 = vrot.slane %v3306_v50, 1  ;;  %vm13596_vm9 = vmmov %vm13591_vm1 }
 0x322   : > { %7092 = vmatmul.mubr.msk.bf16.gmra.mrb[184].mxu0 %vm13585_vm14, %v4878_v63  ;;  %v4934_v26 = vor.u32 %v4932_v39, %v4931_v41  ;;  %v4965_v3 = vshrl.u32 %v3865_v32, 16  ;;  %v4950_v27 = vsel %vm2341_vm0, %v4910_v58, %v4949_v8  ;;  %v5018_v56 = vrot.slane %v5016_v7, 7  ;;  %v3655_v8 = vpop.permute.xlu1 %3654  ;;  %vm13598_vm2 = vmmov %vm13591_vm1 }
 0x323   : > { %7095 = vmatprep.mubr.msk.bf16.mxu0 %vm13586_vm7, %v4914_v46  ;;  %v5019_v37 = vshll.u32 %v3719_v1, 16  ;;  %v4986_v49 = vsel %vm2341_vm0, %v4946_v44, %v4985_v34  ;;  %v5054_v47 = vrot.slane %v5052_v53, 7  ;;  %v5055_v33 = vshll.u32 %v3721_v45, 16  ;;  %v12022_v15 = vpop.f32.mrb[84].mxu0  ;;  %v13597_v53 = vld [vmem:[#allocation7_spill] sm:$0xff]  ;;  %vm13600_vm11 = vmmov %vm13591_vm1 }
 0x324   : > { %v3723_v9 = vsel %vm2749_vm12, %v3720_v51, %v3722_v59  ;;  %v3307_v6 = vsel %vm2485_vm3, %v3205_v2, 0  ;;  %v3868_v58 = vsel %vm13594_vm15, %v13593_v54, %v13592_v31  ;;  %v4967_v60 = vrot.slane %v4965_v3, 7  ;;  %v5619_v51 = vpop.f32.mrb[85].mxu0  ;;  %vm13595_vm3 = vmmov %vm13591_vm1 }
 0x325   : > { %v4935_v21 = vsel %vm2341_vm0, %v11980_v22, %v4934_v26  ;;  %v5021_v4 = vor.u32 %v5019_v37, %v5018_v56  ;;  %v5088_v61 = vshrl.u32 %v3723_v9, 16  ;;  %v5057_v63 = vor.u32 %v5055_v33, %v5054_v47  ;;  %v12026_v35 = vpop.f32.mrb[86].mxu0  ;;  %vm13602_vm10 = vmmov %vm13591_vm1 }
 0x326   : > { %v3726_v62 = vrot.slane %v3307_v6, 1  ;;  %v4968_v46 = vshll.u32 %v3865_v32, 16  ;;  %v5001_v52 = vshrl.u32 %v3868_v58, 16  ;;  %v5622_v1 = vpop.f32.mrb[87].mxu0  ;;  %v5091_v29 = vshll.u32 %v3723_v9, 16  ;;  %v3657_v31 = vpop.permute.xlu1 %3656  ;;  %vm13603_vm4 = vmmov %vm13591_vm1 }
 0x327   : > { %6057 = vmatmul.mubr.bf16.gmra.mrb[20].mxu1 %v4899_v10  ;;  %v5022_v45 = vsel %vm2341_vm0, %v4982_v17, %v5021_v4  ;;  %v5090_v28 = vrot.slane %v5088_v61, 7  ;;  %v5058_v22 = vsel %vm2341_vm0, %v5018_v56, %v5057_v63  ;;  %v5004_v34 = vshll.u32 %v3868_v58, 16  ;;  %v13601_v61 = vld [vmem:[#allocation62_spill] sm:$0xff]  ;;  %vm13605_vm14 = vmmov %vm13591_vm1 }
 0x328   : > { %6064 = vmatprep.mubr.bf16.mxu1 %v11690_v5  ;;  %v3725_v5 = vsel %vm2749_vm12, %v3722_v59, %v3724_v48  ;;  %v4970_v16 = vor.u32 %v4968_v46, %v4967_v60  ;;  %v3727_v10 = vsel %vm2749_vm12, %v3724_v48, %v3726_v62  ;;  %v12034_v7 = vrot.slane %v5001_v52, 7  ;;  %vm13599_vm12 = vmmov %vm13591_vm1 }
 0x329   : > { %v5124_v44 = vshrl.u32 %v3725_v5, 16  ;;  %v5127_v39 = vshll.u32 %v3725_v5, 16  ;;  %v5093_v32 = vor.u32 %v5091_v29, %v5090_v28  ;;  %v5160_v0 = vshrl.u32 %v3727_v10, 16  ;;  %vm13607_vm7 = vmmov %vm13591_vm1 }
 0x32a   : > { %7096 = vmatmul.mubr.msk.bf16.gmra.mrb[188].mxu0 %vm13590_vm6, %v4950_v27  ;;  %v4971_v25 = vsel %vm2341_vm0, %v4931_v41, %v4970_v16  ;;  %v3871_v59 = vsel %vm13598_vm2, %v13597_v53, %v3655_v8  ;;  %v5006_v2 = vor.u32 %v5004_v34, %v12034_v7  ;;  %v5163_v33 = vshll.u32 %v3727_v10, 16 }
 0x32b   : > { %7099 = vmatprep.mubr.msk.bf16.mxu0 %vm13591_vm1, %v4986_v49  ;;  %v5126_v50 = vrot.slane %v5124_v44, 7  ;;  %v5037_v41 = vshrl.u32 %v3871_v59, 16  ;;  %v5094_v56 = vsel %vm2341_vm0, %v5054_v47, %v5093_v32  ;;  %v5162_v49 = vrot.slane %v5160_v0, 7 }
 0x32c   : > { %v12041_v17 = vpop.f32.mrb[88].mxu0  ;;  %v3874_v51 = vsel %vm13602_vm10, %v13601_v61, %v3657_v31  ;;  %v5040_v44 = vshll.u32 %v3871_v59, 16  ;;  %vm6620_vm13 = vcmask 0  }
 0x32d   : > { %v5627_v48 = vpop.f32.mrb[89].mxu0  ;;  %v5129_v26 = vor.u32 %v5127_v39, %v5126_v50  ;;  %v5039_v58 = vrot.slane %v5037_v41, 7  ;;  %v5165_v4 = vor.u32 %v5163_v33, %v5162_v49  ;;  %v5073_v1 = vshrl.u32 %v3874_v51, 16 }
 0x32e   : > { %v12046_v24 = vpop.f32.mrb[90].mxu0  ;;  %v5076_v53 = vshll.u32 %v3874_v51, 16 }
 0x32f   : > { %6065 = vmatmul.mubr.bf16.gmra.mrb[24].mxu1 %v4935_v21  ;;  %v5630_v27 = vpop.f32.mrb[91].mxu0  ;;  %v5866_v37 = vpop.f32.mrb[52].mxu1  ;;  %v5130_v5 = vsel %vm2341_vm0, %v5090_v28, %v5129_v26  ;;  %v5166_v16 = vsel %vm2341_vm0, %v5126_v50, %v5165_v4 }
 0x330   : > { %6072 = vmatprep.mubr.bf16.mxu1 %v11704_v42  ;;  %v12039_v42 = vld [vmem:[%s12500_s5] ss:$0 sm:$0xff]  ;;  %v5868_v6 = vpop.f32.mrb[53].mxu1 }
 0x331   : > { %v5578_v3 = vadd.f32 %v12039_v42, %v11877_v19  ;;  %v5581_v9 = vadd.f32 %v12039_v42, %v11891_v14  ;;  %v5869_v19 = vpop.f32.mrb[54].mxu1  ;;  %v5007_v14 = vsel %vm2341_vm0, %v4967_v60, %v5006_v2  ;;  %v5586_v46 = vadd.f32 %v12039_v42, %v11921_v23  ;;  %v13606_v6 = vld [vmem:[#allocation80_spill] sm:$0xff] }
 0x332   : > { %7100 = vmatmul.mubr.msk.bf16.gmra.mrb[192].mxu0 %vm13595_vm3, %v5022_v45  ;;  %v5871_v47 = vpop.f32.mrb[55].mxu1  ;;  %v5042_v60 = vor.u32 %v5040_v44, %v5039_v58  ;;  %v5589_v28 = vadd.f32 %v12039_v42, %v11931_v43  ;;  %v13604_v43 = vld [vmem:[#allocation79_spill] sm:$0xff]  ;;  %v5594_v48 = vadd.f32 %v12039_v42, %v11956_v55 }
 0x333   : > { %7103 = vmatprep.mubr.msk.bf16.mxu0 %vm13596_vm9, %v5058_v22  ;;  %v12060_v54 = vadd.f32 %v5869_v19, %v5581_v9  ;;  %v3659_v22 = vpop.permute.xlu1 %3658 }
 0x334   : > { %v5043_v32 = vsel %vm2341_vm0, %v12034_v7, %v5042_v60  ;;  %v3877_v0 = vsel %vm13605_vm14, %v13604_v43, %v3659_v22  ;;  %v5597_v7 = vadd.f32 %v12039_v42, %v11962_v18 }
 0x335   : > { %v12062_v21 = vpop.f32.mrb[92].mxu0  ;;  %v5112_v47 = vshll.u32 %v3877_v0, 16 }
 0x336   : > { %v5635_v63 = vpop.f32.mrb[93].mxu0 }
 0x337   : > { %6073 = vmatmul.mubr.bf16.gmra.mrb[28].mxu1 %v4971_v25  ;;  %v12067_v62 = vpop.f32.mrb[94].mxu0  ;;  %v5075_v25 = vrot.slane %v5073_v1, 7 }
 0x338   : > { %6080 = vmatprep.mubr.bf16.mxu1 %v11734_v38  ;;  %v12057_v38 = vadd.f32 %v5866_v37, %v5578_v3  ;;  %v5638_v52 = vpop.f32.mrb[95].mxu0  ;;  %v5109_v3 = vshrl.u32 %v3877_v0, 16  ;;  %v3661_v37 = vpop.permute.xlu1 %3660 }
 0x339   : > { %v5078_v2 = vor.u32 %v5076_v53, %v5075_v25  ;;  %v3880_v31 = vsel %vm13607_vm7, %v13606_v6, %v3661_v37 }
 0x33a   : > { %7104 = vmatmul.mubr.msk.bf16.gmra.mrb[196].mxu0 %vm13599_vm12, %v5094_v56  ;;  %v5874_v45 = vpop.f32.mrb[56].mxu1  ;;  %v5145_v51 = vshrl.u32 %v3880_v31, 16 }
 0x33b   : > { %7107 = vmatprep.mubr.msk.bf16.mxu0 %vm13600_vm11, %v5130_v5  ;;  %v5876_v29 = vpop.f32.mrb[57].mxu1  ;;  %v5111_v5 = vrot.slane %v5109_v3, 7  ;;  %v5079_v55 = vsel %vm2341_vm0, %v5039_v58, %v5078_v2  ;;  %v5605_v58 = vadd.f32 %v12039_v42, %v11986_v11  ;;  %v5610_v11 = vadd.f32 %v12039_v42, %v12002_v20 }
 0x33c   : > { %v5877_v39 = vpop.f32.mrb[58].mxu1  ;;  %v5621_v3 = vadd.f32 %v12039_v42, %v12026_v35  ;;  %v5629_v35 = vadd.f32 %v12039_v42, %v12046_v24  ;;  %v5637_v24 = vadd.f32 %v12039_v42, %v12067_v62 }
 0x33d   : > { %v12083_v10 = vadd.f32 %v5877_v39, %v5589_v28  ;;  %v5879_v8 = vpop.f32.mrb[59].mxu1  ;;  %v5114_v61 = vor.u32 %v5112_v47, %v5111_v5  ;;  %v5148_v28 = vshll.u32 %v3880_v31, 16 }
 0x33e   : > { %v12085_v50 = vpop.f32.mrb[96].mxu0  ;;  %v5613_v8 = vadd.f32 %v12039_v42, %v12008_v36 }
 0x33f   : > { %6081 = vmatmul.mubr.bf16.gmra.mrb[32].mxu1 %v5007_v14  ;;  %v5643_v34 = vpop.f32.mrb[97].mxu0  ;;  %v5602_v14 = vadd.f32 %v12039_v42, %v11982_v12 }
 0x340   : > { %6088 = vmatprep.mubr.bf16.mxu1 %v11751_v40  ;;  %v12080_v40 = vadd.f32 %v5874_v45, %v5586_v46  ;;  %v12091_v59 = vpop.f32.mrb[98].mxu0 }
 0x341   : > { %s7298_s15 = spop %7297  ;;  %v5646_v26 = vpop.f32.mrb[99].mxu0  ;;  %v5645_v62 = vadd.f32 %v12039_v42, %v12091_v59 }
 0x342   : > { %7108 = vmatmul.mubr.msk.bf16.gmra.mrb[200].mxu0 %vm13603_vm4, %v5166_v16  ;;  %v6619_v23 = vstv %s7298_s15  ;;  %v5882_v27 = vpop.f32.mrb[60].mxu1  ;;  %v5147_v16 = vrot.slane %v5145_v51, 7  ;;  %v5618_v26 = vadd.f32 %v12039_v42, %v12022_v15  ;;  %v5626_v15 = vadd.f32 %v12039_v42, %v12041_v17 }
 0x343   : > { %6621 = vst.msk [vmem:[%s300_s14] sm:$0x1] %vm6620_vm13, %v6619_v23  ;;  %v12098_v41 = vadd.f32 %v5882_v27, %v5594_v48  ;;  %v5884_v56 = vpop.f32.mrb[61].mxu1  ;;  %v5634_v17 = vadd.f32 %v12039_v42, %v12062_v21  ;;  %v5642_v21 = vadd.f32 %v12039_v42, %v12085_v50 }
 0x344   : > { %v5885_v49 = vpop.f32.mrb[62].mxu1  ;;  %v5150_v22 = vor.u32 %v5148_v28, %v5147_v16 }
 0x345   : > { %v12100_v33 = vadd.f32 %v5885_v49, %v5597_v7  ;;  %v5887_v9 = vpop.f32.mrb[63].mxu1 }
 0x347   : > { %6089 = vmatmul.mubr.bf16.gmra.mrb[36].mxu1 %v5043_v32 }
 0x348   : > { %6096 = vmatprep.mubr.bf16.mxu1 %v11774_v13  ;;  %v12102_v13 = vpop.f32.mrb[100].mxu0 }
 0x349   : > { %v5651_v19 = vpop.f32.mrb[101].mxu0  ;;  %v5650_v50 = vadd.f32 %v12039_v42, %v12102_v13 }
 0x34a   : > { %v12107_v18 = vpop.f32.mrb[102].mxu0 }
 0x34b   : > { %v5654_v4 = vpop.f32.mrb[103].mxu0  ;;  %v5890_v63 = vpop.f32.mrb[64].mxu1  ;;  %v5653_v59 = vadd.f32 %v12039_v42, %v12107_v18 }
 0x34c   : > { %v12114_v44 = vadd.f32 %v5890_v63, %v5602_v14  ;;  %v5892_v46 = vpop.f32.mrb[65].mxu1 }
 0x34d   : > { %v5893_v52 = vpop.f32.mrb[66].mxu1 }
 0x34e   : > { %v12116_v60 = vadd.f32 %v5893_v52, %v5605_v58  ;;  %v5895_v1 = vpop.f32.mrb[67].mxu1 }
 0x34f   : > { %6097 = vmatmul.mubr.bf16.gmra.mrb[40].mxu1 %v5079_v55  ;;  %v12118_v45 = vpop.f32.mrb[104].mxu0 }
 0x350   : > { %6104 = vmatprep.mubr.bf16.mxu1 %v11777_v30  ;;  %v5115_v30 = vsel %vm2341_vm0, %v5075_v25, %v5114_v61  ;;  %v5659_v12 = vpop.f32.mrb[105].mxu0  ;;  %v5658_v13 = vadd.f32 %v12039_v42, %v12118_v45 }
 0x351   : > { %v12121_v23 = vpop.f32.mrb[106].mxu0 }
 0x352   : > { %v5662_v29 = vpop.f32.mrb[107].mxu0  ;;  %v5661_v18 = vadd.f32 %v12039_v42, %v12121_v23 }
 0x353   : > { %v5898_v39 = vpop.f32.mrb[68].mxu1 }
 0x354   : > { %v12128_v32 = vadd.f32 %v5898_v39, %v5610_v11  ;;  %v5900_v43 = vpop.f32.mrb[69].mxu1 }
 0x355   : > { %v5901_v25 = vpop.f32.mrb[70].mxu1 }
 0x356   : > { %v12130_v0 = vadd.f32 %v5901_v25, %v5613_v8  ;;  %v5903_v34 = vpop.f32.mrb[71].mxu1 }
 0x357   : > { %6105 = vmatmul.mubr.bf16.gmra.mrb[44].mxu1 %v5115_v30 }
 0x358   : > { %6112 = vmatprep.mubr.bf16.mxu1 %v11790_v57  ;;  %v12132_v53 = vpop.f32.mrb[108].mxu0  ;;  %v5151_v57 = vsel %vm2341_vm0, %v5111_v5, %v5150_v22  ;;  %vm13608_vm0 = vmmov %vm13591_vm1 }
 0x359   : > { %v5667_v48 = vpop.f32.mrb[109].mxu0  ;;  %v5666_v45 = vadd.f32 %v12039_v42, %v12132_v53  ;;  %vm13609_vm8 = vmmov %vm13608_vm0 }
 0x35a   : > { %v12135_v20 = vpop.f32.mrb[110].mxu0  ;;  %vm13610_vm6 = vmmov %vm13608_vm0 }
 0x35b   : > { %v5670_v2 = vpop.f32.mrb[111].mxu0  ;;  %v5669_v23 = vadd.f32 %v12039_v42, %v12135_v20  ;;  %vm13611_vm1 = vmmov %vm13608_vm0 }
 0x35c   : > { %v5906_v36 = vpop.f32.mrb[72].mxu1  ;;  %vm13612_vm15 = vmmov %vm13608_vm0 }
 0x35d   : > { %v12141_v27 = vadd.f32 %v5906_v36, %v5618_v26  ;;  %v5908_v7 = vpop.f32.mrb[73].mxu1  ;;  %vm13613_vm3 = vmmov %vm13608_vm0 }
 0x35e   : > { %v5909_v56 = vpop.f32.mrb[74].mxu1  ;;  %vm13614_vm9 = vmmov %vm13608_vm0 }
 0x35f   : > { %6113 = vmatmul.mubr.bf16.gmra.mrb[48].mxu1 %v5151_v57  ;;  %v12143_v37 = vadd.f32 %v5909_v56, %v5621_v3  ;;  %v5911_v49 = vpop.f32.mrb[75].mxu1  ;;  %vm13615_vm2 = vmmov %vm13608_vm0 }
 0x360   : > { %vm13616_vm12 = vmmov %vm13608_vm0 }
 0x361   : > { %v12145_v9 = vpop.f32.mrb[112].mxu0  ;;  %vm13617_vm11 = vmmov %vm13608_vm0 }
 0x362   : > { %v5675_v5 = vpop.f32.mrb[113].mxu0  ;;  %v5674_v53 = vadd.f32 %v12039_v42, %v12145_v9  ;;  %vm13618_vm10 = vmmov %vm13608_vm0 }
 0x363   : > { %v12147_v55 = vpop.f32.mrb[114].mxu0  ;;  %vm13619_vm4 = vmmov %vm13608_vm0 }
 0x364   : > { %v5678_v6 = vpop.f32.mrb[115].mxu0  ;;  %v5677_v20 = vadd.f32 %v12039_v42, %v12147_v55  ;;  %vm13620_vm14 = vmmov %vm13608_vm0 }
 0x365   : > { %v5914_v31 = vpop.f32.mrb[76].mxu1  ;;  %vm13621_vm7 = vmmov %vm13608_vm0 }
 0x366   : > { %v12153_v19 = vadd.f32 %v5914_v31, %v5626_v15  ;;  %v5916_v47 = vpop.f32.mrb[77].mxu1 }
 0x367   : > { %v5917_v14 = vpop.f32.mrb[78].mxu1 }
 0x368   : > { %v12155_v4 = vadd.f32 %v5917_v14, %v5629_v35  ;;  %v5919_v61 = vpop.f32.mrb[79].mxu1 }
 0x369   : > { %v12157_v51 = vpop.f32.mrb[116].mxu0 }
 0x36a   : > { %v5683_v63 = vpop.f32.mrb[117].mxu0 }
 0x36b   : > { %v12159_v58 = vpop.f32.mrb[118].mxu0 }
 0x36c   : > { %v5686_v46 = vpop.f32.mrb[119].mxu0 }
 0x36d   : > { %v5922_v52 = vpop.f32.mrb[80].mxu1 }
 0x36e   : > { %v12165_v1 = vadd.f32 %v5922_v52, %v5634_v17  ;;  %v5924_v16 = vpop.f32.mrb[81].mxu1 }
 0x36f   : > { %v5925_v30 = vpop.f32.mrb[82].mxu1 }
 0x370   : > { %v12167_v12 = vadd.f32 %v5925_v30, %v5637_v24  ;;  %v5927_v28 = vpop.f32.mrb[83].mxu1 }
 0x371   : > { %v12169_v11 = vpop.f32.mrb[120].mxu0 }
 0x372   : > { %v5691_v29 = vpop.f32.mrb[121].mxu0 }
 0x373   : > { %v12171_v22 = vpop.f32.mrb[122].mxu0 }
 0x374   : > { %v5694_v39 = vpop.f32.mrb[123].mxu0 }
 0x375   : > { %v5930_v8 = vpop.f32.mrb[84].mxu1 }
 0x376   : > { %v12177_v43 = vadd.f32 %v5930_v8, %v5642_v21  ;;  %v5932_v25 = vpop.f32.mrb[85].mxu1 }
 0x377   : > { %v5933_v34 = vpop.f32.mrb[86].mxu1 }
 0x378   : > { %v12179_v57 = vadd.f32 %v5933_v34, %v5645_v62  ;;  %v5935_v48 = vpop.f32.mrb[87].mxu1 }
 0x37a   : > { %v12181_v26 = vpop.f32.mrb[124].mxu0 }
 0x37b   : > { %v5699_v2 = vpop.f32.mrb[125].mxu0 }
 0x37c   : > { %v12183_v36 = vpop.f32.mrb[126].mxu0 }
 0x37d   : > { %v5702_v3 = vpop.f32.mrb[127].mxu0 }
 0x37e   : > { %v5938_v7 = vpop.f32.mrb[88].mxu1 }
 0x37f   : > { %v12189_v56 = vadd.f32 %v5938_v7, %v5650_v50  ;;  %v5940_v49 = vpop.f32.mrb[89].mxu1 }
 0x380   : > { %v5941_v5 = vpop.f32.mrb[90].mxu1 }
 0x381   : > { %v12191_v15 = vadd.f32 %v5941_v5, %v5653_v59  ;;  %v5943_v6 = vpop.f32.mrb[91].mxu1 }
 0x383   : > { %v12193_v31 = vpop.f32.mrb[128].mxu0 }
 0x384   : > { %v5707_v35 = vpop.f32.mrb[129].mxu0 }
 0x385   : > { %v12195_v47 = vpop.f32.mrb[130].mxu0 }
 0x386   : > { %v5710_v14 = vpop.f32.mrb[131].mxu0 }
 0x387   : > { %v5946_v61 = vpop.f32.mrb[92].mxu1 }
 0x388   : > { %v12201_v63 = vadd.f32 %v5946_v61, %v5658_v13  ;;  %v5948_v17 = vpop.f32.mrb[93].mxu1 }
 0x389   : > { %v5949_v46 = vpop.f32.mrb[94].mxu1  ;;  %v5682_v17 = vadd.f32 %v12039_v42, %v12157_v51 }
 0x38a   : > { %v12203_v52 = vadd.f32 %v5949_v46, %v5661_v18  ;;  %v5951_v24 = vpop.f32.mrb[95].mxu1 }
 0x38b   : > { %v12205_v16 = vpop.f32.mrb[132].mxu0 }
 0x38c   : > { %v5715_v30 = vpop.f32.mrb[133].mxu0 }
 0x38d   : > { %v12207_v28 = vpop.f32.mrb[134].mxu0 }
 0x38e   : > { %v5718_v29 = vpop.f32.mrb[135].mxu0 }
 0x38f   : > { %v5954_v21 = vpop.f32.mrb[96].mxu1 }
 0x390   : > { %v12213_v39 = vadd.f32 %v5954_v21, %v5666_v45  ;;  %v5956_v8 = vpop.f32.mrb[97].mxu1 }
 0x391   : > { %v5957_v62 = vpop.f32.mrb[98].mxu1 }
 0x392   : > { %v12215_v25 = vadd.f32 %v5957_v62, %v5669_v23  ;;  %v5959_v34 = vpop.f32.mrb[99].mxu1 }
 0x393   : > { %v12217_v48 = vpop.f32.mrb[136].mxu0  ;;  %v5690_v34 = vadd.f32 %v12039_v42, %v12169_v11 }
 0x394   : > { %v5723_v2 = vpop.f32.mrb[137].mxu0 }
 0x395   : > { %v12219_v50 = vpop.f32.mrb[138].mxu0 }
 0x396   : > { %v5726_v3 = vpop.f32.mrb[139].mxu0 }
 0x397   : > { %v5962_v7 = vpop.f32.mrb[100].mxu1 }
 0x398   : > { %v12225_v59 = vadd.f32 %v5962_v7, %v5674_v53  ;;  %v5964_v49 = vpop.f32.mrb[101].mxu1 }
 0x399   : > { %v5965_v5 = vpop.f32.mrb[102].mxu1 }
 0x39a   : > { %v12227_v6 = vadd.f32 %v5965_v5, %v5677_v20  ;;  %v5967_v35 = vpop.f32.mrb[103].mxu1 }
 0x39b   : > { %v7049_v13 = vpop.f32.mrb[140].mxu0 }
 0x39c   : > { %v12230_v14 = vadd.f32 %v7049_v13, %v12080_v40  ;;  %v6155_v61 = vpop.f32.mrb[141].mxu0  ;;  %v5685_v40 = vadd.f32 %v12039_v42, %v12159_v58 }
 0x39d   : > { %v12233_v18 = vadd.f32 %v6155_v61, %v12057_v38  ;;  %v7050_v9 = vpop.f32.mrb[142].mxu0  ;;  %v5698_v61 = vadd.f32 %v12039_v42, %v12181_v26 }
 0x39e   : > { %v12238_v55 = vadd.f32 %v7050_v9, %v12083_v10  ;;  %v6158_v46 = vpop.f32.mrb[143].mxu0 }
 0x39f   : > { %v12241_v24 = vadd.f32 %v6158_v46, %v12060_v54  ;;  %v5970_v30 = vpop.f32.mrb[104].mxu1 }
 0x3a0   : > { %v12245_v45 = vadd.f32 %v5970_v30, %v5682_v17  ;;  %v5972_v29 = vpop.f32.mrb[105].mxu1 }
 0x3a1   : > { %v5973_v38 = vpop.f32.mrb[106].mxu1 }
 0x3a2   : > { %v12247_v21 = vadd.f32 %v5973_v38, %v5685_v40  ;;  %v5975_v23 = vpop.f32.mrb[107].mxu1 }
 0x3a3   : > { %v7053_v8 = vpop.f32.mrb[144].mxu0 }
 0x3a4   : > { %v12250_v51 = vadd.f32 %v7053_v8, %v12114_v44  ;;  %v6171_v10 = vpop.f32.mrb[145].mxu0  ;;  %v5693_v44 = vadd.f32 %v12039_v42, %v12171_v22 }
 0x3a5   : > { %v12253_v62 = vadd.f32 %v6171_v10, %v12098_v41  ;;  %v7054_v54 = vpop.f32.mrb[146].mxu0  ;;  %v5706_v10 = vadd.f32 %v12039_v42, %v12193_v31 }
 0x3a6   : > { %v12258_v58 = vadd.f32 %v7054_v54, %v12116_v60  ;;  %v6174_v2 = vpop.f32.mrb[147].mxu0 }
 0x3a7   : > { %v12261_v53 = vadd.f32 %v6174_v2, %v12100_v33  ;;  %v5978_v3 = vpop.f32.mrb[108].mxu1 }
 0x3a8   : > { %v12265_v7 = vadd.f32 %v5978_v3, %v5690_v34  ;;  %v5980_v20 = vpop.f32.mrb[109].mxu1 }
 0x3a9   : > { %v5981_v41 = vpop.f32.mrb[110].mxu1 }
 0x3aa   : > { %v12267_v49 = vadd.f32 %v5981_v41, %v5693_v44  ;;  %v5983_v5 = vpop.f32.mrb[111].mxu1 }
 0x3ab   : > { %v7057_v35 = vpop.f32.mrb[148].mxu0 }
 0x3ac   : > { %v12270_v11 = vadd.f32 %v7057_v35, %v12141_v27  ;;  %v6187_v60 = vpop.f32.mrb[149].mxu0  ;;  %v5701_v27 = vadd.f32 %v12039_v42, %v12183_v36 }
 0x3ad   : > { %v12273_v13 = vadd.f32 %v6187_v60, %v12128_v32  ;;  %v7058_v33 = vpop.f32.mrb[150].mxu0  ;;  %v5714_v60 = vadd.f32 %v12039_v42, %v12205_v16 }
 0x3ae   : > { %v12278_v22 = vadd.f32 %v7058_v33, %v12143_v37  ;;  %v6190_v9 = vpop.f32.mrb[151].mxu0 }
 0x3af   : > { %v12281_v17 = vadd.f32 %v6190_v9, %v12130_v0 }
 0x3b0   : > { %v5986_v46 = vpop.f32.mrb[112].mxu1 }
 0x3b1   : > { %v12285_v30 = vadd.f32 %v5986_v46, %v5698_v61  ;;  %v5988_v40 = vpop.f32.mrb[113].mxu1 }
 0x3b2   : > { %v5989_v32 = vpop.f32.mrb[114].mxu1 }
 0x3b3   : > { %v12287_v29 = vadd.f32 %v5989_v32, %v5701_v27  ;;  %v5991_v38 = vpop.f32.mrb[115].mxu1  ;;  %v7061_v23 = vpop.f32.mrb[152].mxu0 }
 0x3b4   : > { %v12290_v26 = vadd.f32 %v7061_v23, %v12165_v1  ;;  %v6203_v37 = vpop.f32.mrb[153].mxu0  ;;  %v5709_v1 = vadd.f32 %v12039_v42, %v12195_v47 }
 0x3b5   : > { %v12293_v8 = vadd.f32 %v6203_v37, %v12153_v19  ;;  %v7062_v0 = vpop.f32.mrb[154].mxu0 }
 0x3b6   : > { %v12298_v36 = vadd.f32 %v7062_v0, %v12167_v12  ;;  %v6206_v54 = vpop.f32.mrb[155].mxu0 }
 0x3b7   : > { %v12301_v34 = vadd.f32 %v6206_v54, %v12155_v4 }
 0x3b9   : > { %v5994_v2 = vpop.f32.mrb[116].mxu1 }
 0x3ba   : > { %v12305_v3 = vadd.f32 %v5994_v2, %v5706_v10  ;;  %v5996_v44 = vpop.f32.mrb[117].mxu1 }
 0x3bb   : > { %v5997_v19 = vpop.f32.mrb[118].mxu1  ;;  %v7065_v5 = vpop.f32.mrb[156].mxu0 }
 0x3bc   : > { %v12307_v20 = vadd.f32 %v5997_v19, %v5709_v1  ;;  %v5999_v41 = vpop.f32.mrb[119].mxu1  ;;  %v12310_v31 = vadd.f32 %v7065_v5, %v12189_v56  ;;  %v6219_v12 = vpop.f32.mrb[157].mxu0  ;;  %v5717_v56 = vadd.f32 %v12039_v42, %v12207_v28 }
 0x3bd   : > { %v12313_v35 = vadd.f32 %v6219_v12, %v12177_v43  ;;  %v7066_v4 = vpop.f32.mrb[158].mxu0 }
 0x3be   : > { %v12318_v47 = vadd.f32 %v7066_v4, %v12191_v15  ;;  %v6222_v33 = vpop.f32.mrb[159].mxu0 }
 0x3bf   : > { %v12321_v61 = vadd.f32 %v6222_v33, %v12179_v57  ;;  %v5722_v57 = vadd.f32 %v12039_v42, %v12217_v48 }
 0x3c1   : > { %v6002_v9 = vpop.f32.mrb[120].mxu1 }
 0x3c2   : > { %v6003_v46 = vadd.f32 %v6002_v9, %v5714_v60  ;;  %v6004_v27 = vpop.f32.mrb[121].mxu1 }
 0x3c3   : > { %v6005_v40 = vpop.f32.mrb[122].mxu1 }
 0x3c4   : > { %v6006_v43 = vadd.f32 %v6005_v40, %v5717_v56  ;;  %v6007_v32 = vpop.f32.mrb[123].mxu1  ;;  %v7069_v38 = vpop.f32.mrb[160].mxu0 }
 0x3c5   : > { %v12326_v23 = vadd.f32 %v7069_v38, %v12213_v39  ;;  %v6235_v16 = vpop.f32.mrb[161].mxu0  ;;  %v5725_v39 = vadd.f32 %v12039_v42, %v12219_v50 }
 0x3c6   : > { %v12329_v15 = vadd.f32 %v6235_v16, %v12201_v63  ;;  %v7070_v37 = vpop.f32.mrb[162].mxu0 }
 0x3c7   : > { %v12334_v0 = vadd.f32 %v7070_v37, %v12215_v25  ;;  %v6238_v28 = vpop.f32.mrb[163].mxu0 }
 0x3c8   : > { %v12337_v10 = vadd.f32 %v6238_v28, %v12203_v52 }
 0x3ca   : > { %v6010_v54 = vpop.f32.mrb[124].mxu1 }
 0x3cb   : > { %v12341_v2 = vadd.f32 %v6010_v54, %v5722_v57  ;;  %v6012_v1 = vpop.f32.mrb[125].mxu1 }
 0x3cc   : > { %v6013_v63 = vpop.f32.mrb[126].mxu1 }
 0x3cd   : > { %v12343_v44 = vadd.f32 %v6013_v63, %v5725_v39  ;;  %v6015_v19 = vpop.f32.mrb[127].mxu1  ;;  %v7073_v41 = vpop.f32.mrb[164].mxu0  ;;  %v6412_v63 = vmax.f32 %v12230_v14, 0.0 }
 0x3ce   : > { %v12346_v48 = vadd.f32 %v7073_v41, %v12245_v45  ;;  %v6251_v25 = vpop.f32.mrb[165].mxu0 }
 0x3cf   : > { %v12349_v5 = vadd.f32 %v6251_v25, %v12225_v59  ;;  %v7074_v52 = vpop.f32.mrb[166].mxu0 }
 0x3d0   : > { %v12352_v12 = vadd.f32 %v7074_v52, %v12247_v21  ;;  %v6254_v50 = vpop.f32.mrb[167].mxu0 }
 0x3d1   : > { %v12355_v4 = vadd.f32 %v6254_v50, %v12227_v6 }
 0x3d2   : > { %v6018_v60 = vpop.f32.mrb[0].mxu1 }
 0x3d3   : > { %v6020_v33 = vpop.f32.mrb[1].mxu1  ;;  %v7219_v14 = vadd.f32 %v12039_v42, %v6018_v60  ;;  %v6417_v60 = vmax.f32 %v12258_v58, 0.0  ;;  %v6420_v58 = vmax.f32 %v12270_v11, 0.0 }
 0x3d4   : > { %v6021_v9 = vpop.f32.mrb[2].mxu1  ;;  %v6413_v33 = vmax.f32 %v12238_v55, 0.0 }
 0x3d5   : > { %v6023_v56 = vpop.f32.mrb[3].mxu1  ;;  %v7077_v27 = vpop.f32.mrb[168].mxu0 }
 0x3d6   : > { %v12358_v45 = vadd.f32 %v7077_v27, %v12285_v30  ;;  %v6267_v40 = vpop.f32.mrb[169].mxu0 }
 0x3d7   : > { %v12361_v59 = vadd.f32 %v6267_v40, %v12265_v7  ;;  %v7078_v32 = vpop.f32.mrb[170].mxu0  ;;  %v6411_v40 = vmax.f32 %v12241_v24, 0.0 }
 0x3d8   : > { %v12364_v21 = vadd.f32 %v7078_v32, %v12287_v29  ;;  %v6270_v38 = vpop.f32.mrb[171].mxu0 }
 0x3d9   : > { %v12367_v6 = vadd.f32 %v6270_v38, %v12267_v49  ;;  %v6410_v49 = vmax.f32 %v12233_v18, 0.0 }
 0x3da   : > { %v12369_v16 = vpop.f32.mrb[4].mxu1 }
 0x3db   : > { %v6028_v37 = vpop.f32.mrb[5].mxu1 }
 0x3dc   : > { %v12371_v57 = vpop.f32.mrb[6].mxu1 }
 0x3dd   : > { %v6031_v28 = vpop.f32.mrb[7].mxu1  ;;  %v7081_v30 = vpop.f32.mrb[172].mxu0 }
 0x3de   : > { %v6292_v54 = vadd.f32 %v7081_v30, %v6003_v46  ;;  %v6283_v39 = vpop.f32.mrb[173].mxu0 }
 0x3df   : > { %v6284_v7 = vadd.f32 %v6283_v39, %v12305_v3  ;;  %v7082_v1 = vpop.f32.mrb[174].mxu0 }
 0x3e0   : > { %v6444_v29 = vmax.f32 %v6292_v54, 0.0  ;;  %v6295_v19 = vadd.f32 %v7082_v1, %v6006_v43  ;;  %v6286_v41 = vpop.f32.mrb[175].mxu0  ;;  %v7220_v54 = vadd.f32 %v12039_v42, %v6021_v9 }
 0x3e1   : > { %v6442_v25 = vmax.f32 %v6284_v7, 0.0  ;;  %v6287_v52 = vadd.f32 %v6286_v41, %v12307_v20  ;;  %v6416_v20 = vmax.f32 %v12250_v51, 0.0  ;;  %v6414_v7 = vmax.f32 %v12253_v62, 0.0 }
 0x3e2   : > { %v6034_v50 = vpop.f32.mrb[8].mxu1  ;;  %v6476_v56 = vsub.f32 %v6412_v63, %v6444_v29  ;;  %v6445_v27 = vmax.f32 %v6295_v19, 0.0  ;;  %v6415_v62 = vmax.f32 %v12261_v53, 0.0  ;;  %v7221_v53 = vadd.f32 %v12039_v42, %v12369_v16 }
 0x3e3   : > { %v6036_v46 = vpop.f32.mrb[9].mxu1  ;;  %v6474_v3 = vsub.f32 %v6410_v49, %v6442_v25  ;;  %v6443_v32 = vmax.f32 %v6287_v52, 0.0  ;;  %v6421_v16 = vmax.f32 %v12278_v22, 0.0 }
 0x3e4   : > { %v6037_v38 = vpop.f32.mrb[10].mxu1  ;;  %v6477_v43 = vsub.f32 %v6413_v33, %v6445_v27  ;;  %v6508_v1 = vand.u32 2147483647, %v6476_v56 }
 0x3e5   : > { %v6039_v37 = vpop.f32.mrb[11].mxu1  ;;  %v6506_v28 = vand.u32 2147483647, %v6474_v3  ;;  %v6475_v18 = vsub.f32 %v6411_v40, %v6443_v32  ;;  %v7085_v30 = vpop.f32.mrb[176].mxu0 }
 0x3e6   : > { %v6308_v55 = vadd.f32 %v7219_v14, %v7085_v30  ;;  %v6299_v39 = vpop.f32.mrb[177].mxu0  ;;  %v6509_v19 = vand.u32 2147483647, %v6477_v43  ;;  %v6541_v3 = vsel %vm13610_vm6, %v6508_v1, 0.0  ;;  %v6418_v37 = vmax.f32 %v12273_v13, 0.0  ;;  %vm13623_vm6 = vmmov %vm13608_vm0 }
 0x3e7   : > { %v6507_v24 = vand.u32 2147483647, %v6475_v18  ;;  %v6300_v63 = vadd.f32 %v6299_v39, %v12341_v2  ;;  %v7086_v29 = vpop.f32.mrb[178].mxu0  ;;  %v6538_v52 = vsel %vm13608_vm0, %v6506_v28, 0.0  ;;  %v7223_v18 = vadd.f32 %v12039_v42, %v6034_v50 }
 0x3e8   : > { %v6448_v41 = vmax.f32 %v6308_v55, 0.0  ;;  %v6311_v49 = vadd.f32 %v7220_v54, %v7086_v29  ;;  %v6302_v25 = vpop.f32.mrb[179].mxu0  ;;  %v7222_v39 = vadd.f32 %v12039_v42, %v12371_v57  ;;  %v7224_v1 = vadd.f32 %v12039_v42, %v6037_v38 }
 0x3e9   : > { %v6539_v51 = vsel %vm13609_vm8, %v6507_v24, 0.0  ;;  %v6446_v9 = vmax.f32 %v6300_v63, 0.0  ;;  %v6303_v33 = vadd.f32 %v6302_v25, %v12343_v44  ;;  %vm13622_vm8 = vmmov %vm13608_vm0 }
 0x3ea   : > { %v6042_v27 = vpop.f32.mrb[12].mxu1  ;;  %v6540_v56 = vadd.f32 %v6539_v51, %v6538_v52  ;;  %v6480_v46 = vsub.f32 %v6416_v20, %v6448_v41  ;;  %v6449_v2 = vmax.f32 %v6311_v49, 0.0  ;;  %v6543_v20 = vsel %vm13611_vm1, %v6509_v19, 0.0  ;;  %vm13624_vm1 = vmmov %vm13608_vm0 }
 0x3eb   : > { %v6044_v40 = vpop.f32.mrb[13].mxu1  ;;  %v6478_v32 = vsub.f32 %v6414_v7, %v6446_v9  ;;  %v6447_v14 = vmax.f32 %v6303_v33, 0.0 }
 0x3ec   : > { %v6045_v43 = vpop.f32.mrb[14].mxu1  ;;  %v6542_v28 = vadd.f32 %v6541_v3, %v6540_v56  ;;  %v6481_v44 = vsub.f32 %v6417_v60, %v6449_v2  ;;  %v6512_v63 = vand.u32 2147483647, %v6480_v46  ;;  %v6419_v3 = vmax.f32 %v12281_v17, 0.0 }
 0x3ed   : > { %v6047_v30 = vpop.f32.mrb[15].mxu1  ;;  %v6510_v54 = vand.u32 2147483647, %v6478_v32  ;;  %v6479_v55 = vsub.f32 %v6415_v62, %v6447_v14  ;;  %v7089_v11 = vpop.f32.mrb[180].mxu0  ;;  %v6422_v17 = vmax.f32 %v12293_v8, 0.0 }
 0x3ee   : > { %v6544_v7 = vadd.f32 %v6543_v20, %v6542_v28  ;;  %v6324_v13 = vadd.f32 %v7223_v18, %v7089_v11  ;;  %v6315_v24 = vpop.f32.mrb[181].mxu0  ;;  %v6513_v51 = vand.u32 2147483647, %v6481_v44  ;;  %v6549_v22 = vsel %vm13614_vm9, %v6512_v63, 0.0  ;;  %vm13627_vm9 = vmmov %vm13608_vm0 }
 0x3ef   : > { %v6545_v50 = vsel %vm13612_vm15, %v6510_v54, 0.0  ;;  %v6511_v29 = vand.u32 2147483647, %v6479_v55  ;;  %v6316_v60 = vadd.f32 %v7221_v53, %v6315_v24  ;;  %v7090_v41 = vpop.f32.mrb[182].mxu0  ;;  %v6424_v18 = vmax.f32 %v12290_v26, 0.0  ;;  %vm13625_vm15 = vmmov %vm13608_vm0 }
 0x3f0   : > { %v6546_v19 = vadd.f32 %v6545_v50, %v6544_v7  ;;  %v6452_v49 = vmax.f32 %v6324_v13, 0.0  ;;  %v6327_v25 = vadd.f32 %v7224_v1, %v7090_v41  ;;  %v6318_v52 = vpop.f32.mrb[183].mxu0  ;;  %v7225_v54 = vadd.f32 %v12039_v42, %v6042_v27 }
 0x3f1   : > { %v6547_v57 = vsel %vm13613_vm3, %v6511_v29, 0.0  ;;  %v6450_v9 = vmax.f32 %v6316_v60, 0.0  ;;  %v6319_v33 = vadd.f32 %v7222_v39, %v6318_v52  ;;  %v6425_v60 = vmax.f32 %v12298_v36, 0.0  ;;  %vm13626_vm3 = vmmov %vm13608_vm0 }
 0x3f2   : > { %v6050_v38 = vpop.f32.mrb[16].mxu1  ;;  %v6548_v62 = vadd.f32 %v6547_v57, %v6546_v19  ;;  %v6484_v56 = vsub.f32 %v6420_v58, %v6452_v49  ;;  %v6453_v46 = vmax.f32 %v6327_v25, 0.0  ;;  %v6551_v58 = vsel %vm13615_vm2, %v6513_v51, 0.0  ;;  %vm13628_vm2 = vmmov %vm13608_vm0 }
 0x3f3   : > { %v7227_v2 = vadd.f32 %v12039_v42, %v6050_v38  ;;  %v6052_v40 = vpop.f32.mrb[17].mxu1  ;;  %v6482_v32 = vsub.f32 %v6418_v37, %v6450_v9  ;;  %v6451_v14 = vmax.f32 %v6319_v33, 0.0  ;;  %v7226_v37 = vadd.f32 %v12039_v42, %v6045_v43 }
 0x3f4   : > { %v6053_v28 = vpop.f32.mrb[18].mxu1  ;;  %v6550_v44 = vadd.f32 %v6549_v22, %v6548_v62  ;;  %v6485_v30 = vsub.f32 %v6421_v16, %v6453_v46  ;;  %v6516_v26 = vand.u32 2147483647, %v6484_v56  ;;  %v6423_v51 = vmax.f32 %v12301_v34, 0.0 }
 0x3f5   : > { %v7228_v53 = vadd.f32 %v12039_v42, %v6053_v28  ;;  %v6055_v20 = vpop.f32.mrb[19].mxu1  ;;  %v6514_v55 = vand.u32 2147483647, %v6482_v32  ;;  %v6483_v11 = vsub.f32 %v6419_v3, %v6451_v14  ;;  %v7093_v39 = vpop.f32.mrb[184].mxu0 }
 0x3f6   : > { %v6552_v7 = vadd.f32 %v6551_v58, %v6550_v44  ;;  %v6340_v1 = vadd.f32 %v7227_v2, %v7093_v39  ;;  %v6331_v13 = vpop.f32.mrb[185].mxu0  ;;  %v6517_v49 = vand.u32 2147483647, %v6485_v30  ;;  %v6557_v62 = vsel %vm13618_vm10, %v6516_v26, 0.0  ;;  %vm13631_vm10 = vmmov %vm13608_vm0 }
 0x3f7   : > { %v6553_v24 = vsel %vm13616_vm12, %v6514_v55, 0.0  ;;  %v6515_v63 = vand.u32 2147483647, %v6483_v11  ;;  %v6332_v50 = vadd.f32 %v7225_v54, %v6331_v13  ;;  %v7094_v29 = vpop.f32.mrb[186].mxu0  ;;  %v6426_v11 = vmax.f32 %v12313_v35, 0.0  ;;  %vm13629_vm12 = vmmov %vm13608_vm0 }
 0x3f8   : > { %v6554_v41 = vadd.f32 %v6553_v24, %v6552_v7  ;;  %v6456_v27 = vmax.f32 %v6340_v1, 0.0  ;;  %v6343_v16 = vadd.f32 %v7228_v53, %v7094_v29  ;;  %v6334_v19 = vpop.f32.mrb[187].mxu0  ;;  %v6559_v32 = vsel %vm13619_vm4, %v6517_v49, 0.0  ;;  %vm13632_vm4 = vmmov %vm13608_vm0 }
 0x3f9   : > { %v6555_v8 = vsel %vm13617_vm11, %v6515_v63, 0.0  ;;  %v6454_v25 = vmax.f32 %v6332_v50, 0.0  ;;  %v6335_v52 = vadd.f32 %v7226_v37, %v6334_v19  ;;  %v6427_v29 = vmax.f32 %v12321_v61, 0.0  ;;  %vm13630_vm11 = vmmov %vm13608_vm0 }
 0x3fa   : > { %v6058_v43 = vpop.f32.mrb[20].mxu1  ;;  %v6556_v57 = vadd.f32 %v6555_v8, %v6554_v41  ;;  %v6488_v9 = vsub.f32 %v6424_v18, %v6456_v27  ;;  %v6457_v33 = vmax.f32 %v6343_v16, 0.0 }
 0x3fb   : > { %v6060_v38 = vpop.f32.mrb[21].mxu1  ;;  %v6486_v56 = vsub.f32 %v6422_v17, %v6454_v25  ;;  %v6455_v36 = vmax.f32 %v6335_v52, 0.0  ;;  %v7229_v46 = vadd.f32 %v12039_v42, %v6058_v43 }
 0x3fc   : > { %v6061_v2 = vpop.f32.mrb[22].mxu1  ;;  %v6558_v40 = vadd.f32 %v6557_v62, %v6556_v57  ;;  %v6489_v3 = vsub.f32 %v6425_v60, %v6457_v33  ;;  %v6520_v53 = vand.u32 2147483647, %v6488_v9  ;;  %v6428_v57 = vmax.f32 %v12310_v31, 0.0 }
 0x3fd   : > { %v6063_v22 = vpop.f32.mrb[23].mxu1  ;;  %v6518_v14 = vand.u32 2147483647, %v6486_v56  ;;  %v6487_v28 = vsub.f32 %v6423_v51, %v6455_v36  ;;  %v7097_v44 = vpop.f32.mrb[188].mxu0  ;;  %v7230_v34 = vadd.f32 %v12039_v42, %v6061_v2 }
 0x3fe   : > { %v6560_v18 = vadd.f32 %v6559_v32, %v6558_v40  ;;  %v6347_v30 = vpop.f32.mrb[189].mxu0  ;;  %v6521_v7 = vand.u32 2147483647, %v6489_v3  ;;  %v6565_v60 = vsel %vm13608_vm0, %v6520_v53, 0.0 }
 0x3ff   : > { %v6561_v20 = vsel %vm13620_vm14, %v6518_v14, 0.0  ;;  %v6519_v58 = vand.u32 2147483647, %v6487_v28  ;;  %v6348_v54 = vadd.f32 %v7229_v46, %v6347_v30  ;;  %v7098_v55 = vpop.f32.mrb[190].mxu0  ;;  %v6429_v46 = vmax.f32 %v12318_v47, 0.0  ;;  %vm13633_vm14 = vmmov %vm13608_vm0 }
 0x400   : > { %v6562_v39 = vadd.f32 %v6561_v20, %v6560_v18  ;;  %v6350_v17 = vpop.f32.mrb[191].mxu0  ;;  %v6567_v25 = vsel %vm13622_vm8, %v6521_v7, 0.0  ;;  %vm13635_vm8 = vmmov %vm13608_vm0 }
 0x401   : > { %v6563_v37 = vsel %vm13621_vm7, %v6519_v58, 0.0  ;;  %v6458_v1 = vmax.f32 %v6348_v54, 0.0  ;;  %v6351_v13 = vadd.f32 %v7230_v34, %v6350_v17  ;;  %vm13634_vm7 = vmmov %vm13608_vm0 }
 0x402   : > { %v6066_v26 = vpop.f32.mrb[24].mxu1  ;;  %v6564_v24 = vadd.f32 %v6563_v37, %v6562_v39  ;;  %v6430_v39 = vmax.f32 %v12329_v15, 0.0 }
 0x403   : > { %v7231_v63 = vadd.f32 %v12039_v42, %v6066_v26  ;;  %v6068_v50 = vpop.f32.mrb[25].mxu1  ;;  %v6490_v41 = vsub.f32 %v6426_v11, %v6458_v1  ;;  %v6459_v27 = vmax.f32 %v6351_v13, 0.0 }
 0x404   : > { %v6069_v16 = vpop.f32.mrb[26].mxu1  ;;  %v6566_v35 = vadd.f32 %v6565_v60, %v6564_v24  ;;  %v6431_v24 = vmax.f32 %v12337_v10, 0.0  ;;  %v6432_v10 = vmax.f32 %v12326_v23, 0.0 }
 0x405   : > { %v6356_v19 = vadd.f32 %v7231_v63, %v7097_v44  ;;  %v7232_v49 = vadd.f32 %v12039_v42, %v6069_v16  ;;  %v6071_v8 = vpop.f32.mrb[27].mxu1  ;;  %v6522_v52 = vand.u32 2147483647, %v6490_v41  ;;  %v6491_v43 = vsub.f32 %v6427_v29, %v6459_v27  ;;  %v7101_v51 = vpop.f32.mrb[192].mxu0  ;;  %v12434_v44 = vld [vmem:[%s12500_s5] ss:$0 sm:$0xff] }
 0x406   : > { %v6568_v9 = vadd.f32 %v6567_v25, %v6566_v35  ;;  %v6363_v61 = vpop.f32.mrb[193].mxu0 }
 0x407   : > { %v6460_v33 = vmax.f32 %v6356_v19, 0.0  ;;  %v6359_v38 = vadd.f32 %v7232_v49, %v7098_v55  ;;  %v6569_v62 = vsel %vm13623_vm6, %v6522_v52, 0.0  ;;  %v6523_v56 = vand.u32 2147483647, %v6491_v43  ;;  %v7102_v36 = vpop.f32.mrb[194].mxu0  ;;  %vm13636_vm6 = vmmov %vm13608_vm0 }
 0x408   : > { %v6570_v2 = vadd.f32 %v6569_v62, %v6568_v9  ;;  %v6366_v3 = vpop.f32.mrb[195].mxu0 }
 0x409   : > { %v6492_v42 = vsub.f32 %v6428_v57, %v6460_v33  ;;  %v6461_v40 = vmax.f32 %v6359_v38, 0.0  ;;  %v6571_v22 = vsel %vm13624_vm1, %v6523_v56, 0.0  ;;  %vm13637_vm1 = vmmov %vm13608_vm0 }
 0x40a   : > { %v6074_v32 = vpop.f32.mrb[28].mxu1  ;;  %v6572_v14 = vadd.f32 %v6571_v22, %v6570_v2 }
 0x40b   : > { %v6524_v28 = vand.u32 2147483647, %v6492_v42  ;;  %v6493_v31 = vsub.f32 %v6429_v46, %v6461_v40  ;;  %v7233_v34 = vadd.f32 %v12434_v44, %v6074_v32  ;;  %v6076_v18 = vpop.f32.mrb[29].mxu1  ;;  %v6433_v46 = vmax.f32 %v12334_v0, 0.0 }
 0x40c   : > { %v6077_v30 = vpop.f32.mrb[30].mxu1  ;;  %v6434_v0 = vmax.f32 %v12349_v5, 0.0 }
 0x40d   : > { %v6573_v47 = vsel %vm13625_vm15, %v6524_v28, 0.0  ;;  %v6525_v53 = vand.u32 2147483647, %v6493_v31  ;;  %v6364_v20 = vadd.f32 %v7233_v34, %v6363_v61  ;;  %v7234_v58 = vadd.f32 %v12434_v44, %v6077_v30  ;;  %v6079_v54 = vpop.f32.mrb[31].mxu1  ;;  %v12439_v11 = vpop.f32.mrb[196].mxu0 }
 0x40e   : > { %v6574_v55 = vadd.f32 %v6573_v47, %v6572_v14  ;;  %v6379_v37 = vpop.f32.mrb[197].mxu0  ;;  %v6435_v54 = vmax.f32 %v12355_v4, 0.0  ;;  %v6436_v4 = vmax.f32 %v12346_v48, 0.0 }
 0x40f   : > { %v6575_v17 = vsel %vm13626_vm3, %v6525_v53, 0.0  ;;  %v6462_v7 = vmax.f32 %v6364_v20, 0.0  ;;  %v6367_v1 = vadd.f32 %v7234_v58, %v6366_v3  ;;  %v12443_v26 = vpop.f32.mrb[198].mxu0 }
 0x410   : > { %v6576_v13 = vadd.f32 %v6575_v17, %v6574_v55  ;;  %v6382_v29 = vpop.f32.mrb[199].mxu0 }
 0x411   : > { %v6494_v63 = vsub.f32 %v6430_v39, %v6462_v7  ;;  %v6463_v50 = vmax.f32 %v6367_v1, 0.0 }
 0x412   : > { %v6082_v60 = vpop.f32.mrb[32].mxu1 }
 0x413   : > { %v6526_v41 = vand.u32 2147483647, %v6494_v63  ;;  %v6495_v27 = vsub.f32 %v6431_v24, %v6463_v50  ;;  %v7235_v16 = vadd.f32 %v12434_v44, %v6082_v60  ;;  %v6084_v35 = vpop.f32.mrb[33].mxu1 }
 0x414   : > { %v6085_v15 = vpop.f32.mrb[34].mxu1 }
 0x415   : > { %v6577_v19 = vsel %vm13627_vm9, %v6526_v41, 0.0  ;;  %v6527_v49 = vand.u32 2147483647, %v6495_v27  ;;  %v6372_v8 = vadd.f32 %v7235_v16, %v7101_v51  ;;  %v7236_v25 = vadd.f32 %v12434_v44, %v6085_v15  ;;  %v6087_v52 = vpop.f32.mrb[35].mxu1  ;;  %v12449_v57 = vpop.f32.mrb[200].mxu0 }
 0x416   : > { %v6578_v43 = vadd.f32 %v6577_v19, %v6576_v13  ;;  %v6395_v61 = vpop.f32.mrb[201].mxu0  ;;  %v6437_v19 = vmax.f32 %v12352_v12, 0.0 }
 0x417   : > { %v6579_v9 = vsel %vm13628_vm2, %v6527_v49, 0.0  ;;  %v6464_v33 = vmax.f32 %v6372_v8, 0.0  ;;  %v6375_v38 = vadd.f32 %v7236_v25, %v7102_v36  ;;  %v12453_v56 = vpop.f32.mrb[202].mxu0 }
 0x418   : > { %v6580_v62 = vadd.f32 %v6579_v9, %v6578_v43  ;;  %v6398_v42 = vpop.f32.mrb[203].mxu0 }
 0x419   : > { %v6496_v2 = vsub.f32 %v6432_v10, %v6464_v33  ;;  %v6465_v51 = vmax.f32 %v6375_v38, 0.0 }
 0x41a   : > { %v6090_v40 = vpop.f32.mrb[36].mxu1 }
 0x41b   : > { %v6528_v3 = vand.u32 2147483647, %v6496_v2  ;;  %v6497_v22 = vsub.f32 %v6433_v46, %v6465_v51  ;;  %v7237_v32 = vadd.f32 %v12434_v44, %v6090_v40  ;;  %v6092_v14 = vpop.f32.mrb[37].mxu1  ;;  %v6438_v2 = vmax.f32 %v12361_v59, 0.0 }
 0x41c   : > { %v6093_v23 = vpop.f32.mrb[38].mxu1 }
 0x41d   : > { %v6581_v28 = vsel %vm13629_vm12, %v6528_v3, 0.0  ;;  %v6529_v31 = vand.u32 2147483647, %v6497_v22  ;;  %v6380_v34 = vadd.f32 %v7237_v32, %v6379_v37  ;;  %v7238_v36 = vadd.f32 %v12434_v44, %v6093_v23  ;;  %v6095_v18 = vpop.f32.mrb[39].mxu1 }
 0x41e   : > { %v6582_v30 = vadd.f32 %v6581_v28, %v6580_v62  ;;  %v6439_v22 = vmax.f32 %v12367_v6, 0.0  ;;  %v6440_v6 = vmax.f32 %v12358_v45, 0.0 }
 0x41f   : > { %v6583_v47 = vsel %vm13630_vm11, %v6529_v31, 0.0  ;;  %v6466_v53 = vmax.f32 %v6380_v34, 0.0  ;;  %v6383_v20 = vadd.f32 %v7238_v36, %v6382_v29 }
 0x420   : > { %v6584_v58 = vadd.f32 %v6583_v47, %v6582_v30 }
 0x421   : > { %v6498_v55 = vsub.f32 %v6434_v0, %v6466_v53  ;;  %v6467_v39 = vmax.f32 %v6383_v20, 0.0 }
 0x422   : > { %v6098_v17 = vpop.f32.mrb[40].mxu1 }
 0x423   : > { %v6530_v7 = vand.u32 2147483647, %v6498_v55  ;;  %v6499_v1 = vsub.f32 %v6435_v54, %v6467_v39  ;;  %v7239_v37 = vadd.f32 %v12434_v44, %v6098_v17  ;;  %v6100_v13 = vpop.f32.mrb[41].mxu1  ;;  %v6441_v55 = vmax.f32 %v12364_v21, 0.0 }
 0x424   : > { %v6101_v24 = vpop.f32.mrb[42].mxu1 }
 0x425   : > { %v6585_v63 = vsel %vm13631_vm10, %v6530_v7, 0.0  ;;  %v6531_v50 = vand.u32 2147483647, %v6499_v1  ;;  %v6388_v5 = vadd.f32 %v7239_v37, %v12439_v11  ;;  %v7240_v60 = vadd.f32 %v12434_v44, %v6101_v24  ;;  %v6103_v29 = vpop.f32.mrb[43].mxu1 }
 0x426   : > { %v6586_v41 = vadd.f32 %v6585_v63, %v6584_v58 }
 0x427   : > { %v6587_v27 = vsel %vm13632_vm4, %v6531_v50, 0.0  ;;  %v6468_v16 = vmax.f32 %v6388_v5, 0.0  ;;  %v6391_v35 = vadd.f32 %v7240_v60, %v12443_v26 }
 0x428   : > { %v6588_v15 = vadd.f32 %v6587_v27, %v6586_v41 }
 0x429   : > { %v6500_v49 = vsub.f32 %v6436_v4, %v6468_v16  ;;  %v6469_v8 = vmax.f32 %v6391_v35, 0.0 }
 0x42a   : > { %v6106_v25 = vpop.f32.mrb[44].mxu1 }
 0x42b   : > { %v6532_v52 = vand.u32 2147483647, %v6500_v49  ;;  %v6501_v43 = vsub.f32 %v6437_v19, %v6469_v8  ;;  %v7241_v11 = vadd.f32 %v12434_v44, %v6106_v25  ;;  %v6108_v10 = vpop.f32.mrb[45].mxu1 }
 0x42c   : > { %v6109_v9 = vpop.f32.mrb[46].mxu1 }
 0x42d   : > { %v6589_v33 = vsel %vm13633_vm14, %v6532_v52, 0.0  ;;  %v6533_v48 = vand.u32 2147483647, %v6501_v43  ;;  %v6396_v38 = vadd.f32 %v7241_v11, %v6395_v61  ;;  %v7242_v62 = vadd.f32 %v12434_v44, %v6109_v9  ;;  %v6111_v46 = vpop.f32.mrb[47].mxu1 }
 0x42e   : > { %v6590_v26 = vadd.f32 %v6589_v33, %v6588_v15 }
 0x42f   : > { %v6591_v12 = vsel %vm13634_vm7, %v6533_v48, 0.0  ;;  %v6470_v51 = vmax.f32 %v6396_v38, 0.0  ;;  %v6399_v40 = vadd.f32 %v7242_v62, %v6398_v42 }
 0x430   : > { %v6592_v3 = vadd.f32 %v6591_v12, %v6590_v26 }
 0x431   : > { %v6502_v32 = vsub.f32 %v6438_v2, %v6470_v51  ;;  %v6471_v14 = vmax.f32 %v6399_v40, 0.0 }
 0x432   : > { %v6114_v23 = vpop.f32.mrb[48].mxu1 }
 0x433   : > { %v6534_v28 = vand.u32 2147483647, %v6502_v32  ;;  %v6503_v31 = vsub.f32 %v6439_v22, %v6471_v14  ;;  %v7243_v61 = vadd.f32 %v12434_v44, %v6114_v23  ;;  %v6116_v34 = vpop.f32.mrb[49].mxu1 }
 0x434   : > { %v6117_v36 = vpop.f32.mrb[50].mxu1 }
 0x435   : > { %v6593_v18 = vsel %vm13608_vm0, %v6534_v28, 0.0  ;;  %v6535_v30 = vand.u32 2147483647, %v6503_v31  ;;  %v6404_v59 = vadd.f32 %v7243_v61, %v12449_v57  ;;  %v7244_v0 = vadd.f32 %v12434_v44, %v6117_v36  ;;  %v6119_v42 = vpop.f32.mrb[51].mxu1 }
 0x436   : > { %v6594_v47 = vadd.f32 %v6593_v18, %v6592_v3 }
 0x437   : > { %v6595_v53 = vsel %vm13635_vm8, %v6535_v30, 0.0  ;;  %v6472_v20 = vmax.f32 %v6404_v59, 0.0  ;;  %v6407_v58 = vadd.f32 %v7244_v0, %v12453_v56 }
 0x438   : > { %v6596_v54 = vadd.f32 %v6595_v53, %v6594_v47 }
 0x439   : > { %v6504_v39 = vsub.f32 %v6440_v6, %v6472_v20  ;;  %v6473_v17 = vmax.f32 %v6407_v58, 0.0 }
 0x43b   : > { %v6536_v7 = vand.u32 2147483647, %v6504_v39  ;;  %v6505_v1 = vsub.f32 %v6441_v55, %v6473_v17 }
 0x43d   : > { %v6597_v57 = vsel %vm13636_vm6, %v6536_v7, 0.0  ;;  %v6537_v37 = vand.u32 2147483647, %v6505_v1 }
 0x43e   : > { %v6598_v44 = vadd.f32 %v6597_v57, %v6596_v54 }
 0x43f   : > { %v6599_v13 = vsel %vm13637_vm1, %v6537_v37, 0.0 }
 0x440   : > { %v6600_v24 = vadd.f32 %v6599_v13, %v6598_v44 }
 0x442   : > { %v6601_v45 = vrot.slane %v6600_v24, 4 }
 0x444   : > { %v6602_v63 = vadd.f32 %v6601_v45, %v6600_v24 }
 0x446   : > { %v6603_v50 = vrot.slane %v6602_v63, 2 }
 0x448   : > { %v6604_v5 = vadd.f32 %v6603_v50, %v6602_v63 }
 0x44a   : > { %v6605_v56 = vrot.slane %v6604_v5, 1 }
 0x44c   : > { %v6606_v60 = vadd.f32 %v6605_v56, %v6604_v5 }
 0x44e   : > { %v6622_v21 = vsel %vm6608_vm5, %v6606_v60, 0.0 }
 0x44f   : > { %6623 = vadd.xlane.f32.xlu1 %v6622_v21 }
 0x4dc   : > { %v6624_v29 = vpop.xlane.xlu1 %6623 }
 0x4dd   : > { %v6625_v41 = vrot.slane %v6624_v29, 4 }
 0x4df   : > { %v6626_v4 = vadd.f32 %v6625_v41, %v6624_v29 }
 0x4e1   : > { %v6627_v27 = vrot.slane %v6626_v4, 2 }
 0x4e3   : > { %v6628_v16 = vadd.f32 %v6627_v27, %v6626_v4 }
 0x4e5   : > { %v6629_v35 = vrot.slane %v6628_v16, 1 }
 0x4e7   : > { %v6630_v15 = vadd.f32 %v6629_v35, %v6628_v16 }
 0x4e9   : > { %7299 = vpush %v6630_v15 }
 0x51a   : > { %s7300_s21 = spop %7299 }
 0x51b   : > { %v6632_v19 = vstv %s7300_s21 }
 0x51c   : > { %6633 = vst.msk [vmem:[%s303_s20] sm:$0x1] %vm6620_vm13, %v6632_v19 }
 0x51d PF: > { %s18_s24 = sadd.s32 1, %s7450_s24  }
 0x51e   : > { %p15_p4 = scmp.ge.s32.totalorder %s18_s24, 4  }
 0x520   :  { %17 = sbr.rel (!%p15_p4) target bundleno = 1 (0x1), region = 92 }

</bundles_post_ra>
